<compile_context>
chip_gen: v7x
topology: tpu7x:2x2x1
jax: 0.10.0
libtpu: 0.0.40
codegen_flags: <defaults>
</compile_context>

<pallas_src>
import functools

import jax
import jax.numpy as jnp
from jax import lax
from jax.experimental import pallas as pl
from jax.experimental.pallas import tpu as pltpu


_PADL = 8  # left halo offset inside the padded VMEM scratches (sublane aligned)


def _largest_divisor(n, cap):
    for d in range(min(n, cap), 0, -1):
        if n % d == 0:
            return d
    return 1


# ---------------------------------------------------------------------------
# Pallas kernels
# ---------------------------------------------------------------------------
def deconv2x2_kernel(x_ref, w_ref, b_ref, o_ref):
    """One row-tile of ConvTranspose2d(k=2, s=2) for one output row phase di.

    x_ref: (TH, W, Cin)     input row tile
    w_ref: (Cin, 2*Cout)    taps (di, 0) and (di, 1) packed along lanes
    b_ref: (1, 2*Cout)
    o_ref: (TH, W, 2*Cout)  block of the (B, H, 2, W, 2*Cout) output, which is
                            a free (row-major) reshape of (B, 2H, 2W, Cout).
    """
    th, w, cin = x_ref.shape
    acc = jnp.dot(x_ref[...].reshape(th * w, cin), w_ref[...],
                  preferred_element_type=jnp.float32) + b_ref[...]
    o_ref[...] = acc.reshape(th, w, -1).astype(o_ref.dtype)


def fused_up_block_kernel(slope, up_ref, br_ref,
                          w1u_ref, w1b_ref, b1_ref,
                          w2_ref, b2_ref,
                          widu_ref, widb_ref, bid_ref,
                          o_ref, up_pad, br_pad, h1_pad):
    """conv_1 + LReLU + conv_2 + LReLU + identity(1x1) + add, fully fused.

    The channel concat of [up, bridge] is never materialized: conv_1 and the
    1x1 identity conv are split into an `up` part and a `bridge` part.
    Zero padding for both 3x3 convs happens in VMEM scratch inside the kernel.
    """
    H2, W2, Cout = o_ref.shape
    Cu = up_ref.shape[-1]
    Cbr = br_ref.shape[-1]
    M = H2 * W2

    # ---- in-kernel zero padding (replaces wrapper-side jnp.pad) -----------
    up_pad[...] = jnp.zeros_like(up_pad)
    br_pad[...] = jnp.zeros_like(br_pad)
    h1_pad[...] = jnp.zeros_like(h1_pad)
    up_pad[1:H2 + 1, _PADL:_PADL + W2, :] = up_ref[...]
    br_pad[1:H2 + 1, _PADL:_PADL + W2, :] = br_ref[...]

    upv = up_pad[...]
    brv = br_pad[...]

    # ---- conv_1 (3x3, pad=1) + bias + LeakyReLU ----------------------------
    acc1 = jnp.zeros((M, Cout), jnp.float32)
    for kh in range(3):
        for kw in range(3):
            t = kh * 3 + kw
            c0 = _PADL - 1 + kw
            uw = upv[kh:kh + H2, c0:c0 + W2, :].reshape(M, Cu)
            bw = brv[kh:kh + H2, c0:c0 + W2, :].reshape(M, Cbr)
            acc1 = acc1 + jnp.dot(uw, w1u_ref[t],
                                  preferred_element_type=jnp.float32)
            acc1 = acc1 + jnp.dot(bw, w1b_ref[t],
                                  preferred_element_type=jnp.float32)
    acc1 = acc1 + b1_ref[...]
    h1 = jnp.where(acc1 >= 0, acc1, slope * acc1)
    h1_pad[1:H2 + 1, _PADL:_PADL + W2, :] = h1.reshape(H2, W2, Cout)

    # ---- identity 1x1 conv on concat([up, bridge]) (tiles already in VMEM) -
    ident = (jnp.dot(up_ref[...].reshape(M, Cu), widu_ref[...],
                     preferred_element_type=jnp.float32)
             + jnp.dot(br_ref[...].reshape(M, Cbr), widb_ref[...],
                       preferred_element_type=jnp.float32)
             + bid_ref[...])

    # ---- conv_2 (3x3, pad=1) + bias + LeakyReLU + residual add -------------
    h1v = h1_pad[...]
    acc2 = jnp.zeros((M, Cout), jnp.float32)
    for kh in range(3):
        for kw in range(3):
            t = kh * 3 + kw
            c0 = _PADL - 1 + kw
            hw = h1v[kh:kh + H2, c0:c0 + W2, :].reshape(M, Cout)
            acc2 = acc2 + jnp.dot(hw, w2_ref[t],
                                  preferred_element_type=jnp.float32)
    acc2 = acc2 + b2_ref[...]
    h2 = jnp.where(acc2 >= 0, acc2, slope * acc2)

    o_ref[...] = (h2 + ident).reshape(H2, W2, Cout).astype(o_ref.dtype)


# ---------------------------------------------------------------------------
# Wrappers around pallas_call
# ---------------------------------------------------------------------------
def conv_transpose_2x2(x_nhwc, w_up, b_up):
    """ConvTranspose2d(k=2, s=2, bias=True).  w_up: (Cin, 2, 2, Cout).

    The kernel writes into a (B, H, 2, W, 2*Cout) array whose row-major
    reshape IS the interleaved (B, 2H, 2W, Cout) result -> no XLA transpose.
    """
    B, H, W, Cin = x_nhwc.shape
    Cout = w_up.shape[-1]
    # w_k[di, c, dj*Cout + o] = w_up[c, di, dj, o]
    w_k = jnp.transpose(w_up, (1, 0, 2, 3)).reshape(2, Cin, 2 * Cout)
    b_k = jnp.tile(b_up, 2).reshape(1, 2 * Cout)
    TH = _largest_divisor(H, 64)
    up6 = pl.pallas_call(
        deconv2x2_kernel,
        out_shape=jax.ShapeDtypeStruct((B, H, 2, W, 2 * Cout), x_nhwc.dtype),
        grid=(B, H // TH, 2),
        in_specs=[
            pl.BlockSpec((None, TH, W, Cin), lambda b, h, d: (b, h, 0, 0)),
            pl.BlockSpec((None, Cin, 2 * Cout), lambda b, h, d: (d, 0, 0)),
            pl.BlockSpec((1, 2 * Cout), lambda b, h, d: (0, 0)),
        ],
        out_specs=pl.BlockSpec((None, TH, None, W, 2 * Cout),
                               lambda b, h, d: (b, h, d, 0, 0)),
        compiler_params=pltpu.CompilerParams(
            dimension_semantics=("parallel", "parallel", "arbitrary")),
    )(x_nhwc, w_k, b_k)
    return up6.reshape(B, 2 * H, 2 * W, Cout)   # contiguous: no data movement


@functools.partial(jax.jit, static_argnames=("relu_slope",))
def unet_up_block(x_nchw, bridge_nchw, params, *, relu_slope=0.2):
    """UNetUpBlock.forward.  Inputs/outputs NCHW (PyTorch convention)."""
    x = jnp.transpose(x_nchw, (0, 2, 3, 1))             # -> NHWC
    bridge = jnp.transpose(bridge_nchw, (0, 2, 3, 1))   # -> NHWC

    up = conv_transpose_2x2(x, params["w_up"], params["b_up"])

    B, H2, W2, Cu = up.shape
    Cbr = bridge.shape[-1]
    Cout = params["w1"].shape[-1]

    # Split conv_1 / identity weights along the cat channel axis so the
    # channel concat never has to be materialized anywhere.
    w1 = params["w1"]                                    # (3, 3, Cu+Cbr, Cout)
    w1u = w1[:, :, :Cu, :].reshape(9, Cu, Cout)
    w1b = w1[:, :, Cu:, :].reshape(9, Cbr, Cout)
    w2 = params["w2"].reshape(9, Cout, Cout)
    b1 = params["b1"].reshape(1, Cout)
    b2 = params["b2"].reshape(1, Cout)
    widu = params["w_id"][:Cu, :]
    widb = params["w_id"][Cu:, :]
    bid = params["b_id"].reshape(1, Cout)

    pad_cols = W2 + 2 * _PADL
    scratch_bytes = 4 * (H2 + 2) * pad_cols * (Cu + Cbr + Cout)
    block_bytes = 4 * H2 * W2 * (Cu + Cbr + Cout)
    vmem_limit = int(min(64 * 2 ** 20,
                         max(16 * 2 ** 20,
                             3 * (scratch_bytes + 2 * block_bytes))))

    # TODO(synk): add a spatial (row-tile + halo) grid axis so the padded VMEM
    # scratches stay under v7x's 64 MiB at full UNet resolutions.
    out = pl.pallas_call(
        functools.partial(fused_up_block_kernel, relu_slope),
        out_shape=jax.ShapeDtypeStruct((B, H2, W2, Cout), x.dtype),
        grid=(B,),
        in_specs=[
            pl.BlockSpec((None, H2, W2, Cu), lambda b: (b, 0, 0, 0)),
            pl.BlockSpec((None, H2, W2, Cbr), lambda b: (b, 0, 0, 0)),
            pl.BlockSpec((9, Cu, Cout), lambda b: (0, 0, 0)),
            pl.BlockSpec((9, Cbr, Cout), lambda b: (0, 0, 0)),
            pl.BlockSpec((1, Cout), lambda b: (0, 0)),
            pl.BlockSpec((9, Cout, Cout), lambda b: (0, 0, 0)),
            pl.BlockSpec((1, Cout), lambda b: (0, 0)),
            pl.BlockSpec((Cu, Cout), lambda b: (0, 0)),
            pl.BlockSpec((Cbr, Cout), lambda b: (0, 0)),
            pl.BlockSpec((1, Cout), lambda b: (0, 0)),
        ],
        out_specs=pl.BlockSpec((None, H2, W2, Cout), lambda b: (b, 0, 0, 0)),
        scratch_shapes=[
            pltpu.VMEM((H2 + 2, pad_cols, Cu), jnp.float32),    # padded up
            pltpu.VMEM((H2 + 2, pad_cols, Cbr), jnp.float32),   # padded bridge
            pltpu.VMEM((H2 + 2, pad_cols, Cout), jnp.float32),  # padded h1
        ],
        compiler_params=pltpu.CompilerParams(
            dimension_semantics=("parallel",),
            vmem_limit_bytes=vmem_limit),
    )(up, bridge, w1u, w1b, b1, w2, b2, widu, widb, bid)

    return jnp.transpose(out, (0, 3, 1, 2))              # -> NCHW


# ---------------------------------------------------------------------------
# Parameter init + pure-JAX reference + test
# ---------------------------------------------------------------------------
def init_params(key, in_size, out_size):
    ks = jax.random.split(key, 8)
    s = 0.1
    return {
        # ConvTranspose2d(in_size, out_size, 2, 2): (Cin, kh, kw, Cout)
        "w_up": s * jax.random.normal(ks[0], (in_size, 2, 2, out_size), jnp.float32),
        "b_up": s * jax.random.normal(ks[1], (out_size,), jnp.float32),
        # conv_1: Conv2d(in_size, out_size, 3, pad=1): (kh, kw, Cin, Cout)
        "w1": s * jax.random.normal(ks[2], (3, 3, in_size, out_size), jnp.float32),
        "b1": s * jax.random.normal(ks[3], (out_size,), jnp.float32),
        # conv_2: Conv2d(out_size, out_size, 3, pad=1)
        "w2": s * jax.random.normal(ks[4], (3, 3, out_size, out_size), jnp.float32),
        "b2": s * jax.random.normal(ks[5], (out_size,), jnp.float32),
        # identity: Conv2d(in_size, out_size, 1)
        "w_id": s * jax.random.normal(ks[6], (in_size, out_size), jnp.float32),
        "b_id": s * jax.random.normal(ks[7], (out_size,), jnp.float32),
    }


def reference(x_nchw, bridge_nchw, params, relu_slope):
    x = jnp.transpose(x_nchw, (0, 2, 3, 1))
    bridge = jnp.transpose(bridge_nchw, (0, 2, 3, 1))
    B, H, W, _ = x.shape
    Cout = params["w_up"].shape[-1]
    up = jnp.einsum("bhwc,cdeo->bhwdeo", x, params["w_up"])
    up = up.transpose(0, 1, 3, 2, 4, 5).reshape(B, 2 * H, 2 * W, Cout) + params["b_up"]
    cat = jnp.concatenate([up, bridge], axis=-1)

    def c3(v, w, b):
        return lax.conv_general_dilated(v, w, (1, 1), "SAME",
                                        dimension_numbers=("NHWC", "HWIO", "NHWC")) + b

    def lrelu(v):
        return jnp.where(v >= 0, v, relu_slope * v)

    r1 = lrelu(c3(cat, params["w1"], params["b1"]))
    r2 = lrelu(c3(r1, params["w2"], params["b2"]))
    rid = jnp.einsum("bhwc,co->bhwo", cat, params["w_id"]) + params["b_id"]
    return jnp.transpose(r2 + rid, (0, 3, 1, 2))


if __name__ == "__main__":
    B, in_size, out_size = 2, 8, 4
    H = W = 8                      # x spatial; bridge spatial = 2H x 2W
    relu_slope = 0.2

    key = jax.random.PRNGKey(0)
    k_x, k_b, k_p = jax.random.split(key, 3)
    x = jax.random.normal(k_x, (B, in_size, H, W), jnp.float32)        # NCHW
    bridge = jax.random.normal(k_b, (B, out_size, 2 * H, 2 * W), jnp.float32)
    params = init_params(k_p, in_size, out_size)

    out = unet_up_block(x, bridge, params, relu_slope=relu_slope)
    out = jax.block_until_ready(out)

    ref = reference(x, bridge, params, relu_slope)
    assert out.shape == (B, out_size, 2 * H, 2 * W), out.shape
    err = float(jnp.max(jnp.abs(out - ref)))
    assert jnp.allclose(out, ref, atol=1e-4, rtol=1e-4), err

    print("KERNEL_OK")
</pallas_src>

<mosaic_0001>
module attributes {stable_mosaic.version = 11 : i64} {
  func.func @deconv2x2_kernel(%arg0: i32, %arg1: i32, %arg2: i32, %arg3: memref<1x8x8x8xf32, #tpu.memory_space<vmem>>, %arg4: memref<1x8x8xf32, #tpu.memory_space<vmem>>, %arg5: memref<1x8xf32, #tpu.memory_space<vmem>>, %arg6: memref<1x8x1x8x8xf32, #tpu.memory_space<vmem>>) attributes {dimension_semantics = [#tpu.dimension_semantics<parallel>, #tpu.dimension_semantics<parallel>, #tpu.dimension_semantics<arbitrary>], iteration_bounds = array<i64: 2, 1, 2>, scalar_prefetch = 0 : i64, scratch_operands = 0 : i64, tpu.core_type = #tpu.core_type<tc>, window_params = [{transform_indices = @transform_0, window_bounds = array<i64: 1, 8, 8, 8>}, {transform_indices = @transform_1, window_bounds = array<i64: 1, 8, 8>}, {pipeline_mode = #tpu.pipeline_mode<synchronous>, transform_indices = @transform_2, window_bounds = array<i64: 1, 8>}, {transform_indices = @transform_3, window_bounds = array<i64: 1, 8, 1, 8, 8>}]} {
    %c0 = arith.constant 0 : index
    %c0_0 = arith.constant 0 : index
    %c0_1 = arith.constant 0 : index
    %c0_2 = arith.constant 0 : index
    %0 = vector.load %arg3[%c0, %c0_0, %c0_1, %c0_2] : memref<1x8x8x8xf32, #tpu.memory_space<vmem>>, vector<1x8x8x8xf32>
    %1 = vector.shape_cast %0 : vector<1x8x8x8xf32> to vector<8x8x8xf32>
    %2 = vector.shape_cast %1 : vector<8x8x8xf32> to vector<64x8xf32>
    %c0_3 = arith.constant 0 : index
    %c0_4 = arith.constant 0 : index
    %c0_5 = arith.constant 0 : index
    %3 = vector.load %arg4[%c0_3, %c0_4, %c0_5] : memref<1x8x8xf32, #tpu.memory_space<vmem>>, vector<1x8x8xf32>
    %4 = vector.shape_cast %3 : vector<1x8x8xf32> to vector<8x8xf32>
    %cst = arith.constant dense<0.000000e+00> : vector<64x8xf32>
    %5 = tpu.matmul %2, %4, %cst {dimension_numbers = #tpu.dot_dimension_numbers<[1], [0], [0], [1], [0, 0, 1, 1], [], []>} : vector<64x8xf32>, vector<8x8xf32>, vector<64x8xf32> -> vector<64x8xf32>
    %c0_6 = arith.constant 0 : index
    %c0_7 = arith.constant 0 : index
    %6 = vector.load %arg5[%c0_6, %c0_7] : memref<1x8xf32, #tpu.memory_space<vmem>>, vector<1x8xf32>
    %7 = vector.broadcast %6 : vector<1x8xf32> to vector<64x8xf32>
    %8 = arith.addf %5, %7 : vector<64x8xf32>
    %9 = vector.shape_cast %8 : vector<64x8xf32> to vector<8x8x8xf32>
    %c0_8 = arith.constant 0 : index
    %c0_9 = arith.constant 0 : index
    %c0_10 = arith.constant 0 : index
    %c0_11 = arith.constant 0 : index
    %c0_12 = arith.constant 0 : index
    %10 = vector.load %arg6[%c0_8, %c0_9, %c0_10, %c0_11, %c0_12] : memref<1x8x1x8x8xf32, #tpu.memory_space<vmem>>, vector<1x8x1x8x8xf32>
    %11 = vector.shape_cast %10 : vector<1x8x1x8x8xf32> to vector<8x8x8xf32>
    %12 = vector.shape_cast %9 : vector<8x8x8xf32> to vector<1x8x1x8x8xf32>
    tpu.vector_store %arg6[%c0_8, %c0_9, %c0_10, %c0_11, %c0_12], %12 {strides = array<i32>} : memref<1x8x1x8x8xf32, #tpu.memory_space<vmem>>, vector<1x8x1x8x8xf32>,
    return
  }
  func.func @transform_0(%arg0: i32, %arg1: i32, %arg2: i32) -> (i32, i32, i32, i32) {
    %c0_i32 = arith.constant 0 : i32
    %c0_i32_0 = arith.constant 0 : i32
    %c0_i32_1 = arith.constant 0 : i32
    return %arg0, %arg1, %c0_i32, %c0_i32_0 : i32, i32, i32, i32
  }
  func.func @transform_1(%arg0: i32, %arg1: i32, %arg2: i32) -> (i32, i32, i32) {
    %c0_i32 = arith.constant 0 : i32
    %c0_i32_0 = arith.constant 0 : i32
    %c0_i32_1 = arith.constant 0 : i32
    return %arg2, %c0_i32, %c0_i32_0 : i32, i32, i32
  }
  func.func @transform_2(%arg0: i32, %arg1: i32, %arg2: i32) -> (i32, i32) {
    %c0_i32 = arith.constant 0 : i32
    %c0_i32_0 = arith.constant 0 : i32
    %c0_i32_1 = arith.constant 0 : i32
    return %c0_i32, %c0_i32_0 : i32, i32
  }
  func.func @transform_3(%arg0: i32, %arg1: i32, %arg2: i32) -> (i32, i32, i32, i32, i32) {
    %c0_i32 = arith.constant 0 : i32
    %c0_i32_0 = arith.constant 0 : i32
    %c0_i32_1 = arith.constant 0 : i32
    return %arg0, %arg1, %arg2, %c0_i32, %c0_i32_0 : i32, i32, i32, i32, i32
  }
}

module attributes {stable_mosaic.version = 11 : i64} {
  func.func @fused_up_block_kernel(%arg0: i32, %arg1: memref<1x16x16x4xf32, #tpu.memory_space<vmem>>, %arg2: memref<1x16x16x4xf32, #tpu.memory_space<vmem>>, %arg3: memref<9x4x4xf32, #tpu.memory_space<vmem>>, %arg4: memref<9x4x4xf32, #tpu.memory_space<vmem>>, %arg5: memref<1x4xf32, #tpu.memory_space<vmem>>, %arg6: memref<9x4x4xf32, #tpu.memory_space<vmem>>, %arg7: memref<1x4xf32, #tpu.memory_space<vmem>>, %arg8: memref<4x4xf32, #tpu.memory_space<vmem>>, %arg9: memref<4x4xf32, #tpu.memory_space<vmem>>, %arg10: memref<1x4xf32, #tpu.memory_space<vmem>>, %arg11: memref<1x16x16x4xf32, #tpu.memory_space<vmem>>, %arg12: memref<18x32x4xf32, #tpu.memory_space<vmem>>, %arg13: memref<18x32x4xf32, #tpu.memory_space<vmem>>, %arg14: memref<18x32x4xf32, #tpu.memory_space<vmem>>) attributes {dimension_semantics = [#tpu.dimension_semantics<parallel>], iteration_bounds = array<i64: 2>, scalar_prefetch = 0 : i64, scratch_operands = 3 : i64, tpu.core_type = #tpu.core_type<tc>, window_params = [{transform_indices = @transform_0, window_bounds = array<i64: 1, 16, 16, 4>}, {transform_indices = @transform_1, window_bounds = array<i64: 1, 16, 16, 4>}, {pipeline_mode = #tpu.pipeline_mode<synchronous>, transform_indices = @transform_2, window_bounds = array<i64: 9, 4, 4>}, {pipeline_mode = #tpu.pipeline_mode<synchronous>, transform_indices = @transform_3, window_bounds = array<i64: 9, 4, 4>}, {pipeline_mode = #tpu.pipeline_mode<synchronous>, transform_indices = @transform_4, window_bounds = array<i64: 1, 4>}, {pipeline_mode = #tpu.pipeline_mode<synchronous>, transform_indices = @transform_5, window_bounds = array<i64: 9, 4, 4>}, {pipeline_mode = #tpu.pipeline_mode<synchronous>, transform_indices = @transform_6, window_bounds = array<i64: 1, 4>}, {pipeline_mode = #tpu.pipeline_mode<synchronous>, transform_indices = @transform_7, window_bounds = array<i64: 4, 4>}, {pipeline_mode = #tpu.pipeline_mode<synchronous>, transform_indices = @transform_8, window_bounds = array<i64: 4, 4>}, {pipeline_mode = #tpu.pipeline_mode<synchronous>, transform_indices = @transform_9, window_bounds = array<i64: 1, 4>}, {transform_indices = @transform_10, window_bounds = array<i64: 1, 16, 16, 4>}]} {
    %cst = arith.constant 0.000000e+00 : f32
    %0 = vector.broadcast %cst : f32 to vector<18x32x4xf32>
    %c0 = arith.constant 0 : index
    %c0_0 = arith.constant 0 : index
    %c0_1 = arith.constant 0 : index
    %1 = vector.load %arg12[%c0, %c0_0, %c0_1] : memref<18x32x4xf32, #tpu.memory_space<vmem>>, vector<18x32x4xf32>
    tpu.vector_store %arg12[%c0, %c0_0, %c0_1], %0 {strides = array<i32>} : memref<18x32x4xf32, #tpu.memory_space<vmem>>, vector<18x32x4xf32>,
    %cst_2 = arith.constant 0.000000e+00 : f32
    %2 = vector.broadcast %cst_2 : f32 to vector<18x32x4xf32>
    %c0_3 = arith.constant 0 : index
    %c0_4 = arith.constant 0 : index
    %c0_5 = arith.constant 0 : index
    %3 = vector.load %arg13[%c0_3, %c0_4, %c0_5] : memref<18x32x4xf32, #tpu.memory_space<vmem>>, vector<18x32x4xf32>
    tpu.vector_store %arg13[%c0_3, %c0_4, %c0_5], %2 {strides = array<i32>} : memref<18x32x4xf32, #tpu.memory_space<vmem>>, vector<18x32x4xf32>,
    %cst_6 = arith.constant 0.000000e+00 : f32
    %4 = vector.broadcast %cst_6 : f32 to vector<18x32x4xf32>
    %c0_7 = arith.constant 0 : index
    %c0_8 = arith.constant 0 : index
    %c0_9 = arith.constant 0 : index
    %5 = vector.load %arg14[%c0_7, %c0_8, %c0_9] : memref<18x32x4xf32, #tpu.memory_space<vmem>>, vector<18x32x4xf32>
    tpu.vector_store %arg14[%c0_7, %c0_8, %c0_9], %4 {strides = array<i32>} : memref<18x32x4xf32, #tpu.memory_space<vmem>>, vector<18x32x4xf32>,
    %c0_10 = arith.constant 0 : index
    %c0_11 = arith.constant 0 : index
    %c0_12 = arith.constant 0 : index
    %c0_13 = arith.constant 0 : index
    %6 = vector.load %arg1[%c0_10, %c0_11, %c0_12, %c0_13] : memref<1x16x16x4xf32, #tpu.memory_space<vmem>>, vector<1x16x16x4xf32>
    %7 = vector.shape_cast %6 : vector<1x16x16x4xf32> to vector<16x16x4xf32>
    %c1 = arith.constant 1 : index
    %c8 = arith.constant 8 : index
    %c0_14 = arith.constant 0 : index
    %8 = vector.load %arg12[%c1, %c8, %c0_14] : memref<18x32x4xf32, #tpu.memory_space<vmem>>, vector<16x16x4xf32>
    tpu.vector_store %arg12[%c1, %c8, %c0_14], %7 {strides = array<i32>} : memref<18x32x4xf32, #tpu.memory_space<vmem>>, vector<16x16x4xf32>,
    %c0_15 = arith.constant 0 : index
    %c0_16 = arith.constant 0 : index
    %c0_17 = arith.constant 0 : index
    %c0_18 = arith.constant 0 : index
    %9 = vector.load %arg2[%c0_15, %c0_16, %c0_17, %c0_18] : memref<1x16x16x4xf32, #tpu.memory_space<vmem>>, vector<1x16x16x4xf32>
    %10 = vector.shape_cast %9 : vector<1x16x16x4xf32> to vector<16x16x4xf32>
    %c1_19 = arith.constant 1 : index
    %c8_20 = arith.constant 8 : index
    %c0_21 = arith.constant 0 : index
    %11 = vector.load %arg13[%c1_19, %c8_20, %c0_21] : memref<18x32x4xf32, #tpu.memory_space<vmem>>, vector<16x16x4xf32>
    tpu.vector_store %arg13[%c1_19, %c8_20, %c0_21], %10 {strides = array<i32>} : memref<18x32x4xf32, #tpu.memory_space<vmem>>, vector<16x16x4xf32>,
    %c0_22 = arith.constant 0 : index
    %c0_23 = arith.constant 0 : index
    %c0_24 = arith.constant 0 : index
    %12 = vector.load %arg12[%c0_22, %c0_23, %c0_24] : memref<18x32x4xf32, #tpu.memory_space<vmem>>, vector<18x32x4xf32>
    %c0_25 = arith.constant 0 : index
    %c0_26 = arith.constant 0 : index
    %c0_27 = arith.constant 0 : index
    %13 = vector.load %arg13[%c0_25, %c0_26, %c0_27] : memref<18x32x4xf32, #tpu.memory_space<vmem>>, vector<18x32x4xf32>
    %cst_28 = arith.constant 0.000000e+00 : f32
    %14 = vector.broadcast %cst_28 : f32 to vector<256x4xf32>
    %15 = vector.extract_strided_slice %12 {offsets = [0, 7, 0], sizes = [16, 16, 4], strides = [1, 1, 1]} : vector<18x32x4xf32> to vector<16x16x4xf32>
    %16 = vector.shape_cast %15 : vector<16x16x4xf32> to vector<256x4xf32>
    %17 = vector.extract_strided_slice %13 {offsets = [0, 7, 0], sizes = [16, 16, 4], strides = [1, 1, 1]} : vector<18x32x4xf32> to vector<16x16x4xf32>
    %18 = vector.shape_cast %17 : vector<16x16x4xf32> to vector<256x4xf32>
    %c0_29 = arith.constant 0 : index
    %c0_30 = arith.constant 0 : index
    %c0_31 = arith.constant 0 : index
    %19 = vector.load %arg3[%c0_29, %c0_30, %c0_31] : memref<9x4x4xf32, #tpu.memory_space<vmem>>, vector<1x4x4xf32>
    %20 = vector.shape_cast %19 : vector<1x4x4xf32> to vector<4x4xf32>
    %cst_32 = arith.constant dense<0.000000e+00> : vector<256x4xf32>
    %21 = tpu.matmul %16, %20, %cst_32 {dimension_numbers = #tpu.dot_dimension_numbers<[1], [0], [0], [1], [0, 0, 1, 1], [], []>} : vector<256x4xf32>, vector<4x4xf32>, vector<256x4xf32> -> vector<256x4xf32>
    %22 = arith.addf %14, %21 : vector<256x4xf32>
    %c0_33 = arith.constant 0 : index
    %c0_34 = arith.constant 0 : index
    %c0_35 = arith.constant 0 : index
    %23 = vector.load %arg4[%c0_33, %c0_34, %c0_35] : memref<9x4x4xf32, #tpu.memory_space<vmem>>, vector<1x4x4xf32>
    %24 = vector.shape_cast %23 : vector<1x4x4xf32> to vector<4x4xf32>
    %cst_36 = arith.constant dense<0.000000e+00> : vector<256x4xf32>
    %25 = tpu.matmul %18, %24, %cst_36 {dimension_numbers = #tpu.dot_dimension_numbers<[1], [0], [0], [1], [0, 0, 1, 1], [], []>} : vector<256x4xf32>, vector<4x4xf32>, vector<256x4xf32> -> vector<256x4xf32>
    %26 = arith.addf %22, %25 : vector<256x4xf32>
    %27 = vector.extract_strided_slice %12 {offsets = [0, 8, 0], sizes = [16, 16, 4], strides = [1, 1, 1]} : vector<18x32x4xf32> to vector<16x16x4xf32>
    %28 = vector.shape_cast %27 : vector<16x16x4xf32> to vector<256x4xf32>
    %29 = vector.extract_strided_slice %13 {offsets = [0, 8, 0], sizes = [16, 16, 4], strides = [1, 1, 1]} : vector<18x32x4xf32> to vector<16x16x4xf32>
    %30 = vector.shape_cast %29 : vector<16x16x4xf32> to vector<256x4xf32>
    %c1_37 = arith.constant 1 : index
    %c0_38 = arith.constant 0 : index
    %c0_39 = arith.constant 0 : index
    %31 = vector.load %arg3[%c1_37, %c0_38, %c0_39] : memref<9x4x4xf32, #tpu.memory_space<vmem>>, vector<1x4x4xf32>
    %32 = vector.shape_cast %31 : vector<1x4x4xf32> to vector<4x4xf32>
    %cst_40 = arith.constant dense<0.000000e+00> : vector<256x4xf32>
    %33 = tpu.matmul %28, %32, %cst_40 {dimension_numbers = #tpu.dot_dimension_numbers<[1], [0], [0], [1], [0, 0, 1, 1], [], []>} : vector<256x4xf32>, vector<4x4xf32>, vector<256x4xf32> -> vector<256x4xf32>
    %34 = arith.addf %26, %33 : vector<256x4xf32>
    %c1_41 = arith.constant 1 : index
    %c0_42 = arith.constant 0 : index
    %c0_43 = arith.constant 0 : index
    %35 = vector.load %arg4[%c1_41, %c0_42, %c0_43] : memref<9x4x4xf32, #tpu.memory_space<vmem>>, vector<1x4x4xf32>
    %36 = vector.shape_cast %35 : vector<1x4x4xf32> to vector<4x4xf32>
    %cst_44 = arith.constant dense<0.000000e+00> : vector<256x4xf32>
    %37 = tpu.matmul %30, %36, %cst_44 {dimension_numbers = #tpu.dot_dimension_numbers<[1], [0], [0], [1], [0, 0, 1, 1], [], []>} : vector<256x4xf32>, vector<4x4xf32>, vector<256x4xf32> -> vector<256x4xf32>
    %38 = arith.addf %34, %37 : vector<256x4xf32>
    %39 = vector.extract_strided_slice %12 {offsets = [0, 9, 0], sizes = [16, 16, 4], strides = [1, 1, 1]} : vector<18x32x4xf32> to vector<16x16x4xf32>
    %40 = vector.shape_cast %39 : vector<16x16x4xf32> to vector<256x4xf32>
    %41 = vector.extract_strided_slice %13 {offsets = [0, 9, 0], sizes = [16, 16, 4], strides = [1, 1, 1]} : vector<18x32x4xf32> to vector<16x16x4xf32>
    %42 = vector.shape_cast %41 : vector<16x16x4xf32> to vector<256x4xf32>
    %c2 = arith.constant 2 : index
    %c0_45 = arith.constant 0 : index
    %c0_46 = arith.constant 0 : index
    %43 = vector.load %arg3[%c2, %c0_45, %c0_46] : memref<9x4x4xf32, #tpu.memory_space<vmem>>, vector<1x4x4xf32>
    %44 = vector.shape_cast %43 : vector<1x4x4xf32> to vector<4x4xf32>
    %cst_47 = arith.constant dense<0.000000e+00> : vector<256x4xf32>
    %45 = tpu.matmul %40, %44, %cst_47 {dimension_numbers = #tpu.dot_dimension_numbers<[1], [0], [0], [1], [0, 0, 1, 1], [], []>} : vector<256x4xf32>, vector<4x4xf32>, vector<256x4xf32> -> vector<256x4xf32>
    %46 = arith.addf %38, %45 : vector<256x4xf32>
    %c2_48 = arith.constant 2 : index
    %c0_49 = arith.constant 0 : index
    %c0_50 = arith.constant 0 : index
    %47 = vector.load %arg4[%c2_48, %c0_49, %c0_50] : memref<9x4x4xf32, #tpu.memory_space<vmem>>, vector<1x4x4xf32>
    %48 = vector.shape_cast %47 : vector<1x4x4xf32> to vector<4x4xf32>
    %cst_51 = arith.constant dense<0.000000e+00> : vector<256x4xf32>
    %49 = tpu.matmul %42, %48, %cst_51 {dimension_numbers = #tpu.dot_dimension_numbers<[1], [0], [0], [1], [0, 0, 1, 1], [], []>} : vector<256x4xf32>, vector<4x4xf32>, vector<256x4xf32> -> vector<256x4xf32>
    %50 = arith.addf %46, %49 : vector<256x4xf32>
    %51 = vector.extract_strided_slice %12 {offsets = [1, 7, 0], sizes = [16, 16, 4], strides = [1, 1, 1]} : vector<18x32x4xf32> to vector<16x16x4xf32>
    %52 = vector.shape_cast %51 : vector<16x16x4xf32> to vector<256x4xf32>
    %53 = vector.extract_strided_slice %13 {offsets = [1, 7, 0], sizes = [16, 16, 4], strides = [1, 1, 1]} : vector<18x32x4xf32> to vector<16x16x4xf32>
    %54 = vector.shape_cast %53 : vector<16x16x4xf32> to vector<256x4xf32>
    %c3 = arith.constant 3 : index
    %c0_52 = arith.constant 0 : index
    %c0_53 = arith.constant 0 : index
    %55 = vector.load %arg3[%c3, %c0_52, %c0_53] : memref<9x4x4xf32, #tpu.memory_space<vmem>>, vector<1x4x4xf32>
    %56 = vector.shape_cast %55 : vector<1x4x4xf32> to vector<4x4xf32>
    %cst_54 = arith.constant dense<0.000000e+00> : vector<256x4xf32>
    %57 = tpu.matmul %52, %56, %cst_54 {dimension_numbers = #tpu.dot_dimension_numbers<[1], [0], [0], [1], [0, 0, 1, 1], [], []>} : vector<256x4xf32>, vector<4x4xf32>, vector<256x4xf32> -> vector<256x4xf32>
    %58 = arith.addf %50, %57 : vector<256x4xf32>
    %c3_55 = arith.constant 3 : index
    %c0_56 = arith.constant 0 : index
    %c0_57 = arith.constant 0 : index
    %59 = vector.load %arg4[%c3_55, %c0_56, %c0_57] : memref<9x4x4xf32, #tpu.memory_space<vmem>>, vector<1x4x4xf32>
    %60 = vector.shape_cast %59 : vector<1x4x4xf32> to vector<4x4xf32>
    %cst_58 = arith.constant dense<0.000000e+00> : vector<256x4xf32>
    %61 = tpu.matmul %54, %60, %cst_58 {dimension_numbers = #tpu.dot_dimension_numbers<[1], [0], [0], [1], [0, 0, 1, 1], [], []>} : vector<256x4xf32>, vector<4x4xf32>, vector<256x4xf32> -> vector<256x4xf32>
    %62 = arith.addf %58, %61 : vector<256x4xf32>
    %63 = vector.extract_strided_slice %12 {offsets = [1, 8, 0], sizes = [16, 16, 4], strides = [1, 1, 1]} : vector<18x32x4xf32> to vector<16x16x4xf32>
    %64 = vector.shape_cast %63 : vector<16x16x4xf32> to vector<256x4xf32>
    %65 = vector.extract_strided_slice %13 {offsets = [1, 8, 0], sizes = [16, 16, 4], strides = [1, 1, 1]} : vector<18x32x4xf32> to vector<16x16x4xf32>
    %66 = vector.shape_cast %65 : vector<16x16x4xf32> to vector<256x4xf32>
    %c4 = arith.constant 4 : index
    %c0_59 = arith.constant 0 : index
    %c0_60 = arith.constant 0 : index
    %67 = vector.load %arg3[%c4, %c0_59, %c0_60] : memref<9x4x4xf32, #tpu.memory_space<vmem>>, vector<1x4x4xf32>
    %68 = vector.shape_cast %67 : vector<1x4x4xf32> to vector<4x4xf32>
    %cst_61 = arith.constant dense<0.000000e+00> : vector<256x4xf32>
    %69 = tpu.matmul %64, %68, %cst_61 {dimension_numbers = #tpu.dot_dimension_numbers<[1], [0], [0], [1], [0, 0, 1, 1], [], []>} : vector<256x4xf32>, vector<4x4xf32>, vector<256x4xf32> -> vector<256x4xf32>
    %70 = arith.addf %62, %69 : vector<256x4xf32>
    %c4_62 = arith.constant 4 : index
    %c0_63 = arith.constant 0 : index
    %c0_64 = arith.constant 0 : index
    %71 = vector.load %arg4[%c4_62, %c0_63, %c0_64] : memref<9x4x4xf32, #tpu.memory_space<vmem>>, vector<1x4x4xf32>
    %72 = vector.shape_cast %71 : vector<1x4x4xf32> to vector<4x4xf32>
    %cst_65 = arith.constant dense<0.000000e+00> : vector<256x4xf32>
    %73 = tpu.matmul %66, %72, %cst_65 {dimension_numbers = #tpu.dot_dimension_numbers<[1], [0], [0], [1], [0, 0, 1, 1], [], []>} : vector<256x4xf32>, vector<4x4xf32>, vector<256x4xf32> -> vector<256x4xf32>
    %74 = arith.addf %70, %73 : vector<256x4xf32>
    %75 = vector.extract_strided_slice %12 {offsets = [1, 9, 0], sizes = [16, 16, 4], strides = [1, 1, 1]} : vector<18x32x4xf32> to vector<16x16x4xf32>
    %76 = vector.shape_cast %75 : vector<16x16x4xf32> to vector<256x4xf32>
    %77 = vector.extract_strided_slice %13 {offsets = [1, 9, 0], sizes = [16, 16, 4], strides = [1, 1, 1]} : vector<18x32x4xf32> to vector<16x16x4xf32>
    %78 = vector.shape_cast %77 : vector<16x16x4xf32> to vector<256x4xf32>
    %c5 = arith.constant 5 : index
    %c0_66 = arith.constant 0 : index
    %c0_67 = arith.constant 0 : index
    %79 = vector.load %arg3[%c5, %c0_66, %c0_67] : memref<9x4x4xf32, #tpu.memory_space<vmem>>, vector<1x4x4xf32>
    %80 = vector.shape_cast %79 : vector<1x4x4xf32> to vector<4x4xf32>
    %cst_68 = arith.constant dense<0.000000e+00> : vector<256x4xf32>
    %81 = tpu.matmul %76, %80, %cst_68 {dimension_numbers = #tpu.dot_dimension_numbers<[1], [0], [0], [1], [0, 0, 1, 1], [], []>} : vector<256x4xf32>, vector<4x4xf32>, vector<256x4xf32> -> vector<256x4xf32>
    %82 = arith.addf %74, %81 : vector<256x4xf32>
    %c5_69 = arith.constant 5 : index
    %c0_70 = arith.constant 0 : index
    %c0_71 = arith.constant 0 : index
    %83 = vector.load %arg4[%c5_69, %c0_70, %c0_71] : memref<9x4x4xf32, #tpu.memory_space<vmem>>, vector<1x4x4xf32>
    %84 = vector.shape_cast %83 : vector<1x4x4xf32> to vector<4x4xf32>
    %cst_72 = arith.constant dense<0.000000e+00> : vector<256x4xf32>
    %85 = tpu.matmul %78, %84, %cst_72 {dimension_numbers = #tpu.dot_dimension_numbers<[1], [0], [0], [1], [0, 0, 1, 1], [], []>} : vector<256x4xf32>, vector<4x4xf32>, vector<256x4xf32> -> vector<256x4xf32>
    %86 = arith.addf %82, %85 : vector<256x4xf32>
    %87 = vector.extract_strided_slice %12 {offsets = [2, 7, 0], sizes = [16, 16, 4], strides = [1, 1, 1]} : vector<18x32x4xf32> to vector<16x16x4xf32>
    %88 = vector.shape_cast %87 : vector<16x16x4xf32> to vector<256x4xf32>
    %89 = vector.extract_strided_slice %13 {offsets = [2, 7, 0], sizes = [16, 16, 4], strides = [1, 1, 1]} : vector<18x32x4xf32> to vector<16x16x4xf32>
    %90 = vector.shape_cast %89 : vector<16x16x4xf32> to vector<256x4xf32>
    %c6 = arith.constant 6 : index
    %c0_73 = arith.constant 0 : index
    %c0_74 = arith.constant 0 : index
    %91 = vector.load %arg3[%c6, %c0_73, %c0_74] : memref<9x4x4xf32, #tpu.memory_space<vmem>>, vector<1x4x4xf32>
    %92 = vector.shape_cast %91 : vector<1x4x4xf32> to vector<4x4xf32>
    %cst_75 = arith.constant dense<0.000000e+00> : vector<256x4xf32>
    %93 = tpu.matmul %88, %92, %cst_75 {dimension_numbers = #tpu.dot_dimension_numbers<[1], [0], [0], [1], [0, 0, 1, 1], [], []>} : vector<256x4xf32>, vector<4x4xf32>, vector<256x4xf32> -> vector<256x4xf32>
    %94 = arith.addf %86, %93 : vector<256x4xf32>
    %c6_76 = arith.constant 6 : index
    %c0_77 = arith.constant 0 : index
    %c0_78 = arith.constant 0 : index
    %95 = vector.load %arg4[%c6_76, %c0_77, %c0_78] : memref<9x4x4xf32, #tpu.memory_space<vmem>>, vector<1x4x4xf32>
    %96 = vector.shape_cast %95 : vector<1x4x4xf32> to vector<4x4xf32>
    %cst_79 = arith.constant dense<0.000000e+00> : vector<256x4xf32>
    %97 = tpu.matmul %90, %96, %cst_79 {dimension_numbers = #tpu.dot_dimension_numbers<[1], [0], [0], [1], [0, 0, 1, 1], [], []>} : vector<256x4xf32>, vector<4x4xf32>, vector<256x4xf32> -> vector<256x4xf32>
    %98 = arith.addf %94, %97 : vector<256x4xf32>
    %99 = vector.extract_strided_slice %12 {offsets = [2, 8, 0], sizes = [16, 16, 4], strides = [1, 1, 1]} : vector<18x32x4xf32> to vector<16x16x4xf32>
    %100 = vector.shape_cast %99 : vector<16x16x4xf32> to vector<256x4xf32>
    %101 = vector.extract_strided_slice %13 {offsets = [2, 8, 0], sizes = [16, 16, 4], strides = [1, 1, 1]} : vector<18x32x4xf32> to vector<16x16x4xf32>
    %102 = vector.shape_cast %101 : vector<16x16x4xf32> to vector<256x4xf32>
    %c7 = arith.constant 7 : index
    %c0_80 = arith.constant 0 : index
    %c0_81 = arith.constant 0 : index
    %103 = vector.load %arg3[%c7, %c0_80, %c0_81] : memref<9x4x4xf32, #tpu.memory_space<vmem>>, vector<1x4x4xf32>
    %104 = vector.shape_cast %103 : vector<1x4x4xf32> to vector<4x4xf32>
    %cst_82 = arith.constant dense<0.000000e+00> : vector<256x4xf32>
    %105 = tpu.matmul %100, %104, %cst_82 {dimension_numbers = #tpu.dot_dimension_numbers<[1], [0], [0], [1], [0, 0, 1, 1], [], []>} : vector<256x4xf32>, vector<4x4xf32>, vector<256x4xf32> -> vector<256x4xf32>
    %106 = arith.addf %98, %105 : vector<256x4xf32>
    %c7_83 = arith.constant 7 : index
    %c0_84 = arith.constant 0 : index
    %c0_85 = arith.constant 0 : index
    %107 = vector.load %arg4[%c7_83, %c0_84, %c0_85] : memref<9x4x4xf32, #tpu.memory_space<vmem>>, vector<1x4x4xf32>
    %108 = vector.shape_cast %107 : vector<1x4x4xf32> to vector<4x4xf32>
    %cst_86 = arith.constant dense<0.000000e+00> : vector<256x4xf32>
    %109 = tpu.matmul %102, %108, %cst_86 {dimension_numbers = #tpu.dot_dimension_numbers<[1], [0], [0], [1], [0, 0, 1, 1], [], []>} : vector<256x4xf32>, vector<4x4xf32>, vector<256x4xf32> -> vector<256x4xf32>
    %110 = arith.addf %106, %109 : vector<256x4xf32>
    %111 = vector.extract_strided_slice %12 {offsets = [2, 9, 0], sizes = [16, 16, 4], strides = [1, 1, 1]} : vector<18x32x4xf32> to vector<16x16x4xf32>
    %112 = vector.shape_cast %111 : vector<16x16x4xf32> to vector<256x4xf32>
    %113 = vector.extract_strided_slice %13 {offsets = [2, 9, 0], sizes = [16, 16, 4], strides = [1, 1, 1]} : vector<18x32x4xf32> to vector<16x16x4xf32>
    %114 = vector.shape_cast %113 : vector<16x16x4xf32> to vector<256x4xf32>
    %c8_87 = arith.constant 8 : index
    %c0_88 = arith.constant 0 : index
    %c0_89 = arith.constant 0 : index
    %115 = vector.load %arg3[%c8_87, %c0_88, %c0_89] : memref<9x4x4xf32, #tpu.memory_space<vmem>>, vector<1x4x4xf32>
    %116 = vector.shape_cast %115 : vector<1x4x4xf32> to vector<4x4xf32>
    %cst_90 = arith.constant dense<0.000000e+00> : vector<256x4xf32>
    %117 = tpu.matmul %112, %116, %cst_90 {dimension_numbers = #tpu.dot_dimension_numbers<[1], [0], [0], [1], [0, 0, 1, 1], [], []>} : vector<256x4xf32>, vector<4x4xf32>, vector<256x4xf32> -> vector<256x4xf32>
    %118 = arith.addf %110, %117 : vector<256x4xf32>
    %c8_91 = arith.constant 8 : index
    %c0_92 = arith.constant 0 : index
    %c0_93 = arith.constant 0 : index
    %119 = vector.load %arg4[%c8_91, %c0_92, %c0_93] : memref<9x4x4xf32, #tpu.memory_space<vmem>>, vector<1x4x4xf32>
    %120 = vector.shape_cast %119 : vector<1x4x4xf32> to vector<4x4xf32>
    %cst_94 = arith.constant dense<0.000000e+00> : vector<256x4xf32>
    %121 = tpu.matmul %114, %120, %cst_94 {dimension_numbers = #tpu.dot_dimension_numbers<[1], [0], [0], [1], [0, 0, 1, 1], [], []>} : vector<256x4xf32>, vector<4x4xf32>, vector<256x4xf32> -> vector<256x4xf32>
    %122 = arith.addf %118, %121 : vector<256x4xf32>
    %c0_95 = arith.constant 0 : index
    %c0_96 = arith.constant 0 : index
    %123 = vector.load %arg5[%c0_95, %c0_96] : memref<1x4xf32, #tpu.memory_space<vmem>>, vector<1x4xf32>
    %124 = vector.broadcast %123 : vector<1x4xf32> to vector<256x4xf32>
    %125 = arith.addf %122, %124 : vector<256x4xf32>
    %cst_97 = arith.constant 0.000000e+00 : f32
    %126 = vector.broadcast %cst_97 : f32 to vector<256x4xf32>
    %127 = arith.cmpf oge, %125, %126 : vector<256x4xf32>
    %cst_98 = arith.constant 2.000000e-01 : f32
    %128 = vector.broadcast %cst_98 : f32 to vector<256x4xf32>
    %129 = arith.mulf %128, %125 : vector<256x4xf32>
    %130 = arith.select %127, %125, %129 : vector<256x4xi1>, vector<256x4xf32>
    %131 = vector.shape_cast %130 : vector<256x4xf32> to vector<16x16x4xf32>
    %c1_99 = arith.constant 1 : index
    %c8_100 = arith.constant 8 : index
    %c0_101 = arith.constant 0 : index
    %132 = vector.load %arg14[%c1_99, %c8_100, %c0_101] : memref<18x32x4xf32, #tpu.memory_space<vmem>>, vector<16x16x4xf32>
    tpu.vector_store %arg14[%c1_99, %c8_100, %c0_101], %131 {strides = array<i32>} : memref<18x32x4xf32, #tpu.memory_space<vmem>>, vector<16x16x4xf32>,
    %c0_102 = arith.constant 0 : index
    %c0_103 = arith.constant 0 : index
    %c0_104 = arith.constant 0 : index
    %c0_105 = arith.constant 0 : index
    %133 = vector.load %arg1[%c0_102, %c0_103, %c0_104, %c0_105] : memref<1x16x16x4xf32, #tpu.memory_space<vmem>>, vector<1x16x16x4xf32>
    %134 = vector.shape_cast %133 : vector<1x16x16x4xf32> to vector<16x16x4xf32>
    %135 = vector.shape_cast %134 : vector<16x16x4xf32> to vector<256x4xf32>
    %c0_106 = arith.constant 0 : index
    %c0_107 = arith.constant 0 : index
    %136 = vector.load %arg8[%c0_106, %c0_107] : memref<4x4xf32, #tpu.memory_space<vmem>>, vector<4x4xf32>
    %cst_108 = arith.constant dense<0.000000e+00> : vector<256x4xf32>
    %137 = tpu.matmul %135, %136, %cst_108 {dimension_numbers = #tpu.dot_dimension_numbers<[1], [0], [0], [1], [0, 0, 1, 1], [], []>} : vector<256x4xf32>, vector<4x4xf32>, vector<256x4xf32> -> vector<256x4xf32>
    %c0_109 = arith.constant 0 : index
    %c0_110 = arith.constant 0 : index
    %c0_111 = arith.constant 0 : index
    %c0_112 = arith.constant 0 : index
    %138 = vector.load %arg2[%c0_109, %c0_110, %c0_111, %c0_112] : memref<1x16x16x4xf32, #tpu.memory_space<vmem>>, vector<1x16x16x4xf32>
    %139 = vector.shape_cast %138 : vector<1x16x16x4xf32> to vector<16x16x4xf32>
    %140 = vector.shape_cast %139 : vector<16x16x4xf32> to vector<256x4xf32>
    %c0_113 = arith.constant 0 : index
    %c0_114 = arith.constant 0 : index
    %141 = vector.load %arg9[%c0_113, %c0_114] : memref<4x4xf32, #tpu.memory_space<vmem>>, vector<4x4xf32>
    %cst_115 = arith.constant dense<0.000000e+00> : vector<256x4xf32>
    %142 = tpu.matmul %140, %141, %cst_115 {dimension_numbers = #tpu.dot_dimension_numbers<[1], [0], [0], [1], [0, 0, 1, 1], [], []>} : vector<256x4xf32>, vector<4x4xf32>, vector<256x4xf32> -> vector<256x4xf32>
    %143 = arith.addf %137, %142 : vector<256x4xf32>
    %c0_116 = arith.constant 0 : index
    %c0_117 = arith.constant 0 : index
    %144 = vector.load %arg10[%c0_116, %c0_117] : memref<1x4xf32, #tpu.memory_space<vmem>>, vector<1x4xf32>
    %145 = vector.broadcast %144 : vector<1x4xf32> to vector<256x4xf32>
    %146 = arith.addf %143, %145 : vector<256x4xf32>
    %c0_118 = arith.constant 0 : index
    %c0_119 = arith.constant 0 : index
    %c0_120 = arith.constant 0 : index
    %147 = vector.load %arg14[%c0_118, %c0_119, %c0_120] : memref<18x32x4xf32, #tpu.memory_space<vmem>>, vector<18x32x4xf32>
    %cst_121 = arith.constant 0.000000e+00 : f32
    %148 = vector.broadcast %cst_121 : f32 to vector<256x4xf32>
    %149 = vector.extract_strided_slice %147 {offsets = [0, 7, 0], sizes = [16, 16, 4], strides = [1, 1, 1]} : vector<18x32x4xf32> to vector<16x16x4xf32>
    %150 = vector.shape_cast %149 : vector<16x16x4xf32> to vector<256x4xf32>
    %c0_122 = arith.constant 0 : index
    %c0_123 = arith.constant 0 : index
    %c0_124 = arith.constant 0 : index
    %151 = vector.load %arg6[%c0_122, %c0_123, %c0_124] : memref<9x4x4xf32, #tpu.memory_space<vmem>>, vector<1x4x4xf32>
    %152 = vector.shape_cast %151 : vector<1x4x4xf32> to vector<4x4xf32>
    %cst_125 = arith.constant dense<0.000000e+00> : vector<256x4xf32>
    %153 = tpu.matmul %150, %152, %cst_125 {dimension_numbers = #tpu.dot_dimension_numbers<[1], [0], [0], [1], [0, 0, 1, 1], [], []>} : vector<256x4xf32>, vector<4x4xf32>, vector<256x4xf32> -> vector<256x4xf32>
    %154 = arith.addf %148, %153 : vector<256x4xf32>
    %155 = vector.extract_strided_slice %147 {offsets = [0, 8, 0], sizes = [16, 16, 4], strides = [1, 1, 1]} : vector<18x32x4xf32> to vector<16x16x4xf32>
    %156 = vector.shape_cast %155 : vector<16x16x4xf32> to vector<256x4xf32>
    %c1_126 = arith.constant 1 : index
    %c0_127 = arith.constant 0 : index
    %c0_128 = arith.constant 0 : index
    %157 = vector.load %arg6[%c1_126, %c0_127, %c0_128] : memref<9x4x4xf32, #tpu.memory_space<vmem>>, vector<1x4x4xf32>
    %158 = vector.shape_cast %157 : vector<1x4x4xf32> to vector<4x4xf32>
    %cst_129 = arith.constant dense<0.000000e+00> : vector<256x4xf32>
    %159 = tpu.matmul %156, %158, %cst_129 {dimension_numbers = #tpu.dot_dimension_numbers<[1], [0], [0], [1], [0, 0, 1, 1], [], []>} : vector<256x4xf32>, vector<4x4xf32>, vector<256x4xf32> -> vector<256x4xf32>
    %160 = arith.addf %154, %159 : vector<256x4xf32>
    %161 = vector.extract_strided_slice %147 {offsets = [0, 9, 0], sizes = [16, 16, 4], strides = [1, 1, 1]} : vector<18x32x4xf32> to vector<16x16x4xf32>
    %162 = vector.shape_cast %161 : vector<16x16x4xf32> to vector<256x4xf32>
    %c2_130 = arith.constant 2 : index
    %c0_131 = arith.constant 0 : index
    %c0_132 = arith.constant 0 : index
    %163 = vector.load %arg6[%c2_130, %c0_131, %c0_132] : memref<9x4x4xf32, #tpu.memory_space<vmem>>, vector<1x4x4xf32>
    %164 = vector.shape_cast %163 : vector<1x4x4xf32> to vector<4x4xf32>
    %cst_133 = arith.constant dense<0.000000e+00> : vector<256x4xf32>
    %165 = tpu.matmul %162, %164, %cst_133 {dimension_numbers = #tpu.dot_dimension_numbers<[1], [0], [0], [1], [0, 0, 1, 1], [], []>} : vector<256x4xf32>, vector<4x4xf32>, vector<256x4xf32> -> vector<256x4xf32>
    %166 = arith.addf %160, %165 : vector<256x4xf32>
    %167 = vector.extract_strided_slice %147 {offsets = [1, 7, 0], sizes = [16, 16, 4], strides = [1, 1, 1]} : vector<18x32x4xf32> to vector<16x16x4xf32>
    %168 = vector.shape_cast %167 : vector<16x16x4xf32> to vector<256x4xf32>
    %c3_134 = arith.constant 3 : index
    %c0_135 = arith.constant 0 : index
    %c0_136 = arith.constant 0 : index
    %169 = vector.load %arg6[%c3_134, %c0_135, %c0_136] : memref<9x4x4xf32, #tpu.memory_space<vmem>>, vector<1x4x4xf32>
    %170 = vector.shape_cast %169 : vector<1x4x4xf32> to vector<4x4xf32>
    %cst_137 = arith.constant dense<0.000000e+00> : vector<256x4xf32>
    %171 = tpu.matmul %168, %170, %cst_137 {dimension_numbers = #tpu.dot_dimension_numbers<[1], [0], [0], [1], [0, 0, 1, 1], [], []>} : vector<256x4xf32>, vector<4x4xf32>, vector<256x4xf32> -> vector<256x4xf32>
    %172 = arith.addf %166, %171 : vector<256x4xf32>
    %173 = vector.extract_strided_slice %147 {offsets = [1, 8, 0], sizes = [16, 16, 4], strides = [1, 1, 1]} : vector<18x32x4xf32> to vector<16x16x4xf32>
    %174 = vector.shape_cast %173 : vector<16x16x4xf32> to vector<256x4xf32>
    %c4_138 = arith.constant 4 : index
    %c0_139 = arith.constant 0 : index
    %c0_140 = arith.constant 0 : index
    %175 = vector.load %arg6[%c4_138, %c0_139, %c0_140] : memref<9x4x4xf32, #tpu.memory_space<vmem>>, vector<1x4x4xf32>
    %176 = vector.shape_cast %175 : vector<1x4x4xf32> to vector<4x4xf32>
    %cst_141 = arith.constant dense<0.000000e+00> : vector<256x4xf32>
    %177 = tpu.matmul %174, %176, %cst_141 {dimension_numbers = #tpu.dot_dimension_numbers<[1], [0], [0], [1], [0, 0, 1, 1], [], []>} : vector<256x4xf32>, vector<4x4xf32>, vector<256x4xf32> -> vector<256x4xf32>
    %178 = arith.addf %172, %177 : vector<256x4xf32>
    %179 = vector.extract_strided_slice %147 {offsets = [1, 9, 0], sizes = [16, 16, 4], strides = [1, 1, 1]} : vector<18x32x4xf32> to vector<16x16x4xf32>
    %180 = vector.shape_cast %179 : vector<16x16x4xf32> to vector<256x4xf32>
    %c5_142 = arith.constant 5 : index
    %c0_143 = arith.constant 0 : index
    %c0_144 = arith.constant 0 : index
    %181 = vector.load %arg6[%c5_142, %c0_143, %c0_144] : memref<9x4x4xf32, #tpu.memory_space<vmem>>, vector<1x4x4xf32>
    %182 = vector.shape_cast %181 : vector<1x4x4xf32> to vector<4x4xf32>
    %cst_145 = arith.constant dense<0.000000e+00> : vector<256x4xf32>
    %183 = tpu.matmul %180, %182, %cst_145 {dimension_numbers = #tpu.dot_dimension_numbers<[1], [0], [0], [1], [0, 0, 1, 1], [], []>} : vector<256x4xf32>, vector<4x4xf32>, vector<256x4xf32> -> vector<256x4xf32>
    %184 = arith.addf %178, %183 : vector<256x4xf32>
    %185 = vector.extract_strided_slice %147 {offsets = [2, 7, 0], sizes = [16, 16, 4], strides = [1, 1, 1]} : vector<18x32x4xf32> to vector<16x16x4xf32>
    %186 = vector.shape_cast %185 : vector<16x16x4xf32> to vector<256x4xf32>
    %c6_146 = arith.constant 6 : index
    %c0_147 = arith.constant 0 : index
    %c0_148 = arith.constant 0 : index
    %187 = vector.load %arg6[%c6_146, %c0_147, %c0_148] : memref<9x4x4xf32, #tpu.memory_space<vmem>>, vector<1x4x4xf32>
    %188 = vector.shape_cast %187 : vector<1x4x4xf32> to vector<4x4xf32>
    %cst_149 = arith.constant dense<0.000000e+00> : vector<256x4xf32>
    %189 = tpu.matmul %186, %188, %cst_149 {dimension_numbers = #tpu.dot_dimension_numbers<[1], [0], [0], [1], [0, 0, 1, 1], [], []>} : vector<256x4xf32>, vector<4x4xf32>, vector<256x4xf32> -> vector<256x4xf32>
    %190 = arith.addf %184, %189 : vector<256x4xf32>
    %191 = vector.extract_strided_slice %147 {offsets = [2, 8, 0], sizes = [16, 16, 4], strides = [1, 1, 1]} : vector<18x32x4xf32> to vector<16x16x4xf32>
    %192 = vector.shape_cast %191 : vector<16x16x4xf32> to vector<256x4xf32>
    %c7_150 = arith.constant 7 : index
    %c0_151 = arith.constant 0 : index
    %c0_152 = arith.constant 0 : index
    %193 = vector.load %arg6[%c7_150, %c0_151, %c0_152] : memref<9x4x4xf32, #tpu.memory_space<vmem>>, vector<1x4x4xf32>
    %194 = vector.shape_cast %193 : vector<1x4x4xf32> to vector<4x4xf32>
    %cst_153 = arith.constant dense<0.000000e+00> : vector<256x4xf32>
    %195 = tpu.matmul %192, %194, %cst_153 {dimension_numbers = #tpu.dot_dimension_numbers<[1], [0], [0], [1], [0, 0, 1, 1], [], []>} : vector<256x4xf32>, vector<4x4xf32>, vector<256x4xf32> -> vector<256x4xf32>
    %196 = arith.addf %190, %195 : vector<256x4xf32>
    %197 = vector.extract_strided_slice %147 {offsets = [2, 9, 0], sizes = [16, 16, 4], strides = [1, 1, 1]} : vector<18x32x4xf32> to vector<16x16x4xf32>
    %198 = vector.shape_cast %197 : vector<16x16x4xf32> to vector<256x4xf32>
    %c8_154 = arith.constant 8 : index
    %c0_155 = arith.constant 0 : index
    %c0_156 = arith.constant 0 : index
    %199 = vector.load %arg6[%c8_154, %c0_155, %c0_156] : memref<9x4x4xf32, #tpu.memory_space<vmem>>, vector<1x4x4xf32>
    %200 = vector.shape_cast %199 : vector<1x4x4xf32> to vector<4x4xf32>
    %cst_157 = arith.constant dense<0.000000e+00> : vector<256x4xf32>
    %201 = tpu.matmul %198, %200, %cst_157 {dimension_numbers = #tpu.dot_dimension_numbers<[1], [0], [0], [1], [0, 0, 1, 1], [], []>} : vector<256x4xf32>, vector<4x4xf32>, vector<256x4xf32> -> vector<256x4xf32>
    %202 = arith.addf %196, %201 : vector<256x4xf32>
    %c0_158 = arith.constant 0 : index
    %c0_159 = arith.constant 0 : index
    %203 = vector.load %arg7[%c0_158, %c0_159] : memref<1x4xf32, #tpu.memory_space<vmem>>, vector<1x4xf32>
    %204 = vector.broadcast %203 : vector<1x4xf32> to vector<256x4xf32>
    %205 = arith.addf %202, %204 : vector<256x4xf32>
    %cst_160 = arith.constant 0.000000e+00 : f32
    %206 = vector.broadcast %cst_160 : f32 to vector<256x4xf32>
    %207 = arith.cmpf oge, %205, %206 : vector<256x4xf32>
    %cst_161 = arith.constant 2.000000e-01 : f32
    %208 = vector.broadcast %cst_161 : f32 to vector<256x4xf32>
    %209 = arith.mulf %208, %205 : vector<256x4xf32>
    %210 = arith.select %207, %205, %209 : vector<256x4xi1>, vector<256x4xf32>
    %211 = arith.addf %210, %146 : vector<256x4xf32>
    %212 = vector.shape_cast %211 : vector<256x4xf32> to vector<16x16x4xf32>
    %c0_162 = arith.constant 0 : index
    %c0_163 = arith.constant 0 : index
    %c0_164 = arith.constant 0 : index
    %c0_165 = arith.constant 0 : index
    %213 = vector.load %arg11[%c0_162, %c0_163, %c0_164, %c0_165] : memref<1x16x16x4xf32, #tpu.memory_space<vmem>>, vector<1x16x16x4xf32>
    %214 = vector.shape_cast %213 : vector<1x16x16x4xf32> to vector<16x16x4xf32>
    %215 = vector.shape_cast %212 : vector<16x16x4xf32> to vector<1x16x16x4xf32>
    tpu.vector_store %arg11[%c0_162, %c0_163, %c0_164, %c0_165], %215 {strides = array<i32>} : memref<1x16x16x4xf32, #tpu.memory_space<vmem>>, vector<1x16x16x4xf32>,
    return
  }
  func.func @transform_0(%arg0: i32) -> (i32, i32, i32, i32) {
    %c0_i32 = arith.constant 0 : i32
    %c0_i32_0 = arith.constant 0 : i32
    %c0_i32_1 = arith.constant 0 : i32
    %c0_i32_2 = arith.constant 0 : i32
    return %arg0, %c0_i32, %c0_i32_0, %c0_i32_1 : i32, i32, i32, i32
  }
  func.func @transform_1(%arg0: i32) -> (i32, i32, i32, i32) {
    %c0_i32 = arith.constant 0 : i32
    %c0_i32_0 = arith.constant 0 : i32
    %c0_i32_1 = arith.constant 0 : i32
    %c0_i32_2 = arith.constant 0 : i32
    return %arg0, %c0_i32, %c0_i32_0, %c0_i32_1 : i32, i32, i32, i32
  }
  func.func @transform_2(%arg0: i32) -> (i32, i32, i32) {
    %c0_i32 = arith.constant 0 : i32
    %c0_i32_0 = arith.constant 0 : i32
    %c0_i32_1 = arith.constant 0 : i32
    %c0_i32_2 = arith.constant 0 : i32
    return %c0_i32, %c0_i32_0, %c0_i32_1 : i32, i32, i32
  }
  func.func @transform_3(%arg0: i32) -> (i32, i32, i32) {
    %c0_i32 = arith.constant 0 : i32
    %c0_i32_0 = arith.constant 0 : i32
    %c0_i32_1 = arith.constant 0 : i32
    %c0_i32_2 = arith.constant 0 : i32
    return %c0_i32, %c0_i32_0, %c0_i32_1 : i32, i32, i32
  }
  func.func @transform_4(%arg0: i32) -> (i32, i32) {
    %c0_i32 = arith.constant 0 : i32
    %c0_i32_0 = arith.constant 0 : i32
    %c0_i32_1 = arith.constant 0 : i32
    return %c0_i32, %c0_i32_0 : i32, i32
  }
  func.func @transform_5(%arg0: i32) -> (i32, i32, i32) {
    %c0_i32 = arith.constant 0 : i32
    %c0_i32_0 = arith.constant 0 : i32
    %c0_i32_1 = arith.constant 0 : i32
    %c0_i32_2 = arith.constant 0 : i32
    return %c0_i32, %c0_i32_0, %c0_i32_1 : i32, i32, i32
  }
  func.func @transform_6(%arg0: i32) -> (i32, i32) {
    %c0_i32 = arith.constant 0 : i32
    %c0_i32_0 = arith.constant 0 : i32
    %c0_i32_1 = arith.constant 0 : i32
    return %c0_i32, %c0_i32_0 : i32, i32
  }
  func.func @transform_7(%arg0: i32) -> (i32, i32) {
    %c0_i32 = arith.constant 0 : i32
    %c0_i32_0 = arith.constant 0 : i32
    %c0_i32_1 = arith.constant 0 : i32
    return %c0_i32, %c0_i32_0 : i32, i32
  }
  func.func @transform_8(%arg0: i32) -> (i32, i32) {
    %c0_i32 = arith.constant 0 : i32
    %c0_i32_0 = arith.constant 0 : i32
    %c0_i32_1 = arith.constant 0 : i32
    return %c0_i32, %c0_i32_0 : i32, i32
  }
  func.func @transform_9(%arg0: i32) -> (i32, i32) {
    %c0_i32 = arith.constant 0 : i32
    %c0_i32_0 = arith.constant 0 : i32
    %c0_i32_1 = arith.constant 0 : i32
    return %c0_i32, %c0_i32_0 : i32, i32
  }
  func.func @transform_10(%arg0: i32) -> (i32, i32, i32, i32) {
    %c0_i32 = arith.constant 0 : i32
    %c0_i32_0 = arith.constant 0 : i32
    %c0_i32_1 = arith.constant 0 : i32
    %c0_i32_2 = arith.constant 0 : i32
    return %arg0, %c0_i32, %c0_i32_0, %c0_i32_1 : i32, i32, i32, i32
  }
}

</mosaic_0001>

<bundles_post_ra>
// kernel: tile.8
= control target key start
LH: loop header
LB: loop body
LE: loop exit
PB: predicated region body
PF: predicated region fallthrough
CT: control target
= control target key end

     0   :  { %s22_s0 = inlined_call_operand.vmem [shape: f32[4], index: 0, kind: input, shape index: {}]   ;;  %s23_s1 = inlined_call_operand.vmem [shape: f32[2,4], index: 1, kind: output, shape index: {}]  }
   0x1   :  { %v4_v0 = vld [vmem:[%s22_s0] ss:$0 sm:$0xff] }
   0x2   :  { %5 = vst [vmem:[%s23_s1] sm:$0x3] %v4_v0 }

// kernel: tile.9
= control target key start
LH: loop header
LB: loop body
LE: loop exit
PB: predicated region body
PF: predicated region fallthrough
CT: control target
= control target key end

     0   :  { %vm7_vm0 = vcmask 31744   ;;  %vm13_vm1 = vcmask 64544   ;;  %s39_s0 = inlined_call_operand.vmem [shape: f32[2,4], index: 0, kind: input, shape index: {}]   ;;  %s40_s1 = inlined_call_operand.vmem [shape: f32[1,8], index: 1, kind: output, shape index: {}]  }
   0x1   :  { %v4_v0 = vld [vmem:[%s39_s0] sm:$0x3]  ;;  %s22_s0 = smov 4  }
   0x2   :  { %5 = vst [vmem:[#allocation1] sm:$0x3] %v4_v0 }
   0x9   :  { %v10_v1 = vld [vmem:[#allocation1 + $0x1] sm:$0x1]   ;;  %v6_v2 = vld [vmem:[#allocation1] sm:$0x1]  }
   0xa   :  { %11 = vrot.lane.b32.xlu0 %v10_v1, %s22_s0  ;;  %8 = vst.msk [vmem:[#allocation0] sm:$0x1] %vm7_vm0, %v6_v2  }
  0x7c   :  { %v12_v3 = vpop.permute.xlu0 %11  }
  0x7d   :  { %14 = vst.msk [vmem:[#allocation0] sm:$0x1] %vm13_vm1, %v12_v3  }
  0x84   :  { %v18_v4 = vld [vmem:[#allocation0] sm:$0x1] }
  0x85   :  { %20 = vst [vmem:[%s40_s1] sm:$0x1] %v18_v4 }

// kernel: unet_up_block.2
= control target key start
LH: loop header
LB: loop body
LE: loop exit
PB: predicated region body
PF: predicated region fallthrough
CT: control target
= control target key end

     0   :  { %s718_s12 = smov 0   ;;  %s720_s13 = smov 0   ;;  %s835_s0 = inlined_call_operand.vmem [shape: f32[2,8,8,8], index: 0, kind: input, shape index: {}]   ;;  %s836_s1 = inlined_call_operand.vmem [shape: f32[2,8,8], index: 1, kind: input, shape index: {}]   ;;  %s837_s2 = inlined_call_operand.vmem [shape: f32[1,8], index: 2, kind: input, shape index: {}]   ;;  %s838_s3 = inlined_call_operand.vmem [shape: f32[2,8,2,8,8], index: 3, kind: output, shape index: {}]  }
   0x1   :  { %s722_s14 = smov 0   ;;  %s724_s15 = smov 0  }
   0x2   :  { %s726_s16 = smov 0   ;;  %s728_s17 = smov 0  }
   0x3   :  { %s730_s18 = smov 0  }
   0x4 LB: > { %s25_s19 = sadd.s32 1, %s688_s16  ;;  %s32_s20 = sadd.s32 1, %s692_s17  ;;  %s696_s18 = sphi %s730_s18, %s13_s18   ;;  %s692_s17 = sphi %s728_s17, %s845_s17   ;;  %s688_s16 = sphi %s726_s16, %s844_s16   ;;  %s684_s15 = sphi %s724_s15, %s843_s15   ;;  %s680_s14 = sphi %s722_s14, %s842_s14   ;;  %s676_s13 = sphi %s720_s13, %s841_s13   ;;  %s672_s12 = sphi %s718_s12, %s840_s12  }
   0x5   : > { %p26_p0 = scmp.ge.s32.totalorder %s25_s19, 2  ;;  %s537_s21 = sadd.s32 4294967295, %s696_s18  }
   0x6   : > { %p128_p1 = scmp.ne.s32.totalorder %s676_s13, %s672_s12  ;;  %p129_p2 = scmp.eq.s32.totalorder %s537_s21, 3 }
   0x7   : > { %s847_s19 = smov (%p26_p0, %s25_s19), 0  ;;  %s849_s20 = smov (!%p26_p0, %s32_s20), %s692_s17 }
   0x8   : > { %s114_s22 = ssub.s32 %s688_s16, %s847_s19  ;;  %p34_p3 = scmp.ge.s32.totalorder %s849_s20, 2 }
   0x9   : > { %p541_p4 = scmp.ge.s32.totalorder %s696_s18, 1  ;;  %p764_p5 = por %p129_p2, %p128_p1 }
   0xa   : > { %p176_p6 = scmp.lt.s32.totalorder %s696_s18, 5  ;;  %s851_s20 = smov (%p34_p3, %s849_s20), 0 }
   0xb   : > { %s111_s24 = ssub.s32 %s692_s17, %s851_s20  ;;  %s118_s26 = sadd.s32 1, %s676_s13 }
   0xc   : > { %p177_p7 = pnand %p541_p4, %p176_p6  ;;  %s115_s25 = sor.u32 %s114_s22, %s111_s24 }
   0xd   : > { %p116_p8 = scmp.eq.s32.totalorder %s115_s25, 0  ;;  %p217_p9 = scmp.lt.s32.totalorder (!%p177_p7), %s680_s14, 1  ;;  %vm238_vm0 = vcmask (!%p177_p7), 64512   ;;  %v546_v9 = vld [vmem:[%s837_s2] ss:$0 sm:$0xff] (!%p177_p7) }
   0xe   : > { %180 = sbr.rel (%p177_p7) target bundleno = 258 (0x102), region = 32  ;;  %p208_p10 = scmp.lt.s32.totalorder (!%p177_p7), %s684_s15, 1 }
   0xf   : > { %s775_s27 = scalar_select %p116_p8, %s676_s13, %s118_s26  }
  0x10   : > { %s204_s11 = sand.u32 (!%p177_p7), 1, %s672_s12  }
  0x11   : > { %s542_s21 = sshll.u32 (!%p177_p7), %s204_s11, 6 }
  0x12   : > { %s206_s25 = scalar_lea.vmem (!%p177_p7), [#allocation2], %s542_s21 }
  0x15   : > { %s218_s28 = scalar_select %p217_p9, %s680_s14, 1 }
  0x16   : > { %s209_s29 = scalar_select %p208_p10, %s684_s15, 1 }
  0x17   : > { %s545_s30 = sshll.u32 %s218_s28, 3  ;;  %s556_s12 = sshll.u32 (%p764_p5), %s684_s15, 4 }
  0x18   : > { %s220_s6 = scalar_lea.vmem %s836_s1, %s545_s30  ;;  %s560_s7 = sshll.u32 %s209_s29, 6 }
  0x19   : > { %v230_v0 = vld [vmem:[%s220_s6] sm:$0xff]  ;;  %s215_s10 = scalar_lea.vmem %s835_s0, %s560_s7  ;;  %s387_s26 = sadd.s32 (%p764_p5), %s680_s14, %s556_s12 }
  0x1a   : > { %570 = vmatprep.subr.mxu0 %v230_v0  ;;  %584 = vmatprep.subr.mxu1 %v230_v0  ;;  %v222_v1 = vld [vmem:[%s215_s10] sm:$0xff]  ;;  %v223_v3 = vld [vmem:[%s215_s10 + $0x8] sm:$0xff]  ;;  %v224_v5 = vld [vmem:[%s215_s10 + $0x10] sm:$0xff]  ;;  %s557_s28 = sshll.u32 (%p764_p5), %s387_s26, 3 }
  0x1b   : > { %v226_v2 = vld [vmem:[%s215_s10 + $0x20] sm:$0xff]  ;;  %571 = vmatpush3.msra.mxu0 %v230_v0  ;;  %585 = vmatpush3.msra.mxu1 %v230_v0  ;;  %v227_v4 = vld [vmem:[%s215_s10 + $0x28] sm:$0xff]  ;;  %v228_v6 = vld [vmem:[%s215_s10 + $0x30] sm:$0xff]  ;;  %s389_s4 = scalar_lea.vmem (%p764_p5), %s838_s3, %s557_s28 }
  0x1c   : > { %572 = vmatprep.mubr.msk.f32.mxu0 %vm238_vm0, %v222_v1  ;;  %578 = vmatprep.mubr.msk.f32.mxu1 %vm238_vm0, %v226_v2  ;;  %v225_v7 = vld [vmem:[%s215_s10 + $0x18] sm:$0xff] }
  0x1d   : > { %573 = vmatmul.mubr.msk.f32.vlgmr.msra.gmra.mrb[0].mxu0 %vm238_vm0, %v223_v3  ;;  %579 = vmatmul.mubr.msk.f32.vlgmr.msra.gmra.mrb[0].mxu1 %vm238_vm0, %v227_v4  ;;  %v229_v8 = vld [vmem:[%s215_s10 + $0x38] sm:$0xff] }
  0x1e   : > { %575 = vmatprep.mubr.msk.f32.mxu0 %vm238_vm0, %v224_v5  ;;  %581 = vmatprep.mubr.msk.f32.mxu1 %vm238_vm0, %v228_v6 }
  0x21   : > { %576 = vmatmul.mubr.msk.f32.gmra.mrb[2].mxu0 %vm238_vm0, %v225_v7  ;;  %582 = vmatmul.mubr.msk.f32.gmra.mrb[2].mxu1 %vm238_vm0, %v229_v8 }
  0xf0   : > { %v574_v10 = vpop.f32.mrb[0].mxu0  ;;  %v580_v11 = vpop.f32.mrb[0].mxu1 }
  0xf1   : > { %v335_v12 = vadd.f32 %v574_v10, %v546_v9  ;;  %v355_v13 = vadd.f32 %v580_v11, %v546_v9  ;;  %v329_v14 = vpop.f32.mrb[1].mxu0  ;;  %v349_v15 = vpop.f32.mrb[1].mxu1 }
  0xf2   : > { %v330_v16 = vadd.f32 %v546_v9, %v329_v14  ;;  %v350_v17 = vadd.f32 %v546_v9, %v349_v15  ;;  %382 = sbr.rel (!%p764_p5) target bundleno = 258 (0x102), region = 36 }
  0xf3   : > { %369 = vst.msk [vmem:[%s206_s25 + $0x8] sm:$0xff] %vm238_vm0, %v335_v12  ;;  %373 = vst.msk [vmem:[%s206_s25 + $0x28] sm:$0xff] %vm238_vm0, %v355_v13 }
  0xf4   : > { %368 = vst.msk [vmem:[%s206_s25] sm:$0xff] %vm238_vm0, %v330_v16  ;;  %372 = vst.msk [vmem:[%s206_s25 + $0x20] sm:$0xff] %vm238_vm0, %v350_v17  ;;  %v577_v18 = vpop.f32.mrb[2].mxu0  ;;  %v583_v19 = vpop.f32.mrb[2].mxu1 }
  0xf5   : > { %v345_v20 = vadd.f32 %v577_v18, %v546_v9  ;;  %v365_v21 = vadd.f32 %v583_v19, %v546_v9  ;;  %v339_v22 = vpop.f32.mrb[3].mxu0  ;;  %v359_v23 = vpop.f32.mrb[3].mxu1 }
  0xf6   : > { %v340_v24 = vadd.f32 %v546_v9, %v339_v22  ;;  %v360_v25 = vadd.f32 %v546_v9, %v359_v23 }
  0xf7   : > { %371 = vst.msk [vmem:[%s206_s25 + $0x18] sm:$0xff] %vm238_vm0, %v345_v20  ;;  %375 = vst.msk [vmem:[%s206_s25 + $0x38] sm:$0xff] %vm238_vm0, %v365_v21 }
  0xf8   : > { %370 = vst.msk [vmem:[%s206_s25 + $0x10] sm:$0xff] %vm238_vm0, %v340_v24  ;;  %374 = vst.msk [vmem:[%s206_s25 + $0x30] sm:$0xff] %vm238_vm0, %v360_v25 }
  0xfa   : > { %v433_v27 = vld [vmem:[%s206_s25 + $0x8] sm:$0xff] }
  0xfb   : > { %v431_v26 = vld [vmem:[%s206_s25] sm:$0xff]  ;;  %v441_v31 = vld [vmem:[%s206_s25 + $0x28] sm:$0xff]  ;;  %434 = vst [vmem:[%s389_s4 + $0x10] sm:$0xff] %v433_v27 }
  0xfc   : > { %v439_v30 = vld [vmem:[%s206_s25 + $0x20] sm:$0xff]  ;;  %432 = vst [vmem:[%s389_s4] sm:$0xff] %v431_v26  ;;  %442 = vst [vmem:[%s389_s4 + $0x50] sm:$0xff] %v441_v31 }
  0xfd   : > { %440 = vst [vmem:[%s389_s4 + $0x40] sm:$0xff] %v439_v30 }
  0xfe   : > { %v437_v29 = vld [vmem:[%s206_s25 + $0x18] sm:$0xff] }
  0xff   : > { %v435_v28 = vld [vmem:[%s206_s25 + $0x10] sm:$0xff]  ;;  %v445_v33 = vld [vmem:[%s206_s25 + $0x38] sm:$0xff]  ;;  %438 = vst [vmem:[%s389_s4 + $0x30] sm:$0xff] %v437_v29 }
 0x100   : > { %v443_v32 = vld [vmem:[%s206_s25 + $0x30] sm:$0xff]  ;;  %436 = vst [vmem:[%s389_s4 + $0x20] sm:$0xff] %v435_v28  ;;  %446 = vst [vmem:[%s389_s4 + $0x70] sm:$0xff] %v445_v33 }
 0x101   : > { %444 = vst [vmem:[%s389_s4 + $0x60] sm:$0xff] %v443_v32 }
 0x102 PF: > { %s13_s18 = sadd.s32 1, %s696_s18   ;;  %s840_s12 = smov %s676_s13 }
 0x103   : > { %p10_p11 = scmp.ge.s32.totalorder %s13_s18, 6   ;;  %s841_s13 = smov %s775_s27 }
 0x104   : > { %s842_s14 = smov %s688_s16  ;;  %s843_s15 = smov %s692_s17 }
 0x105   : > { %s844_s16 = smov %s847_s19  ;;  %s845_s17 = smov %s851_s20 }
 0x106   :  { %12 = sbr.rel (!%p10_p11) target bundleno = 4 (0x4), region = 103 }

// kernel: unet_up_block.3
= control target key start
LH: loop header
LB: loop body
LE: loop exit
PB: predicated region body
PF: predicated region fallthrough
CT: control target
= control target key end

     0   :  { %s14888_s13 = smov 0   ;;  %s19057_s0 = inlined_call_operand.vmem [shape: f32[2,16,16,4], index: 0, kind: input, shape index: {}]   ;;  %s19058_s1 = inlined_call_operand.vmem [shape: f32[2,16,16,4], index: 1, kind: input, shape index: {}]   ;;  %s19059_s2 = inlined_call_operand.vmem [shape: f32[9,4,4], index: 2, kind: input, shape index: {}]   ;;  %s19060_s3 = inlined_call_operand.vmem [shape: f32[9,4,4], index: 3, kind: input, shape index: {}]   ;;  %s19061_s4 = inlined_call_operand.vmem [shape: f32[1,4], index: 4, kind: input, shape index: {}]   ;;  %s19062_s5 = inlined_call_operand.vmem [shape: f32[9,4,4], index: 5, kind: input, shape index: {}]   ;;  %s19063_s6 = inlined_call_operand.vmem [shape: f32[1,4], index: 6, kind: input, shape index: {}]   ;;  %s19064_s7 = inlined_call_operand.vmem [shape: f32[4,4], index: 7, kind: input, shape index: {}]   ;;  %s19065_s8 = inlined_call_operand.vmem [shape: f32[4,4], index: 8, kind: input, shape index: {}]   ;;  %s19066_s9 = inlined_call_operand.vmem [shape: f32[1,4], index: 9, kind: input, shape index: {}]   ;;  %s19067_s10 = inlined_call_operand.vmem [shape: f32[2,16,16,4], index: 10, kind: output, shape index: {}]  }
   0x1 LB: > { %s10480_s14 = sadd.s32 4294967295, %s14830_s13   ;;  %p10484_p0 = scmp.ge.s32.totalorder %s14830_s13, 1  ;;  %s14830_s13 = sphi %s14888_s13, %s20_s13  }
   0x2   : > { %p322_p1 = scmp.lt.s32.totalorder %s14830_s13, 3 }
   0x4   : > { %p323_p2 = pnand %p10484_p0, %p322_p1 }
   0x6   : > { %326 = sbr.rel (%p323_p2) target bundleno = 2009 (0x7d9), region = 60 }
   0xd   : > { %vm1194_vm0 = vcmask 1043456   ;;  %v14899_v0 = vld [vmem:[%s19060_s3 + $0x4] sm:$0xf]  ;;  %vm380_vm1 = vcmask 31744   ;;  %p14903_p3 = scmp.lt.s32.totalorder %s10480_s14, 1  ;;  %v14832_v1 = vmov 0.0  }
   0xe   : > { %12587 = vmatprep.subr.msk.mxu0 %vm1194_vm0, %v14899_v0  ;;  %454 = vst.msk [vmem:[#allocation3 + $0x8] sm:$0xff] %vm380_vm1, %v14832_v1  ;;  %381 = vst.msk [vmem:[#allocation2] sm:$0xff] %vm380_vm1, %v14832_v1  ;;  %v10625_v2 = vld [vmem:[%s19059_s2 + $0x8] sm:$0xf]  ;;  %vm2383_vm2 = vcmask 1046528   ;;  %vm919_vm3 = vcmask 1040384  }
   0xf   : > { %382 = vst.msk [vmem:[#allocation2 + $0x8] sm:$0xff] %vm380_vm1, %v14832_v1  ;;  %383 = vst.msk [vmem:[#allocation2 + $0x10] sm:$0xff] %vm380_vm1, %v14832_v1  ;;  %12588 = vmatpush3.msk.msra.mxu0 %vm1194_vm0, %v14899_v0  ;;  %s19866_s14 = smov (!%p14903_p3, %s10480_s14), 1  ;;  %v15388_v16 = vld [vmem:[%s19060_s3 + $0x8] sm:$0xf] }
  0x10   : > { %384 = vst.msk [vmem:[#allocation2 + $0x18] sm:$0xff] %vm380_vm1, %v14832_v1  ;;  %385 = vst.msk [vmem:[#allocation2 + $0x20] sm:$0xff] %vm380_vm1, %v14832_v1  ;;  %12637 = vmatprep.subr.msk.mxu0 %vm1194_vm0, %v10625_v2  ;;  %s15351_s20 = sshll.u32 %s19866_s14, 8 }
  0x11   : > { %386 = vst.msk [vmem:[#allocation2 + $0x28] sm:$0xff] %vm380_vm1, %v14832_v1  ;;  %387 = vst.msk [vmem:[#allocation2 + $0x30] sm:$0xff] %vm380_vm1, %v14832_v1  ;;  %s15357_s23 = scalar_lea.vmem %s19058_s1, %s15351_s20  ;;  %s15380_s26 = scalar_lea.vmem %s19057_s0, %s15351_s20 }
  0x12   : > { %388 = vst.msk [vmem:[#allocation2 + $0x38] sm:$0xff] %vm380_vm1, %v14832_v1  ;;  %389 = vst.msk [vmem:[#allocation2 + $0x40] sm:$0xff] %vm380_vm1, %v14832_v1  ;;  %v662_v3 = vld [vmem:[%s15357_s23] sm:$0xff]  ;;  %v663_v4 = vld [vmem:[%s15357_s23 + $0x8] sm:$0xff]  ;;  %s18898_s21 = scalar_lea.vmem %s19067_s10, %s15351_s20 }
  0x13   : > { %390 = vst.msk [vmem:[#allocation2 + $0x48] sm:$0xff] %vm380_vm1, %v14832_v1  ;;  %391 = vst.msk [vmem:[#allocation2 + $0x50] sm:$0xff] %vm380_vm1, %v14832_v1  ;;  %v664_v5 = vld [vmem:[%s15357_s23 + $0x10] sm:$0xff]  ;;  %v665_v6 = vld [vmem:[%s15357_s23 + $0x18] sm:$0xff] }
  0x14   : > { %392 = vst.msk [vmem:[#allocation2 + $0x58] sm:$0xff] %vm380_vm1, %v14832_v1  ;;  %393 = vst.msk [vmem:[#allocation2 + $0x60] sm:$0xff] %vm380_vm1, %v14832_v1  ;;  %v666_v7 = vld [vmem:[%s15357_s23 + $0x20] sm:$0xff]  ;;  %v667_v8 = vld [vmem:[%s15357_s23 + $0x28] sm:$0xff] }
  0x15   : > { %394 = vst.msk [vmem:[#allocation2 + $0x68] sm:$0xff] %vm380_vm1, %v14832_v1  ;;  %395 = vst.msk [vmem:[#allocation2 + $0x70] sm:$0xff] %vm380_vm1, %v14832_v1  ;;  %v800_v9 = vld [vmem:[#allocation3 + $0x8] sm:$0xff]  ;;  %v668_v11 = vld [vmem:[%s15357_s23 + $0x30] sm:$0xff] }
  0x16   : > { %396 = vst.msk [vmem:[#allocation2 + $0x78] sm:$0xff] %vm380_vm1, %v14832_v1  ;;  %397 = vst.msk [vmem:[#allocation2 + $0x80] sm:$0xff] %vm380_vm1, %v14832_v1  ;;  %12589 = vmatprep.mubr.msk.f32.mxu0 %vm380_vm1, %v800_v9  ;;  %v2480_v12 = vrot.slane %v800_v9, 1  ;;  %v669_v14 = vld [vmem:[%s15357_s23 + $0x38] sm:$0xff]  ;;  %v670_v15 = vld [vmem:[%s15357_s23 + $0x40] sm:$0xff] }
  0x17   : > { %398 = vst.msk [vmem:[#allocation2 + $0x88] sm:$0xff] %vm380_vm1, %v14832_v1  ;;  %399 = vst.msk [vmem:[#allocation2 + $0x90] sm:$0xff] %vm380_vm1, %v14832_v1  ;;  %v671_v17 = vld [vmem:[%s15357_s23 + $0x48] sm:$0xff]  ;;  %v672_v18 = vld [vmem:[%s15357_s23 + $0x50] sm:$0xff] }
  0x18   : > { %400 = vst.msk [vmem:[#allocation2 + $0x98] sm:$0xff] %vm380_vm1, %v14832_v1  ;;  %401 = vst.msk [vmem:[#allocation2 + $0xa0] sm:$0xff] %vm380_vm1, %v14832_v1  ;;  %v673_v19 = vld [vmem:[%s15357_s23 + $0x58] sm:$0xff]  ;;  %v674_v20 = vld [vmem:[%s15357_s23 + $0x60] sm:$0xff] }
  0x19   : > { %402 = vst.msk [vmem:[#allocation2 + $0xa8] sm:$0xff] %vm380_vm1, %v14832_v1  ;;  %403 = vst.msk [vmem:[#allocation2 + $0xb0] sm:$0xff] %vm380_vm1, %v14832_v1  ;;  %v675_v21 = vld [vmem:[%s15357_s23 + $0x68] sm:$0xff]  ;;  %v597_v23 = vld [vmem:[%s15380_s26] sm:$0xff] }
  0x1a   : > { %404 = vst.msk [vmem:[#allocation2 + $0xb8] sm:$0xff] %vm380_vm1, %v14832_v1  ;;  %405 = vst.msk [vmem:[#allocation2 + $0xc0] sm:$0xff] %vm380_vm1, %v14832_v1  ;;  %v598_v24 = vld [vmem:[%s15380_s26 + $0x8] sm:$0xff]  ;;  %v599_v25 = vld [vmem:[%s15380_s26 + $0x10] sm:$0xff] }
  0x1b   : > { %406 = vst.msk [vmem:[#allocation2 + $0xc8] sm:$0xff] %vm380_vm1, %v14832_v1  ;;  %407 = vst.msk [vmem:[#allocation2 + $0xd0] sm:$0xff] %vm380_vm1, %v14832_v1  ;;  %v600_v29 = vld [vmem:[%s15380_s26 + $0x18] sm:$0xff]  ;;  %v601_v32 = vld [vmem:[%s15380_s26 + $0x20] sm:$0xff] }
  0x1c   : > { %408 = vst.msk [vmem:[#allocation2 + $0xd8] sm:$0xff] %vm380_vm1, %v14832_v1  ;;  %409 = vst.msk [vmem:[#allocation2 + $0xe0] sm:$0xff] %vm380_vm1, %v14832_v1  ;;  %v602_v33 = vld [vmem:[%s15380_s26 + $0x28] sm:$0xff]  ;;  %v603_v35 = vld [vmem:[%s15380_s26 + $0x30] sm:$0xff] }
  0x1d   : > { %410 = vst.msk [vmem:[#allocation2 + $0xe8] sm:$0xff] %vm380_vm1, %v14832_v1  ;;  %411 = vst.msk [vmem:[#allocation2 + $0xf0] sm:$0xff] %vm380_vm1, %v14832_v1  ;;  %v604_v37 = vld [vmem:[%s15380_s26 + $0x38] sm:$0xff]  ;;  %v605_v38 = vld [vmem:[%s15380_s26 + $0x40] sm:$0xff] }
  0x1e   : > { %412 = vst.msk [vmem:[#allocation2 + $0xf8] sm:$0xff] %vm380_vm1, %v14832_v1  ;;  %413 = vst.msk [vmem:[#allocation2 + $0x100] sm:$0xff] %vm380_vm1, %v14832_v1  ;;  %v606_v39 = vld [vmem:[%s15380_s26 + $0x48] sm:$0xff]  ;;  %v607_v40 = vld [vmem:[%s15380_s26 + $0x50] sm:$0xff] }
  0x1f   : > { %414 = vst.msk [vmem:[#allocation2 + $0x108] sm:$0xff] %vm380_vm1, %v14832_v1  ;;  %415 = vst.msk [vmem:[#allocation2 + $0x110] sm:$0xff] %vm380_vm1, %v14832_v1  ;;  %v608_v41 = vld [vmem:[%s15380_s26 + $0x58] sm:$0xff]  ;;  %v609_v43 = vld [vmem:[%s15380_s26 + $0x60] sm:$0xff] }
  0x20   : > { %416 = vst.msk [vmem:[#allocation2 + $0x118] sm:$0xff] %vm380_vm1, %v14832_v1  ;;  %417 = vst.msk [vmem:[#allocation2 + $0x120] sm:$0xff] %vm380_vm1, %v14832_v1  ;;  %v610_v44 = vld [vmem:[%s15380_s26 + $0x68] sm:$0xff]  ;;  %v611_v46 = vld [vmem:[%s15380_s26 + $0x70] sm:$0xff] }
  0x21   : > { %418 = vst.msk [vmem:[#allocation2 + $0x128] sm:$0xff] %vm380_vm1, %v14832_v1  ;;  %419 = vst.msk [vmem:[#allocation2 + $0x130] sm:$0xff] %vm380_vm1, %v14832_v1  ;;  %v612_v47 = vld [vmem:[%s15380_s26 + $0x78] sm:$0xff]  ;;  %v613_v48 = vld [vmem:[%s15380_s26 + $0x80] sm:$0xff] }
  0x22   : > { %420 = vst.msk [vmem:[#allocation2 + $0x138] sm:$0xff] %vm380_vm1, %v14832_v1  ;;  %421 = vst.msk [vmem:[#allocation2 + $0x140] sm:$0xff] %vm380_vm1, %v14832_v1  ;;  %v614_v49 = vld [vmem:[%s15380_s26 + $0x88] sm:$0xff]  ;;  %v615_v50 = vld [vmem:[%s15380_s26 + $0x90] sm:$0xff] }
  0x23   : > { %422 = vst.msk [vmem:[#allocation2 + $0x148] sm:$0xff] %vm380_vm1, %v14832_v1  ;;  %423 = vst.msk [vmem:[#allocation2 + $0x150] sm:$0xff] %vm380_vm1, %v14832_v1  ;;  %v616_v52 = vld [vmem:[%s15380_s26 + $0x98] sm:$0xff]  ;;  %v617_v54 = vld [vmem:[%s15380_s26 + $0xa0] sm:$0xff] }
  0x24   : > { %424 = vst.msk [vmem:[#allocation2 + $0x158] sm:$0xff] %vm380_vm1, %v14832_v1  ;;  %425 = vst.msk [vmem:[#allocation2 + $0x160] sm:$0xff] %vm380_vm1, %v14832_v1  ;;  %v728_v55 = vld [vmem:[#allocation2 + $0x8] sm:$0xff]  ;;  %v729_v56 = vld [vmem:[#allocation2 + $0x10] sm:$0xff] }
  0x25   : > { %426 = vst.msk [vmem:[#allocation2 + $0x168] sm:$0xff] %vm380_vm1, %v14832_v1  ;;  %427 = vst.msk [vmem:[#allocation2 + $0x170] sm:$0xff] %vm380_vm1, %v14832_v1  ;;  %v618_v57 = vld [vmem:[%s15380_s26 + $0xa8] sm:$0xff]  ;;  %v619_v58 = vld [vmem:[%s15380_s26 + $0xb0] sm:$0xff]  ;;  %v2384_v62 = vrot.slane %v728_v55, 1  ;;  %v2385_v63 = vrot.slane %v729_v56, 1 }
  0x26   : > { %428 = vst.msk [vmem:[#allocation2 + $0x178] sm:$0xff] %vm380_vm1, %v14832_v1  ;;  %429 = vst.msk [vmem:[#allocation2 + $0x180] sm:$0xff] %vm380_vm1, %v14832_v1  ;;  %v620_v60 = vld [vmem:[%s15380_s26 + $0xb8] sm:$0xff] }
  0x27   : > { %430 = vst.msk [vmem:[#allocation2 + $0x188] sm:$0xff] %vm380_vm1, %v14832_v1  ;;  %431 = vst.msk [vmem:[#allocation2 + $0x190] sm:$0xff] %vm380_vm1, %v14832_v1  ;;  %v730_v0 = vld [vmem:[#allocation2 + $0x18] sm:$0xff]  ;;  %v2386_v9 = vsel %vm2383_vm2, %v2384_v62, %v2385_v63 }
  0x28   : > { %432 = vst.msk [vmem:[#allocation2 + $0x198] sm:$0xff] %vm380_vm1, %v14832_v1  ;;  %433 = vst.msk [vmem:[#allocation2 + $0x1a0] sm:$0xff] %vm380_vm1, %v14832_v1 }
  0x29   : > { %434 = vst.msk [vmem:[#allocation2 + $0x1a8] sm:$0xff] %vm380_vm1, %v14832_v1  ;;  %435 = vst.msk [vmem:[#allocation2 + $0x1b0] sm:$0xff] %vm380_vm1, %v14832_v1 }
  0x2a   : > { %436 = vst.msk [vmem:[#allocation2 + $0x1b8] sm:$0xff] %vm380_vm1, %v14832_v1  ;;  %437 = vst.msk [vmem:[#allocation2 + $0x1c0] sm:$0xff] %vm380_vm1, %v14832_v1 }
  0x2b   : > { %438 = vst.msk [vmem:[#allocation2 + $0x1c8] sm:$0xff] %vm380_vm1, %v14832_v1  ;;  %439 = vst.msk [vmem:[#allocation2 + $0x1d0] sm:$0xff] %vm380_vm1, %v14832_v1 }
  0x2c   : > { %440 = vst.msk [vmem:[#allocation2 + $0x1d8] sm:$0xff] %vm380_vm1, %v14832_v1  ;;  %441 = vst.msk [vmem:[#allocation2 + $0x1e0] sm:$0xff] %vm380_vm1, %v14832_v1 }
  0x2d   : > { %442 = vst.msk [vmem:[#allocation2 + $0x1e8] sm:$0xff] %vm380_vm1, %v14832_v1  ;;  %443 = vst.msk [vmem:[#allocation2 + $0x1f0] sm:$0xff] %vm380_vm1, %v14832_v1 }
  0x2e   : > { %444 = vst.msk [vmem:[#allocation2 + $0x1f8] sm:$0xff] %vm380_vm1, %v14832_v1  ;;  %445 = vst.msk [vmem:[#allocation2 + $0x200] sm:$0xff] %vm380_vm1, %v14832_v1 }
  0x2f   : > { %446 = vst.msk [vmem:[#allocation2 + $0x208] sm:$0xff] %vm380_vm1, %v14832_v1  ;;  %447 = vst.msk [vmem:[#allocation2 + $0x210] sm:$0xff] %vm380_vm1, %v14832_v1 }
  0x30   : > { %448 = vst.msk [vmem:[#allocation2 + $0x218] sm:$0xff] %vm380_vm1, %v14832_v1  ;;  %449 = vst.msk [vmem:[#allocation2 + $0x220] sm:$0xff] %vm380_vm1, %v14832_v1 }
  0x31   : > { %450 = vst.msk [vmem:[#allocation2 + $0x228] sm:$0xff] %vm380_vm1, %v14832_v1  ;;  %451 = vst.msk [vmem:[#allocation2 + $0x230] sm:$0xff] %vm380_vm1, %v14832_v1 }
  0x32   : > { %452 = vst.msk [vmem:[#allocation2 + $0x238] sm:$0xff] %vm380_vm1, %v14832_v1  ;;  %453 = vst.msk [vmem:[#allocation3] sm:$0xff] %vm380_vm1, %v14832_v1 }
  0x33   : > { %455 = vst.msk [vmem:[#allocation3 + $0x10] sm:$0xff] %vm380_vm1, %v14832_v1  ;;  %456 = vst.msk [vmem:[#allocation3 + $0x18] sm:$0xff] %vm380_vm1, %v14832_v1 }
  0x34   : > { %457 = vst.msk [vmem:[#allocation3 + $0x20] sm:$0xff] %vm380_vm1, %v14832_v1  ;;  %458 = vst.msk [vmem:[#allocation3 + $0x28] sm:$0xff] %vm380_vm1, %v14832_v1 }
  0x35   : > { %459 = vst.msk [vmem:[#allocation3 + $0x30] sm:$0xff] %vm380_vm1, %v14832_v1  ;;  %460 = vst.msk [vmem:[#allocation3 + $0x38] sm:$0xff] %vm380_vm1, %v14832_v1 }
  0x36   : > { %461 = vst.msk [vmem:[#allocation3 + $0x40] sm:$0xff] %vm380_vm1, %v14832_v1  ;;  %462 = vst.msk [vmem:[#allocation3 + $0x48] sm:$0xff] %vm380_vm1, %v14832_v1 }
  0x37   : > { %463 = vst.msk [vmem:[#allocation3 + $0x50] sm:$0xff] %vm380_vm1, %v14832_v1  ;;  %464 = vst.msk [vmem:[#allocation3 + $0x58] sm:$0xff] %vm380_vm1, %v14832_v1 }
  0x38   : > { %465 = vst.msk [vmem:[#allocation3 + $0x60] sm:$0xff] %vm380_vm1, %v14832_v1  ;;  %466 = vst.msk [vmem:[#allocation3 + $0x68] sm:$0xff] %vm380_vm1, %v14832_v1 }
  0x39   : > { %467 = vst.msk [vmem:[#allocation3 + $0x70] sm:$0xff] %vm380_vm1, %v14832_v1  ;;  %468 = vst.msk [vmem:[#allocation3 + $0x78] sm:$0xff] %vm380_vm1, %v14832_v1 }
  0x3a   : > { %469 = vst.msk [vmem:[#allocation3 + $0x80] sm:$0xff] %vm380_vm1, %v14832_v1  ;;  %470 = vst.msk [vmem:[#allocation3 + $0x88] sm:$0xff] %vm380_vm1, %v14832_v1  ;;  %v15368_v10 = vld [vmem:[#allocation3 + $0x10] sm:$0xff] }
  0x3b   : > { %471 = vst.msk [vmem:[#allocation3 + $0x90] sm:$0xff] %vm380_vm1, %v14832_v1  ;;  %472 = vst.msk [vmem:[#allocation3 + $0x98] sm:$0xff] %vm380_vm1, %v14832_v1  ;;  %v19068_v13 = vrot.slane %v15368_v10, 1  ;;  %12590 = vmatmul.mubr.msk.f32.vlgmr.msra.gmra.mrb[0].mxu0 %vm380_vm1, %v15368_v10 }
  0x3c   : > { %473 = vst.msk [vmem:[#allocation3 + $0xa0] sm:$0xff] %vm380_vm1, %v14832_v1  ;;  %474 = vst.msk [vmem:[#allocation3 + $0xa8] sm:$0xff] %vm380_vm1, %v14832_v1  ;;  %12638 = vmatpush3.msk.msra.mxu0 %vm1194_vm0, %v10625_v2 }
  0x3d   : > { %475 = vst.msk [vmem:[#allocation3 + $0xb0] sm:$0xff] %vm380_vm1, %v14832_v1  ;;  %476 = vst.msk [vmem:[#allocation3 + $0xb8] sm:$0xff] %vm380_vm1, %v14832_v1  ;;  %v15406_v22 = vsel %vm2383_vm2, %v2480_v12, %v19068_v13  ;;  %12687 = vmatprep.subr.msk.mxu0 %vm1194_vm0, %v15388_v16 }
  0x3e   : > { %477 = vst.msk [vmem:[#allocation3 + $0xc0] sm:$0xff] %vm380_vm1, %v14832_v1  ;;  %478 = vst.msk [vmem:[#allocation3 + $0xc8] sm:$0xff] %vm380_vm1, %v14832_v1 }
  0x3f   : > { %479 = vst.msk [vmem:[#allocation3 + $0xd0] sm:$0xff] %vm380_vm1, %v14832_v1  ;;  %480 = vst.msk [vmem:[#allocation3 + $0xd8] sm:$0xff] %vm380_vm1, %v14832_v1 }
  0x40   : > { %481 = vst.msk [vmem:[#allocation3 + $0xe0] sm:$0xff] %vm380_vm1, %v14832_v1  ;;  %482 = vst.msk [vmem:[#allocation3 + $0xe8] sm:$0xff] %vm380_vm1, %v14832_v1 }
  0x41   : > { %483 = vst.msk [vmem:[#allocation3 + $0xf0] sm:$0xff] %vm380_vm1, %v14832_v1  ;;  %484 = vst.msk [vmem:[#allocation3 + $0xf8] sm:$0xff] %vm380_vm1, %v14832_v1 }
  0x42   : > { %485 = vst.msk [vmem:[#allocation3 + $0x100] sm:$0xff] %vm380_vm1, %v14832_v1  ;;  %486 = vst.msk [vmem:[#allocation3 + $0x108] sm:$0xff] %vm380_vm1, %v14832_v1 }
  0x43   : > { %487 = vst.msk [vmem:[#allocation3 + $0x110] sm:$0xff] %vm380_vm1, %v14832_v1  ;;  %488 = vst.msk [vmem:[#allocation3 + $0x118] sm:$0xff] %vm380_vm1, %v14832_v1 }
  0x44   : > { %489 = vst.msk [vmem:[#allocation3 + $0x120] sm:$0xff] %vm380_vm1, %v14832_v1  ;;  %490 = vst.msk [vmem:[#allocation3 + $0x128] sm:$0xff] %vm380_vm1, %v14832_v1 }
  0x45   : > { %491 = vst.msk [vmem:[#allocation3 + $0x130] sm:$0xff] %vm380_vm1, %v14832_v1  ;;  %492 = vst.msk [vmem:[#allocation3 + $0x138] sm:$0xff] %vm380_vm1, %v14832_v1 }
  0x46   : > { %493 = vst.msk [vmem:[#allocation3 + $0x140] sm:$0xff] %vm380_vm1, %v14832_v1  ;;  %494 = vst.msk [vmem:[#allocation3 + $0x148] sm:$0xff] %vm380_vm1, %v14832_v1 }
  0x47   : > { %495 = vst.msk [vmem:[#allocation3 + $0x150] sm:$0xff] %vm380_vm1, %v14832_v1  ;;  %496 = vst.msk [vmem:[#allocation3 + $0x158] sm:$0xff] %vm380_vm1, %v14832_v1 }
  0x48   : > { %497 = vst.msk [vmem:[#allocation3 + $0x160] sm:$0xff] %vm380_vm1, %v14832_v1  ;;  %498 = vst.msk [vmem:[#allocation3 + $0x168] sm:$0xff] %vm380_vm1, %v14832_v1 }
  0x49   : > { %499 = vst.msk [vmem:[#allocation3 + $0x170] sm:$0xff] %vm380_vm1, %v14832_v1  ;;  %500 = vst.msk [vmem:[#allocation3 + $0x178] sm:$0xff] %vm380_vm1, %v14832_v1 }
  0x4a   : > { %501 = vst.msk [vmem:[#allocation3 + $0x180] sm:$0xff] %vm380_vm1, %v14832_v1  ;;  %502 = vst.msk [vmem:[#allocation3 + $0x188] sm:$0xff] %vm380_vm1, %v14832_v1 }
  0x4b   : > { %503 = vst.msk [vmem:[#allocation3 + $0x190] sm:$0xff] %vm380_vm1, %v14832_v1  ;;  %504 = vst.msk [vmem:[#allocation3 + $0x198] sm:$0xff] %vm380_vm1, %v14832_v1 }
  0x4c   : > { %505 = vst.msk [vmem:[#allocation3 + $0x1a0] sm:$0xff] %vm380_vm1, %v14832_v1  ;;  %506 = vst.msk [vmem:[#allocation3 + $0x1a8] sm:$0xff] %vm380_vm1, %v14832_v1 }
  0x4d   : > { %507 = vst.msk [vmem:[#allocation3 + $0x1b0] sm:$0xff] %vm380_vm1, %v14832_v1  ;;  %508 = vst.msk [vmem:[#allocation3 + $0x1b8] sm:$0xff] %vm380_vm1, %v14832_v1 }
  0x4e   : > { %509 = vst.msk [vmem:[#allocation3 + $0x1c0] sm:$0xff] %vm380_vm1, %v14832_v1  ;;  %510 = vst.msk [vmem:[#allocation3 + $0x1c8] sm:$0xff] %vm380_vm1, %v14832_v1 }
  0x4f   : > { %511 = vst.msk [vmem:[#allocation3 + $0x1d0] sm:$0xff] %vm380_vm1, %v14832_v1  ;;  %512 = vst.msk [vmem:[#allocation3 + $0x1d8] sm:$0xff] %vm380_vm1, %v14832_v1 }
  0x50   : > { %513 = vst.msk [vmem:[#allocation3 + $0x1e0] sm:$0xff] %vm380_vm1, %v14832_v1  ;;  %514 = vst.msk [vmem:[#allocation3 + $0x1e8] sm:$0xff] %vm380_vm1, %v14832_v1 }
  0x51   : > { %515 = vst.msk [vmem:[#allocation3 + $0x1f0] sm:$0xff] %vm380_vm1, %v14832_v1  ;;  %516 = vst.msk [vmem:[#allocation3 + $0x1f8] sm:$0xff] %vm380_vm1, %v14832_v1 }
  0x52   : > { %517 = vst.msk [vmem:[#allocation3 + $0x200] sm:$0xff] %vm380_vm1, %v14832_v1  ;;  %518 = vst.msk [vmem:[#allocation3 + $0x208] sm:$0xff] %vm380_vm1, %v14832_v1 }
  0x53   : > { %519 = vst.msk [vmem:[#allocation3 + $0x210] sm:$0xff] %vm380_vm1, %v14832_v1  ;;  %520 = vst.msk [vmem:[#allocation3 + $0x218] sm:$0xff] %vm380_vm1, %v14832_v1 }
  0x54   : > { %521 = vst.msk [vmem:[#allocation3 + $0x220] sm:$0xff] %vm380_vm1, %v14832_v1  ;;  %522 = vst.msk [vmem:[#allocation3 + $0x228] sm:$0xff] %vm380_vm1, %v14832_v1 }
  0x55   : > { %523 = vst.msk [vmem:[#allocation3 + $0x230] sm:$0xff] %vm380_vm1, %v14832_v1  ;;  %524 = vst.msk [vmem:[#allocation3 + $0x238] sm:$0xff] %vm380_vm1, %v14832_v1 }
  0x56   : > { %525 = vst.msk [vmem:[#allocation4] sm:$0xff] %vm380_vm1, %v14832_v1  ;;  %526 = vst.msk [vmem:[#allocation4 + $0x8] sm:$0xff] %vm380_vm1, %v14832_v1 }
  0x57   : > { %527 = vst.msk [vmem:[#allocation4 + $0x10] sm:$0xff] %vm380_vm1, %v14832_v1  ;;  %528 = vst.msk [vmem:[#allocation4 + $0x18] sm:$0xff] %vm380_vm1, %v14832_v1 }
  0x58   : > { %529 = vst.msk [vmem:[#allocation4 + $0x20] sm:$0xff] %vm380_vm1, %v14832_v1  ;;  %530 = vst.msk [vmem:[#allocation4 + $0x28] sm:$0xff] %vm380_vm1, %v14832_v1 }
  0x59   : > { %531 = vst.msk [vmem:[#allocation4 + $0x30] sm:$0xff] %vm380_vm1, %v14832_v1  ;;  %532 = vst.msk [vmem:[#allocation4 + $0x38] sm:$0xff] %vm380_vm1, %v14832_v1 }
  0x5a   : > { %533 = vst.msk [vmem:[#allocation4 + $0x40] sm:$0xff] %vm380_vm1, %v14832_v1  ;;  %534 = vst.msk [vmem:[#allocation4 + $0x48] sm:$0xff] %vm380_vm1, %v14832_v1 }
  0x5b   : > { %535 = vst.msk [vmem:[#allocation4 + $0x50] sm:$0xff] %vm380_vm1, %v14832_v1  ;;  %536 = vst.msk [vmem:[#allocation4 + $0x58] sm:$0xff] %vm380_vm1, %v14832_v1 }
  0x5c   : > { %537 = vst.msk [vmem:[#allocation4 + $0x60] sm:$0xff] %vm380_vm1, %v14832_v1  ;;  %538 = vst.msk [vmem:[#allocation4 + $0x68] sm:$0xff] %vm380_vm1, %v14832_v1 }
  0x5d   : > { %539 = vst.msk [vmem:[#allocation4 + $0x70] sm:$0xff] %vm380_vm1, %v14832_v1  ;;  %540 = vst.msk [vmem:[#allocation4 + $0x78] sm:$0xff] %vm380_vm1, %v14832_v1 }
  0x5e   : > { %541 = vst.msk [vmem:[#allocation4 + $0x80] sm:$0xff] %vm380_vm1, %v14832_v1  ;;  %542 = vst.msk [vmem:[#allocation4 + $0x88] sm:$0xff] %vm380_vm1, %v14832_v1 }
  0x5f   : > { %543 = vst.msk [vmem:[#allocation4 + $0x90] sm:$0xff] %vm380_vm1, %v14832_v1  ;;  %544 = vst.msk [vmem:[#allocation4 + $0x98] sm:$0xff] %vm380_vm1, %v14832_v1 }
  0x60   : > { %545 = vst.msk [vmem:[#allocation4 + $0xa0] sm:$0xff] %vm380_vm1, %v14832_v1  ;;  %546 = vst.msk [vmem:[#allocation4 + $0xa8] sm:$0xff] %vm380_vm1, %v14832_v1 }
  0x61   : > { %547 = vst.msk [vmem:[#allocation4 + $0xb0] sm:$0xff] %vm380_vm1, %v14832_v1  ;;  %548 = vst.msk [vmem:[#allocation4 + $0xb8] sm:$0xff] %vm380_vm1, %v14832_v1 }
  0x62   : > { %549 = vst.msk [vmem:[#allocation4 + $0xc0] sm:$0xff] %vm380_vm1, %v14832_v1  ;;  %550 = vst.msk [vmem:[#allocation4 + $0xc8] sm:$0xff] %vm380_vm1, %v14832_v1 }
  0x63   : > { %551 = vst.msk [vmem:[#allocation4 + $0xd0] sm:$0xff] %vm380_vm1, %v14832_v1  ;;  %552 = vst.msk [vmem:[#allocation4 + $0xd8] sm:$0xff] %vm380_vm1, %v14832_v1 }
  0x64   : > { %553 = vst.msk [vmem:[#allocation4 + $0xe0] sm:$0xff] %vm380_vm1, %v14832_v1  ;;  %554 = vst.msk [vmem:[#allocation4 + $0xe8] sm:$0xff] %vm380_vm1, %v14832_v1 }
  0x65   : > { %555 = vst.msk [vmem:[#allocation4 + $0xf0] sm:$0xff] %vm380_vm1, %v14832_v1  ;;  %556 = vst.msk [vmem:[#allocation4 + $0xf8] sm:$0xff] %vm380_vm1, %v14832_v1 }
  0x66   : > { %557 = vst.msk [vmem:[#allocation4 + $0x100] sm:$0xff] %vm380_vm1, %v14832_v1  ;;  %558 = vst.msk [vmem:[#allocation4 + $0x108] sm:$0xff] %vm380_vm1, %v14832_v1 }
  0x67   : > { %559 = vst.msk [vmem:[#allocation4 + $0x110] sm:$0xff] %vm380_vm1, %v14832_v1  ;;  %560 = vst.msk [vmem:[#allocation4 + $0x118] sm:$0xff] %vm380_vm1, %v14832_v1 }
  0x68   : > { %561 = vst.msk [vmem:[#allocation4 + $0x120] sm:$0xff] %vm380_vm1, %v14832_v1  ;;  %562 = vst.msk [vmem:[#allocation4 + $0x128] sm:$0xff] %vm380_vm1, %v14832_v1 }
  0x69   : > { %563 = vst.msk [vmem:[#allocation4 + $0x130] sm:$0xff] %vm380_vm1, %v14832_v1  ;;  %564 = vst.msk [vmem:[#allocation4 + $0x138] sm:$0xff] %vm380_vm1, %v14832_v1 }
  0x6a   : > { %565 = vst.msk [vmem:[#allocation4 + $0x140] sm:$0xff] %vm380_vm1, %v14832_v1  ;;  %566 = vst.msk [vmem:[#allocation4 + $0x148] sm:$0xff] %vm380_vm1, %v14832_v1 }
  0x6b   : > { %567 = vst.msk [vmem:[#allocation4 + $0x150] sm:$0xff] %vm380_vm1, %v14832_v1  ;;  %568 = vst.msk [vmem:[#allocation4 + $0x158] sm:$0xff] %vm380_vm1, %v14832_v1 }
  0x6c   : > { %569 = vst.msk [vmem:[#allocation4 + $0x160] sm:$0xff] %vm380_vm1, %v14832_v1  ;;  %570 = vst.msk [vmem:[#allocation4 + $0x168] sm:$0xff] %vm380_vm1, %v14832_v1 }
  0x6d   : > { %571 = vst.msk [vmem:[#allocation4 + $0x170] sm:$0xff] %vm380_vm1, %v14832_v1  ;;  %572 = vst.msk [vmem:[#allocation4 + $0x178] sm:$0xff] %vm380_vm1, %v14832_v1 }
  0x6e   : > { %573 = vst.msk [vmem:[#allocation4 + $0x180] sm:$0xff] %vm380_vm1, %v14832_v1  ;;  %574 = vst.msk [vmem:[#allocation4 + $0x188] sm:$0xff] %vm380_vm1, %v14832_v1 }
  0x6f   : > { %575 = vst.msk [vmem:[#allocation4 + $0x190] sm:$0xff] %vm380_vm1, %v14832_v1  ;;  %576 = vst.msk [vmem:[#allocation4 + $0x198] sm:$0xff] %vm380_vm1, %v14832_v1 }
  0x70   : > { %577 = vst.msk [vmem:[#allocation4 + $0x1a0] sm:$0xff] %vm380_vm1, %v14832_v1  ;;  %578 = vst.msk [vmem:[#allocation4 + $0x1a8] sm:$0xff] %vm380_vm1, %v14832_v1 }
  0x71   : > { %579 = vst.msk [vmem:[#allocation4 + $0x1b0] sm:$0xff] %vm380_vm1, %v14832_v1  ;;  %580 = vst.msk [vmem:[#allocation4 + $0x1b8] sm:$0xff] %vm380_vm1, %v14832_v1 }
  0x72   : > { %581 = vst.msk [vmem:[#allocation4 + $0x1c0] sm:$0xff] %vm380_vm1, %v14832_v1  ;;  %582 = vst.msk [vmem:[#allocation4 + $0x1c8] sm:$0xff] %vm380_vm1, %v14832_v1 }
  0x73   : > { %583 = vst.msk [vmem:[#allocation4 + $0x1d0] sm:$0xff] %vm380_vm1, %v14832_v1  ;;  %584 = vst.msk [vmem:[#allocation4 + $0x1d8] sm:$0xff] %vm380_vm1, %v14832_v1 }
  0x74   : > { %585 = vst.msk [vmem:[#allocation4 + $0x1e0] sm:$0xff] %vm380_vm1, %v14832_v1  ;;  %586 = vst.msk [vmem:[#allocation4 + $0x1e8] sm:$0xff] %vm380_vm1, %v14832_v1 }
  0x75   : > { %587 = vst.msk [vmem:[#allocation4 + $0x1f0] sm:$0xff] %vm380_vm1, %v14832_v1  ;;  %588 = vst.msk [vmem:[#allocation4 + $0x1f8] sm:$0xff] %vm380_vm1, %v14832_v1 }
  0x76   : > { %589 = vst.msk [vmem:[#allocation4 + $0x200] sm:$0xff] %vm380_vm1, %v14832_v1  ;;  %590 = vst.msk [vmem:[#allocation4 + $0x208] sm:$0xff] %vm380_vm1, %v14832_v1 }
  0x77   : > { %591 = vst.msk [vmem:[#allocation4 + $0x210] sm:$0xff] %vm380_vm1, %v14832_v1  ;;  %592 = vst.msk [vmem:[#allocation4 + $0x218] sm:$0xff] %vm380_vm1, %v14832_v1 }
  0x78   : > { %593 = vst.msk [vmem:[#allocation4 + $0x220] sm:$0xff] %vm380_vm1, %v14832_v1  ;;  %594 = vst.msk [vmem:[#allocation4 + $0x228] sm:$0xff] %vm380_vm1, %v14832_v1 }
  0x79   : > { %595 = vst.msk [vmem:[#allocation4 + $0x230] sm:$0xff] %vm380_vm1, %v14832_v1  ;;  %596 = vst.msk [vmem:[#allocation4 + $0x238] sm:$0xff] %vm380_vm1, %v14832_v1 }
  0x7a   : > { %695 = vst.msk [vmem:[#allocation3 + $0x28] sm:$0xff] %vm380_vm1, %v662_v3  ;;  %696 = vst.msk [vmem:[#allocation3 + $0x30] sm:$0xff] %vm380_vm1, %v663_v4  ;;  %v621_v3 = vld [vmem:[%s15380_s26 + $0xc0] sm:$0xff]  ;;  %v622_v4 = vld [vmem:[%s15380_s26 + $0xc8] sm:$0xff] }
  0x7b   : > { %697 = vst.msk [vmem:[#allocation3 + $0x48] sm:$0xff] %vm380_vm1, %v664_v5  ;;  %698 = vst.msk [vmem:[#allocation3 + $0x50] sm:$0xff] %vm380_vm1, %v665_v6  ;;  %v2387_v6 = vrot.slane %v730_v0, 1  ;;  %v746_v0 = vld [vmem:[#allocation2 + $0x98] sm:$0xff] }
  0x7c   : > { %699 = vst.msk [vmem:[#allocation3 + $0x68] sm:$0xff] %vm380_vm1, %v666_v7  ;;  %700 = vst.msk [vmem:[#allocation3 + $0x70] sm:$0xff] %vm380_vm1, %v667_v8  ;;  %v623_v7 = vld [vmem:[%s15380_s26 + $0xd0] sm:$0xff]  ;;  %v624_v8 = vld [vmem:[%s15380_s26 + $0xd8] sm:$0xff] }
  0x7d   : > { %701 = vst.msk [vmem:[#allocation3 + $0x88] sm:$0xff] %vm380_vm1, %v668_v11  ;;  %702 = vst.msk [vmem:[#allocation3 + $0x90] sm:$0xff] %vm380_vm1, %v669_v14  ;;  %v734_v14 = vld [vmem:[#allocation2 + $0x38] sm:$0xff] }
  0x7e   : > { %703 = vst.msk [vmem:[#allocation3 + $0xa8] sm:$0xff] %vm380_vm1, %v670_v15  ;;  %704 = vst.msk [vmem:[#allocation3 + $0xb0] sm:$0xff] %vm380_vm1, %v671_v17  ;;  %v625_v15 = vld [vmem:[%s15380_s26 + $0xe0] sm:$0xff] }
  0x7f   : > { %705 = vst.msk [vmem:[#allocation3 + $0xc8] sm:$0xff] %vm380_vm1, %v672_v18  ;;  %706 = vst.msk [vmem:[#allocation3 + $0xd0] sm:$0xff] %vm380_vm1, %v673_v19  ;;  %v626_v19 = vld [vmem:[%s15380_s26 + $0xe8] sm:$0xff] }
  0x80   : > { %707 = vst.msk [vmem:[#allocation3 + $0xe8] sm:$0xff] %vm380_vm1, %v674_v20  ;;  %708 = vst.msk [vmem:[#allocation3 + $0xf0] sm:$0xff] %vm380_vm1, %v675_v21  ;;  %v2388_v20 = vsel %vm2383_vm2, %v2385_v63, %v2387_v6  ;;  %v2392_v21 = vrot.slane %v734_v14, 1  ;;  %v2407_v14 = vrot.slane %v746_v0, 1 }
  0x81   : > { %630 = vst.msk [vmem:[#allocation2 + $0x28] sm:$0xff] %vm380_vm1, %v597_v23  ;;  %v15416_v26 = vld [vmem:[#allocation3 + $0x28] sm:$0xff]  ;;  %v15418_v27 = vld [vmem:[#allocation3 + $0x30] sm:$0xff]  ;;  %631 = vst.msk [vmem:[#allocation2 + $0x30] sm:$0xff] %vm380_vm1, %v598_v24 }
  0x82   : > { %v15420_v28 = vld [vmem:[#allocation3 + $0x48] sm:$0xff]  ;;  %632 = vst.msk [vmem:[#allocation2 + $0x48] sm:$0xff] %vm380_vm1, %v599_v25  ;;  %12592 = vmatprep.mubr.msk.f32.mxu0 %vm380_vm1, %v15416_v26  ;;  %v15431_v30 = vld [vmem:[#allocation3 + $0x50] sm:$0xff]  ;;  %633 = vst.msk [vmem:[#allocation2 + $0x50] sm:$0xff] %vm380_vm1, %v600_v29 }
  0x83   : > { %12593 = vmatmul.mubr.msk.f32.gmra.mrb[2].mxu0 %vm380_vm1, %v15418_v27  ;;  %v15434_v31 = vld [vmem:[#allocation3 + $0x68] sm:$0xff]  ;;  %634 = vst.msk [vmem:[#allocation2 + $0x68] sm:$0xff] %vm380_vm1, %v601_v32  ;;  %v15443_v34 = vld [vmem:[#allocation3 + $0x70] sm:$0xff]  ;;  %635 = vst.msk [vmem:[#allocation2 + $0x70] sm:$0xff] %vm380_vm1, %v602_v33 }
  0x84   : > { %12595 = vmatprep.mubr.msk.f32.mxu0 %vm380_vm1, %v15420_v28  ;;  %v15447_v36 = vld [vmem:[#allocation3 + $0x88] sm:$0xff]  ;;  %636 = vst.msk [vmem:[#allocation2 + $0x88] sm:$0xff] %vm380_vm1, %v603_v35  ;;  %637 = vst.msk [vmem:[#allocation2 + $0x90] sm:$0xff] %vm380_vm1, %v604_v37  ;;  %v15463_v42 = vld [vmem:[#allocation3 + $0x90] sm:$0xff] }
  0x85   : > { %638 = vst.msk [vmem:[#allocation2 + $0xa8] sm:$0xff] %vm380_vm1, %v605_v38  ;;  %639 = vst.msk [vmem:[#allocation2 + $0xb0] sm:$0xff] %vm380_vm1, %v606_v39  ;;  %v15468_v45 = vld [vmem:[#allocation3 + $0xa8] sm:$0xff]  ;;  %v15485_v51 = vld [vmem:[#allocation3 + $0xb0] sm:$0xff] }
  0x86   : > { %640 = vst.msk [vmem:[#allocation2 + $0xc8] sm:$0xff] %vm380_vm1, %v607_v40  ;;  %641 = vst.msk [vmem:[#allocation2 + $0xd0] sm:$0xff] %vm380_vm1, %v608_v41  ;;  %v15489_v53 = vld [vmem:[#allocation3 + $0xc8] sm:$0xff]  ;;  %v15501_v59 = vld [vmem:[#allocation3 + $0xd0] sm:$0xff] }
  0x87   : > { %12596 = vmatmul.mubr.msk.f32.gmra.mrb[4].mxu0 %vm380_vm1, %v15431_v30  ;;  %642 = vst.msk [vmem:[#allocation2 + $0xe8] sm:$0xff] %vm380_vm1, %v609_v43  ;;  %643 = vst.msk [vmem:[#allocation2 + $0xf0] sm:$0xff] %vm380_vm1, %v610_v44  ;;  %v15505_v61 = vld [vmem:[#allocation3 + $0xe8] sm:$0xff]  ;;  %v15519_v5 = vld [vmem:[#allocation3 + $0xf0] sm:$0xff] }
  0x88   : > { %12598 = vmatprep.mubr.msk.f32.mxu0 %vm380_vm1, %v15434_v31  ;;  %644 = vst.msk [vmem:[#allocation2 + $0x108] sm:$0xff] %vm380_vm1, %v611_v46  ;;  %645 = vst.msk [vmem:[#allocation2 + $0x110] sm:$0xff] %vm380_vm1, %v612_v47  ;;  %v15508_v1 = vld [vmem:[#allocation2 + $0x28] sm:$0xff]  ;;  %v15510_v2 = vld [vmem:[#allocation2 + $0x30] sm:$0xff] }
  0x89   : > { %646 = vst.msk [vmem:[#allocation2 + $0x128] sm:$0xff] %vm380_vm1, %v613_v48  ;;  %647 = vst.msk [vmem:[#allocation2 + $0x130] sm:$0xff] %vm380_vm1, %v614_v49  ;;  %v2389_v11 = vrot.slane %v15508_v1, 1  ;;  %v2390_v12 = vrot.slane %v15510_v2, 1  ;;  %v15530_v17 = vld [vmem:[#allocation2 + $0x48] sm:$0xff]  ;;  %v15532_v18 = vld [vmem:[#allocation2 + $0x50] sm:$0xff] }
  0x8a   : > { %648 = vst.msk [vmem:[#allocation2 + $0x148] sm:$0xff] %vm380_vm1, %v615_v50  ;;  %649 = vst.msk [vmem:[#allocation2 + $0x150] sm:$0xff] %vm380_vm1, %v616_v52  ;;  %v2394_v24 = vrot.slane %v15530_v17, 1  ;;  %v2395_v25 = vrot.slane %v15532_v18, 1  ;;  %v738_v29 = vld [vmem:[#allocation2 + $0x58] sm:$0xff]  ;;  %v15551_v33 = vld [vmem:[#allocation2 + $0x68] sm:$0xff] }
  0x8b   : > { %12599 = vmatmul.mubr.msk.f32.gmra.mrb[6].mxu0 %vm380_vm1, %v15443_v34  ;;  %650 = vst.msk [vmem:[#allocation2 + $0x168] sm:$0xff] %vm380_vm1, %v617_v54  ;;  %651 = vst.msk [vmem:[#allocation2 + $0x170] sm:$0xff] %vm380_vm1, %v618_v57  ;;  %v15542_v23 = vsel %vm2383_vm2, %v2389_v11, %v2390_v12  ;;  %v15549_v32 = vld [vmem:[%s19059_s2 + $0xc] sm:$0xf]  ;;  %v15553_v35 = vld [vmem:[#allocation2 + $0x70] sm:$0xff]  ;;  %v15564_v39 = vsel %vm2383_vm2, %v2390_v12, %v2392_v21  ;;  %v2397_v40 = vrot.slane %v738_v29, 1 }
  0x8c   : > { %12601 = vmatprep.mubr.msk.f32.mxu0 %vm380_vm1, %v15447_v36  ;;  %652 = vst.msk [vmem:[#allocation2 + $0x188] sm:$0xff] %vm380_vm1, %v619_v58  ;;  %653 = vst.msk [vmem:[#allocation2 + $0x190] sm:$0xff] %vm380_vm1, %v620_v60  ;;  %v676_v37 = vld [vmem:[%s15357_s23 + $0x70] sm:$0xff]  ;;  %v677_v38 = vld [vmem:[%s15357_s23 + $0x78] sm:$0xff]  ;;  %v15569_v43 = vsel %vm2383_vm2, %v2394_v24, %v2395_v25  ;;  %v2399_v44 = vrot.slane %v15551_v33, 1 }
  0x8d   : > { %654 = vst.msk [vmem:[#allocation2 + $0x1a8] sm:$0xff] %vm380_vm1, %v621_v3  ;;  %655 = vst.msk [vmem:[#allocation2 + $0x1b0] sm:$0xff] %vm380_vm1, %v622_v4  ;;  %v678_v41 = vld [vmem:[%s15357_s23 + $0x80] sm:$0xff]  ;;  %v742_v46 = vld [vmem:[#allocation2 + $0x78] sm:$0xff]  ;;  %v15591_v55 = vsel %vm2383_vm2, %v2395_v25, %v2397_v40 }
  0x8e   : > { %656 = vst.msk [vmem:[#allocation2 + $0x1c8] sm:$0xff] %vm380_vm1, %v623_v7  ;;  %657 = vst.msk [vmem:[#allocation2 + $0x1d0] sm:$0xff] %vm380_vm1, %v624_v8  ;;  %v679_v47 = vld [vmem:[%s15357_s23 + $0x88] sm:$0xff]  ;;  %v15579_v49 = vld [vmem:[#allocation2 + $0x90] sm:$0xff]  ;;  %v2402_v56 = vrot.slane %v742_v46, 1 }
  0x8f   : > { %12602 = vmatmul.mubr.msk.f32.gmra.mrb[8].mxu0 %vm380_vm1, %v15463_v42  ;;  %658 = vst.msk [vmem:[#allocation2 + $0x1e8] sm:$0xff] %vm380_vm1, %v625_v15  ;;  %659 = vst.msk [vmem:[#allocation2 + $0x1f0] sm:$0xff] %vm380_vm1, %v626_v19  ;;  %v15577_v48 = vld [vmem:[#allocation2 + $0x88] sm:$0xff]  ;;  %v680_v50 = vld [vmem:[%s15357_s23 + $0x90] sm:$0xff]  ;;  %v2405_v63 = vrot.slane %v15579_v49, 1 }
  0x90   : > { %12604 = vmatprep.mubr.msk.f32.mxu0 %vm380_vm1, %v15468_v45  ;;  %709 = vst.msk [vmem:[#allocation3 + $0x108] sm:$0xff] %vm380_vm1, %v676_v37  ;;  %710 = vst.msk [vmem:[#allocation3 + $0x110] sm:$0xff] %vm380_vm1, %v677_v38  ;;  %v681_v52 = vld [vmem:[%s15357_s23 + $0x98] sm:$0xff]  ;;  %v682_v54 = vld [vmem:[%s15357_s23 + $0xa0] sm:$0xff]  ;;  %v2404_v62 = vrot.slane %v15577_v48, 1 }
  0x91   : > { %19386 = vst [vmem:[#allocation5_spill] sm:$0xff] %v15569_v43  ;;  %711 = vst.msk [vmem:[#allocation3 + $0x128] sm:$0xff] %vm380_vm1, %v678_v41  ;;  %v683_v57 = vld [vmem:[%s15357_s23 + $0xa8] sm:$0xff]  ;;  %v684_v58 = vld [vmem:[%s15357_s23 + $0xb0] sm:$0xff]  ;;  %v15643_v38 = vsel %vm2383_vm2, %v2405_v63, %v2407_v14 }
  0x92   : > { %712 = vst.msk [vmem:[#allocation3 + $0x130] sm:$0xff] %vm380_vm1, %v679_v47  ;;  %713 = vst.msk [vmem:[#allocation3 + $0x148] sm:$0xff] %vm380_vm1, %v680_v50  ;;  %v685_v3 = vld [vmem:[%s15357_s23 + $0xb8] sm:$0xff]  ;;  %v686_v4 = vld [vmem:[%s15357_s23 + $0xc0] sm:$0xff]  ;;  %v15627_v19 = vsel %vm2383_vm2, %v2404_v62, %v2405_v63 }
  0x93   : > { %12605 = vmatmul.mubr.msk.f32.gmra.mrb[10].mxu0 %vm380_vm1, %v15485_v51  ;;  %19387 = vst [vmem:[#allocation6_spill] sm:$0xff] %v15591_v55  ;;  %714 = vst.msk [vmem:[#allocation3 + $0x150] sm:$0xff] %vm380_vm1, %v681_v52  ;;  %v15606_v6 = vld [vmem:[#allocation2 + $0xa8] sm:$0xff]  ;;  %v15608_v7 = vld [vmem:[#allocation2 + $0xb0] sm:$0xff] }
  0x94   : > { %12607 = vmatprep.mubr.msk.f32.mxu0 %vm380_vm1, %v15489_v53  ;;  %715 = vst.msk [vmem:[#allocation3 + $0x168] sm:$0xff] %vm380_vm1, %v682_v54  ;;  %716 = vst.msk [vmem:[#allocation3 + $0x170] sm:$0xff] %vm380_vm1, %v683_v57  ;;  %v687_v8 = vld [vmem:[%s15357_s23 + $0xc8] sm:$0xff]  ;;  %v689_v11 = vld [vmem:[%s15357_s23 + $0xd8] sm:$0xff]  ;;  %v2410_v21 = vrot.slane %v15608_v7, 1 }
  0x95   : > { %717 = vst.msk [vmem:[#allocation3 + $0x188] sm:$0xff] %vm380_vm1, %v684_v58  ;;  %718 = vst.msk [vmem:[#allocation3 + $0x190] sm:$0xff] %vm380_vm1, %v685_v3  ;;  %v690_v15 = vld [vmem:[%s15357_s23 + $0xe0] sm:$0xff]  ;;  %v750_v24 = vld [vmem:[#allocation2 + $0xb8] sm:$0xff] }
  0x96   : > { %719 = vst.msk [vmem:[#allocation3 + $0x1a8] sm:$0xff] %vm380_vm1, %v686_v4  ;;  %720 = vst.msk [vmem:[#allocation3 + $0x1b0] sm:$0xff] %vm380_vm1, %v687_v8  ;;  %v691_v25 = vld [vmem:[%s15357_s23 + $0xe8] sm:$0xff]  ;;  %v15635_v37 = vld [vmem:[#allocation2 + $0xd0] sm:$0xff]  ;;  %v2412_v40 = vrot.slane %v750_v24, 1 }
  0x97   : > { %12608 = vmatmul.mubr.msk.f32.gmra.mrb[12].mxu0 %vm380_vm1, %v15501_v59  ;;  %722 = vst.msk [vmem:[#allocation3 + $0x1d0] sm:$0xff] %vm380_vm1, %v689_v11  ;;  %19390 = vst [vmem:[#allocation9_spill] sm:$0xff] %v15627_v19  ;;  %v15633_v29 = vld [vmem:[#allocation2 + $0xc8] sm:$0xff]  ;;  %v754_v46 = vld [vmem:[#allocation2 + $0xd8] sm:$0xff] }
  0x98   : > { %12610 = vmatprep.mubr.msk.f32.mxu0 %vm380_vm1, %v15505_v61  ;;  %723 = vst.msk [vmem:[#allocation3 + $0x1e8] sm:$0xff] %vm380_vm1, %v690_v15  ;;  %724 = vst.msk [vmem:[#allocation3 + $0x1f0] sm:$0xff] %vm380_vm1, %v691_v25  ;;  %v15650_v47 = vld [vmem:[#allocation2 + $0xe8] sm:$0xff]  ;;  %v15652_v50 = vld [vmem:[#allocation2 + $0xf0] sm:$0xff]  ;;  %v15659_v52 = vsel %vm2383_vm2, %v2410_v21, %v2412_v40  ;;  %v2417_v54 = vrot.slane %v754_v46, 1 }
  0x99   : > { %19391 = vst [vmem:[#allocation10_spill] sm:$0xff] %v15643_v38  ;;  %19393 = vst [vmem:[#allocation12_spill] sm:$0xff] %v15659_v52  ;;  %v2419_v57 = vrot.slane %v15650_v47, 1  ;;  %v2420_v58 = vrot.slane %v15652_v50, 1  ;;  %v758_v62 = vld [vmem:[#allocation2 + $0xf8] sm:$0xff]  ;;  %v15666_v63 = vld [vmem:[#allocation2 + $0x108] sm:$0xff] }
  0x9a   : > { %v15668_v0 = vld [vmem:[#allocation2 + $0x110] sm:$0xff]  ;;  %v2422_v4 = vrot.slane %v758_v62, 1  ;;  %v762_v14 = vld [vmem:[#allocation2 + $0x118] sm:$0xff]  ;;  %v15682_v15 = vld [vmem:[#allocation2 + $0x128] sm:$0xff] }
  0x9b   : > { %12611 = vmatmul.mubr.msk.f32.gmra.mrb[14].mxu0 %vm380_vm1, %v15519_v5  ;;  %v15678_v8 = vsel %vm2383_vm2, %v2419_v57, %v2420_v58  ;;  %v2425_v11 = vrot.slane %v15668_v0, 1  ;;  %v2427_v24 = vrot.slane %v762_v14, 1  ;;  %v2429_v40 = vrot.slane %v15682_v15, 1  ;;  %v15698_v46 = vld [vmem:[#allocation2 + $0x148] sm:$0xff]  ;;  %v770_v14 = vld [vmem:[#allocation2 + $0x158] sm:$0xff] }
  0x9c   : > { %12639 = vmatprep.mubr.msk.f32.mxu0 %vm380_vm1, %v2386_v9  ;;  %v688_v9 = vld [vmem:[%s15357_s23 + $0xd0] sm:$0xff]  ;;  %19396 = vst [vmem:[#allocation15_spill] sm:$0xff] %v15678_v8  ;;  %v15714_v13 = vld [vmem:[#allocation2 + $0x168] sm:$0xff] }
  0x9d   : > { %721 = vst.msk [vmem:[#allocation3 + $0x1c8] sm:$0xff] %vm380_vm1, %v688_v9  ;;  %v2424_v9 = vrot.slane %v15666_v63, 1  ;;  %v15707_v57 = vsel %vm2383_vm2, %v2425_v11, %v2427_v24  ;;  %v2437_v24 = vrot.slane %v770_v14, 1 }
  0x9e   : > { %19399 = vst [vmem:[#allocation18_spill] sm:$0xff] %v15707_v57 }
  0x9f   : > { %12640 = vmatmul.mubr.msk.f32.vlgmr.msra.gmra.mrb[0].mxu0 %vm380_vm1, %v2388_v20  ;;  %v2409_v20 = vrot.slane %v15606_v6, 1  ;;  %v15694_v25 = vsel %vm2383_vm2, %v2424_v9, %v2425_v11 }
  0xa0   : > { %12688 = vmatpush3.msk.msra.mxu0 %vm1194_vm0, %v15388_v16  ;;  %12642 = vmatprep.mubr.msk.f32.mxu0 %vm380_vm1, %v15542_v23  ;;  %v2400_v16 = vrot.slane %v15553_v35, 1  ;;  %19398 = vst [vmem:[#allocation17_spill] sm:$0xff] %v15694_v25 }
  0xa1   : > { %12737 = vmatprep.subr.msk.mxu0 %vm1194_vm0, %v15549_v32  ;;  %v15646_v41 = vsel %vm2383_vm2, %v2409_v20, %v2410_v21  ;;  %v15684_v20 = vld [vmem:[#allocation2 + $0x130] sm:$0xff]  ;;  %v15691_v21 = vsel %vm2383_vm2, %v2420_v58, %v2422_v4  ;;  %v2434_v4 = vrot.slane %v15698_v46, 1 }
  0xa2   : > { %v15598_v60 = vsel %vm2383_vm2, %v2399_v44, %v2400_v16  ;;  %v15621_v12 = vsel %vm2383_vm2, %v2400_v16, %v2402_v56  ;;  %19392 = vst [vmem:[#allocation11_spill] sm:$0xff] %v15646_v41  ;;  %v2414_v44 = vrot.slane %v15633_v29, 1  ;;  %v2415_v16 = vrot.slane %v15635_v37, 1  ;;  %19397 = vst [vmem:[#allocation16_spill] sm:$0xff] %v15691_v21 }
  0xa3   : > { %12643 = vmatmul.mubr.msk.f32.gmra.mrb[2].mxu0 %vm380_vm1, %v15564_v39  ;;  %19388 = vst [vmem:[#allocation7_spill] sm:$0xff] %v15598_v60  ;;  %19389 = vst [vmem:[#allocation8_spill] sm:$0xff] %v15621_v12 }
  0xa4   : > { %12645 = vmatprep.mubr.msk.f32.mxu0 %vm380_vm1, %v15569_v43  ;;  %v15662_v56 = vsel %vm2383_vm2, %v2414_v44, %v2415_v16  ;;  %v15675_v3 = vsel %vm2383_vm2, %v2415_v16, %v2417_v54  ;;  %v2430_v44 = vrot.slane %v15684_v20, 1  ;;  %v766_v16 = vld [vmem:[#allocation2 + $0x138] sm:$0xff]  ;;  %v15700_v54 = vld [vmem:[#allocation2 + $0x150] sm:$0xff]  ;;  %v731_v43 = vld [vmem:[#allocation2 + $0x20] sm:$0xff] }
  0xa5   : > { %19394 = vst [vmem:[#allocation13_spill] sm:$0xff] %v15662_v56  ;;  %19395 = vst [vmem:[#allocation14_spill] sm:$0xff] %v15675_v3  ;;  %v2432_v58 = vrot.slane %v766_v16, 1  ;;  %v2435_v9 = vrot.slane %v15700_v54, 1  ;;  %v2439_v16 = vrot.slane %v15714_v13, 1 }
  0xa6   : > { %v15710_v62 = vsel %vm2383_vm2, %v2429_v40, %v2430_v44 }
  0xa7   : > { %12646 = vmatmul.mubr.msk.f32.gmra.mrb[4].mxu0 %vm380_vm1, %v15591_v55  ;;  %19400 = vst [vmem:[#allocation19_spill] sm:$0xff] %v15710_v62  ;;  %v15723_v11 = vsel %vm2383_vm2, %v2430_v44, %v2432_v58  ;;  %v15726_v40 = vsel %vm2383_vm2, %v2434_v4, %v2435_v9  ;;  %v15739_v44 = vsel %vm2383_vm2, %v2435_v9, %v2437_v24 }
  0xa8   : > { %12648 = vmatprep.mubr.msk.f32.mxu0 %vm380_vm1, %v15598_v60  ;;  %19401 = vst [vmem:[#allocation20_spill] sm:$0xff] %v15723_v11  ;;  %19402 = vst [vmem:[#allocation21_spill] sm:$0xff] %v15726_v40  ;;  %v15780_v60 = vld [vmem:[#allocation2 + $0x1f0] sm:$0xff] }
  0xa9   : > { %19403 = vst [vmem:[#allocation22_spill] sm:$0xff] %v15739_v44  ;;  %v2460_v55 = vrot.slane %v15780_v60, 1 }
  0xab   : > { %12649 = vmatmul.mubr.msk.f32.gmra.mrb[6].mxu0 %vm380_vm1, %v15621_v12  ;;  %v15778_v12 = vld [vmem:[#allocation2 + $0x1e8] sm:$0xff] }
  0xac   : > { %12651 = vmatprep.mubr.msk.f32.mxu0 %vm380_vm1, %v15627_v19  ;;  %v786_v19 = vld [vmem:[#allocation2 + $0x1d8] sm:$0xff] }
  0xaf   : > { %12652 = vmatmul.mubr.msk.f32.gmra.mrb[8].mxu0 %vm380_vm1, %v15643_v38  ;;  %v15762_v38 = vld [vmem:[#allocation2 + $0x1c8] sm:$0xff] }
  0xb0   : > { %12654 = vmatprep.mubr.msk.f32.mxu0 %vm380_vm1, %v15646_v41  ;;  %v15748_v41 = vld [vmem:[#allocation2 + $0x1b0] sm:$0xff] }
  0xb3   : > { %12655 = vmatmul.mubr.msk.f32.gmra.mrb[10].mxu0 %vm380_vm1, %v15659_v52  ;;  %v15746_v52 = vld [vmem:[#allocation2 + $0x1a8] sm:$0xff] }
  0xb4   : > { %12657 = vmatprep.mubr.msk.f32.mxu0 %vm380_vm1, %v15662_v56  ;;  %v15732_v56 = vld [vmem:[#allocation2 + $0x190] sm:$0xff] }
  0xb7   : > { %12658 = vmatmul.mubr.msk.f32.gmra.mrb[12].mxu0 %vm380_vm1, %v15675_v3  ;;  %v15730_v3 = vld [vmem:[#allocation2 + $0x188] sm:$0xff] }
  0xb8   : > { %12660 = vmatprep.mubr.msk.f32.mxu0 %vm380_vm1, %v15678_v8  ;;  %v15716_v8 = vld [vmem:[#allocation2 + $0x170] sm:$0xff]  ;;  %v2444_v14 = vrot.slane %v15730_v3, 1 }
  0xbb   : > { %12661 = vmatmul.mubr.msk.f32.gmra.mrb[14].mxu0 %vm380_vm1, %v15691_v21  ;;  %v774_v21 = vld [vmem:[#allocation2 + $0x178] sm:$0xff] }
  0xbc   : > { %12663 = vmatprep.mubr.msk.f32.mxu0 %vm380_vm1, %v15694_v25  ;;  %v2440_v25 = vrot.slane %v15716_v8, 1  ;;  %v2442_v58 = vrot.slane %v774_v21, 1 }
  0xbe   : > { %v15742_v4 = vsel %vm2383_vm2, %v2439_v16, %v2440_v25  ;;  %v15755_v21 = vsel %vm2383_vm2, %v2440_v25, %v2442_v58  ;;  %v2449_v16 = vrot.slane %v15746_v52, 1 }
  0xbf   : > { %12664 = vmatmul.mubr.msk.f32.gmra.mrb[16].mxu0 %vm380_vm1, %v15707_v57  ;;  %19404 = vst [vmem:[#allocation23_spill] sm:$0xff] %v15742_v4  ;;  %v778_v57 = vld [vmem:[#allocation2 + $0x198] sm:$0xff]  ;;  %19405 = vst [vmem:[#allocation24_spill] sm:$0xff] %v15755_v21 }
  0xc0   : > { %12666 = vmatprep.mubr.msk.f32.mxu0 %vm380_vm1, %v15710_v62  ;;  %v2445_v62 = vrot.slane %v15732_v56, 1  ;;  %v2447_v9 = vrot.slane %v778_v57, 1 }
  0xc2   : > { %v15758_v24 = vsel %vm2383_vm2, %v2444_v14, %v2445_v62  ;;  %v15771_v25 = vsel %vm2383_vm2, %v2445_v62, %v2447_v9  ;;  %v2454_v14 = vrot.slane %v15762_v38, 1  ;;  %v628_v62 = vld [vmem:[%s15380_s26 + $0xf8] sm:$0xff]  ;;  %v2457_v9 = vrot.slane %v786_v19, 1 }
  0xc3   : > { %12667 = vmatmul.mubr.msk.f32.gmra.mrb[18].mxu0 %vm380_vm1, %v15723_v11  ;;  %19406 = vst [vmem:[#allocation25_spill] sm:$0xff] %v15758_v24  ;;  %v782_v11 = vld [vmem:[#allocation2 + $0x1b8] sm:$0xff]  ;;  %19407 = vst [vmem:[#allocation26_spill] sm:$0xff] %v15771_v25 }
  0xc4   : > { %12669 = vmatprep.mubr.msk.f32.mxu0 %vm380_vm1, %v15726_v40  ;;  %v2450_v40 = vrot.slane %v15748_v41, 1  ;;  %v2452_v57 = vrot.slane %v782_v11, 1  ;;  %661 = vst.msk [vmem:[#allocation2 + $0x210] sm:$0xff] %vm380_vm1, %v628_v62 }
  0xc6   : > { %v15774_v58 = vsel %vm2383_vm2, %v2449_v16, %v2450_v40  ;;  %v15790_v11 = vsel %vm2383_vm2, %v2450_v40, %v2452_v57  ;;  %v802_v57 = vld [vmem:[#allocation3 + $0x18] sm:$0xff] }
  0xc7   : > { %12670 = vmatmul.mubr.msk.f32.gmra.mrb[20].mxu0 %vm380_vm1, %v15739_v44  ;;  %v15764_v44 = vld [vmem:[#allocation2 + $0x1d0] sm:$0xff]  ;;  %19408 = vst [vmem:[#allocation27_spill] sm:$0xff] %v15774_v58  ;;  %19409 = vst [vmem:[#allocation28_spill] sm:$0xff] %v15790_v11  ;;  %v2483_v62 = vrot.slane %v802_v57, 1  ;;  %v15832_v57 = vld [vmem:[%s19060_s3 + $0xc] sm:$0xf] }
  0xc8   : > { %12672 = vmatprep.mubr.msk.f32.mxu0 %vm380_vm1, %v15742_v4  ;;  %v2455_v4 = vrot.slane %v15764_v44, 1 }
  0xca   : > { %v15794_v16 = vsel %vm2383_vm2, %v2454_v14, %v2455_v4  ;;  %v15803_v40 = vsel %vm2383_vm2, %v2455_v4, %v2457_v9  ;;  %v2486_v4 = vrot.slane %v15418_v27, 1  ;;  %v806_v9 = vld [vmem:[#allocation3 + $0x38] sm:$0xff] }
  0xcb   : > { %12673 = vmatmul.mubr.msk.f32.gmra.mrb[22].mxu0 %vm380_vm1, %v15755_v21  ;;  %v627_v21 = vld [vmem:[%s15380_s26 + $0xf0] sm:$0xff]  ;;  %19410 = vst [vmem:[#allocation29_spill] sm:$0xff] %v15794_v16  ;;  %19411 = vst [vmem:[#allocation30_spill] sm:$0xff] %v15803_v40  ;;  %v810_v27 = vld [vmem:[#allocation3 + $0x58] sm:$0xff] }
  0xcc   : > { %12675 = vmatprep.mubr.msk.f32.mxu0 %vm380_vm1, %v15758_v24  ;;  %660 = vst.msk [vmem:[#allocation2 + $0x208] sm:$0xff] %vm380_vm1, %v627_v21  ;;  %v2459_v24 = vrot.slane %v15778_v12, 1 }
  0xce   : > { %v15806_v21 = vsel %vm2383_vm2, %v2459_v24, %v2460_v55  ;;  %v19414_v24 = vrot.slane %v15368_v10, 1 }
  0xcf   : > { %12676 = vmatmul.mubr.msk.f32.gmra.mrb[24].mxu0 %vm380_vm1, %v15771_v25  ;;  %v790_v25 = vld [vmem:[#allocation2 + $0x1f8] sm:$0xff]  ;;  %19412 = vst [vmem:[#allocation31_spill] sm:$0xff] %v15806_v21 }
  0xd0   : > { %12678 = vmatprep.mubr.msk.f32.mxu0 %vm380_vm1, %v15774_v58  ;;  %v2462_v19 = vrot.slane %v790_v25, 1  ;;  %v2484_v25 = vsel %vm2383_vm2, %v19414_v24, %v2483_v62  ;;  %v814_v62 = vld [vmem:[#allocation3 + $0x78] sm:$0xff] }
  0xd2   : > { %v15813_v14 = vsel %vm2383_vm2, %v2460_v55, %v2462_v19  ;;  %v2490_v19 = vrot.slane %v15420_v28, 1 }
  0xd3   : > { %12679 = vmatmul.mubr.msk.f32.gmra.mrb[26].mxu0 %vm380_vm1, %v15790_v11  ;;  %19413 = vst [vmem:[#allocation32_spill] sm:$0xff] %v15813_v14  ;;  %v16011_v11 = vld [vmem:[#allocation3 + $0x1f0] sm:$0xff] }
  0xd4   : > { %12681 = vmatprep.mubr.msk.f32.mxu0 %vm380_vm1, %v15794_v16  ;;  %v2485_v16 = vrot.slane %v15416_v26, 1  ;;  %v2491_v26 = vrot.slane %v15431_v30, 1  ;;  %v2495_v30 = vrot.slane %v15434_v31, 1  ;;  %v2500_v31 = vrot.slane %v15447_v36, 1 }
  0xd5   : > { %v2506_v36 = vrot.slane %v15485_v51, 1  ;;  %v2556_v58 = vrot.slane %v16011_v11, 1 }
  0xd6   : > { %v15825_v55 = vsel %vm2383_vm2, %v2485_v16, %v2486_v4  ;;  %v15843_v28 = vsel %vm2383_vm2, %v2490_v19, %v2491_v26  ;;  %v2496_v16 = vrot.slane %v15443_v34, 1  ;;  %v2501_v34 = vrot.slane %v15463_v42, 1 }
  0xd7   : > { %12682 = vmatmul.mubr.msk.f32.gmra.mrb[28].mxu0 %vm380_vm1, %v15803_v40  ;;  %19415 = vst [vmem:[#allocation33_spill] sm:$0xff] %v15825_v55  ;;  %19417 = vst [vmem:[#allocation35_spill] sm:$0xff] %v15843_v28  ;;  %v16009_v40 = vld [vmem:[#allocation3 + $0x1e8] sm:$0xff] }
  0xd8   : > { %12684 = vmatprep.mubr.msk.f32.mxu0 %vm380_vm1, %v15806_v21  ;;  %v2488_v21 = vrot.slane %v806_v9, 1  ;;  %v818_v9 = vld [vmem:[#allocation3 + $0x98] sm:$0xff]  ;;  %v15869_v19 = vsel %vm2383_vm2, %v2500_v31, %v2501_v34 }
  0xd9   : > { %19421 = vst [vmem:[#allocation39_spill] sm:$0xff] %v15869_v19 }
  0xda   : > { %v15840_v10 = vsel %vm2383_vm2, %v2486_v4, %v2488_v21  ;;  %v2498_v21 = vrot.slane %v814_v62, 1  ;;  %v15857_v4 = vsel %vm2383_vm2, %v2495_v30, %v2496_v16  ;;  %v826_v62 = vld [vmem:[#allocation3 + $0xd8] sm:$0xff] }
  0xdb   : > { %12685 = vmatmul.mubr.msk.f32.gmra.mrb[30].mxu0 %vm380_vm1, %v15813_v14  ;;  %19416 = vst [vmem:[#allocation34_spill] sm:$0xff] %v15840_v10  ;;  %19419 = vst [vmem:[#allocation37_spill] sm:$0xff] %v15857_v4  ;;  %v858_v14 = vld [vmem:[#allocation3 + $0x1d8] sm:$0xff] }
  0xdc   : > { %12689 = vmatprep.mubr.msk.f32.mxu0 %vm380_vm1, %v15406_v22  ;;  %v2493_v22 = vrot.slane %v810_v27, 1  ;;  %v15866_v24 = vsel %vm2383_vm2, %v2496_v16, %v2498_v21  ;;  %v822_v27 = vld [vmem:[#allocation3 + $0xb8] sm:$0xff]  ;;  %v2510_v16 = vrot.slane %v15489_v53, 1  ;;  %v2513_v21 = vrot.slane %v826_v62, 1  ;;  %v15915_v62 = vld [vmem:[#allocation3 + $0x130] sm:$0xff] }
  0xdd   : > { %19420 = vst [vmem:[#allocation38_spill] sm:$0xff] %v15866_v24  ;;  %v2516_v53 = vrot.slane %v15519_v5, 1 }
  0xdf   : > { %12690 = vmatmul.mubr.msk.f32.vlgmr.msra.gmra.mrb[0].mxu0 %vm380_vm1, %v2484_v25  ;;  %v2503_v25 = vrot.slane %v818_v9, 1  ;;  %v830_v9 = vld [vmem:[#allocation3 + $0xf8] sm:$0xff] }
  0xe0   : > { %12738 = vmatpush3.msk.msra.mxu0 %vm1194_vm0, %v15549_v32  ;;  %12692 = vmatprep.mubr.msk.f32.mxu0 %vm380_vm1, %v15825_v55  ;;  %v15854_v32 = vsel %vm2383_vm2, %v2491_v26, %v2493_v22  ;;  %v2505_v26 = vrot.slane %v15468_v45, 1  ;;  %v2508_v22 = vrot.slane %v822_v27, 1  ;;  %v2511_v45 = vrot.slane %v15501_v59, 1  ;;  %v15897_v59 = vld [vmem:[#allocation3 + $0x108] sm:$0xff] }
  0xe1   : > { %12787 = vmatprep.subr.msk.mxu0 %vm1194_vm0, %v15832_v57  ;;  %19418 = vst [vmem:[#allocation36_spill] sm:$0xff] %v15854_v32  ;;  %v15878_v42 = vsel %vm2383_vm2, %v2501_v34, %v2503_v25  ;;  %v2515_v34 = vrot.slane %v15505_v61, 1  ;;  %v15899_v25 = vld [vmem:[#allocation3 + $0x110] sm:$0xff]  ;;  %v2520_v61 = vrot.slane %v15897_v59, 1  ;;  %v15993_v55 = vld [vmem:[#allocation3 + $0x1c8] sm:$0xff] }
  0xe2   : > { %19422 = vst [vmem:[#allocation40_spill] sm:$0xff] %v15878_v42  ;;  %v15881_v30 = vsel %vm2383_vm2, %v2505_v26, %v2506_v36  ;;  %v15890_v51 = vsel %vm2383_vm2, %v2506_v36, %v2508_v22  ;;  %v15893_v31 = vsel %vm2383_vm2, %v2510_v16, %v2511_v45  ;;  %v15906_v26 = vsel %vm2383_vm2, %v2511_v45, %v2513_v21  ;;  %v834_v22 = vld [vmem:[#allocation3 + $0x118] sm:$0xff]  ;;  %v15913_v16 = vld [vmem:[#allocation3 + $0x128] sm:$0xff] }
  0xe3   : > { %12693 = vmatmul.mubr.msk.f32.gmra.mrb[2].mxu0 %vm380_vm1, %v15840_v10  ;;  %19423 = vst [vmem:[#allocation41_spill] sm:$0xff] %v15881_v30  ;;  %19424 = vst [vmem:[#allocation42_spill] sm:$0xff] %v15890_v51  ;;  %v2518_v36 = vrot.slane %v830_v9, 1  ;;  %v15909_v27 = vsel %vm2383_vm2, %v2515_v34, %v2516_v53  ;;  %v2521_v5 = vrot.slane %v15899_v25, 1  ;;  %v2523_v21 = vrot.slane %v834_v22, 1  ;;  %v15979_v10 = vld [vmem:[#allocation3 + $0x1b0] sm:$0xff] }
  0xe4   : > { %12695 = vmatprep.mubr.msk.f32.mxu0 %vm380_vm1, %v15843_v28  ;;  %19425 = vst [vmem:[#allocation43_spill] sm:$0xff] %v15893_v31  ;;  %19426 = vst [vmem:[#allocation44_spill] sm:$0xff] %v15906_v26  ;;  %v2525_v9 = vrot.slane %v15913_v16, 1  ;;  %v15977_v28 = vld [vmem:[#allocation3 + $0x1a8] sm:$0xff] }
  0xe5   : > { %19427 = vst [vmem:[#allocation45_spill] sm:$0xff] %v15909_v27  ;;  %v15922_v45 = vsel %vm2383_vm2, %v2516_v53, %v2518_v36  ;;  %v15925_v34 = vsel %vm2383_vm2, %v2520_v61, %v2521_v5  ;;  %v15938_v53 = vsel %vm2383_vm2, %v2521_v5, %v2523_v21 }
  0xe6   : > { %19428 = vst [vmem:[#allocation46_spill] sm:$0xff] %v15922_v45  ;;  %19429 = vst [vmem:[#allocation47_spill] sm:$0xff] %v15925_v34 }
  0xe7   : > { %12696 = vmatmul.mubr.msk.f32.gmra.mrb[4].mxu0 %vm380_vm1, %v15854_v32  ;;  %19430 = vst [vmem:[#allocation48_spill] sm:$0xff] %v15938_v53  ;;  %v15963_v32 = vld [vmem:[#allocation3 + $0x190] sm:$0xff] }
  0xe8   : > { %12698 = vmatprep.mubr.msk.f32.mxu0 %vm380_vm1, %v15857_v4  ;;  %v15961_v4 = vld [vmem:[#allocation3 + $0x188] sm:$0xff] }
  0xeb   : > { %12699 = vmatmul.mubr.msk.f32.gmra.mrb[6].mxu0 %vm380_vm1, %v15866_v24  ;;  %v15947_v24 = vld [vmem:[#allocation3 + $0x170] sm:$0xff] }
  0xec   : > { %12701 = vmatprep.mubr.msk.f32.mxu0 %vm380_vm1, %v15869_v19  ;;  %v15945_v19 = vld [vmem:[#allocation3 + $0x168] sm:$0xff] }
  0xef   : > { %12702 = vmatmul.mubr.msk.f32.gmra.mrb[8].mxu0 %vm380_vm1, %v15878_v42  ;;  %v15931_v42 = vld [vmem:[#allocation3 + $0x150] sm:$0xff] }
  0xf0   : > { %12704 = vmatprep.mubr.msk.f32.mxu0 %vm380_vm1, %v15881_v30  ;;  %v15929_v30 = vld [vmem:[#allocation3 + $0x148] sm:$0xff] }
  0xf1   : > { %v2530_v22 = vrot.slane %v15929_v30, 1 }
  0xf3   : > { %12705 = vmatmul.mubr.msk.f32.gmra.mrb[10].mxu0 %vm380_vm1, %v15890_v51  ;;  %v838_v51 = vld [vmem:[#allocation3 + $0x138] sm:$0xff] }
  0xf4   : > { %12707 = vmatprep.mubr.msk.f32.mxu0 %vm380_vm1, %v15893_v31  ;;  %v2526_v31 = vrot.slane %v15915_v62, 1  ;;  %v2528_v36 = vrot.slane %v838_v51, 1 }
  0xf6   : > { %v15941_v61 = vsel %vm2383_vm2, %v2525_v9, %v2526_v31  ;;  %v15954_v51 = vsel %vm2383_vm2, %v2526_v31, %v2528_v36  ;;  %v2535_v9 = vrot.slane %v15945_v19, 1 }
  0xf7   : > { %12708 = vmatmul.mubr.msk.f32.gmra.mrb[12].mxu0 %vm380_vm1, %v15906_v26  ;;  %19431 = vst [vmem:[#allocation49_spill] sm:$0xff] %v15941_v61  ;;  %v842_v26 = vld [vmem:[#allocation3 + $0x158] sm:$0xff]  ;;  %19432 = vst [vmem:[#allocation50_spill] sm:$0xff] %v15954_v51 }
  0xf8   : > { %12710 = vmatprep.mubr.msk.f32.mxu0 %vm380_vm1, %v15909_v27  ;;  %v2531_v27 = vrot.slane %v15931_v42, 1  ;;  %v2533_v5 = vrot.slane %v842_v26, 1 }
  0xfa   : > { %v15957_v21 = vsel %vm2383_vm2, %v2530_v22, %v2531_v27  ;;  %v15970_v31 = vsel %vm2383_vm2, %v2531_v27, %v2533_v5  ;;  %v2540_v22 = vrot.slane %v15961_v4, 1 }
  0xfb   : > { %12711 = vmatmul.mubr.msk.f32.gmra.mrb[14].mxu0 %vm380_vm1, %v15922_v45  ;;  %19433 = vst [vmem:[#allocation51_spill] sm:$0xff] %v15957_v21  ;;  %v846_v45 = vld [vmem:[#allocation3 + $0x178] sm:$0xff]  ;;  %19434 = vst [vmem:[#allocation52_spill] sm:$0xff] %v15970_v31 }
  0xfc   : > { %12713 = vmatprep.mubr.msk.f32.mxu0 %vm380_vm1, %v15925_v34  ;;  %v2536_v34 = vrot.slane %v15947_v24, 1  ;;  %v2538_v26 = vrot.slane %v846_v45, 1 }
  0xfe   : > { %v15973_v36 = vsel %vm2383_vm2, %v2535_v9, %v2536_v34  ;;  %v15986_v27 = vsel %vm2383_vm2, %v2536_v34, %v2538_v26  ;;  %v2545_v9 = vrot.slane %v15977_v28, 1 }
  0xff   : > { %12714 = vmatmul.mubr.msk.f32.gmra.mrb[16].mxu0 %vm380_vm1, %v15938_v53  ;;  %19435 = vst [vmem:[#allocation53_spill] sm:$0xff] %v15973_v36  ;;  %v850_v53 = vld [vmem:[#allocation3 + $0x198] sm:$0xff]  ;;  %19436 = vst [vmem:[#allocation54_spill] sm:$0xff] %v15986_v27 }
 0x100   : > { %12716 = vmatprep.mubr.msk.f32.mxu0 %vm380_vm1, %v15941_v61  ;;  %v2541_v61 = vrot.slane %v15963_v32, 1  ;;  %v2543_v45 = vrot.slane %v850_v53, 1 }
 0x102   : > { %v15989_v5 = vsel %vm2383_vm2, %v2540_v22, %v2541_v61  ;;  %v16002_v34 = vsel %vm2383_vm2, %v2541_v61, %v2543_v45  ;;  %v2550_v22 = vrot.slane %v15993_v55, 1  ;;  %v693_v61 = vld [vmem:[%s15357_s23 + $0xf8] sm:$0xff]  ;;  %v2553_v45 = vrot.slane %v858_v14, 1 }
 0x103   : > { %12717 = vmatmul.mubr.msk.f32.gmra.mrb[18].mxu0 %vm380_vm1, %v15954_v51  ;;  %19437 = vst [vmem:[#allocation55_spill] sm:$0xff] %v15989_v5  ;;  %v854_v51 = vld [vmem:[#allocation3 + $0x1b8] sm:$0xff]  ;;  %19438 = vst [vmem:[#allocation56_spill] sm:$0xff] %v16002_v34 }
 0x104   : > { %12719 = vmatprep.mubr.msk.f32.mxu0 %vm380_vm1, %v15957_v21  ;;  %v2546_v21 = vrot.slane %v15979_v10, 1  ;;  %v2548_v53 = vrot.slane %v854_v51, 1  ;;  %726 = vst.msk [vmem:[#allocation3 + $0x210] sm:$0xff] %vm380_vm1, %v693_v61  ;;  %v735_v61 = vld [vmem:[#allocation2 + $0x40] sm:$0xff] }
 0x106   : > { %v16005_v26 = vsel %vm2383_vm2, %v2545_v9, %v2546_v21  ;;  %v16021_v51 = vsel %vm2383_vm2, %v2546_v21, %v2548_v53  ;;  %v925_v53 = vrot.slane %v731_v43, 7  ;;  %v931_v43 = vrot.slane %v15530_v17, 7  ;;  %v16067_v17 = vld [vmem:[%s19059_s2 + $0x10] sm:$0xf] }
 0x107   : > { %12720 = vmatmul.mubr.msk.f32.gmra.mrb[20].mxu0 %vm380_vm1, %v15970_v31  ;;  %v15995_v31 = vld [vmem:[#allocation3 + $0x1d0] sm:$0xff]  ;;  %19439 = vst [vmem:[#allocation57_spill] sm:$0xff] %v16005_v26  ;;  %19440 = vst [vmem:[#allocation58_spill] sm:$0xff] %v16021_v51 }
 0x108   : > { %12722 = vmatprep.mubr.msk.f32.mxu0 %vm380_vm1, %v15973_v36  ;;  %v2551_v36 = vrot.slane %v15995_v31, 1 }
 0x10a   : > { %v16025_v9 = vsel %vm2383_vm2, %v2550_v22, %v2551_v36  ;;  %v16034_v21 = vsel %vm2383_vm2, %v2551_v36, %v2553_v45  ;;  %v926_v22 = vrot.slane %v15508_v1, 7  ;;  %v928_v36 = vrot.slane %v15510_v2, 7  ;;  %v739_v1 = vld [vmem:[#allocation2 + $0x60] sm:$0xff] }
 0x10b   : > { %12723 = vmatmul.mubr.msk.f32.gmra.mrb[22].mxu0 %vm380_vm1, %v15986_v27  ;;  %v692_v27 = vld [vmem:[%s15357_s23 + $0xf0] sm:$0xff]  ;;  %19441 = vst [vmem:[#allocation59_spill] sm:$0xff] %v16025_v9  ;;  %19442 = vst [vmem:[#allocation60_spill] sm:$0xff] %v16034_v21 }
 0x10c   : > { %12725 = vmatprep.mubr.msk.f32.mxu0 %vm380_vm1, %v15989_v5  ;;  %725 = vst.msk [vmem:[#allocation3 + $0x208] sm:$0xff] %vm380_vm1, %v692_v27  ;;  %v2555_v5 = vrot.slane %v16009_v40, 1  ;;  %v16057_v45 = vsel %vm919_vm3, %v926_v22, %v928_v36 }
 0x10d   : > { %19446 = vst [vmem:[#allocation64_spill] sm:$0xff] %v16057_v45 }
 0x10e   : > { %v16037_v27 = vsel %vm2383_vm2, %v2555_v5, %v2556_v58  ;;  %v930_v5 = vrot.slane %v735_v61, 7  ;;  %v743_v61 = vld [vmem:[#allocation2 + $0x80] sm:$0xff] }
 0x10f   : > { %12726 = vmatmul.mubr.msk.f32.gmra.mrb[24].mxu0 %vm380_vm1, %v16002_v34  ;;  %v862_v34 = vld [vmem:[#allocation3 + $0x1f8] sm:$0xff]  ;;  %19443 = vst [vmem:[#allocation61_spill] sm:$0xff] %v16037_v27  ;;  %v940_v36 = vrot.slane %v743_v61, 7 }
 0x110   : > { %12728 = vmatprep.mubr.msk.f32.mxu0 %vm380_vm1, %v16005_v26  ;;  %v2558_v14 = vrot.slane %v862_v34, 1  ;;  %v16049_v34 = vsel %vm919_vm3, %v925_v53, %v926_v22  ;;  %v16061_v2 = vsel %vm919_vm3, %v930_v5, %v931_v43  ;;  %v936_v53 = vrot.slane %v15551_v33, 7 }
 0x111   : > { %19445 = vst [vmem:[#allocation63_spill] sm:$0xff] %v16049_v34  ;;  %19447 = vst [vmem:[#allocation65_spill] sm:$0xff] %v16061_v2  ;;  %v938_v33 = vrot.slane %v15553_v35, 7  ;;  %v941_v5 = vrot.slane %v15577_v48, 7  ;;  %v943_v35 = vrot.slane %v15579_v49, 7  ;;  %v946_v48 = vrot.slane %v15606_v6, 7 }
 0x113   : > { %12729 = vmatmul.mubr.msk.f32.gmra.mrb[26].mxu0 %vm380_vm1, %v16021_v51  ;;  %v16102_v61 = vsel %vm919_vm3, %v941_v5, %v943_v35  ;;  %v783_v51 = vld [vmem:[#allocation2 + $0x1c0] sm:$0xff] }
 0x114   : > { %12731 = vmatprep.mubr.msk.f32.mxu0 %vm380_vm1, %v16025_v9  ;;  %v16045_v9 = vsel %vm2383_vm2, %v2556_v58, %v2558_v14  ;;  %v933_v58 = vrot.slane %v15532_v18, 7  ;;  %v935_v14 = vrot.slane %v739_v1, 7  ;;  %v747_v1 = vld [vmem:[#allocation2 + $0xa0] sm:$0xff]  ;;  %19452 = vst [vmem:[#allocation70_spill] sm:$0xff] %v16102_v61 }
 0x115   : > { %19444 = vst [vmem:[#allocation62_spill] sm:$0xff] %v16045_v9 }
 0x116   : > { %v16076_v18 = vsel %vm919_vm3, %v931_v43, %v933_v58  ;;  %v16080_v22 = vsel %vm919_vm3, %v935_v14, %v936_v53  ;;  %v16094_v43 = vsel %vm919_vm3, %v940_v36, %v941_v5  ;;  %v945_v58 = vrot.slane %v747_v1, 7  ;;  %v751_v14 = vld [vmem:[#allocation2 + $0xc0] sm:$0xff] }
 0x117   : > { %12732 = vmatmul.mubr.msk.f32.gmra.mrb[28].mxu0 %vm380_vm1, %v16034_v21  ;;  %19448 = vst [vmem:[#allocation66_spill] sm:$0xff] %v16076_v18  ;;  %19449 = vst [vmem:[#allocation67_spill] sm:$0xff] %v16080_v22  ;;  %v951_v36 = vrot.slane %v15633_v29, 7  ;;  %v755_v1 = vld [vmem:[#allocation2 + $0xe0] sm:$0xff]  ;;  %v953_v5 = vrot.slane %v15635_v37, 7 }
 0x118   : > { %12734 = vmatprep.mubr.msk.f32.mxu0 %vm380_vm1, %v16037_v27  ;;  %19451 = vst [vmem:[#allocation69_spill] sm:$0xff] %v16094_v43  ;;  %v16106_v49 = vsel %vm919_vm3, %v945_v58, %v946_v48  ;;  %v955_v35 = vrot.slane %v755_v1, 7  ;;  %v956_v58 = vrot.slane %v15650_v47, 7  ;;  %v763_v1 = vld [vmem:[#allocation2 + $0x120] sm:$0xff] }
 0x119   : > { %19453 = vst [vmem:[#allocation71_spill] sm:$0xff] %v16106_v49  ;;  %v16126_v29 = vsel %vm919_vm3, %v951_v36, %v953_v5  ;;  %v965_v5 = vrot.slane %v763_v1, 7  ;;  %v771_v1 = vld [vmem:[#allocation2 + $0x160] sm:$0xff] }
 0x11a   : > { %19456 = vst [vmem:[#allocation74_spill] sm:$0xff] %v16126_v29  ;;  %v16130_v37 = vsel %vm919_vm3, %v955_v35, %v956_v58  ;;  %v966_v35 = vrot.slane %v15682_v15, 7  ;;  %v779_v27 = vld [vmem:[#allocation2 + $0x1a0] sm:$0xff] }
 0x11b   : > { %12735 = vmatmul.mubr.msk.f32.gmra.mrb[30].mxu0 %vm380_vm1, %v16045_v9  ;;  %19457 = vst [vmem:[#allocation75_spill] sm:$0xff] %v16130_v37 }
 0x11c   : > { %12739 = vmatprep.mubr.msk.f32.mxu0 %vm380_vm1, %v16049_v34  ;;  %v16349_v34 = vld [vmem:[#allocation3 + $0xe8] sm:$0xff] }
 0x11d   : > { %19487 = vst [vmem:[#allocation105_spill] sm:$0xff] %v16349_v34 }
 0x11f   : > { %12740 = vmatmul.mubr.msk.f32.vlgmr.msra.gmra.mrb[0].mxu0 %vm380_vm1, %v16057_v45 }
 0x120   : > { %12788 = vmatpush3.msk.msra.mxu0 %vm1194_vm0, %v15832_v57  ;;  %12742 = vmatprep.mubr.msk.f32.mxu0 %vm380_vm1, %v16061_v2  ;;  %v16090_v57 = vsel %vm919_vm3, %v936_v53, %v938_v33  ;;  %v948_v53 = vrot.slane %v15608_v7, 7  ;;  %v950_v33 = vrot.slane %v751_v14, 7  ;;  %v759_v14 = vld [vmem:[#allocation2 + $0x100] sm:$0xff] }
 0x121   : > { %12837 = vmatprep.subr.msk.mxu0 %vm1194_vm0, %v16067_v17  ;;  %19450 = vst [vmem:[#allocation68_spill] sm:$0xff] %v16090_v57  ;;  %v827_v2 = vld [vmem:[#allocation3 + $0xe0] sm:$0xff] }
 0x122   : > { %v16114_v6 = vsel %vm919_vm3, %v946_v48, %v948_v53  ;;  %v16118_v7 = vsel %vm919_vm3, %v950_v33, %v951_v36  ;;  %v958_v48 = vrot.slane %v15652_v50, 7  ;;  %v960_v53 = vrot.slane %v759_v14, 7  ;;  %v767_v14 = vld [vmem:[#allocation2 + $0x140] sm:$0xff] }
 0x123   : > { %12743 = vmatmul.mubr.msk.f32.gmra.mrb[2].mxu0 %vm380_vm1, %v16076_v18  ;;  %19454 = vst [vmem:[#allocation72_spill] sm:$0xff] %v16114_v6  ;;  %19455 = vst [vmem:[#allocation73_spill] sm:$0xff] %v16118_v7  ;;  %v961_v33 = vrot.slane %v15666_v63, 7  ;;  %v963_v36 = vrot.slane %v15668_v0, 7  ;;  %v16154_v0 = vsel %vm919_vm3, %v965_v5, %v966_v35  ;;  %v976_v5 = vrot.slane %v15714_v13, 7 }
 0x124   : > { %12745 = vmatprep.mubr.msk.f32.mxu0 %vm380_vm1, %v16080_v22  ;;  %v16138_v47 = vsel %vm919_vm3, %v956_v58, %v958_v48  ;;  %v968_v58 = vrot.slane %v15684_v20, 7  ;;  %19461 = vst [vmem:[#allocation79_spill] sm:$0xff] %v16154_v0  ;;  %v970_v48 = vrot.slane %v767_v14, 7  ;;  %v775_v14 = vld [vmem:[#allocation2 + $0x180] sm:$0xff]  ;;  %v16333_v22 = vld [vmem:[#allocation3 + $0xc8] sm:$0xff]  ;;  %v1083_v45 = vrot.slane %v827_v2, 7 }
 0x125   : > { %19458 = vst [vmem:[#allocation76_spill] sm:$0xff] %v16138_v47  ;;  %v16142_v50 = vsel %vm919_vm3, %v960_v53, %v961_v33  ;;  %v16150_v63 = vsel %vm919_vm3, %v961_v33, %v963_v36  ;;  %v971_v53 = vrot.slane %v15698_v46, 7  ;;  %v973_v33 = vrot.slane %v15700_v54, 7  ;;  %19483 = vst [vmem:[#allocation101_spill] sm:$0xff] %v16333_v22 }
 0x126   : > { %19459 = vst [vmem:[#allocation77_spill] sm:$0xff] %v16142_v50  ;;  %19460 = vst [vmem:[#allocation78_spill] sm:$0xff] %v16150_v63  ;;  %v16162_v15 = vsel %vm919_vm3, %v966_v35, %v968_v58  ;;  %v975_v36 = vrot.slane %v771_v1, 7  ;;  %v978_v35 = vrot.slane %v15716_v8, 7  ;;  %v981_v1 = vrot.slane %v15730_v3, 7 }
 0x127   : > { %12746 = vmatmul.mubr.msk.f32.gmra.mrb[4].mxu0 %vm380_vm1, %v16090_v57  ;;  %19462 = vst [vmem:[#allocation80_spill] sm:$0xff] %v16162_v15  ;;  %v16166_v20 = vsel %vm919_vm3, %v970_v48, %v971_v53  ;;  %v16174_v9 = vsel %vm919_vm3, %v971_v53, %v973_v33  ;;  %v980_v48 = vrot.slane %v775_v14, 7  ;;  %v983_v53 = vrot.slane %v15732_v56, 7 }
 0x128   : > { %12748 = vmatprep.mubr.msk.f32.mxu0 %vm380_vm1, %v16094_v43  ;;  %19463 = vst [vmem:[#allocation81_spill] sm:$0xff] %v16166_v20  ;;  %19464 = vst [vmem:[#allocation82_spill] sm:$0xff] %v16174_v9  ;;  %v16178_v58 = vsel %vm919_vm3, %v975_v36, %v976_v5  ;;  %v16186_v21 = vsel %vm919_vm3, %v976_v5, %v978_v35  ;;  %v985_v36 = vrot.slane %v779_v27, 7  ;;  %v986_v14 = vrot.slane %v15746_v52, 7  ;;  %v823_v43 = vld [vmem:[#allocation3 + $0xc0] sm:$0xff] }
 0x129   : > { %19465 = vst [vmem:[#allocation83_spill] sm:$0xff] %v16178_v58  ;;  %19466 = vst [vmem:[#allocation84_spill] sm:$0xff] %v16186_v21  ;;  %v16190_v33 = vsel %vm919_vm3, %v980_v48, %v981_v1  ;;  %v16198_v26 = vsel %vm919_vm3, %v981_v1, %v983_v53  ;;  %v988_v5 = vrot.slane %v15748_v41, 7  ;;  %v990_v48 = vrot.slane %v783_v51, 7 }
 0x12a   : > { %19467 = vst [vmem:[#allocation85_spill] sm:$0xff] %v16190_v33  ;;  %19468 = vst [vmem:[#allocation86_spill] sm:$0xff] %v16198_v26  ;;  %v16202_v35 = vsel %vm919_vm3, %v985_v36, %v986_v14  ;;  %v991_v27 = vrot.slane %v15762_v38, 7  ;;  %v993_v1 = vrot.slane %v15764_v44, 7  ;;  %v996_v51 = vrot.slane %v15778_v12, 7 }
 0x12b   : > { %12749 = vmatmul.mubr.msk.f32.gmra.mrb[6].mxu0 %vm380_vm1, %v16102_v61  ;;  %19469 = vst [vmem:[#allocation87_spill] sm:$0xff] %v16202_v35  ;;  %v1078_v57 = vrot.slane %v823_v43, 7  ;;  %v1079_v18 = vrot.slane %v16333_v22, 7 }
 0x12c   : > { %12751 = vmatprep.mubr.msk.f32.mxu0 %vm380_vm1, %v16106_v49  ;;  %v16214_v53 = vsel %vm919_vm3, %v990_v48, %v991_v27  ;;  %v16317_v49 = vld [vmem:[#allocation3 + $0xa8] sm:$0xff] }
 0x12d   : > { %19471 = vst [vmem:[#allocation89_spill] sm:$0xff] %v16214_v53  ;;  %v1074_v61 = vrot.slane %v16317_v49, 7  ;;  %v16347_v43 = vsel %vm919_vm3, %v1078_v57, %v1079_v18 }
 0x12e   : > { %19486 = vst [vmem:[#allocation104_spill] sm:$0xff] %v16347_v43 }
 0x12f   : > { %12752 = vmatmul.mubr.msk.f32.gmra.mrb[8].mxu0 %vm380_vm1, %v16114_v6 }
 0x130   : > { %12754 = vmatprep.mubr.msk.f32.mxu0 %vm380_vm1, %v16118_v7 }
 0x133   : > { %12755 = vmatmul.mubr.msk.f32.gmra.mrb[10].mxu0 %vm380_vm1, %v16126_v29  ;;  %v16299_v29 = vld [vmem:[#allocation3 + $0x88] sm:$0xff] }
 0x134   : > { %12757 = vmatprep.mubr.msk.f32.mxu0 %vm380_vm1, %v16130_v37  ;;  %v1069_v7 = vrot.slane %v16299_v29, 7 }
 0x137   : > { %12758 = vmatmul.mubr.msk.f32.gmra.mrb[12].mxu0 %vm380_vm1, %v16138_v47  ;;  %v815_v47 = vld [vmem:[#allocation3 + $0x80] sm:$0xff] }
 0x138   : > { %12760 = vmatprep.mubr.msk.f32.mxu0 %vm380_vm1, %v16142_v50  ;;  %v1068_v37 = vrot.slane %v815_v47, 7 }
 0x13b   : > { %12761 = vmatmul.mubr.msk.f32.gmra.mrb[14].mxu0 %vm380_vm1, %v16150_v63  ;;  %v811_v63 = vld [vmem:[#allocation3 + $0x60] sm:$0xff] }
 0x13c   : > { %12763 = vmatprep.mubr.msk.f32.mxu0 %vm380_vm1, %v16154_v0  ;;  %v16260_v0 = vld [vmem:[#allocation3 + $0x48] sm:$0xff] }
 0x13f   : > { %12764 = vmatmul.mubr.msk.f32.gmra.mrb[16].mxu0 %vm380_vm1, %v16162_v15  ;;  %v807_v15 = vld [vmem:[#allocation3 + $0x40] sm:$0xff] }
 0x140   : > { %12766 = vmatprep.mubr.msk.f32.mxu0 %vm380_vm1, %v16166_v20  ;;  %v803_v20 = vld [vmem:[#allocation3 + $0x20] sm:$0xff] }
 0x143   : > { %12767 = vmatmul.mubr.msk.f32.gmra.mrb[18].mxu0 %vm380_vm1, %v16174_v9  ;;  %v16217_v9 = vld [vmem:[#allocation2 + $0x208] sm:$0xff] }
 0x144   : > { %12769 = vmatprep.mubr.msk.f32.mxu0 %vm380_vm1, %v16178_v58  ;;  %v787_v58 = vld [vmem:[#allocation2 + $0x1e0] sm:$0xff] }
 0x145   : > { %v995_v36 = vrot.slane %v787_v58, 7 }
 0x147   : > { %12770 = vmatmul.mubr.msk.f32.gmra.mrb[20].mxu0 %vm380_vm1, %v16186_v21  ;;  %v791_v21 = vld [vmem:[#allocation2 + $0x200] sm:$0xff]  ;;  %v16228_v48 = vsel %vm919_vm3, %v995_v36, %v996_v51 }
 0x148   : > { %12772 = vmatprep.mubr.msk.f32.mxu0 %vm380_vm1, %v16190_v33  ;;  %v16210_v33 = vsel %vm919_vm3, %v986_v14, %v988_v5  ;;  %v16224_v14 = vsel %vm919_vm3, %v991_v27, %v993_v1  ;;  %v998_v5 = vrot.slane %v15780_v60, 7  ;;  %19473 = vst [vmem:[#allocation91_spill] sm:$0xff] %v16228_v48  ;;  %v3215_v58 = vrot.slane %v791_v21, 7 }
 0x149   : > { %19470 = vst [vmem:[#allocation88_spill] sm:$0xff] %v16210_v33  ;;  %19472 = vst [vmem:[#allocation90_spill] sm:$0xff] %v16224_v14 }
 0x14a   : > { %v16238_v27 = vsel %vm919_vm3, %v996_v51, %v998_v5 }
 0x14b   : > { %12773 = vmatmul.mubr.msk.f32.gmra.mrb[22].mxu0 %vm380_vm1, %v16198_v26  ;;  %v16231_v26 = vld [vmem:[#allocation2 + $0x210] sm:$0xff]  ;;  %19474 = vst [vmem:[#allocation92_spill] sm:$0xff] %v16238_v27 }
 0x14c   : > { %12775 = vmatprep.mubr.msk.f32.mxu0 %vm380_vm1, %v16202_v35  ;;  %v3216_v35 = vrot.slane %v16217_v9, 7  ;;  %v3218_v1 = vrot.slane %v16231_v26, 7 }
 0x14e   : > { %v16245_v36 = vsel %vm919_vm3, %v3215_v58, %v3216_v35  ;;  %v16255_v51 = vsel %vm919_vm3, %v3216_v35, %v3218_v1  ;;  %v1058_v58 = vrot.slane %v807_v15, 7  ;;  %v16270_v35 = vld [vmem:[#allocation3 + $0x50] sm:$0xff]  ;;  %v1063_v1 = vrot.slane %v811_v63, 7 }
 0x14f   : > { %12776 = vmatmul.mubr.msk.f32.gmra.mrb[24].mxu0 %vm380_vm1, %v16210_v33  ;;  %19475 = vst [vmem:[#allocation93_spill] sm:$0xff] %v16245_v36  ;;  %v1053_v33 = vrot.slane %v803_v20, 7  ;;  %19476 = vst [vmem:[#allocation94_spill] sm:$0xff] %v16255_v51  ;;  %v1059_v20 = vrot.slane %v16260_v0, 7 }
 0x150   : > { %12778 = vmatprep.mubr.msk.f32.mxu0 %vm380_vm1, %v16214_v53  ;;  %v16241_v53 = vld [vmem:[#allocation3 + $0x28] sm:$0xff] }
 0x151   : > { %v1054_v21 = vrot.slane %v16241_v53, 7  ;;  %v16274_v15 = vsel %vm919_vm3, %v1058_v58, %v1059_v20 }
 0x153   : > { %12779 = vmatmul.mubr.msk.f32.gmra.mrb[26].mxu0 %vm380_vm1, %v16224_v14  ;;  %v16249_v14 = vld [vmem:[#allocation3 + $0x30] sm:$0xff]  ;;  %v16258_v5 = vsel %vm919_vm3, %v1053_v33, %v1054_v21  ;;  %v1061_v33 = vrot.slane %v16270_v35, 7 }
 0x154   : > { %12781 = vmatprep.mubr.msk.f32.mxu0 %vm380_vm1, %v16228_v48  ;;  %v1056_v48 = vrot.slane %v16249_v14, 7 }
 0x155   : > { %v16291_v63 = vsel %vm919_vm3, %v1059_v20, %v1061_v33  ;;  %v16311_v33 = vld [vmem:[#allocation3 + $0x90] sm:$0xff] }
 0x156   : > { %19477 = vst [vmem:[#allocation95_spill] sm:$0xff] %v16291_v63  ;;  %v1071_v47 = vrot.slane %v16311_v33, 7 }
 0x157   : > { %12782 = vmatmul.mubr.msk.f32.gmra.mrb[28].mxu0 %vm380_vm1, %v16238_v27  ;;  %v16276_v27 = vld [vmem:[#allocation3 + $0x68] sm:$0xff] }
 0x158   : > { %12784 = vmatprep.mubr.msk.f32.mxu0 %vm380_vm1, %v16245_v36  ;;  %v16268_v36 = vsel %vm919_vm3, %v1054_v21, %v1056_v48  ;;  %v1064_v50 = vrot.slane %v16276_v27, 7  ;;  %v16293_v48 = vld [vmem:[#allocation3 + $0x70] sm:$0xff] }
 0x159   : > { %v1066_v21 = vrot.slane %v16293_v48, 7 }
 0x15a   : > { %v16297_v58 = vsel %vm919_vm3, %v1063_v1, %v1064_v50  ;;  %v16315_v1 = vsel %vm919_vm3, %v1068_v37, %v1069_v7 }
 0x15b   : > { %12785 = vmatmul.mubr.msk.f32.gmra.mrb[30].mxu0 %vm380_vm1, %v16255_v51  ;;  %v16282_v51 = vld [vmem:[%s19060_s3 + $0x10] sm:$0xf]  ;;  %19478 = vst [vmem:[#allocation96_spill] sm:$0xff] %v16297_v58  ;;  %v16309_v20 = vsel %vm919_vm3, %v1064_v50, %v1066_v21  ;;  %19480 = vst [vmem:[#allocation98_spill] sm:$0xff] %v16315_v1  ;;  %v16325_v50 = vsel %vm919_vm3, %v1069_v7, %v1071_v47 }
 0x15c   : > { %12789 = vmatprep.mubr.msk.f32.mxu0 %vm380_vm1, %v16258_v5  ;;  %19479 = vst [vmem:[#allocation97_spill] sm:$0xff] %v16309_v20  ;;  %19481 = vst [vmem:[#allocation99_spill] sm:$0xff] %v16325_v50  ;;  %v16327_v21 = vld [vmem:[#allocation3 + $0xb0] sm:$0xff] }
 0x15d   : > { %v1076_v37 = vrot.slane %v16327_v21, 7  ;;  %v16343_v47 = vld [vmem:[#allocation3 + $0xd0] sm:$0xff] }
 0x15e   : > { %19485 = vst [vmem:[#allocation103_spill] sm:$0xff] %v16343_v47 }
 0x15f   : > { %12790 = vmatmul.mubr.msk.f32.vlgmr.msra.gmra.mrb[0].mxu0 %vm380_vm1, %v16268_v36  ;;  %v16341_v7 = vsel %vm919_vm3, %v1074_v61, %v1076_v37  ;;  %v16359_v37 = vld [vmem:[#allocation3 + $0xf0] sm:$0xff] }
 0x160   : > { %12838 = vmatpush3.msk.msra.mxu0 %vm1194_vm0, %v16067_v17  ;;  %12792 = vmatprep.mubr.msk.f32.mxu0 %vm380_vm1, %v16274_v15  ;;  %v819_v17 = vld [vmem:[#allocation3 + $0xa0] sm:$0xff]  ;;  %19484 = vst [vmem:[#allocation102_spill] sm:$0xff] %v16341_v7  ;;  %19489 = vst [vmem:[#allocation107_spill] sm:$0xff] %v16359_v37  ;;  %v1086_v57 = vrot.slane %v16359_v37, 7 }
 0x161   : > { %12887 = vmatprep.subr.msk.mxu0 %vm1194_vm0, %v16282_v51  ;;  %v1073_v6 = vrot.slane %v819_v17, 7 }
 0x163   : > { %12793 = vmatmul.mubr.msk.f32.gmra.mrb[2].mxu0 %vm380_vm1, %v16291_v63  ;;  %v16331_v17 = vsel %vm919_vm3, %v1073_v6, %v1074_v61  ;;  %v1081_v6 = vrot.slane %v16343_v47, 7  ;;  %v16450_v63 = vld [vmem:[#allocation3 + $0x208] sm:$0xff] }
 0x164   : > { %12795 = vmatprep.mubr.msk.f32.mxu0 %vm380_vm1, %v16297_v58  ;;  %19482 = vst [vmem:[#allocation100_spill] sm:$0xff] %v16331_v17  ;;  %v835_v58 = vld [vmem:[#allocation3 + $0x120] sm:$0xff]  ;;  %19505 = vst [vmem:[#allocation123_spill] sm:$0xff] %v16450_v63 }
 0x165   : > { %v16357_v61 = vsel %vm919_vm3, %v1079_v18, %v1081_v6  ;;  %v1091_v6 = vrot.slane %v15899_v25, 7 }
 0x166   : > { %19488 = vst [vmem:[#allocation106_spill] sm:$0xff] %v16357_v61 }
 0x167   : > { %12796 = vmatmul.mubr.msk.f32.gmra.mrb[4].mxu0 %vm380_vm1, %v16309_v20  ;;  %v831_v20 = vld [vmem:[#allocation3 + $0x100] sm:$0xff] }
 0x168   : > { %12798 = vmatprep.mubr.msk.f32.mxu0 %vm380_vm1, %v16315_v1  ;;  %v1084_v1 = vrot.slane %v16349_v34, 7 }
 0x16a   : > { %v16363_v2 = vsel %vm919_vm3, %v1083_v45, %v1084_v1  ;;  %v16371_v18 = vsel %vm919_vm3, %v1084_v1, %v1086_v57  ;;  %v1093_v45 = vrot.slane %v835_v58, 7  ;;  %v1096_v1 = vrot.slane %v15915_v62, 7 }
 0x16b   : > { %12799 = vmatmul.mubr.msk.f32.gmra.mrb[6].mxu0 %vm380_vm1, %v16325_v50  ;;  %19490 = vst [vmem:[#allocation108_spill] sm:$0xff] %v16363_v2  ;;  %v1089_v50 = vrot.slane %v15897_v59, 7  ;;  %19491 = vst [vmem:[#allocation109_spill] sm:$0xff] %v16371_v18  ;;  %v1099_v58 = vrot.slane %v15929_v30, 7 }
 0x16c   : > { %12801 = vmatprep.mubr.msk.f32.mxu0 %vm380_vm1, %v16331_v17  ;;  %v1088_v17 = vrot.slane %v831_v20, 7  ;;  %v1094_v20 = vrot.slane %v15913_v16, 7 }
 0x16e   : > { %v16387_v57 = vsel %vm919_vm3, %v1093_v45, %v1094_v20 }
 0x16f   : > { %12802 = vmatmul.mubr.msk.f32.gmra.mrb[8].mxu0 %vm380_vm1, %v16341_v7  ;;  %v839_v7 = vld [vmem:[#allocation3 + $0x140] sm:$0xff]  ;;  %19494 = vst [vmem:[#allocation112_spill] sm:$0xff] %v16387_v57 }
 0x170   : > { %12804 = vmatprep.mubr.msk.f32.mxu0 %vm380_vm1, %v16347_v43  ;;  %v16375_v43 = vsel %vm919_vm3, %v1088_v17, %v1089_v50  ;;  %v1098_v17 = vrot.slane %v839_v7, 7  ;;  %v1104_v7 = vrot.slane %v15945_v19, 7 }
 0x171   : > { %19492 = vst [vmem:[#allocation110_spill] sm:$0xff] %v16375_v43 }
 0x173   : > { %12805 = vmatmul.mubr.msk.f32.gmra.mrb[10].mxu0 %vm380_vm1, %v16357_v61  ;;  %v843_v61 = vld [vmem:[#allocation3 + $0x160] sm:$0xff] }
 0x174   : > { %12807 = vmatprep.mubr.msk.f32.mxu0 %vm380_vm1, %v16363_v2  ;;  %v16383_v2 = vsel %vm919_vm3, %v1089_v50, %v1091_v6  ;;  %v1101_v50 = vrot.slane %v15931_v42, 7  ;;  %v16399_v6 = vsel %vm919_vm3, %v1098_v17, %v1099_v58  ;;  %v1103_v45 = vrot.slane %v843_v61, 7 }
 0x175   : > { %19493 = vst [vmem:[#allocation111_spill] sm:$0xff] %v16383_v2  ;;  %19496 = vst [vmem:[#allocation114_spill] sm:$0xff] %v16399_v6  ;;  %v1109_v61 = vrot.slane %v15961_v4, 7 }
 0x177   : > { %12808 = vmatmul.mubr.msk.f32.gmra.mrb[12].mxu0 %vm380_vm1, %v16371_v18  ;;  %v847_v18 = vld [vmem:[#allocation3 + $0x180] sm:$0xff] }
 0x178   : > { %12810 = vmatprep.mubr.msk.f32.mxu0 %vm380_vm1, %v16375_v43  ;;  %v16395_v43 = vsel %vm919_vm3, %v1094_v20, %v1096_v1  ;;  %v1106_v20 = vrot.slane %v15947_v24, 7  ;;  %v16411_v1 = vsel %vm919_vm3, %v1103_v45, %v1104_v7  ;;  %v1108_v17 = vrot.slane %v847_v18, 7 }
 0x179   : > { %19495 = vst [vmem:[#allocation113_spill] sm:$0xff] %v16395_v43  ;;  %19498 = vst [vmem:[#allocation116_spill] sm:$0xff] %v16411_v1  ;;  %v1114_v18 = vrot.slane %v15977_v28, 7 }
 0x17b   : > { %12811 = vmatmul.mubr.msk.f32.gmra.mrb[14].mxu0 %vm380_vm1, %v16383_v2  ;;  %v851_v2 = vld [vmem:[#allocation3 + $0x1a0] sm:$0xff] }
 0x17c   : > { %12813 = vmatprep.mubr.msk.f32.mxu0 %vm380_vm1, %v16387_v57  ;;  %v16407_v57 = vsel %vm919_vm3, %v1099_v58, %v1101_v50  ;;  %v1111_v58 = vrot.slane %v15963_v32, 7  ;;  %v16423_v50 = vsel %vm919_vm3, %v1108_v17, %v1109_v61  ;;  %v1113_v45 = vrot.slane %v851_v2, 7 }
 0x17d   : > { %19497 = vst [vmem:[#allocation115_spill] sm:$0xff] %v16407_v57  ;;  %19500 = vst [vmem:[#allocation118_spill] sm:$0xff] %v16423_v50  ;;  %v1119_v2 = vrot.slane %v15993_v55, 7 }
 0x17f   : > { %12814 = vmatmul.mubr.msk.f32.gmra.mrb[16].mxu0 %vm380_vm1, %v16395_v43  ;;  %v855_v43 = vld [vmem:[#allocation3 + $0x1c0] sm:$0xff] }
 0x180   : > { %12816 = vmatprep.mubr.msk.f32.mxu0 %vm380_vm1, %v16399_v6  ;;  %v16419_v6 = vsel %vm919_vm3, %v1104_v7, %v1106_v20  ;;  %v1116_v7 = vrot.slane %v15979_v10, 7  ;;  %v16435_v20 = vsel %vm919_vm3, %v1113_v45, %v1114_v18  ;;  %v1118_v17 = vrot.slane %v855_v43, 7 }
 0x181   : > { %19499 = vst [vmem:[#allocation117_spill] sm:$0xff] %v16419_v6  ;;  %19502 = vst [vmem:[#allocation120_spill] sm:$0xff] %v16435_v20  ;;  %v1124_v43 = vrot.slane %v16009_v40, 7 }
 0x183   : > { %12817 = vmatmul.mubr.msk.f32.gmra.mrb[18].mxu0 %vm380_vm1, %v16407_v57  ;;  %v859_v57 = vld [vmem:[#allocation3 + $0x1e0] sm:$0xff] }
 0x184   : > { %12819 = vmatprep.mubr.msk.f32.mxu0 %vm380_vm1, %v16411_v1  ;;  %v16431_v1 = vsel %vm919_vm3, %v1109_v61, %v1111_v58  ;;  %v1121_v61 = vrot.slane %v15995_v31, 7  ;;  %v16447_v58 = vsel %vm919_vm3, %v1118_v17, %v1119_v2  ;;  %v1123_v45 = vrot.slane %v859_v57, 7 }
 0x185   : > { %19501 = vst [vmem:[#allocation119_spill] sm:$0xff] %v16431_v1  ;;  %19504 = vst [vmem:[#allocation122_spill] sm:$0xff] %v16447_v58 }
 0x186   : > { %v16461_v17 = vsel %vm919_vm3, %v1123_v45, %v1124_v43  ;;  %v16486_v45 = vld [vmem:[#allocation2 + $0x28] sm:$0xff] }
 0x187   : > { %12820 = vmatmul.mubr.msk.f32.gmra.mrb[20].mxu0 %vm380_vm1, %v16419_v6  ;;  %v863_v6 = vld [vmem:[#allocation3 + $0x200] sm:$0xff]  ;;  %19507 = vst [vmem:[#allocation125_spill] sm:$0xff] %v16461_v17 }
 0x188   : > { %12822 = vmatprep.mubr.msk.f32.mxu0 %vm380_vm1, %v16423_v50  ;;  %v16443_v50 = vsel %vm919_vm3, %v1114_v18, %v1116_v7  ;;  %v16457_v18 = vsel %vm919_vm3, %v1119_v2, %v1121_v61  ;;  %v1126_v7 = vrot.slane %v16011_v11, 7  ;;  %v3223_v57 = vrot.slane %v863_v6, 7 }
 0x189   : > { %19503 = vst [vmem:[#allocation121_spill] sm:$0xff] %v16443_v50  ;;  %19506 = vst [vmem:[#allocation124_spill] sm:$0xff] %v16457_v18 }
 0x18b   : > { %12823 = vmatmul.mubr.msk.f32.gmra.mrb[22].mxu0 %vm380_vm1, %v16431_v1  ;;  %v16464_v1 = vld [vmem:[#allocation3 + $0x210] sm:$0xff] }
 0x18c   : > { %12825 = vmatprep.mubr.msk.f32.mxu0 %vm380_vm1, %v16435_v20  ;;  %v3224_v20 = vrot.slane %v16450_v63, 7  ;;  %19508 = vst [vmem:[#allocation126_spill] sm:$0xff] %v16464_v1  ;;  %v3226_v2 = vrot.slane %v16464_v1, 7 }
 0x18e   : > { %v16475_v61 = vsel %vm919_vm3, %v3223_v57, %v3224_v20  ;;  %v16482_v6 = vsel %vm919_vm3, %v3224_v20, %v3226_v2  ;;  %v16499_v20 = vld [vmem:[#allocation2 + $0x48] sm:$0xff]  ;;  %v16504_v57 = vld [vmem:[#allocation2 + $0x50] sm:$0xff] }
 0x18f   : > { %12826 = vmatmul.mubr.msk.f32.gmra.mrb[24].mxu0 %vm380_vm1, %v16443_v50  ;;  %19510 = vst [vmem:[#allocation128_spill] sm:$0xff] %v16475_v61  ;;  %19511 = vst [vmem:[#allocation129_spill] sm:$0xff] %v16482_v6  ;;  %v16508_v2 = vld [vmem:[#allocation2 + $0x68] sm:$0xff] }
 0x190   : > { %12828 = vmatprep.mubr.msk.f32.mxu0 %vm380_vm1, %v16447_v58  ;;  %v16471_v58 = vsel %vm919_vm3, %v1124_v43, %v1126_v7  ;;  %v10829_v43 = vld [vmem:[%s19059_s2 + $0x14] sm:$0xf]  ;;  %19512 = vst [vmem:[#allocation130_spill] sm:$0xff] %v16504_v57  ;;  %19513 = vst [vmem:[#allocation131_spill] sm:$0xff] %v16508_v2 }
 0x191   : > { %19509 = vst [vmem:[#allocation127_spill] sm:$0xff] %v16471_v58  ;;  %v16493_v7 = vld [vmem:[#allocation2 + $0x30] sm:$0xff] }
 0x193   : > { %12829 = vmatmul.mubr.msk.f32.gmra.mrb[26].mxu0 %vm380_vm1, %v16457_v18 }
 0x194   : > { %12831 = vmatprep.mubr.msk.f32.mxu0 %vm380_vm1, %v16461_v17 }
 0x197   : > { %12832 = vmatmul.mubr.msk.f32.gmra.mrb[28].mxu0 %vm380_vm1, %v16471_v58 }
 0x198   : > { %12834 = vmatprep.mubr.msk.f32.mxu0 %vm380_vm1, %v16475_v61  ;;  %v16520_v61 = vld [vmem:[#allocation2 + $0x90] sm:$0xff] }
 0x199   : > { %19516 = vst [vmem:[#allocation134_spill] sm:$0xff] %v16520_v61 }
 0x19b   : > { %12835 = vmatmul.mubr.msk.f32.gmra.mrb[30].mxu0 %vm380_vm1, %v16482_v6  ;;  %v16512_v6 = vld [vmem:[#allocation2 + $0x70] sm:$0xff] }
 0x19c   : > { %12839 = vmatprep.mubr.msk.f32.mxu0 %vm380_vm1, %v16486_v45  ;;  %19514 = vst [vmem:[#allocation132_spill] sm:$0xff] %v16512_v6 }
 0x19f   : > { %12840 = vmatmul.mubr.msk.f32.vlgmr.msra.gmra.mrb[0].mxu0 %vm380_vm1, %v16493_v7 }
 0x1a0   : > { %12888 = vmatpush3.msk.msra.mxu0 %vm1194_vm0, %v16282_v51  ;;  %12842 = vmatprep.mubr.msk.f32.mxu0 %vm380_vm1, %v16499_v20  ;;  %v16516_v51 = vld [vmem:[#allocation2 + $0x88] sm:$0xff] }
 0x1a1   : > { %12937 = vmatprep.subr.msk.mxu0 %vm1194_vm0, %v10829_v43  ;;  %19515 = vst [vmem:[#allocation133_spill] sm:$0xff] %v16516_v51 }
 0x1a3   : > { %12843 = vmatmul.mubr.msk.f32.gmra.mrb[2].mxu0 %vm380_vm1, %v16504_v57  ;;  %v16524_v57 = vld [vmem:[#allocation2 + $0xa8] sm:$0xff] }
 0x1a4   : > { %12845 = vmatprep.mubr.msk.f32.mxu0 %vm380_vm1, %v16508_v2  ;;  %19517 = vst [vmem:[#allocation135_spill] sm:$0xff] %v16524_v57  ;;  %v16528_v2 = vld [vmem:[#allocation2 + $0xb0] sm:$0xff] }
 0x1a5   : > { %19518 = vst [vmem:[#allocation136_spill] sm:$0xff] %v16528_v2 }
 0x1a7   : > { %12846 = vmatmul.mubr.msk.f32.gmra.mrb[4].mxu0 %vm380_vm1, %v16512_v6  ;;  %v16532_v6 = vld [vmem:[#allocation2 + $0xc8] sm:$0xff] }
 0x1a8   : > { %12848 = vmatprep.mubr.msk.f32.mxu0 %vm380_vm1, %v16516_v51  ;;  %19519 = vst [vmem:[#allocation137_spill] sm:$0xff] %v16532_v6  ;;  %v16536_v51 = vld [vmem:[#allocation2 + $0xd0] sm:$0xff] }
 0x1a9   : > { %19520 = vst [vmem:[#allocation138_spill] sm:$0xff] %v16536_v51 }
 0x1ab   : > { %12849 = vmatmul.mubr.msk.f32.gmra.mrb[6].mxu0 %vm380_vm1, %v16520_v61  ;;  %v16540_v61 = vld [vmem:[#allocation2 + $0xe8] sm:$0xff] }
 0x1ac   : > { %12851 = vmatprep.mubr.msk.f32.mxu0 %vm380_vm1, %v16524_v57  ;;  %19521 = vst [vmem:[#allocation139_spill] sm:$0xff] %v16540_v61  ;;  %v16544_v57 = vld [vmem:[#allocation2 + $0xf0] sm:$0xff] }
 0x1af   : > { %12852 = vmatmul.mubr.msk.f32.gmra.mrb[8].mxu0 %vm380_vm1, %v16528_v2  ;;  %v16548_v2 = vld [vmem:[#allocation2 + $0x108] sm:$0xff] }
 0x1b0   : > { %12854 = vmatprep.mubr.msk.f32.mxu0 %vm380_vm1, %v16532_v6  ;;  %v16552_v6 = vld [vmem:[#allocation2 + $0x110] sm:$0xff] }
 0x1b3   : > { %12855 = vmatmul.mubr.msk.f32.gmra.mrb[10].mxu0 %vm380_vm1, %v16536_v51  ;;  %v16556_v51 = vld [vmem:[#allocation2 + $0x128] sm:$0xff] }
 0x1b4   : > { %12857 = vmatprep.mubr.msk.f32.mxu0 %vm380_vm1, %v16540_v61  ;;  %v16560_v61 = vld [vmem:[#allocation2 + $0x130] sm:$0xff] }
 0x1b7   : > { %12858 = vmatmul.mubr.msk.f32.gmra.mrb[12].mxu0 %vm380_vm1, %v16544_v57 }
 0x1b8   : > { %12860 = vmatprep.mubr.msk.f32.mxu0 %vm380_vm1, %v16548_v2 }
 0x1bb   : > { %12861 = vmatmul.mubr.msk.f32.gmra.mrb[14].mxu0 %vm380_vm1, %v16552_v6 }
 0x1bc   : > { %12863 = vmatprep.mubr.msk.f32.mxu0 %vm380_vm1, %v16556_v51 }
 0x1bf   : > { %12864 = vmatmul.mubr.msk.f32.gmra.mrb[16].mxu0 %vm380_vm1, %v16560_v61 }
 0x1c0   : > { %12866 = vmatprep.mubr.msk.f32.mxu0 %vm380_vm1, %v15698_v46 }
 0x1c3   : > { %12867 = vmatmul.mubr.msk.f32.gmra.mrb[18].mxu0 %vm380_vm1, %v15700_v54  ;;  %v16674_v54 = vld [vmem:[%s19059_s2 + $0x18] sm:$0xf] }
 0x1c4   : > { %12869 = vmatprep.mubr.msk.f32.mxu0 %vm380_vm1, %v15714_v13  ;;  %v10863_v13 = vld [vmem:[%s19060_s3 + $0x14] sm:$0xf] }
 0x1c7   : > { %12870 = vmatmul.mubr.msk.f32.gmra.mrb[20].mxu0 %vm380_vm1, %v15716_v8 }
 0x1c8   : > { %12872 = vmatprep.mubr.msk.f32.mxu0 %vm380_vm1, %v15730_v3  ;;  %v1129_v3 = vld [vmem:[%s19060_s3] sm:$0xf] }
 0x1c9   : > { %12437 = vmatprep.subr.msk.mxu1 %vm1194_vm0, %v1129_v3 }
 0x1ca   : > { %12438 = vmatpush3.msk.msra.mxu1 %vm1194_vm0, %v1129_v3  ;;  %v19561_v3 = vld [vmem:[#allocation117_spill] sm:$0xff] }
 0x1cb   : > { %12873 = vmatmul.mubr.msk.f32.gmra.mrb[22].mxu0 %vm380_vm1, %v15732_v56 }
 0x1cc   : > { %12875 = vmatprep.mubr.msk.f32.mxu0 %vm380_vm1, %v15746_v52  ;;  %v799_v52 = vld [vmem:[#allocation3] sm:$0xff] }
 0x1cd   : > { %v1048_v56 = vrot.slane %v799_v52, 7  ;;  %v19559_v52 = vld [vmem:[#allocation116_spill] sm:$0xff] }
 0x1cf   : > { %12876 = vmatmul.mubr.msk.f32.gmra.mrb[24].mxu0 %vm380_vm1, %v15748_v41 }
 0x1d0   : > { %12878 = vmatprep.mubr.msk.f32.mxu0 %vm380_vm1, %v15762_v38  ;;  %v14763_v38 = vld [vmem:[#allocation3 + $0x10] sm:$0xff] }
 0x1d1   : > { %v1051_v41 = vrot.slane %v14763_v38, 7  ;;  %v19557_v38 = vld [vmem:[#allocation115_spill] sm:$0xff] }
 0x1d3   : > { %12879 = vmatmul.mubr.msk.f32.gmra.mrb[26].mxu0 %vm380_vm1, %v15764_v44  ;;  %v19523_v44 = vld [vmem:[#allocation6_spill] sm:$0xff] }
 0x1d4   : > { %12881 = vmatprep.mubr.msk.f32.mxu0 %vm380_vm1, %v15778_v12 }
 0x1d7   : > { %12882 = vmatmul.mubr.msk.f32.gmra.mrb[28].mxu0 %vm380_vm1, %v15780_v60  ;;  %v14762_v60 = vld [vmem:[#allocation3 + $0x8] sm:$0xff] }
 0x1d8   : > { %12884 = vmatprep.mubr.msk.f32.mxu0 %vm380_vm1, %v16217_v9  ;;  %v1049_v12 = vrot.slane %v14762_v60, 7  ;;  %v19555_v60 = vld [vmem:[#allocation114_spill] sm:$0xff] }
 0x1da   : > { %v1052_v8 = vsel %vm919_vm3, %v1049_v12, %v1051_v41  ;;  %v1050_v46 = vsel %vm919_vm3, %v1048_v56, %v1049_v12  ;;  %v19556_v12 = vld [vmem:[#allocation23_spill] sm:$0xff]  ;;  %v19558_v41 = vld [vmem:[#allocation24_spill] sm:$0xff]  ;;  %v19560_v56 = vld [vmem:[#allocation25_spill] sm:$0xff] }
 0x1db   : > { %12885 = vmatmul.mubr.msk.f32.gmra.mrb[30].mxu0 %vm380_vm1, %v16231_v26  ;;  %12439 = vmatprep.mubr.msk.f32.mxu1 %vm380_vm1, %v1050_v46  ;;  %v19563_v46 = vld [vmem:[#allocation118_spill] sm:$0xff] }
 0x1dc   : > { %12889 = vmatprep.mubr.msk.f32.mxu0 %vm380_vm1, %v16241_v53  ;;  %12440 = vmatmul.mubr.msk.f32.vlgmr.msra.gmra.mrb[0].mxu1 %vm380_vm1, %v1052_v8  ;;  %v19544_v53 = vld [vmem:[#allocation17_spill] sm:$0xff]  ;;  %v19562_v8 = vld [vmem:[#allocation26_spill] sm:$0xff] }
 0x1dd   : > { %12442 = vmatprep.mubr.msk.f32.mxu1 %vm380_vm1, %v16258_v5  ;;  %v19548_v5 = vld [vmem:[#allocation19_spill] sm:$0xff] }
 0x1df   : > { %12890 = vmatmul.mubr.msk.f32.vlgmr.msra.gmra.mrb[0].mxu0 %vm380_vm1, %v16249_v14  ;;  %v19545_v14 = vld [vmem:[#allocation109_spill] sm:$0xff] }
 0x1e0   : > { %12938 = vmatpush3.msk.msra.mxu0 %vm1194_vm0, %v10829_v43  ;;  %12892 = vmatprep.mubr.msk.f32.mxu0 %vm380_vm1, %v16260_v0  ;;  %v19543_v0 = vld [vmem:[#allocation108_spill] sm:$0xff]  ;;  %v19553_v43 = vld [vmem:[#allocation113_spill] sm:$0xff] }
 0x1e1   : > { %12987 = vmatprep.subr.msk.mxu0 %vm1194_vm0, %v10863_v13  ;;  %12443 = vmatmul.mubr.msk.f32.gmra.mrb[2].mxu1 %vm380_vm1, %v16268_v36  ;;  %v19547_v36 = vld [vmem:[#allocation110_spill] sm:$0xff] }
 0x1e2   : > { %12445 = vmatprep.mubr.msk.f32.mxu1 %vm380_vm1, %v16274_v15 }
 0x1e3   : > { %12893 = vmatmul.mubr.msk.f32.gmra.mrb[2].mxu0 %vm380_vm1, %v16270_v35  ;;  %v19549_v35 = vld [vmem:[#allocation111_spill] sm:$0xff] }
 0x1e4   : > { %12895 = vmatprep.mubr.msk.f32.mxu0 %vm380_vm1, %v16276_v27  ;;  %v19546_v27 = vld [vmem:[#allocation18_spill] sm:$0xff] }
 0x1e7   : > { %12896 = vmatmul.mubr.msk.f32.gmra.mrb[4].mxu0 %vm380_vm1, %v16293_v48  ;;  %v19550_v48 = vld [vmem:[#allocation20_spill] sm:$0xff] }
 0x1e8   : > { %12898 = vmatprep.mubr.msk.f32.mxu0 %vm380_vm1, %v16299_v29  ;;  %v19542_v29 = vld [vmem:[#allocation16_spill] sm:$0xff] }
 0x1eb   : > { %12899 = vmatmul.mubr.msk.f32.gmra.mrb[6].mxu0 %vm380_vm1, %v16311_v33  ;;  %v19551_v33 = vld [vmem:[#allocation112_spill] sm:$0xff] }
 0x1ec   : > { %12901 = vmatprep.mubr.msk.f32.mxu0 %vm380_vm1, %v16317_v49  ;;  %v19541_v49 = vld [vmem:[#allocation106_spill] sm:$0xff] }
 0x1ef   : > { %12902 = vmatmul.mubr.msk.f32.gmra.mrb[8].mxu0 %vm380_vm1, %v16327_v21  ;;  %v19552_v21 = vld [vmem:[#allocation21_spill] sm:$0xff] }
 0x1f0   : > { %12904 = vmatprep.mubr.msk.f32.mxu0 %vm380_vm1, %v16333_v22  ;;  %v19617_v22 = vld [vmem:[#allocation83_spill] sm:$0xff] }
 0x1f3   : > { %12905 = vmatmul.mubr.msk.f32.gmra.mrb[10].mxu0 %vm380_vm1, %v16343_v47  ;;  %v19615_v47 = vld [vmem:[#allocation82_spill] sm:$0xff] }
 0x1f4   : > { %12907 = vmatprep.mubr.msk.f32.mxu0 %vm380_vm1, %v16349_v34  ;;  %v19613_v34 = vld [vmem:[#allocation81_spill] sm:$0xff] }
 0x1f7   : > { %12908 = vmatmul.mubr.msk.f32.gmra.mrb[12].mxu0 %vm380_vm1, %v16359_v37  ;;  %v19611_v37 = vld [vmem:[#allocation80_spill] sm:$0xff] }
 0x1f8   : > { %12910 = vmatprep.mubr.msk.f32.mxu0 %vm380_vm1, %v15897_v59  ;;  %v19536_v59 = vld [vmem:[#allocation13_spill] sm:$0xff] }
 0x1fb   : > { %12911 = vmatmul.mubr.msk.f32.gmra.mrb[14].mxu0 %vm380_vm1, %v15899_v25  ;;  %v19537_v25 = vld [vmem:[#allocation102_spill] sm:$0xff] }
 0x1fc   : > { %12913 = vmatprep.mubr.msk.f32.mxu0 %vm380_vm1, %v15913_v16  ;;  %v19538_v16 = vld [vmem:[#allocation14_spill] sm:$0xff] }
 0x1ff   : > { %12914 = vmatmul.mubr.msk.f32.gmra.mrb[16].mxu0 %vm380_vm1, %v15915_v62  ;;  %v19539_v62 = vld [vmem:[#allocation104_spill] sm:$0xff] }
 0x200   : > { %12916 = vmatprep.mubr.msk.f32.mxu0 %vm380_vm1, %v15929_v30  ;;  %v19535_v30 = vld [vmem:[#allocation100_spill] sm:$0xff] }
 0x203   : > { %12917 = vmatmul.mubr.msk.f32.gmra.mrb[18].mxu0 %vm380_vm1, %v15931_v42  ;;  %v19534_v42 = vld [vmem:[#allocation12_spill] sm:$0xff] }
 0x204   : > { %12919 = vmatprep.mubr.msk.f32.mxu0 %vm380_vm1, %v15945_v19  ;;  %v19533_v19 = vld [vmem:[#allocation99_spill] sm:$0xff] }
 0x207   : > { %12920 = vmatmul.mubr.msk.f32.gmra.mrb[20].mxu0 %vm380_vm1, %v15947_v24  ;;  %v19532_v24 = vld [vmem:[#allocation11_spill] sm:$0xff] }
 0x208   : > { %12922 = vmatprep.mubr.msk.f32.mxu0 %vm380_vm1, %v15961_v4  ;;  %v19531_v4 = vld [vmem:[#allocation98_spill] sm:$0xff] }
 0x20b   : > { %12923 = vmatmul.mubr.msk.f32.gmra.mrb[22].mxu0 %vm380_vm1, %v15963_v32  ;;  %v19530_v32 = vld [vmem:[#allocation10_spill] sm:$0xff] }
 0x20c   : > { %12925 = vmatprep.mubr.msk.f32.mxu0 %vm380_vm1, %v15977_v28  ;;  %v19529_v28 = vld [vmem:[#allocation97_spill] sm:$0xff] }
 0x20f   : > { %12926 = vmatmul.mubr.msk.f32.gmra.mrb[24].mxu0 %vm380_vm1, %v15979_v10  ;;  %v19528_v10 = vld [vmem:[#allocation9_spill] sm:$0xff] }
 0x210   : > { %12928 = vmatprep.mubr.msk.f32.mxu0 %vm380_vm1, %v15993_v55  ;;  %v19527_v55 = vld [vmem:[#allocation96_spill] sm:$0xff] }
 0x213   : > { %12929 = vmatmul.mubr.msk.f32.gmra.mrb[26].mxu0 %vm380_vm1, %v15995_v31  ;;  %v19540_v31 = vld [vmem:[#allocation15_spill] sm:$0xff] }
 0x214   : > { %12931 = vmatprep.mubr.msk.f32.mxu0 %vm380_vm1, %v16009_v40  ;;  %v19526_v40 = vld [vmem:[#allocation8_spill] sm:$0xff] }
 0x217   : > { %12932 = vmatmul.mubr.msk.f32.gmra.mrb[28].mxu0 %vm380_vm1, %v16011_v11  ;;  %v19525_v11 = vld [vmem:[#allocation95_spill] sm:$0xff] }
 0x218   : > { %12934 = vmatprep.mubr.msk.f32.mxu0 %vm380_vm1, %v16450_v63  ;;  %12446 = vmatmul.mubr.msk.f32.gmra.mrb[4].mxu1 %vm380_vm1, %v19525_v11 }
 0x219   : > { %12448 = vmatprep.mubr.msk.f32.mxu1 %vm380_vm1, %v19527_v55 }
 0x21b   : > { %12935 = vmatmul.mubr.msk.f32.gmra.mrb[30].mxu0 %vm380_vm1, %v16464_v1 }
 0x21c   : > { %12939 = vmatprep.mubr.msk.f32.mxu0 %vm380_vm1, %v15542_v23  ;;  %v19522_v23 = vld [vmem:[#allocation5_spill] sm:$0xff]  ;;  %12449 = vmatmul.mubr.msk.f32.gmra.mrb[6].mxu1 %vm380_vm1, %v19529_v28 }
 0x21d   : > { %12451 = vmatprep.mubr.msk.f32.mxu1 %vm380_vm1, %v19531_v4 }
 0x21f   : > { %12940 = vmatmul.mubr.msk.f32.vlgmr.msra.gmra.mrb[0].mxu0 %vm380_vm1, %v15564_v39  ;;  %v19524_v39 = vld [vmem:[#allocation7_spill] sm:$0xff] }
 0x220   : > { %12988 = vmatpush3.msk.msra.mxu0 %vm1194_vm0, %v10863_v13  ;;  %12942 = vmatprep.mubr.msk.f32.mxu0 %vm380_vm1, %v19522_v23  ;;  %v19554_v13 = vld [vmem:[#allocation22_spill] sm:$0xff]  ;;  %v19609_v23 = vld [vmem:[#allocation79_spill] sm:$0xff] }
 0x221   : > { %13037 = vmatprep.subr.msk.mxu0 %vm1194_vm0, %v16674_v54  ;;  %12452 = vmatmul.mubr.msk.f32.gmra.mrb[8].mxu1 %vm380_vm1, %v19533_v19 }
 0x222   : > { %12454 = vmatprep.mubr.msk.f32.mxu1 %vm380_vm1, %v19535_v30 }
 0x223   : > { %12943 = vmatmul.mubr.msk.f32.gmra.mrb[2].mxu0 %vm380_vm1, %v19523_v44  ;;  %v19607_v44 = vld [vmem:[#allocation78_spill] sm:$0xff] }
 0x224   : > { %12945 = vmatprep.mubr.msk.f32.mxu0 %vm380_vm1, %v19524_v39  ;;  %v19605_v39 = vld [vmem:[#allocation77_spill] sm:$0xff] }
 0x225   : > { %12455 = vmatmul.mubr.msk.f32.gmra.mrb[10].mxu1 %vm380_vm1, %v19537_v25 }
 0x226   : > { %12457 = vmatprep.mubr.msk.f32.mxu1 %vm380_vm1, %v19539_v62 }
 0x227   : > { %12946 = vmatmul.mubr.msk.f32.gmra.mrb[4].mxu0 %vm380_vm1, %v19526_v40  ;;  %v19603_v40 = vld [vmem:[#allocation76_spill] sm:$0xff] }
 0x228   : > { %12948 = vmatprep.mubr.msk.f32.mxu0 %vm380_vm1, %v19528_v10  ;;  %v19601_v10 = vld [vmem:[#allocation75_spill] sm:$0xff] }
 0x229   : > { %12458 = vmatmul.mubr.msk.f32.gmra.mrb[12].mxu1 %vm380_vm1, %v19541_v49 }
 0x22a   : > { %12460 = vmatprep.mubr.msk.f32.mxu1 %vm380_vm1, %v19543_v0 }
 0x22b   : > { %12949 = vmatmul.mubr.msk.f32.gmra.mrb[6].mxu0 %vm380_vm1, %v19530_v32  ;;  %v19599_v32 = vld [vmem:[#allocation74_spill] sm:$0xff] }
 0x22c   : > { %12951 = vmatprep.mubr.msk.f32.mxu0 %vm380_vm1, %v19532_v24  ;;  %v19597_v24 = vld [vmem:[#allocation73_spill] sm:$0xff] }
 0x22d   : > { %12461 = vmatmul.mubr.msk.f32.gmra.mrb[14].mxu1 %vm380_vm1, %v19545_v14 }
 0x22e   : > { %12463 = vmatprep.mubr.msk.f32.mxu1 %vm380_vm1, %v19547_v36 }
 0x22f   : > { %12952 = vmatmul.mubr.msk.f32.gmra.mrb[8].mxu0 %vm380_vm1, %v19534_v42  ;;  %v19595_v42 = vld [vmem:[#allocation72_spill] sm:$0xff] }
 0x230   : > { %12954 = vmatprep.mubr.msk.f32.mxu0 %vm380_vm1, %v19536_v59  ;;  %v19593_v59 = vld [vmem:[#allocation71_spill] sm:$0xff] }
 0x231   : > { %12464 = vmatmul.mubr.msk.f32.gmra.mrb[16].mxu1 %vm380_vm1, %v19549_v35 }
 0x232   : > { %12466 = vmatprep.mubr.msk.f32.mxu1 %vm380_vm1, %v19551_v33 }
 0x233   : > { %12955 = vmatmul.mubr.msk.f32.gmra.mrb[10].mxu0 %vm380_vm1, %v19538_v16  ;;  %v19591_v16 = vld [vmem:[#allocation70_spill] sm:$0xff] }
 0x234   : > { %12957 = vmatprep.mubr.msk.f32.mxu0 %vm380_vm1, %v19540_v31  ;;  %v1128_v31 = vld [vmem:[%s19059_s2] sm:$0xf] }
 0x235   : > { %12467 = vmatmul.mubr.msk.f32.gmra.mrb[18].mxu1 %vm380_vm1, %v19553_v43  ;;  %12487 = vmatprep.subr.msk.mxu1 %vm1194_vm0, %v1128_v31 }
 0x236   : > { %12469 = vmatprep.mubr.msk.f32.mxu1 %vm380_vm1, %v19555_v60  ;;  %12488 = vmatpush3.msk.msra.mxu1 %vm1194_vm0, %v1128_v31  ;;  %v19579_v31 = vld [vmem:[#allocation64_spill] sm:$0xff] }
 0x237   : > { %12958 = vmatmul.mubr.msk.f32.gmra.mrb[12].mxu0 %vm380_vm1, %v19542_v29  ;;  %v16811_v29 = vld [vmem:[#allocation2 + $0x8] sm:$0xff] }
 0x238   : > { %12960 = vmatprep.mubr.msk.f32.mxu0 %vm380_vm1, %v19544_v53 }
 0x239   : > { %12470 = vmatmul.mubr.msk.f32.gmra.mrb[20].mxu1 %vm380_vm1, %v19557_v38 }
 0x23a   : > { %12472 = vmatprep.mubr.msk.f32.mxu1 %vm380_vm1, %v19559_v52  ;;  %v19633_v52 = vld [vmem:[#allocation91_spill] sm:$0xff] }
 0x23b   : > { %12961 = vmatmul.mubr.msk.f32.gmra.mrb[14].mxu0 %vm380_vm1, %v19546_v27  ;;  %v19570_v27 = vld [vmem:[#allocation122_spill] sm:$0xff] }
 0x23c   : > { %12963 = vmatprep.mubr.msk.f32.mxu0 %vm380_vm1, %v19548_v5  ;;  %v794_v5 = vld [vmem:[#allocation2 + $0x218] sm:$0xff] }
 0x23d   : > { %12473 = vmatmul.mubr.msk.f32.gmra.mrb[22].mxu1 %vm380_vm1, %v19561_v3  ;;  %v4296_v53 = vrot.slane %v794_v5, 1 }
 0x23e   : > { %12475 = vmatprep.mubr.msk.f32.mxu1 %vm380_vm1, %v19563_v46  ;;  %v19629_v46 = vld [vmem:[#allocation89_spill] sm:$0xff] }
 0x23f   : > { %12964 = vmatmul.mubr.msk.f32.gmra.mrb[16].mxu0 %vm380_vm1, %v19550_v48  ;;  %v4294_v48 = vrot.slane %v16231_v26, 1  ;;  %v19573_v26 = vld [vmem:[#allocation32_spill] sm:$0xff] }
 0x240   : > { %12966 = vmatprep.mubr.msk.f32.mxu0 %vm380_vm1, %v19552_v21  ;;  %v19567_v21 = vld [vmem:[#allocation120_spill] sm:$0xff] }
 0x241   : > { %v16807_v5 = vsel %vm2383_vm2, %v4294_v48, %v4296_v53 }
 0x242   : > { %19574 = vst [vmem:[#allocation96_spill] sm:$0xff] %v16807_v5 }
 0x243   : > { %12967 = vmatmul.mubr.msk.f32.gmra.mrb[18].mxu0 %vm380_vm1, %v19554_v13  ;;  %v19565_v13 = vld [vmem:[#allocation119_spill] sm:$0xff] }
 0x244   : > { %12969 = vmatprep.mubr.msk.f32.mxu0 %vm380_vm1, %v19556_v12  ;;  %v19564_v12 = vld [vmem:[#allocation27_spill] sm:$0xff]  ;;  %12476 = vmatmul.mubr.msk.f32.gmra.mrb[24].mxu1 %vm380_vm1, %v19565_v13  ;;  %v19627_v13 = vld [vmem:[#allocation88_spill] sm:$0xff] }
 0x245   : > { %12478 = vmatprep.mubr.msk.f32.mxu1 %vm380_vm1, %v19567_v21  ;;  %v866_v21 = vld [vmem:[#allocation3 + $0x218] sm:$0xff] }
 0x246   : > { %v4302_v3 = vrot.slane %v866_v21, 1  ;;  %v10557_v21 = vld [vmem:[%s19059_s2 + $0x4] sm:$0xf] }
 0x247   : > { %12970 = vmatmul.mubr.msk.f32.gmra.mrb[20].mxu0 %vm380_vm1, %v19558_v41  ;;  %v19566_v41 = vld [vmem:[#allocation28_spill] sm:$0xff]  ;;  %12537 = vmatprep.subr.msk.mxu1 %vm1194_vm0, %v10557_v21 }
 0x248   : > { %12972 = vmatprep.mubr.msk.f32.mxu0 %vm380_vm1, %v19560_v56  ;;  %v19568_v56 = vld [vmem:[#allocation29_spill] sm:$0xff]  ;;  %12479 = vmatmul.mubr.msk.f32.gmra.mrb[26].mxu1 %vm380_vm1, %v16443_v50  ;;  %v4300_v50 = vrot.slane %v16464_v1, 1  ;;  %v19632_v1 = vld [vmem:[#allocation62_spill] sm:$0xff] }
 0x249   : > { %12481 = vmatprep.mubr.msk.f32.mxu1 %vm380_vm1, %v19570_v27  ;;  %v19625_v27 = vld [vmem:[#allocation87_spill] sm:$0xff] }
 0x24b   : > { %12973 = vmatmul.mubr.msk.f32.gmra.mrb[22].mxu0 %vm380_vm1, %v19562_v8  ;;  %v4293_v8 = vrot.slane %v16217_v9, 1  ;;  %v16801_v9 = vld [vmem:[#allocation2 + $0x10] sm:$0xff] }
 0x24c   : > { %12975 = vmatprep.mubr.msk.f32.mxu0 %vm380_vm1, %v19564_v12  ;;  %v19569_v12 = vld [vmem:[#allocation30_spill] sm:$0xff]  ;;  %12482 = vmatmul.mubr.msk.f32.gmra.mrb[28].mxu1 %vm380_vm1, %v16457_v18 }
 0x24d   : > { %12484 = vmatprep.mubr.msk.f32.mxu1 %vm380_vm1, %v16461_v17  ;;  %v19621_v17 = vld [vmem:[#allocation85_spill] sm:$0xff]  ;;  %v19623_v18 = vld [vmem:[#allocation86_spill] sm:$0xff] }
 0x24f   : > { %12976 = vmatmul.mubr.msk.f32.gmra.mrb[24].mxu0 %vm380_vm1, %v19566_v41  ;;  %v19571_v41 = vld [vmem:[#allocation31_spill] sm:$0xff] }
 0x250   : > { %12978 = vmatprep.mubr.msk.f32.mxu0 %vm380_vm1, %v19568_v56  ;;  %v16793_v56 = vsel %vm2383_vm2, %v4293_v8, %v4294_v48  ;;  %v727_v8 = vld [vmem:[#allocation2] sm:$0xff]  ;;  %12485 = vmatmul.mubr.msk.f32.gmra.mrb[30].mxu1 %vm380_vm1, %v16471_v58  ;;  %v19619_v58 = vld [vmem:[#allocation84_spill] sm:$0xff] }
 0x251   : > { %19572 = vst [vmem:[#allocation95_spill] sm:$0xff] %v16793_v56 }
 0x253   : > { %12979 = vmatmul.mubr.msk.f32.gmra.mrb[26].mxu0 %vm380_vm1, %v19569_v12  ;;  %v923_v12 = vrot.slane %v16801_v9, 7 }
 0x254   : > { %12981 = vmatprep.mubr.msk.f32.mxu0 %vm380_vm1, %v19571_v41  ;;  %v920_v41 = vrot.slane %v727_v8, 7  ;;  %v16829_v8 = vld [vmem:[%s19060_s3 + $0x18] sm:$0xf] }
 0x257   : > { %12982 = vmatmul.mubr.msk.f32.gmra.mrb[28].mxu0 %vm380_vm1, %v19573_v26  ;;  %v921_v26 = vrot.slane %v16811_v29, 7 }
 0x258   : > { %12984 = vmatprep.mubr.msk.f32.mxu0 %vm380_vm1, %v16793_v56  ;;  %v19575_v56 = vld [vmem:[#allocation33_spill] sm:$0xff] }
 0x259   : > { %v922_v53 = vsel %vm919_vm3, %v920_v41, %v921_v26  ;;  %v924_v48 = vsel %vm919_vm3, %v921_v26, %v923_v12  ;;  %v19578_v12 = vld [vmem:[#allocation35_spill] sm:$0xff]  ;;  %v19580_v41 = vld [vmem:[#allocation36_spill] sm:$0xff]  ;;  %v19581_v26 = vld [vmem:[#allocation65_spill] sm:$0xff] }
 0x25a   : > { %12489 = vmatprep.mubr.msk.f32.mxu1 %vm380_vm1, %v922_v53  ;;  %v19583_v53 = vld [vmem:[#allocation66_spill] sm:$0xff] }
 0x25b   : > { %12985 = vmatmul.mubr.msk.f32.gmra.mrb[30].mxu0 %vm380_vm1, %v16807_v5  ;;  %12490 = vmatmul.mubr.msk.f32.vlgmr.msra.gmra.mrb[0].mxu1 %vm380_vm1, %v924_v48  ;;  %v19576_v5 = vld [vmem:[#allocation34_spill] sm:$0xff]  ;;  %v19585_v48 = vld [vmem:[#allocation67_spill] sm:$0xff] }
 0x25c   : > { %12989 = vmatprep.mubr.msk.f32.mxu0 %vm380_vm1, %v19575_v56  ;;  %v19577_v56 = vld [vmem:[#allocation63_spill] sm:$0xff]  ;;  %12538 = vmatpush3.msk.msra.mxu1 %vm1194_vm0, %v10557_v21 }
 0x25d   : > { %12492 = vmatprep.mubr.msk.f32.mxu1 %vm380_vm1, %v19577_v56  ;;  %v19586_v56 = vld [vmem:[#allocation39_spill] sm:$0xff] }
 0x25e   : > { %v17154_v21 = vld [vmem:[#allocation3 + $0x110] sm:$0xff] }
 0x25f   : > { %12990 = vmatmul.mubr.msk.f32.vlgmr.msra.gmra.mrb[0].mxu0 %vm380_vm1, %v19576_v5  ;;  %12493 = vmatmul.mubr.msk.f32.gmra.mrb[2].mxu1 %vm380_vm1, %v19579_v31  ;;  %v19582_v5 = vld [vmem:[#allocation37_spill] sm:$0xff]  ;;  %v19587_v31 = vld [vmem:[#allocation68_spill] sm:$0xff] }
 0x260   : > { %13038 = vmatpush3.msk.msra.mxu0 %vm1194_vm0, %v16674_v54  ;;  %12992 = vmatprep.mubr.msk.f32.mxu0 %vm380_vm1, %v19578_v12  ;;  %v19584_v54 = vld [vmem:[#allocation38_spill] sm:$0xff]  ;;  %v19589_v12 = vld [vmem:[#allocation69_spill] sm:$0xff] }
 0x261   : > { %13087 = vmatprep.subr.msk.mxu0 %vm1194_vm0, %v16829_v8  ;;  %12495 = vmatprep.mubr.msk.f32.mxu1 %vm380_vm1, %v19581_v26 }
 0x263   : > { %12993 = vmatmul.mubr.msk.f32.gmra.mrb[2].mxu0 %vm380_vm1, %v19580_v41  ;;  %12496 = vmatmul.mubr.msk.f32.gmra.mrb[4].mxu1 %vm380_vm1, %v19583_v53  ;;  %v19588_v41 = vld [vmem:[#allocation40_spill] sm:$0xff] }
 0x264   : > { %12995 = vmatprep.mubr.msk.f32.mxu0 %vm380_vm1, %v19582_v5  ;;  %12498 = vmatprep.mubr.msk.f32.mxu1 %vm380_vm1, %v19585_v48  ;;  %v19590_v5 = vld [vmem:[#allocation41_spill] sm:$0xff] }
 0x267   : > { %12996 = vmatmul.mubr.msk.f32.gmra.mrb[4].mxu0 %vm380_vm1, %v19584_v54  ;;  %12499 = vmatmul.mubr.msk.f32.gmra.mrb[6].mxu1 %vm380_vm1, %v19587_v31  ;;  %v19592_v54 = vld [vmem:[#allocation42_spill] sm:$0xff] }
 0x268   : > { %12998 = vmatprep.mubr.msk.f32.mxu0 %vm380_vm1, %v19586_v56  ;;  %12501 = vmatprep.mubr.msk.f32.mxu1 %vm380_vm1, %v19589_v12  ;;  %v19594_v56 = vld [vmem:[#allocation43_spill] sm:$0xff] }
 0x26b   : > { %12999 = vmatmul.mubr.msk.f32.gmra.mrb[6].mxu0 %vm380_vm1, %v19588_v41  ;;  %12502 = vmatmul.mubr.msk.f32.gmra.mrb[8].mxu1 %vm380_vm1, %v19591_v16  ;;  %v19596_v41 = vld [vmem:[#allocation44_spill] sm:$0xff] }
 0x26c   : > { %13001 = vmatprep.mubr.msk.f32.mxu0 %vm380_vm1, %v19590_v5  ;;  %12504 = vmatprep.mubr.msk.f32.mxu1 %vm380_vm1, %v19593_v59  ;;  %v19598_v5 = vld [vmem:[#allocation45_spill] sm:$0xff] }
 0x26f   : > { %13002 = vmatmul.mubr.msk.f32.gmra.mrb[8].mxu0 %vm380_vm1, %v19592_v54  ;;  %12505 = vmatmul.mubr.msk.f32.gmra.mrb[10].mxu1 %vm380_vm1, %v19595_v42  ;;  %v19600_v54 = vld [vmem:[#allocation46_spill] sm:$0xff] }
 0x270   : > { %13004 = vmatprep.mubr.msk.f32.mxu0 %vm380_vm1, %v19594_v56  ;;  %12507 = vmatprep.mubr.msk.f32.mxu1 %vm380_vm1, %v19597_v24  ;;  %v19602_v56 = vld [vmem:[#allocation47_spill] sm:$0xff] }
 0x273   : > { %13005 = vmatmul.mubr.msk.f32.gmra.mrb[10].mxu0 %vm380_vm1, %v19596_v41  ;;  %12508 = vmatmul.mubr.msk.f32.gmra.mrb[12].mxu1 %vm380_vm1, %v19599_v32  ;;  %v19604_v41 = vld [vmem:[#allocation48_spill] sm:$0xff] }
 0x274   : > { %13007 = vmatprep.mubr.msk.f32.mxu0 %vm380_vm1, %v19598_v5  ;;  %12510 = vmatprep.mubr.msk.f32.mxu1 %vm380_vm1, %v19601_v10  ;;  %v19606_v5 = vld [vmem:[#allocation49_spill] sm:$0xff] }
 0x277   : > { %13008 = vmatmul.mubr.msk.f32.gmra.mrb[12].mxu0 %vm380_vm1, %v19600_v54  ;;  %12511 = vmatmul.mubr.msk.f32.gmra.mrb[14].mxu1 %vm380_vm1, %v19603_v40  ;;  %v19608_v54 = vld [vmem:[#allocation50_spill] sm:$0xff] }
 0x278   : > { %13010 = vmatprep.mubr.msk.f32.mxu0 %vm380_vm1, %v19602_v56  ;;  %12513 = vmatprep.mubr.msk.f32.mxu1 %vm380_vm1, %v19605_v39  ;;  %v19610_v56 = vld [vmem:[#allocation51_spill] sm:$0xff] }
 0x27b   : > { %13011 = vmatmul.mubr.msk.f32.gmra.mrb[14].mxu0 %vm380_vm1, %v19604_v41  ;;  %12514 = vmatmul.mubr.msk.f32.gmra.mrb[16].mxu1 %vm380_vm1, %v19607_v44  ;;  %v19612_v41 = vld [vmem:[#allocation52_spill] sm:$0xff] }
 0x27c   : > { %13013 = vmatprep.mubr.msk.f32.mxu0 %vm380_vm1, %v19606_v5  ;;  %12516 = vmatprep.mubr.msk.f32.mxu1 %vm380_vm1, %v19609_v23  ;;  %v19614_v5 = vld [vmem:[#allocation53_spill] sm:$0xff] }
 0x27f   : > { %13014 = vmatmul.mubr.msk.f32.gmra.mrb[16].mxu0 %vm380_vm1, %v19608_v54  ;;  %12517 = vmatmul.mubr.msk.f32.gmra.mrb[18].mxu1 %vm380_vm1, %v19611_v37  ;;  %v19616_v54 = vld [vmem:[#allocation54_spill] sm:$0xff] }
 0x280   : > { %13016 = vmatprep.mubr.msk.f32.mxu0 %vm380_vm1, %v19610_v56  ;;  %12519 = vmatprep.mubr.msk.f32.mxu1 %vm380_vm1, %v19613_v34  ;;  %v19618_v56 = vld [vmem:[#allocation55_spill] sm:$0xff] }
 0x283   : > { %13017 = vmatmul.mubr.msk.f32.gmra.mrb[18].mxu0 %vm380_vm1, %v19612_v41  ;;  %12520 = vmatmul.mubr.msk.f32.gmra.mrb[20].mxu1 %vm380_vm1, %v19615_v47  ;;  %v19620_v41 = vld [vmem:[#allocation56_spill] sm:$0xff] }
 0x284   : > { %13019 = vmatprep.mubr.msk.f32.mxu0 %vm380_vm1, %v19614_v5  ;;  %12522 = vmatprep.mubr.msk.f32.mxu1 %vm380_vm1, %v19617_v22  ;;  %v19622_v5 = vld [vmem:[#allocation57_spill] sm:$0xff] }
 0x287   : > { %13020 = vmatmul.mubr.msk.f32.gmra.mrb[20].mxu0 %vm380_vm1, %v19616_v54  ;;  %12523 = vmatmul.mubr.msk.f32.gmra.mrb[22].mxu1 %vm380_vm1, %v19619_v58  ;;  %v19624_v54 = vld [vmem:[#allocation58_spill] sm:$0xff] }
 0x288   : > { %13022 = vmatprep.mubr.msk.f32.mxu0 %vm380_vm1, %v19618_v56  ;;  %12525 = vmatprep.mubr.msk.f32.mxu1 %vm380_vm1, %v19621_v17  ;;  %v19626_v56 = vld [vmem:[#allocation59_spill] sm:$0xff] }
 0x28b   : > { %13023 = vmatmul.mubr.msk.f32.gmra.mrb[22].mxu0 %vm380_vm1, %v19620_v41  ;;  %12526 = vmatmul.mubr.msk.f32.gmra.mrb[24].mxu1 %vm380_vm1, %v19623_v18  ;;  %v4299_v41 = vrot.slane %v16450_v63, 1  ;;  %v19631_v63 = vld [vmem:[#allocation90_spill] sm:$0xff] }
 0x28c   : > { %13025 = vmatprep.mubr.msk.f32.mxu0 %vm380_vm1, %v19622_v5  ;;  %12528 = vmatprep.mubr.msk.f32.mxu1 %vm380_vm1, %v19625_v27  ;;  %v19628_v5 = vld [vmem:[#allocation60_spill] sm:$0xff] }
 0x28f   : > { %13026 = vmatmul.mubr.msk.f32.gmra.mrb[24].mxu0 %vm380_vm1, %v19624_v54  ;;  %12529 = vmatmul.mubr.msk.f32.gmra.mrb[26].mxu1 %vm380_vm1, %v19627_v13  ;;  %v19630_v54 = vld [vmem:[#allocation61_spill] sm:$0xff] }
 0x290   : > { %13028 = vmatprep.mubr.msk.f32.mxu0 %vm380_vm1, %v19626_v56  ;;  %12531 = vmatprep.mubr.msk.f32.mxu1 %vm380_vm1, %v19629_v46  ;;  %v16949_v56 = vsel %vm2383_vm2, %v4299_v41, %v4300_v50  ;;  %v19646_v41 = vld [vmem:[#allocation94_spill] sm:$0xff] }
 0x293   : > { %13029 = vmatmul.mubr.msk.f32.gmra.mrb[26].mxu0 %vm380_vm1, %v19628_v5  ;;  %12532 = vmatmul.mubr.msk.f32.gmra.mrb[28].mxu1 %vm380_vm1, %v19631_v63  ;;  %v16960_v5 = vsel %vm2383_vm2, %v4300_v50, %v4302_v3  ;;  %v16978_v50 = vld [vmem:[%s19059_s2 + $0x1c] sm:$0xf]  ;;  %v14766_v3 = vld [vmem:[%s19060_s3 + $0x4] sm:$0xf] }
 0x294   : > { %13031 = vmatprep.mubr.msk.f32.mxu0 %vm380_vm1, %v19630_v54  ;;  %12534 = vmatprep.mubr.msk.f32.mxu1 %vm380_vm1, %v19633_v52  ;;  %v19634_v54 = vld [vmem:[#allocation92_spill] sm:$0xff] }
 0x295   : > { %13887 = vmatprep.subr.msk.mxu1 %vm1194_vm0, %v14766_v3 }
 0x297   : > { %13032 = vmatmul.mubr.msk.f32.gmra.mrb[28].mxu0 %vm380_vm1, %v19632_v1  ;;  %12535 = vmatmul.mubr.msk.f32.gmra.mrb[30].mxu1 %vm380_vm1, %v19634_v54 }
 0x298   : > { %13034 = vmatprep.mubr.msk.f32.mxu0 %vm380_vm1, %v16949_v56  ;;  %12539 = vmatprep.mubr.msk.f32.mxu1 %vm380_vm1, %v16811_v29  ;;  %v19636_v29 = vld [vmem:[#allocation131_spill] sm:$0xff] }
 0x29b   : > { %13035 = vmatmul.mubr.msk.f32.gmra.mrb[30].mxu0 %vm380_vm1, %v16960_v5  ;;  %12540 = vmatmul.mubr.msk.f32.vlgmr.msra.gmra.mrb[0].mxu1 %vm380_vm1, %v16801_v9  ;;  %v19638_v9 = vld [vmem:[#allocation133_spill] sm:$0xff] }
 0x29c   : > { %13039 = vmatprep.mubr.msk.f32.mxu0 %vm380_vm1, %v19581_v26  ;;  %12542 = vmatprep.mubr.msk.f32.mxu1 %vm380_vm1, %v16486_v45  ;;  %v19635_v45 = vld [vmem:[#allocation130_spill] sm:$0xff] }
 0x29d   : > { %13888 = vmatpush3.msk.msra.mxu1 %vm1194_vm0, %v14766_v3  ;;  %v17132_v26 = vld [vmem:[#allocation2 + $0x1e8] sm:$0xff] }
 0x29e   : > { %v17160_v3 = vld [vmem:[#allocation3 + $0x128] sm:$0xff] }
 0x29f   : > { %13040 = vmatmul.mubr.msk.f32.vlgmr.msra.gmra.mrb[0].mxu0 %vm380_vm1, %v19583_v53  ;;  %12543 = vmatmul.mubr.msk.f32.gmra.mrb[2].mxu1 %vm380_vm1, %v16493_v7  ;;  %v19637_v7 = vld [vmem:[#allocation132_spill] sm:$0xff] }
 0x2a0   : > { %13088 = vmatpush3.msk.msra.mxu0 %vm1194_vm0, %v16829_v8  ;;  %13042 = vmatprep.mubr.msk.f32.mxu0 %vm380_vm1, %v19585_v48  ;;  %v19639_v8 = vld [vmem:[#allocation134_spill] sm:$0xff] }
 0x2a1   : > { %13137 = vmatprep.subr.msk.mxu0 %vm1194_vm0, %v16978_v50  ;;  %12545 = vmatprep.mubr.msk.f32.mxu1 %vm380_vm1, %v16499_v20  ;;  %v17143_v48 = vld [vmem:[#allocation3 + $0x108] sm:$0xff] }
 0x2a3   : > { %13043 = vmatmul.mubr.msk.f32.gmra.mrb[2].mxu0 %vm380_vm1, %v19587_v31  ;;  %12546 = vmatmul.mubr.msk.f32.gmra.mrb[4].mxu1 %vm380_vm1, %v19635_v45  ;;  %v17152_v31 = vld [vmem:[%s19060_s3 + $0x1c] sm:$0xf] }
 0x2a4   : > { %13045 = vmatprep.mubr.msk.f32.mxu0 %vm380_vm1, %v19589_v12  ;;  %12548 = vmatprep.mubr.msk.f32.mxu1 %vm380_vm1, %v19636_v29  ;;  %v17126_v12 = vld [vmem:[#allocation2 + $0x1d0] sm:$0xff] }
 0x2a7   : > { %13046 = vmatmul.mubr.msk.f32.gmra.mrb[4].mxu0 %vm380_vm1, %v19591_v16  ;;  %12549 = vmatmul.mubr.msk.f32.gmra.mrb[6].mxu1 %vm380_vm1, %v19637_v7  ;;  %v19640_v16 = vld [vmem:[#allocation135_spill] sm:$0xff] }
 0x2a8   : > { %13048 = vmatprep.mubr.msk.f32.mxu0 %vm380_vm1, %v19593_v59  ;;  %12551 = vmatprep.mubr.msk.f32.mxu1 %vm380_vm1, %v19638_v9  ;;  %v19641_v59 = vld [vmem:[#allocation136_spill] sm:$0xff] }
 0x2ab   : > { %13049 = vmatmul.mubr.msk.f32.gmra.mrb[6].mxu0 %vm380_vm1, %v19595_v42  ;;  %12552 = vmatmul.mubr.msk.f32.gmra.mrb[8].mxu1 %vm380_vm1, %v19639_v8  ;;  %v19642_v42 = vld [vmem:[#allocation137_spill] sm:$0xff] }
 0x2ac   : > { %13051 = vmatprep.mubr.msk.f32.mxu0 %vm380_vm1, %v19597_v24  ;;  %12554 = vmatprep.mubr.msk.f32.mxu1 %vm380_vm1, %v19640_v16  ;;  %v19643_v24 = vld [vmem:[#allocation138_spill] sm:$0xff] }
 0x2af   : > { %13052 = vmatmul.mubr.msk.f32.gmra.mrb[8].mxu0 %vm380_vm1, %v19599_v32  ;;  %12555 = vmatmul.mubr.msk.f32.gmra.mrb[10].mxu1 %vm380_vm1, %v19641_v59  ;;  %v19644_v32 = vld [vmem:[#allocation139_spill] sm:$0xff] }
 0x2b0   : > { %13054 = vmatprep.mubr.msk.f32.mxu0 %vm380_vm1, %v19601_v10  ;;  %12557 = vmatprep.mubr.msk.f32.mxu1 %vm380_vm1, %v19642_v42  ;;  %v17110_v10 = vld [vmem:[#allocation2 + $0x230] sm:$0xff] }
 0x2b3   : > { %13055 = vmatmul.mubr.msk.f32.gmra.mrb[10].mxu0 %vm380_vm1, %v19603_v40  ;;  %12558 = vmatmul.mubr.msk.f32.gmra.mrb[12].mxu1 %vm380_vm1, %v19643_v24 }
 0x2b4   : > { %13057 = vmatprep.mubr.msk.f32.mxu0 %vm380_vm1, %v19605_v39  ;;  %12560 = vmatprep.mubr.msk.f32.mxu1 %vm380_vm1, %v19644_v32 }
 0x2b7   : > { %13058 = vmatmul.mubr.msk.f32.gmra.mrb[12].mxu0 %vm380_vm1, %v19607_v44  ;;  %12561 = vmatmul.mubr.msk.f32.gmra.mrb[14].mxu1 %vm380_vm1, %v16544_v57  ;;  %v17103_v44 = vld [vmem:[#allocation2 + $0x1a8] sm:$0xff] }
 0x2b8   : > { %13060 = vmatprep.mubr.msk.f32.mxu0 %vm380_vm1, %v19609_v23  ;;  %12563 = vmatprep.mubr.msk.f32.mxu1 %vm380_vm1, %v16548_v2  ;;  %v17097_v23 = vld [vmem:[#allocation2 + $0x190] sm:$0xff] }
 0x2bb   : > { %13061 = vmatmul.mubr.msk.f32.gmra.mrb[14].mxu0 %vm380_vm1, %v19611_v37  ;;  %12564 = vmatmul.mubr.msk.f32.gmra.mrb[16].mxu1 %vm380_vm1, %v16552_v6  ;;  %v17065_v37 = vld [vmem:[#allocation2 + $0x148] sm:$0xff] }
 0x2bc   : > { %13063 = vmatprep.mubr.msk.f32.mxu0 %vm380_vm1, %v19613_v34  ;;  %12566 = vmatprep.mubr.msk.f32.mxu1 %vm380_vm1, %v16556_v51  ;;  %v17071_v34 = vld [vmem:[#allocation2 + $0x150] sm:$0xff] }
 0x2bf   : > { %13064 = vmatmul.mubr.msk.f32.gmra.mrb[16].mxu0 %vm380_vm1, %v19615_v47  ;;  %12567 = vmatmul.mubr.msk.f32.gmra.mrb[18].mxu1 %vm380_vm1, %v16560_v61  ;;  %v17083_v47 = vld [vmem:[#allocation2 + $0x170] sm:$0xff] }
 0x2c0   : > { %13066 = vmatprep.mubr.msk.f32.mxu0 %vm380_vm1, %v19617_v22  ;;  %12569 = vmatprep.mubr.msk.f32.mxu1 %vm380_vm1, %v17065_v37  ;;  %v17077_v22 = vld [vmem:[#allocation2 + $0x168] sm:$0xff] }
 0x2c3   : > { %13067 = vmatmul.mubr.msk.f32.gmra.mrb[18].mxu0 %vm380_vm1, %v19619_v58  ;;  %12570 = vmatmul.mubr.msk.f32.gmra.mrb[20].mxu1 %vm380_vm1, %v17071_v34  ;;  %v17089_v58 = vld [vmem:[#allocation2 + $0x188] sm:$0xff] }
 0x2c4   : > { %13069 = vmatprep.mubr.msk.f32.mxu0 %vm380_vm1, %v19621_v17  ;;  %12572 = vmatprep.mubr.msk.f32.mxu1 %vm380_vm1, %v17077_v22  ;;  %v17095_v17 = vld [vmem:[#allocation2 + $0x228] sm:$0xff] }
 0x2c5   : > { %v4840_v40 = vrot.slane %v17095_v17, 7 }
 0x2c7   : > { %13070 = vmatmul.mubr.msk.f32.gmra.mrb[20].mxu0 %vm380_vm1, %v19623_v18  ;;  %12573 = vmatmul.mubr.msk.f32.gmra.mrb[22].mxu1 %vm380_vm1, %v17083_v47  ;;  %v795_v18 = vld [vmem:[#allocation2 + $0x220] sm:$0xff] }
 0x2c8   : > { %13072 = vmatprep.mubr.msk.f32.mxu0 %vm380_vm1, %v19625_v27  ;;  %12575 = vmatprep.mubr.msk.f32.mxu1 %vm380_vm1, %v17089_v58  ;;  %v4839_v39 = vrot.slane %v795_v18, 7  ;;  %v17112_v27 = vld [vmem:[#allocation2 + $0x1b0] sm:$0xff] }
 0x2c9   : > { %v19650_v18 = vld [vmem:[#allocation119_spill] sm:$0xff] }
 0x2cb   : > { %13073 = vmatmul.mubr.msk.f32.gmra.mrb[22].mxu0 %vm380_vm1, %v19627_v13  ;;  %12576 = vmatmul.mubr.msk.f32.gmra.mrb[24].mxu1 %vm380_vm1, %v17097_v23  ;;  %v19645_v13 = vld [vmem:[#allocation93_spill] sm:$0xff] }
 0x2cc   : > { %13075 = vmatprep.mubr.msk.f32.mxu0 %vm380_vm1, %v19629_v46  ;;  %12578 = vmatprep.mubr.msk.f32.mxu1 %vm380_vm1, %v17103_v44  ;;  %v4841_v46 = vsel %vm919_vm3, %v4839_v39, %v4840_v40  ;;  %v19651_v39 = vld [vmem:[#allocation120_spill] sm:$0xff] }
 0x2cf   : > { %13076 = vmatmul.mubr.msk.f32.gmra.mrb[24].mxu0 %vm380_vm1, %v19631_v63  ;;  %12579 = vmatmul.mubr.msk.f32.gmra.mrb[26].mxu1 %vm380_vm1, %v17112_v27  ;;  %v17118_v63 = vld [vmem:[#allocation2 + $0x1c8] sm:$0xff] }
 0x2d0   : > { %13078 = vmatprep.mubr.msk.f32.mxu0 %vm380_vm1, %v19633_v52  ;;  %12581 = vmatprep.mubr.msk.f32.mxu1 %vm380_vm1, %v17118_v63  ;;  %v4842_v52 = vrot.slane %v17110_v10, 7 }
 0x2d2   : > { %v4843_v53 = vsel %vm919_vm3, %v4840_v40, %v4842_v52  ;;  %v17266_v40 = vld [vmem:[#allocation3 + $0x228] sm:$0xff]  ;;  %v19655_v52 = vld [vmem:[#allocation125_spill] sm:$0xff] }
 0x2d3   : > { %13079 = vmatmul.mubr.msk.f32.gmra.mrb[26].mxu0 %vm380_vm1, %v19634_v54  ;;  %12582 = vmatmul.mubr.msk.f32.gmra.mrb[28].mxu1 %vm380_vm1, %v17126_v12  ;;  %v17138_v54 = vld [vmem:[#allocation2 + $0x1f0] sm:$0xff] }
 0x2d4   : > { %13081 = vmatprep.mubr.msk.f32.mxu0 %vm380_vm1, %v19645_v13  ;;  %12584 = vmatprep.mubr.msk.f32.mxu1 %vm380_vm1, %v17132_v26  ;;  %v19654_v13 = vld [vmem:[#allocation124_spill] sm:$0xff] }
 0x2d7   : > { %13082 = vmatmul.mubr.msk.f32.gmra.mrb[28].mxu0 %vm380_vm1, %v19646_v41  ;;  %12585 = vmatmul.mubr.msk.f32.gmra.mrb[30].mxu1 %vm380_vm1, %v17138_v54  ;;  %v4848_v41 = vrot.slane %v17266_v40, 7 }
 0x2d8   : > { %13084 = vmatprep.mubr.msk.f32.mxu0 %vm380_vm1, %v4841_v46  ;;  %12613 = vmatprep.mubr.msk.f32.mxu1 %vm380_vm1, %v17143_v48 }
 0x2db   : > { %13085 = vmatmul.mubr.msk.f32.gmra.mrb[30].mxu0 %vm380_vm1, %v4843_v53  ;;  %12614 = vmatmul.mubr.msk.f32.vlgmr.msra.gmra.mrb[16].mxu1 %vm380_vm1, %v17154_v21  ;;  %v17273_v53 = vld [vmem:[#allocation3 + $0x230] sm:$0xff] }
 0x2dc   : > { %13089 = vmatprep.mubr.msk.f32.mxu0 %vm380_vm1, %v16274_v15  ;;  %12616 = vmatprep.mubr.msk.f32.mxu1 %vm380_vm1, %v17160_v3  ;;  %v17170_v15 = vld [vmem:[#allocation3 + $0x130] sm:$0xff] }
 0x2df   : > { %13090 = vmatmul.mubr.msk.f32.vlgmr.msra.gmra.mrb[0].mxu0 %vm380_vm1, %v19525_v11  ;;  %12617 = vmatmul.mubr.msk.f32.gmra.mrb[18].mxu1 %vm380_vm1, %v17170_v15  ;;  %v17176_v11 = vld [vmem:[#allocation3 + $0x148] sm:$0xff] }
 0x2e0   : > { %13138 = vmatpush3.msk.msra.mxu0 %vm1194_vm0, %v16978_v50  ;;  %13092 = vmatprep.mubr.msk.f32.mxu0 %vm380_vm1, %v19527_v55  ;;  %v17182_v55 = vld [vmem:[#allocation3 + $0x150] sm:$0xff]  ;;  %v17188_v50 = vld [vmem:[#allocation3 + $0x168] sm:$0xff] }
 0x2e1   : > { %13187 = vmatprep.subr.msk.mxu0 %vm1194_vm0, %v17152_v31  ;;  %12619 = vmatprep.mubr.msk.f32.mxu1 %vm380_vm1, %v17176_v11 }
 0x2e3   : > { %13093 = vmatmul.mubr.msk.f32.gmra.mrb[2].mxu0 %vm380_vm1, %v19529_v28  ;;  %12620 = vmatmul.mubr.msk.f32.gmra.mrb[20].mxu1 %vm380_vm1, %v17182_v55  ;;  %v17194_v28 = vld [vmem:[#allocation3 + $0x170] sm:$0xff] }
 0x2e4   : > { %13095 = vmatprep.mubr.msk.f32.mxu0 %vm380_vm1, %v19531_v4  ;;  %12622 = vmatprep.mubr.msk.f32.mxu1 %vm380_vm1, %v17188_v50  ;;  %v17200_v4 = vld [vmem:[#allocation3 + $0x188] sm:$0xff] }
 0x2e7   : > { %13096 = vmatmul.mubr.msk.f32.gmra.mrb[4].mxu0 %vm380_vm1, %v19533_v19  ;;  %12623 = vmatmul.mubr.msk.f32.gmra.mrb[22].mxu1 %vm380_vm1, %v17194_v28  ;;  %v17206_v19 = vld [vmem:[#allocation3 + $0x190] sm:$0xff] }
 0x2e8   : > { %13098 = vmatprep.mubr.msk.f32.mxu0 %vm380_vm1, %v19535_v30  ;;  %12625 = vmatprep.mubr.msk.f32.mxu1 %vm380_vm1, %v17200_v4  ;;  %v17212_v30 = vld [vmem:[#allocation3 + $0x1a8] sm:$0xff] }
 0x2eb   : > { %13099 = vmatmul.mubr.msk.f32.gmra.mrb[6].mxu0 %vm380_vm1, %v19537_v25  ;;  %12626 = vmatmul.mubr.msk.f32.gmra.mrb[24].mxu1 %vm380_vm1, %v17206_v19  ;;  %v17218_v25 = vld [vmem:[#allocation3 + $0x1b0] sm:$0xff] }
 0x2ec   : > { %13101 = vmatprep.mubr.msk.f32.mxu0 %vm380_vm1, %v19539_v62  ;;  %12628 = vmatprep.mubr.msk.f32.mxu1 %vm380_vm1, %v17212_v30  ;;  %v17224_v62 = vld [vmem:[#allocation3 + $0x1c8] sm:$0xff] }
 0x2ef   : > { %13102 = vmatmul.mubr.msk.f32.gmra.mrb[8].mxu0 %vm380_vm1, %v19541_v49  ;;  %12629 = vmatmul.mubr.msk.f32.gmra.mrb[26].mxu1 %vm380_vm1, %v17218_v25  ;;  %v17230_v49 = vld [vmem:[#allocation3 + $0x1d0] sm:$0xff] }
 0x2f0   : > { %13104 = vmatprep.mubr.msk.f32.mxu0 %vm380_vm1, %v19543_v0  ;;  %12631 = vmatprep.mubr.msk.f32.mxu1 %vm380_vm1, %v17224_v62  ;;  %v17236_v0 = vld [vmem:[#allocation3 + $0x1e8] sm:$0xff] }
 0x2f3   : > { %13105 = vmatmul.mubr.msk.f32.gmra.mrb[10].mxu0 %vm380_vm1, %v19545_v14  ;;  %12632 = vmatmul.mubr.msk.f32.gmra.mrb[28].mxu1 %vm380_vm1, %v17230_v49  ;;  %v17242_v14 = vld [vmem:[#allocation3 + $0x1f0] sm:$0xff] }
 0x2f4   : > { %13107 = vmatprep.mubr.msk.f32.mxu0 %vm380_vm1, %v19547_v36  ;;  %12634 = vmatprep.mubr.msk.f32.mxu1 %vm380_vm1, %v17236_v0  ;;  %v19647_v36 = vld [vmem:[#allocation116_spill] sm:$0xff] }
 0x2f7   : > { %13108 = vmatmul.mubr.msk.f32.gmra.mrb[12].mxu0 %vm380_vm1, %v19549_v35  ;;  %12635 = vmatmul.mubr.msk.f32.gmra.mrb[30].mxu1 %vm380_vm1, %v17242_v14  ;;  %v19648_v35 = vld [vmem:[#allocation117_spill] sm:$0xff] }
 0x2f8   : > { %13110 = vmatprep.mubr.msk.f32.mxu0 %vm380_vm1, %v19551_v33  ;;  %v19649_v33 = vld [vmem:[#allocation118_spill] sm:$0xff] }
 0x2fb   : > { %13111 = vmatmul.mubr.msk.f32.gmra.mrb[14].mxu0 %vm380_vm1, %v19553_v43  ;;  %v19652_v43 = vld [vmem:[#allocation121_spill] sm:$0xff] }
 0x2fc   : > { %13113 = vmatprep.mubr.msk.f32.mxu0 %vm380_vm1, %v19555_v60  ;;  %v19653_v60 = vld [vmem:[#allocation122_spill] sm:$0xff] }
 0x2ff   : > { %13114 = vmatmul.mubr.msk.f32.gmra.mrb[16].mxu0 %vm380_vm1, %v19557_v38  ;;  %v867_v38 = vld [vmem:[#allocation3 + $0x220] sm:$0xff] }
 0x300   : > { %13116 = vmatprep.mubr.msk.f32.mxu0 %vm380_vm1, %v19647_v36  ;;  %v4847_v46 = vrot.slane %v867_v38, 7  ;;  %v19656_v36 = vld [vmem:[#allocation127_spill] sm:$0xff] }
 0x303   : > { %13117 = vmatmul.mubr.msk.f32.gmra.mrb[18].mxu0 %vm380_vm1, %v19648_v35  ;;  %v19657_v35 = vld [vmem:[#allocation128_spill] sm:$0xff] }
 0x304   : > { %13119 = vmatprep.mubr.msk.f32.mxu0 %vm380_vm1, %v19649_v33  ;;  %v4850_v33 = vrot.slane %v17273_v53, 7 }
 0x307   : > { %13120 = vmatmul.mubr.msk.f32.gmra.mrb[20].mxu0 %vm380_vm1, %v19650_v18  ;;  %v4849_v18 = vsel %vm919_vm3, %v4847_v46, %v4848_v41  ;;  %v19666_v46 = vld [vmem:[#allocation6_spill] sm:$0xff] }
 0x308   : > { %13122 = vmatprep.mubr.msk.f32.mxu0 %vm380_vm1, %v19651_v39  ;;  %v19658_v39 = vld [vmem:[#allocation129_spill] sm:$0xff] }
 0x30b   : > { %13123 = vmatmul.mubr.msk.f32.gmra.mrb[22].mxu0 %vm380_vm1, %v19652_v43  ;;  %v4851_v43 = vsel %vm919_vm3, %v4848_v41, %v4850_v33 }
 0x30c   : > { %13125 = vmatprep.mubr.msk.f32.mxu0 %vm380_vm1, %v19653_v60  ;;  %v11033_v60 = vld [vmem:[%s19059_s2 + $0x20] sm:$0xf] }
 0x30f   : > { %13126 = vmatmul.mubr.msk.f32.gmra.mrb[24].mxu0 %vm380_vm1, %v19654_v13 }
 0x310   : > { %13128 = vmatprep.mubr.msk.f32.mxu0 %vm380_vm1, %v19655_v52  ;;  %v6679_v52 = vld [vmem:[%s15357_s23 + $0x90] sm:$0xff] }
 0x313   : > { %13129 = vmatmul.mubr.msk.f32.gmra.mrb[26].mxu0 %vm380_vm1, %v19656_v36  ;;  %v19667_v36 = vld [vmem:[#allocation7_spill] sm:$0xff] }
 0x314   : > { %13131 = vmatprep.mubr.msk.f32.mxu0 %vm380_vm1, %v19657_v35  ;;  %v6680_v35 = vld [vmem:[%s15357_s23 + $0x98] sm:$0xff] }
 0x317   : > { %13132 = vmatmul.mubr.msk.f32.gmra.mrb[28].mxu0 %vm380_vm1, %v19658_v39  ;;  %v6681_v39 = vld [vmem:[%s15357_s23 + $0xa0] sm:$0xff] }
 0x318   : > { %13134 = vmatprep.mubr.msk.f32.mxu0 %vm380_vm1, %v4849_v18  ;;  %v6660_v18 = vld [vmem:[%s19064_s7] sm:$0xf] }
 0x31b   : > { %13135 = vmatmul.mubr.msk.f32.gmra.mrb[30].mxu0 %vm380_vm1, %v4851_v43 }
 0x31c   : > { %13139 = vmatprep.mubr.msk.f32.mxu0 %vm380_vm1, %v16499_v20  ;;  %v14797_v20 = vld [vmem:[#allocation3 + $0x48] sm:$0xff] }
 0x31f   : > { %13140 = vmatmul.mubr.msk.f32.vlgmr.msra.gmra.mrb[0].mxu0 %vm380_vm1, %v19635_v45  ;;  %v14800_v45 = vld [vmem:[#allocation3 + $0x70] sm:$0xff] }
 0x320   : > { %13188 = vmatpush3.msk.msra.mxu0 %vm1194_vm0, %v17152_v31  ;;  %13142 = vmatprep.mubr.msk.f32.mxu0 %vm380_vm1, %v19636_v29  ;;  %v14801_v29 = vld [vmem:[#allocation3 + $0x88] sm:$0xff]  ;;  %v6672_v31 = vld [vmem:[%s15357_s23 + $0x58] sm:$0xff] }
 0x321   : > { %13237 = vmatprep.subr.msk.mxu0 %vm1194_vm0, %v11033_v60 }
 0x323   : > { %13143 = vmatmul.mubr.msk.f32.gmra.mrb[2].mxu0 %vm380_vm1, %v19637_v7  ;;  %v14802_v7 = vld [vmem:[#allocation3 + $0x90] sm:$0xff] }
 0x324   : > { %13145 = vmatprep.mubr.msk.f32.mxu0 %vm380_vm1, %v19638_v9  ;;  %v14803_v9 = vld [vmem:[#allocation3 + $0xa8] sm:$0xff] }
 0x327   : > { %13146 = vmatmul.mubr.msk.f32.gmra.mrb[4].mxu0 %vm380_vm1, %v19639_v8  ;;  %v14804_v8 = vld [vmem:[#allocation3 + $0xb0] sm:$0xff] }
 0x328   : > { %13148 = vmatprep.mubr.msk.f32.mxu0 %vm380_vm1, %v19640_v16  ;;  %v19659_v16 = vld [vmem:[#allocation101_spill] sm:$0xff] }
 0x32b   : > { %13149 = vmatmul.mubr.msk.f32.gmra.mrb[6].mxu0 %vm380_vm1, %v19641_v59  ;;  %v19660_v59 = vld [vmem:[#allocation103_spill] sm:$0xff] }
 0x32c   : > { %13151 = vmatprep.mubr.msk.f32.mxu0 %vm380_vm1, %v19642_v42  ;;  %v19661_v42 = vld [vmem:[#allocation105_spill] sm:$0xff] }
 0x32f   : > { %13152 = vmatmul.mubr.msk.f32.gmra.mrb[8].mxu0 %vm380_vm1, %v19643_v24  ;;  %v19662_v24 = vld [vmem:[#allocation107_spill] sm:$0xff] }
 0x330   : > { %13154 = vmatprep.mubr.msk.f32.mxu0 %vm380_vm1, %v19644_v32  ;;  %v6693_v32 = vld [vmem:[%s19065_s8] sm:$0xf] }
 0x331   : > { %13337 = vmatprep.subr.msk.mxu1 %vm1194_vm0, %v6693_v32 }
 0x332   : > { %13338 = vmatpush3.msk.msra.mxu1 %vm1194_vm0, %v6693_v32  ;;  %v19674_v32 = vld [vmem:[#allocation14_spill] sm:$0xff] }
 0x333   : > { %13155 = vmatmul.mubr.msk.f32.gmra.mrb[10].mxu0 %vm380_vm1, %v16544_v57  ;;  %v17358_v57 = vld [vmem:[%s19060_s3 + $0x20] sm:$0xf]  ;;  %13387 = vmatprep.subr.msk.mxu1 %vm1194_vm0, %v6660_v18 }
 0x334   : > { %13157 = vmatprep.mubr.msk.f32.mxu0 %vm380_vm1, %v16548_v2  ;;  %v14798_v2 = vld [vmem:[#allocation3 + $0x50] sm:$0xff] }
 0x337   : > { %13158 = vmatmul.mubr.msk.f32.gmra.mrb[12].mxu0 %vm380_vm1, %v16552_v6  ;;  %v14796_v6 = vld [vmem:[#allocation2 + $0x210] sm:$0xff] }
 0x338   : > { %13160 = vmatprep.mubr.msk.f32.mxu0 %vm380_vm1, %v16556_v51  ;;  %v14799_v51 = vld [vmem:[#allocation3 + $0x68] sm:$0xff] }
 0x33b   : > { %13161 = vmatmul.mubr.msk.f32.gmra.mrb[14].mxu0 %vm380_vm1, %v16560_v61  ;;  %v14795_v61 = vld [vmem:[#allocation2 + $0x208] sm:$0xff] }
 0x33c   : > { %13163 = vmatprep.mubr.msk.f32.mxu0 %vm380_vm1, %v17065_v37  ;;  %v6661_v37 = vld [vmem:[%s15357_s23] sm:$0xff] }
 0x33d   : > { %13339 = vmatprep.mubr.msk.f32.mxu1 %vm380_vm1, %v6661_v37  ;;  %v19675_v37 = vld [vmem:[#allocation15_spill] sm:$0xff] }
 0x33f   : > { %13164 = vmatmul.mubr.msk.f32.gmra.mrb[16].mxu0 %vm380_vm1, %v17071_v34  ;;  %v6662_v34 = vld [vmem:[%s15357_s23 + $0x8] sm:$0xff] }
 0x340   : > { %13166 = vmatprep.mubr.msk.f32.mxu0 %vm380_vm1, %v17077_v22  ;;  %13340 = vmatmul.mubr.msk.f32.vlgmr.msra.gmra.mrb[32].mxu1 %vm380_vm1, %v6662_v34  ;;  %v6663_v22 = vld [vmem:[%s15357_s23 + $0x10] sm:$0xff]  ;;  %v6688_v34 = vld [vmem:[%s15357_s23 + $0xd8] sm:$0xff] }
 0x341   : > { %13342 = vmatprep.mubr.msk.f32.mxu1 %vm380_vm1, %v6663_v22  ;;  %13388 = vmatpush3.msk.msra.mxu1 %vm1194_vm0, %v6660_v18  ;;  %v6631_v18 = vld [vmem:[%s15380_s26 + $0x18] sm:$0xff] }
 0x343   : > { %13167 = vmatmul.mubr.msk.f32.gmra.mrb[18].mxu0 %vm380_vm1, %v17083_v47  ;;  %v6664_v47 = vld [vmem:[%s15357_s23 + $0x18] sm:$0xff] }
 0x344   : > { %13169 = vmatprep.mubr.msk.f32.mxu0 %vm380_vm1, %v17089_v58  ;;  %13343 = vmatmul.mubr.msk.f32.gmra.mrb[34].mxu1 %vm380_vm1, %v6664_v47  ;;  %v6665_v58 = vld [vmem:[%s15357_s23 + $0x20] sm:$0xff] }
 0x345   : > { %13345 = vmatprep.mubr.msk.f32.mxu1 %vm380_vm1, %v6665_v58  ;;  %v6689_v47 = vld [vmem:[%s15357_s23 + $0xe0] sm:$0xff] }
 0x347   : > { %13170 = vmatmul.mubr.msk.f32.gmra.mrb[20].mxu0 %vm380_vm1, %v17097_v23  ;;  %v6666_v23 = vld [vmem:[%s15357_s23 + $0x28] sm:$0xff] }
 0x348   : > { %13172 = vmatprep.mubr.msk.f32.mxu0 %vm380_vm1, %v17103_v44  ;;  %13346 = vmatmul.mubr.msk.f32.gmra.mrb[36].mxu1 %vm380_vm1, %v6666_v23  ;;  %v6667_v44 = vld [vmem:[%s15357_s23 + $0x30] sm:$0xff]  ;;  %v19676_v23 = vld [vmem:[#allocation16_spill] sm:$0xff] }
 0x349   : > { %13348 = vmatprep.mubr.msk.f32.mxu1 %vm380_vm1, %v6667_v44  ;;  %v19677_v44 = vld [vmem:[#allocation17_spill] sm:$0xff] }
 0x34b   : > { %13173 = vmatmul.mubr.msk.f32.gmra.mrb[22].mxu0 %vm380_vm1, %v17112_v27  ;;  %v6668_v27 = vld [vmem:[%s15357_s23 + $0x38] sm:$0xff] }
 0x34c   : > { %13175 = vmatprep.mubr.msk.f32.mxu0 %vm380_vm1, %v17118_v63  ;;  %13349 = vmatmul.mubr.msk.f32.gmra.mrb[38].mxu1 %vm380_vm1, %v6668_v27  ;;  %v6669_v63 = vld [vmem:[%s15357_s23 + $0x40] sm:$0xff]  ;;  %v6690_v27 = vld [vmem:[%s15357_s23 + $0xe8] sm:$0xff] }
 0x34d   : > { %13351 = vmatprep.mubr.msk.f32.mxu1 %vm380_vm1, %v6669_v63 }
 0x34f   : > { %13176 = vmatmul.mubr.msk.f32.gmra.mrb[24].mxu0 %vm380_vm1, %v17126_v12  ;;  %v6670_v12 = vld [vmem:[%s15357_s23 + $0x48] sm:$0xff] }
 0x350   : > { %13178 = vmatprep.mubr.msk.f32.mxu0 %vm380_vm1, %v17132_v26  ;;  %13352 = vmatmul.mubr.msk.f32.gmra.mrb[40].mxu1 %vm380_vm1, %v6670_v12  ;;  %v6691_v12 = vld [vmem:[%s15357_s23 + $0xf0] sm:$0xff] }
 0x353   : > { %13179 = vmatmul.mubr.msk.f32.gmra.mrb[26].mxu0 %vm380_vm1, %v17138_v54 }
 0x354   : > { %13181 = vmatprep.mubr.msk.f32.mxu0 %vm380_vm1, %v14795_v61  ;;  %v19668_v61 = vld [vmem:[#allocation8_spill] sm:$0xff] }
 0x357   : > { %13182 = vmatmul.mubr.msk.f32.gmra.mrb[28].mxu0 %vm380_vm1, %v14796_v6 }
 0x358   : > { %13184 = vmatprep.mubr.msk.f32.mxu0 %vm380_vm1, %v17095_v17 }
 0x35b   : > { %13185 = vmatmul.mubr.msk.f32.gmra.mrb[30].mxu0 %vm380_vm1, %v17110_v10 }
 0x35c   : > { %13189 = vmatprep.mubr.msk.f32.mxu0 %vm380_vm1, %v14797_v20  ;;  %v19669_v20 = vld [vmem:[#allocation9_spill] sm:$0xff] }
 0x35f   : > { %13190 = vmatmul.mubr.msk.f32.vlgmr.msra.gmra.mrb[0].mxu0 %vm380_vm1, %v14798_v2 }
 0x360   : > { %13238 = vmatpush3.msk.msra.mxu0 %vm1194_vm0, %v11033_v60  ;;  %13192 = vmatprep.mubr.msk.f32.mxu0 %vm380_vm1, %v14799_v51  ;;  %v6683_v51 = vld [vmem:[%s15357_s23 + $0xb0] sm:$0xff] }
 0x361   : > { %13287 = vmatprep.subr.msk.mxu0 %vm1194_vm0, %v17358_v57 }
 0x363   : > { %13193 = vmatmul.mubr.msk.f32.gmra.mrb[2].mxu0 %vm380_vm1, %v14800_v45  ;;  %v19670_v45 = vld [vmem:[#allocation10_spill] sm:$0xff] }
 0x364   : > { %13195 = vmatprep.mubr.msk.f32.mxu0 %vm380_vm1, %v14801_v29  ;;  %v19671_v29 = vld [vmem:[#allocation11_spill] sm:$0xff] }
 0x367   : > { %13196 = vmatmul.mubr.msk.f32.gmra.mrb[4].mxu0 %vm380_vm1, %v14802_v7  ;;  %v6684_v7 = vld [vmem:[%s15357_s23 + $0xb8] sm:$0xff] }
 0x368   : > { %13198 = vmatprep.mubr.msk.f32.mxu0 %vm380_vm1, %v14803_v9  ;;  %v6685_v9 = vld [vmem:[%s15357_s23 + $0xc0] sm:$0xff] }
 0x36b   : > { %13199 = vmatmul.mubr.msk.f32.gmra.mrb[6].mxu0 %vm380_vm1, %v14804_v8  ;;  %v19672_v8 = vld [vmem:[#allocation12_spill] sm:$0xff] }
 0x36c   : > { %13201 = vmatprep.mubr.msk.f32.mxu0 %vm380_vm1, %v19659_v16  ;;  %v11169_v16 = vld [vmem:[%s19062_s5 + $0x4] sm:$0xf] }
 0x36d   : > { %13437 = vmatprep.subr.msk.mxu1 %vm1194_vm0, %v11169_v16 }
 0x36e   : > { %v17431_v26 = vpop.f32.mrb[0].mxu1 }
 0x36f   : > { %13202 = vmatmul.mubr.msk.f32.gmra.mrb[8].mxu0 %vm380_vm1, %v19660_v59  ;;  %v17435_v54 = vpop.f32.mrb[1].mxu1  ;;  %v19673_v59 = vld [vmem:[#allocation13_spill] sm:$0xff] }
 0x370   : > { %13204 = vmatprep.mubr.msk.f32.mxu0 %vm380_vm1, %v19661_v42  ;;  %v6686_v42 = vld [vmem:[%s15357_s23 + $0xc8] sm:$0xff] }
 0x373   : > { %13205 = vmatmul.mubr.msk.f32.gmra.mrb[10].mxu0 %vm380_vm1, %v19662_v24  ;;  %v6687_v24 = vld [vmem:[%s15357_s23 + $0xd0] sm:$0xff] }
 0x374   : > { %13207 = vmatprep.mubr.msk.f32.mxu0 %vm380_vm1, %v17143_v48  ;;  %v6671_v48 = vld [vmem:[%s15357_s23 + $0x50] sm:$0xff] }
 0x375   : > { %13354 = vmatprep.mubr.msk.f32.mxu1 %vm380_vm1, %v6671_v48 }
 0x376   : > { %13355 = vmatmul.mubr.msk.f32.gmra.mrb[42].mxu1 %vm380_vm1, %v6672_v31  ;;  %v19678_v31 = vld [vmem:[#allocation18_spill] sm:$0xff] }
 0x377   : > { %13208 = vmatmul.mubr.msk.f32.gmra.mrb[12].mxu0 %vm380_vm1, %v17154_v21  ;;  %v17443_v21 = vpop.f32.mrb[2].mxu1 }
 0x378   : > { %13210 = vmatprep.mubr.msk.f32.mxu0 %vm380_vm1, %v17160_v3  ;;  %v19663_v3 = vld [vmem:[#allocation123_spill] sm:$0xff] }
 0x37b   : > { %13211 = vmatmul.mubr.msk.f32.gmra.mrb[14].mxu0 %vm380_vm1, %v17170_v15  ;;  %v17447_v15 = vpop.f32.mrb[3].mxu1 }
 0x37c   : > { %13213 = vmatprep.mubr.msk.f32.mxu0 %vm380_vm1, %v17176_v11  ;;  %v6673_v11 = vld [vmem:[%s15357_s23 + $0x60] sm:$0xff] }
 0x37d   : > { %13357 = vmatprep.mubr.msk.f32.mxu1 %vm380_vm1, %v6673_v11  ;;  %v6692_v11 = vld [vmem:[%s15357_s23 + $0xf8] sm:$0xff] }
 0x37f   : > { %13214 = vmatmul.mubr.msk.f32.gmra.mrb[16].mxu0 %vm380_vm1, %v17182_v55  ;;  %v6674_v55 = vld [vmem:[%s15357_s23 + $0x68] sm:$0xff] }
 0x380   : > { %13216 = vmatprep.mubr.msk.f32.mxu0 %vm380_vm1, %v17188_v50  ;;  %v19664_v50 = vld [vmem:[#allocation126_spill] sm:$0xff]  ;;  %13358 = vmatmul.mubr.msk.f32.gmra.mrb[44].mxu1 %vm380_vm1, %v6674_v55 }
 0x383   : > { %13217 = vmatmul.mubr.msk.f32.gmra.mrb[18].mxu0 %vm380_vm1, %v17194_v28  ;;  %v17455_v28 = vpop.f32.mrb[4].mxu1 }
 0x384   : > { %13219 = vmatprep.mubr.msk.f32.mxu0 %vm380_vm1, %v17200_v4  ;;  %v17459_v4 = vpop.f32.mrb[5].mxu1 }
 0x387   : > { %13220 = vmatmul.mubr.msk.f32.gmra.mrb[20].mxu0 %vm380_vm1, %v17206_v19  ;;  %v6675_v19 = vld [vmem:[%s15357_s23 + $0x70] sm:$0xff] }
 0x388   : > { %13222 = vmatprep.mubr.msk.f32.mxu0 %vm380_vm1, %v17212_v30  ;;  %13360 = vmatprep.mubr.msk.f32.mxu1 %vm380_vm1, %v6675_v19  ;;  %v6676_v30 = vld [vmem:[%s15357_s23 + $0x78] sm:$0xff] }
 0x389   : > { %13361 = vmatmul.mubr.msk.f32.gmra.mrb[46].mxu1 %vm380_vm1, %v6676_v30  ;;  %v19680_v30 = vld [vmem:[#allocation20_spill] sm:$0xff] }
 0x38b   : > { %13223 = vmatmul.mubr.msk.f32.gmra.mrb[22].mxu0 %vm380_vm1, %v17218_v25  ;;  %v17467_v25 = vpop.f32.mrb[6].mxu1 }
 0x38c   : > { %13225 = vmatprep.mubr.msk.f32.mxu0 %vm380_vm1, %v17224_v62  ;;  %v6677_v62 = vld [vmem:[%s15357_s23 + $0x80] sm:$0xff] }
 0x38d   : > { %13363 = vmatprep.mubr.msk.f32.mxu1 %vm380_vm1, %v6677_v62  ;;  %v19681_v62 = vld [vmem:[#allocation21_spill] sm:$0xff] }
 0x38f   : > { %13226 = vmatmul.mubr.msk.f32.gmra.mrb[24].mxu0 %vm380_vm1, %v17230_v49  ;;  %v19665_v49 = vld [vmem:[#allocation5_spill] sm:$0xff] }
 0x390   : > { %13228 = vmatprep.mubr.msk.f32.mxu0 %vm380_vm1, %v17236_v0  ;;  %v17472_v0 = vpop.f32.mrb[7].mxu1 }
 0x391   : > { %v17476_v38 = vpop.f32.mrb[8].mxu1 }
 0x392   : > { %v17478_v13 = vpop.f32.mrb[9].mxu1 }
 0x393   : > { %13229 = vmatmul.mubr.msk.f32.gmra.mrb[26].mxu0 %vm380_vm1, %v17242_v14  ;;  %v6678_v14 = vld [vmem:[%s15357_s23 + $0x88] sm:$0xff]  ;;  %v17484_v41 = vpop.f32.mrb[10].mxu1 }
 0x394   : > { %13231 = vmatprep.mubr.msk.f32.mxu0 %vm380_vm1, %v19663_v3  ;;  %13364 = vmatmul.mubr.msk.f32.gmra.mrb[48].mxu1 %vm380_vm1, %v6678_v14  ;;  %v17491_v33 = vpop.f32.mrb[11].mxu1  ;;  %v19679_v3 = vld [vmem:[#allocation19_spill] sm:$0xff] }
 0x395   : > { %13366 = vmatprep.mubr.msk.f32.mxu1 %vm380_vm1, %v6679_v52  ;;  %v17498_v43 = vpop.f32.mrb[12].mxu1  ;;  %v6630_v52 = vld [vmem:[%s15380_s26 + $0x10] sm:$0xff] }
 0x396   : > { %v17501_v60 = vpop.f32.mrb[13].mxu1 }
 0x397   : > { %13232 = vmatmul.mubr.msk.f32.gmra.mrb[28].mxu0 %vm380_vm1, %v19664_v50  ;;  %v17507_v6 = vpop.f32.mrb[14].mxu1  ;;  %v6628_v50 = vld [vmem:[%s15380_s26] sm:$0xff] }
 0x398   : > { %13234 = vmatprep.mubr.msk.f32.mxu0 %vm380_vm1, %v17266_v40  ;;  %13367 = vmatmul.mubr.msk.f32.gmra.mrb[50].mxu1 %vm380_vm1, %v6680_v35  ;;  %v17513_v2 = vpop.f32.mrb[15].mxu1  ;;  %v19683_v35 = vld [vmem:[#allocation23_spill] sm:$0xff] }
 0x399   : > { %13369 = vmatprep.mubr.msk.f32.mxu1 %vm380_vm1, %v6681_v39 }
 0x39b   : > { %13235 = vmatmul.mubr.msk.f32.gmra.mrb[30].mxu0 %vm380_vm1, %v17273_v53 }
 0x39c   : > { %13239 = vmatprep.mubr.msk.f32.mxu0 %vm380_vm1, %v19665_v49  ;;  %v6629_v49 = vld [vmem:[%s15380_s26 + $0x8] sm:$0xff] }
 0x39f   : > { %13240 = vmatmul.mubr.msk.f32.vlgmr.msra.gmra.mrb[0].mxu0 %vm380_vm1, %v19666_v46 }
 0x3a0   : > { %13288 = vmatpush3.msk.msra.mxu0 %vm1194_vm0, %v17358_v57  ;;  %13242 = vmatprep.mubr.msk.f32.mxu0 %vm380_vm1, %v19667_v36  ;;  %v6682_v57 = vld [vmem:[%s15357_s23 + $0xa8] sm:$0xff] }
 0x3a1   : > { %13370 = vmatmul.mubr.msk.f32.gmra.mrb[52].mxu1 %vm380_vm1, %v6682_v57  ;;  %v19682_v36 = vld [vmem:[#allocation22_spill] sm:$0xff]  ;;  %v19684_v57 = vld [vmem:[#allocation24_spill] sm:$0xff] }
 0x3a2   : > { %13372 = vmatprep.mubr.msk.f32.mxu1 %vm380_vm1, %v6683_v51  ;;  %v19685_v51 = vld [vmem:[#allocation25_spill] sm:$0xff] }
 0x3a3   : > { %13243 = vmatmul.mubr.msk.f32.gmra.mrb[2].mxu0 %vm380_vm1, %v19668_v61  ;;  %v6632_v61 = vld [vmem:[%s15380_s26 + $0x20] sm:$0xff] }
 0x3a4   : > { %13245 = vmatprep.mubr.msk.f32.mxu0 %vm380_vm1, %v19669_v20 }
 0x3a5   : > { %13373 = vmatmul.mubr.msk.f32.gmra.mrb[54].mxu1 %vm380_vm1, %v6684_v7  ;;  %v6634_v7 = vld [vmem:[%s15380_s26 + $0x30] sm:$0xff] }
 0x3a6   : > { %13375 = vmatprep.mubr.msk.f32.mxu1 %vm380_vm1, %v6685_v9 }
 0x3a7   : > { %13246 = vmatmul.mubr.msk.f32.gmra.mrb[4].mxu0 %vm380_vm1, %v19670_v45  ;;  %v6633_v45 = vld [vmem:[%s15380_s26 + $0x28] sm:$0xff] }
 0x3a8   : > { %13248 = vmatprep.mubr.msk.f32.mxu0 %vm380_vm1, %v19671_v29 }
 0x3a9   : > { %13376 = vmatmul.mubr.msk.f32.gmra.mrb[56].mxu1 %vm380_vm1, %v6686_v42 }
 0x3aa   : > { %13378 = vmatprep.mubr.msk.f32.mxu1 %vm380_vm1, %v6687_v24  ;;  %v6636_v24 = vld [vmem:[%s15380_s26 + $0x40] sm:$0xff] }
 0x3ab   : > { %13249 = vmatmul.mubr.msk.f32.gmra.mrb[6].mxu0 %vm380_vm1, %v19672_v8  ;;  %v19686_v8 = vld [vmem:[#allocation26_spill] sm:$0xff] }
 0x3ac   : > { %13251 = vmatprep.mubr.msk.f32.mxu0 %vm380_vm1, %v19673_v59  ;;  %v6635_v59 = vld [vmem:[%s15380_s26 + $0x38] sm:$0xff] }
 0x3ad   : > { %13379 = vmatmul.mubr.msk.f32.gmra.mrb[58].mxu1 %vm380_vm1, %v6688_v34  ;;  %v19689_v34 = vld [vmem:[#allocation29_spill] sm:$0xff] }
 0x3ae   : > { %v17543_v22 = vpop.f32.mrb[16].mxu1  ;;  %13381 = vmatprep.mubr.msk.f32.mxu1 %vm380_vm1, %v6689_v47  ;;  %v6637_v47 = vld [vmem:[%s15380_s26 + $0x48] sm:$0xff] }
 0x3af   : > { %13252 = vmatmul.mubr.msk.f32.gmra.mrb[8].mxu0 %vm380_vm1, %v19674_v32  ;;  %v17546_v58 = vpop.f32.mrb[17].mxu1 }
 0x3b0   : > { %13254 = vmatprep.mubr.msk.f32.mxu0 %vm380_vm1, %v19675_v37  ;;  %v19688_v37 = vld [vmem:[#allocation28_spill] sm:$0xff] }
 0x3b1   : > { %13382 = vmatmul.mubr.msk.f32.gmra.mrb[60].mxu1 %vm380_vm1, %v6690_v27 }
 0x3b2   : > { %v17555_v63 = vpop.f32.mrb[18].mxu1  ;;  %13384 = vmatprep.mubr.msk.f32.mxu1 %vm380_vm1, %v6691_v12  ;;  %v19690_v12 = vld [vmem:[#allocation30_spill] sm:$0xff] }
 0x3b3   : > { %13255 = vmatmul.mubr.msk.f32.gmra.mrb[10].mxu0 %vm380_vm1, %v19676_v23  ;;  %v17558_v48 = vpop.f32.mrb[19].mxu1 }
 0x3b4   : > { %13257 = vmatprep.mubr.msk.f32.mxu0 %vm380_vm1, %v19677_v44  ;;  %v6638_v44 = vld [vmem:[%s15380_s26 + $0x50] sm:$0xff] }
 0x3b5   : > { %13385 = vmatmul.mubr.msk.f32.gmra.mrb[62].mxu1 %vm380_vm1, %v6692_v11  ;;  %v5917_v11 = vrot.slane %v17095_v17, 1  ;;  %v6641_v17 = vld [vmem:[%s15380_s26 + $0x68] sm:$0xff] }
 0x3b6   : > { %v17567_v55 = vpop.f32.mrb[20].mxu1  ;;  %13389 = vmatprep.mubr.msk.f32.mxu1 %vm380_vm1, %v6628_v50  ;;  %v5918_v50 = vrot.slane %v17110_v10, 1 }
 0x3b7   : > { %13258 = vmatmul.mubr.msk.f32.gmra.mrb[12].mxu0 %vm380_vm1, %v19678_v31  ;;  %v17570_v19 = vpop.f32.mrb[21].mxu1  ;;  %v19691_v31 = vld [vmem:[#allocation31_spill] sm:$0xff] }
 0x3b8   : > { %13260 = vmatprep.mubr.msk.f32.mxu0 %vm380_vm1, %v19679_v3  ;;  %v6639_v3 = vld [vmem:[%s15380_s26 + $0x58] sm:$0xff]  ;;  %v5919_v10 = vsel %vm2383_vm2, %v5917_v11, %v5918_v50 }
 0x3b9   : > { %13390 = vmatmul.mubr.msk.f32.vlgmr.msra.gmra.mrb[32].mxu1 %vm380_vm1, %v6629_v49  ;;  %v19692_v49 = vld [vmem:[#allocation32_spill] sm:$0xff] }
 0x3ba   : > { %v17579_v14 = vpop.f32.mrb[22].mxu1  ;;  %13392 = vmatprep.mubr.msk.f32.mxu1 %vm380_vm1, %v6630_v52  ;;  %13438 = vmatpush3.msk.msra.mxu1 %vm1194_vm0, %v11169_v16  ;;  %v19687_v16 = vld [vmem:[#allocation27_spill] sm:$0xff]  ;;  %v6651_v11 = vld [vmem:[%s15380_s26 + $0xb8] sm:$0xff] }
 0x3bb   : > { %13261 = vmatmul.mubr.msk.f32.gmra.mrb[14].mxu0 %vm380_vm1, %v19680_v30  ;;  %v17582_v46 = vpop.f32.mrb[23].mxu1  ;;  %v798_v30 = vld [vmem:[#allocation2 + $0x238] sm:$0xff]  ;;  %v19693_v52 = vld [vmem:[#allocation95_spill] sm:$0xff] }
 0x3bc   : > { %13263 = vmatprep.mubr.msk.f32.mxu0 %vm380_vm1, %v19681_v62  ;;  %v6640_v62 = vld [vmem:[%s15380_s26 + $0x60] sm:$0xff] }
 0x3bd   : > { %13393 = vmatmul.mubr.msk.f32.gmra.mrb[34].mxu1 %vm380_vm1, %v6631_v18  ;;  %v19694_v18 = vld [vmem:[#allocation96_spill] sm:$0xff] }
 0x3be   : > { %v17591_v39 = vpop.f32.mrb[24].mxu1  ;;  %13395 = vmatprep.mubr.msk.f32.mxu1 %vm380_vm1, %v6632_v61 }
 0x3bf   : > { %13264 = vmatmul.mubr.msk.f32.gmra.mrb[16].mxu0 %vm380_vm1, %v19682_v36  ;;  %v17595_v20 = vpop.f32.mrb[25].mxu1  ;;  %v5920_v36 = vrot.slane %v798_v30, 1  ;;  %v19702_v30 = vld [vmem:[#allocation42_spill] sm:$0xff] }
 0x3c0   : > { %13266 = vmatprep.mubr.msk.f32.mxu0 %vm380_vm1, %v19683_v35  ;;  %v6642_v35 = vld [vmem:[%s15380_s26 + $0x70] sm:$0xff] }
 0x3c1   : > { %13396 = vmatmul.mubr.msk.f32.gmra.mrb[36].mxu1 %vm380_vm1, %v6633_v45  ;;  %v5921_v61 = vsel %vm2383_vm2, %v5918_v50, %v5920_v36  ;;  %v19695_v45 = vld [vmem:[#allocation35_spill] sm:$0xff]  ;;  %v6652_v50 = vld [vmem:[%s15380_s26 + $0xc0] sm:$0xff]  ;;  %v19704_v36 = vld [vmem:[#allocation44_spill] sm:$0xff] }
 0x3c2   : > { %v17604_v29 = vpop.f32.mrb[26].mxu1  ;;  %13398 = vmatprep.mubr.msk.f32.mxu1 %vm380_vm1, %v6634_v7  ;;  %v6645_v7 = vld [vmem:[%s15380_s26 + $0x88] sm:$0xff] }
 0x3c3   : > { %13267 = vmatmul.mubr.msk.f32.gmra.mrb[18].mxu0 %vm380_vm1, %v19684_v57  ;;  %v17607_v9 = vpop.f32.mrb[27].mxu1  ;;  %v6643_v57 = vld [vmem:[%s15380_s26 + $0x78] sm:$0xff] }
 0x3c4   : > { %13269 = vmatprep.mubr.msk.f32.mxu0 %vm380_vm1, %v19685_v51  ;;  %v6644_v51 = vld [vmem:[%s15380_s26 + $0x80] sm:$0xff] }
 0x3c5   : > { %13399 = vmatmul.mubr.msk.f32.gmra.mrb[38].mxu1 %vm380_vm1, %v6635_v59  ;;  %v19697_v59 = vld [vmem:[#allocation37_spill] sm:$0xff] }
 0x3c6   : > { %v17616_v42 = vpop.f32.mrb[28].mxu1  ;;  %13401 = vmatprep.mubr.msk.f32.mxu1 %vm380_vm1, %v6636_v24  ;;  %v6647_v24 = vld [vmem:[%s15380_s26 + $0x98] sm:$0xff] }
 0x3c7   : > { %13270 = vmatmul.mubr.msk.f32.gmra.mrb[20].mxu0 %vm380_vm1, %v19686_v8  ;;  %v17619_v32 = vpop.f32.mrb[29].mxu1  ;;  %v6646_v8 = vld [vmem:[%s15380_s26 + $0x90] sm:$0xff] }
 0x3c8   : > { %13272 = vmatprep.mubr.msk.f32.mxu0 %vm380_vm1, %v19687_v16  ;;  %v19696_v16 = vld [vmem:[#allocation36_spill] sm:$0xff] }
 0x3c9   : > { %13402 = vmatmul.mubr.msk.f32.gmra.mrb[40].mxu1 %vm380_vm1, %v6637_v47  ;;  %v19699_v47 = vld [vmem:[#allocation39_spill] sm:$0xff] }
 0x3ca   : > { %v17628_v23 = vpop.f32.mrb[30].mxu1  ;;  %13404 = vmatprep.mubr.msk.f32.mxu1 %vm380_vm1, %v6638_v44  ;;  %v6649_v44 = vld [vmem:[%s15380_s26 + $0xa8] sm:$0xff] }
 0x3cb   : > { %13273 = vmatmul.mubr.msk.f32.gmra.mrb[22].mxu0 %vm380_vm1, %v19688_v37  ;;  %v17631_v27 = vpop.f32.mrb[31].mxu1  ;;  %v6648_v37 = vld [vmem:[%s15380_s26 + $0xa0] sm:$0xff] }
 0x3cc   : > { %13275 = vmatprep.mubr.msk.f32.mxu0 %vm380_vm1, %v19689_v34  ;;  %v19698_v34 = vld [vmem:[#allocation38_spill] sm:$0xff] }
 0x3cd   : > { %13405 = vmatmul.mubr.msk.f32.gmra.mrb[42].mxu1 %vm380_vm1, %v6639_v3  ;;  %v19701_v3 = vld [vmem:[#allocation41_spill] sm:$0xff] }
 0x3ce   : > { %13407 = vmatprep.mubr.msk.f32.mxu1 %vm380_vm1, %v6640_v62  ;;  %v19703_v62 = vld [vmem:[#allocation43_spill] sm:$0xff] }
 0x3cf   : > { %13276 = vmatmul.mubr.msk.f32.gmra.mrb[24].mxu0 %vm380_vm1, %v19690_v12  ;;  %v6650_v12 = vld [vmem:[%s15380_s26 + $0xb0] sm:$0xff] }
 0x3d0   : > { %13278 = vmatprep.mubr.msk.f32.mxu0 %vm380_vm1, %v19691_v31  ;;  %v19700_v31 = vld [vmem:[#allocation40_spill] sm:$0xff] }
 0x3d1   : > { %13408 = vmatmul.mubr.msk.f32.gmra.mrb[44].mxu1 %vm380_vm1, %v6641_v17  ;;  %v19705_v17 = vld [vmem:[#allocation45_spill] sm:$0xff] }
 0x3d2   : > { %13410 = vmatprep.mubr.msk.f32.mxu1 %vm380_vm1, %v6642_v35  ;;  %v6656_v35 = vld [vmem:[%s15380_s26 + $0xe0] sm:$0xff] }
 0x3d3   : > { %13279 = vmatmul.mubr.msk.f32.gmra.mrb[26].mxu0 %vm380_vm1, %v19692_v49  ;;  %v6653_v49 = vld [vmem:[%s15380_s26 + $0xc8] sm:$0xff] }
 0x3d4   : > { %13281 = vmatprep.mubr.msk.f32.mxu0 %vm380_vm1, %v19693_v52  ;;  %v6654_v52 = vld [vmem:[%s15380_s26 + $0xd0] sm:$0xff] }
 0x3d5   : > { %13411 = vmatmul.mubr.msk.f32.gmra.mrb[46].mxu1 %vm380_vm1, %v6643_v57  ;;  %v6657_v57 = vld [vmem:[%s15380_s26 + $0xe8] sm:$0xff] }
 0x3d6   : > { %13413 = vmatprep.mubr.msk.f32.mxu1 %vm380_vm1, %v6644_v51  ;;  %v6658_v51 = vld [vmem:[%s15380_s26 + $0xf0] sm:$0xff] }
 0x3d7   : > { %13282 = vmatmul.mubr.msk.f32.gmra.mrb[28].mxu0 %vm380_vm1, %v19694_v18  ;;  %v19706_v18 = vld [vmem:[#allocation46_spill] sm:$0xff] }
 0x3d8   : > { %13284 = vmatprep.mubr.msk.f32.mxu0 %vm380_vm1, %v5919_v10  ;;  %v6655_v10 = vld [vmem:[%s15380_s26 + $0xd8] sm:$0xff] }
 0x3d9   : > { %13414 = vmatmul.mubr.msk.f32.gmra.mrb[48].mxu1 %vm380_vm1, %v6645_v7  ;;  %v19709_v7 = vld [vmem:[#allocation49_spill] sm:$0xff] }
 0x3da   : > { %13416 = vmatprep.mubr.msk.f32.mxu1 %vm380_vm1, %v6646_v8  ;;  %v6659_v8 = vld [vmem:[%s15380_s26 + $0xf8] sm:$0xff] }
 0x3db   : > { %13285 = vmatmul.mubr.msk.f32.gmra.mrb[30].mxu0 %vm380_vm1, %v5921_v61  ;;  %v19707_v61 = vld [vmem:[#allocation47_spill] sm:$0xff] }
 0x3dc   : > { %13289 = vmatprep.mubr.msk.f32.mxu0 %vm380_vm1, %v19695_v45  ;;  %v19708_v45 = vld [vmem:[#allocation48_spill] sm:$0xff] }
 0x3dd   : > { %13417 = vmatmul.mubr.msk.f32.gmra.mrb[50].mxu1 %vm380_vm1, %v6647_v24  ;;  %v19712_v24 = vld [vmem:[#allocation52_spill] sm:$0xff] }
 0x3de   : > { %13419 = vmatprep.mubr.msk.f32.mxu1 %vm380_vm1, %v6648_v37  ;;  %v19713_v37 = vld [vmem:[#allocation53_spill] sm:$0xff] }
 0x3df   : > { %13290 = vmatmul.mubr.msk.f32.vlgmr.msra.gmra.mrb[0].mxu0 %vm380_vm1, %v19696_v16  ;;  %v19710_v16 = vld [vmem:[#allocation50_spill] sm:$0xff] }
 0x3e0   : > { %13292 = vmatprep.mubr.msk.f32.mxu0 %vm380_vm1, %v19697_v59  ;;  %v19711_v59 = vld [vmem:[#allocation51_spill] sm:$0xff] }
 0x3e1   : > { %13420 = vmatmul.mubr.msk.f32.gmra.mrb[52].mxu1 %vm380_vm1, %v6649_v44  ;;  %v19716_v44 = vld [vmem:[#allocation56_spill] sm:$0xff] }
 0x3e2   : > { %13422 = vmatprep.mubr.msk.f32.mxu1 %vm380_vm1, %v6650_v12  ;;  %v19717_v12 = vld [vmem:[#allocation57_spill] sm:$0xff] }
 0x3e3   : > { %13293 = vmatmul.mubr.msk.f32.gmra.mrb[2].mxu0 %vm380_vm1, %v19698_v34  ;;  %v19714_v34 = vld [vmem:[#allocation54_spill] sm:$0xff] }
 0x3e4   : > { %13295 = vmatprep.mubr.msk.f32.mxu0 %vm380_vm1, %v19699_v47  ;;  %v19715_v47 = vld [vmem:[#allocation55_spill] sm:$0xff] }
 0x3e5   : > { %13423 = vmatmul.mubr.msk.f32.gmra.mrb[54].mxu1 %vm380_vm1, %v6651_v11  ;;  %v19720_v11 = vld [vmem:[#allocation60_spill] sm:$0xff] }
 0x3e6   : > { %13425 = vmatprep.mubr.msk.f32.mxu1 %vm380_vm1, %v6652_v50  ;;  %v19721_v50 = vld [vmem:[#allocation61_spill] sm:$0xff] }
 0x3e7   : > { %13296 = vmatmul.mubr.msk.f32.gmra.mrb[4].mxu0 %vm380_vm1, %v19700_v31  ;;  %v19718_v31 = vld [vmem:[#allocation58_spill] sm:$0xff] }
 0x3e8   : > { %13298 = vmatprep.mubr.msk.f32.mxu0 %vm380_vm1, %v19701_v3  ;;  %v19719_v3 = vld [vmem:[#allocation59_spill] sm:$0xff] }
 0x3e9   : > { %13426 = vmatmul.mubr.msk.f32.gmra.mrb[56].mxu1 %vm380_vm1, %v6653_v49  ;;  %v870_v49 = vld [vmem:[#allocation3 + $0x238] sm:$0xff] }
 0x3ea   : > { %13428 = vmatprep.mubr.msk.f32.mxu1 %vm380_vm1, %v6654_v52  ;;  %v5926_v52 = vrot.slane %v870_v49, 1 }
 0x3eb   : > { %13299 = vmatmul.mubr.msk.f32.gmra.mrb[6].mxu0 %vm380_vm1, %v19702_v30  ;;  %v5923_v30 = vrot.slane %v17266_v40, 1  ;;  %v17759_v40 = vld [vmem:[#allocation4 + $0x8] sm:$0xff] }
 0x3ec   : > { %13301 = vmatprep.mubr.msk.f32.mxu0 %vm380_vm1, %v19703_v62  ;;  %v5924_v62 = vrot.slane %v17273_v53, 1 }
 0x3ed   : > { %13429 = vmatmul.mubr.msk.f32.gmra.mrb[58].mxu1 %vm380_vm1, %v6655_v10 }
 0x3ee   : > { %13431 = vmatprep.mubr.msk.f32.mxu1 %vm380_vm1, %v6656_v35 }
 0x3ef   : > { %13302 = vmatmul.mubr.msk.f32.gmra.mrb[8].mxu0 %vm380_vm1, %v19704_v36  ;;  %v5925_v36 = vsel %vm2383_vm2, %v5923_v30, %v5924_v62 }
 0x3f0   : > { %13304 = vmatprep.mubr.msk.f32.mxu0 %vm380_vm1, %v19705_v17  ;;  %v5927_v17 = vsel %vm2383_vm2, %v5924_v62, %v5926_v52 }
 0x3f1   : > { %13432 = vmatmul.mubr.msk.f32.gmra.mrb[60].mxu1 %vm380_vm1, %v6657_v57 }
 0x3f2   : > { %13434 = vmatprep.mubr.msk.f32.mxu1 %vm380_vm1, %v6658_v51 }
 0x3f3   : > { %13305 = vmatmul.mubr.msk.f32.gmra.mrb[10].mxu0 %vm380_vm1, %v19706_v18 }
 0x3f4   : > { %13307 = vmatprep.mubr.msk.f32.mxu0 %vm380_vm1, %v19707_v61 }
 0x3f5   : > { %13435 = vmatmul.mubr.msk.f32.gmra.mrb[62].mxu1 %vm380_vm1, %v6659_v8 }
 0x3f6   : > { %13439 = vmatprep.mubr.msk.f32.mxu1 %vm380_vm1, %v17759_v40 }
 0x3f7   : > { %13308 = vmatmul.mubr.msk.f32.gmra.mrb[12].mxu0 %vm380_vm1, %v19708_v45 }
 0x3f8   : > { %13310 = vmatprep.mubr.msk.f32.mxu0 %vm380_vm1, %v19709_v7 }
 0x3fb   : > { %13311 = vmatmul.mubr.msk.f32.gmra.mrb[14].mxu0 %vm380_vm1, %v19710_v16 }
 0x3fc   : > { %13313 = vmatprep.mubr.msk.f32.mxu0 %vm380_vm1, %v19711_v59 }
 0x3ff   : > { %13314 = vmatmul.mubr.msk.f32.gmra.mrb[16].mxu0 %vm380_vm1, %v19712_v24 }
 0x400   : > { %13316 = vmatprep.mubr.msk.f32.mxu0 %vm380_vm1, %v19713_v37 }
 0x403   : > { %13317 = vmatmul.mubr.msk.f32.gmra.mrb[18].mxu0 %vm380_vm1, %v19714_v34 }
 0x404   : > { %13319 = vmatprep.mubr.msk.f32.mxu0 %vm380_vm1, %v19715_v47 }
 0x407   : > { %13320 = vmatmul.mubr.msk.f32.gmra.mrb[20].mxu0 %vm380_vm1, %v19716_v44 }
 0x408   : > { %13322 = vmatprep.mubr.msk.f32.mxu0 %vm380_vm1, %v19717_v12  ;;  %v17814_v12 = vld [vmem:[%s19061_s4] ss:$0 sm:$0xff] }
 0x40b   : > { %13323 = vmatmul.mubr.msk.f32.gmra.mrb[22].mxu0 %vm380_vm1, %v19718_v31 }
 0x40c   : > { %13325 = vmatprep.mubr.msk.f32.mxu0 %vm380_vm1, %v19719_v3 }
 0x40f   : > { %13326 = vmatmul.mubr.msk.f32.gmra.mrb[24].mxu0 %vm380_vm1, %v19720_v11 }
 0x410   : > { %13328 = vmatprep.mubr.msk.f32.mxu0 %vm380_vm1, %v19721_v50 }
 0x413   : > { %13329 = vmatmul.mubr.msk.f32.gmra.mrb[26].mxu0 %vm380_vm1, %v19632_v1  ;;  %v17763_v1 = vld [vmem:[#allocation4 + $0x10] sm:$0xff] }
 0x414   : > { %13331 = vmatprep.mubr.msk.f32.mxu0 %vm380_vm1, %v16949_v56  ;;  %13440 = vmatmul.mubr.msk.f32.vlgmr.msra.gmra.mrb[64].mxu1 %vm380_vm1, %v17763_v1  ;;  %v17775_v56 = vld [vmem:[%s19062_s5 + $0x8] sm:$0xf] }
 0x417   : > { %13332 = vmatmul.mubr.msk.f32.gmra.mrb[28].mxu0 %vm380_vm1, %v16960_v5  ;;  %v7581_v5 = vld [vmem:[%s19062_s5] sm:$0xf] }
 0x418   : > { %13334 = vmatprep.mubr.msk.f32.mxu0 %vm380_vm1, %v5925_v36  ;;  %13487 = vmatprep.subr.msk.mxu1 %vm1194_vm0, %v7581_v5 }
 0x419   : > { %13488 = vmatpush3.msk.msra.mxu1 %vm1194_vm0, %v7581_v5 }
 0x41a   : > { %13537 = vmatprep.subr.msk.mxu1 %vm1194_vm0, %v17775_v56 }
 0x41b   : > { %13335 = vmatmul.mubr.msk.f32.gmra.mrb[30].mxu0 %vm380_vm1, %v5927_v17 }
 0x48c   : > { %v17779_v53 = vpop.f32.mrb[32].mxu1 }
 0x48d   : > { %19722 = vst [vmem:[#allocation97_spill] sm:$0xff] %v17779_v53  ;;  %v17781_v10 = vpop.f32.mrb[33].mxu1 }
 0x48e   : > { %19723 = vst [vmem:[#allocation98_spill] sm:$0xff] %v17781_v10  ;;  %v7433_v10 = vld [vmem:[#allocation4 + $0x1a0] sm:$0xff] }
 0x490   : > { %v17783_v35 = vpop.f32.mrb[34].mxu1 }
 0x491   : > { %19724 = vst [vmem:[#allocation99_spill] sm:$0xff] %v17783_v35  ;;  %v17785_v18 = vpop.f32.mrb[35].mxu1 }
 0x492   : > { %19725 = vst [vmem:[#allocation100_spill] sm:$0xff] %v17785_v18  ;;  %v7429_v18 = vld [vmem:[#allocation4 + $0x180] sm:$0xff] }
 0x494   : > { %v17787_v61 = vpop.f32.mrb[36].mxu1 }
 0x495   : > { %19726 = vst [vmem:[#allocation102_spill] sm:$0xff] %v17787_v61  ;;  %v17789_v57 = vpop.f32.mrb[37].mxu1 }
 0x496   : > { %19727 = vst [vmem:[#allocation104_spill] sm:$0xff] %v17789_v57  ;;  %v7425_v57 = vld [vmem:[#allocation4 + $0x160] sm:$0xff] }
 0x498   : > { %v17791_v51 = vpop.f32.mrb[38].mxu1 }
 0x499   : > { %19728 = vst [vmem:[#allocation106_spill] sm:$0xff] %v17791_v51  ;;  %v17793_v45 = vpop.f32.mrb[39].mxu1 }
 0x49a   : > { %19729 = vst [vmem:[#allocation108_spill] sm:$0xff] %v17793_v45  ;;  %v7421_v45 = vld [vmem:[#allocation4 + $0x140] sm:$0xff] }
 0x49c   : > { %v17795_v7 = vpop.f32.mrb[40].mxu1 }
 0x49d   : > { %19730 = vst [vmem:[#allocation109_spill] sm:$0xff] %v17795_v7  ;;  %v17797_v8 = vpop.f32.mrb[41].mxu1 }
 0x49e   : > { %19731 = vst [vmem:[#allocation110_spill] sm:$0xff] %v17797_v8  ;;  %v7417_v8 = vld [vmem:[#allocation4 + $0x120] sm:$0xff] }
 0x4a0   : > { %v17799_v16 = vpop.f32.mrb[42].mxu1 }
 0x4a1   : > { %19732 = vst [vmem:[#allocation111_spill] sm:$0xff] %v17799_v16  ;;  %v17801_v59 = vpop.f32.mrb[43].mxu1 }
 0x4a2   : > { %19733 = vst [vmem:[#allocation112_spill] sm:$0xff] %v17801_v59  ;;  %v7413_v59 = vld [vmem:[#allocation4 + $0x100] sm:$0xff] }
 0x4a4   : > { %v17803_v24 = vpop.f32.mrb[44].mxu1 }
 0x4a5   : > { %19734 = vst [vmem:[#allocation113_spill] sm:$0xff] %v17803_v24  ;;  %v17805_v37 = vpop.f32.mrb[45].mxu1 }
 0x4a6   : > { %19735 = vst [vmem:[#allocation114_spill] sm:$0xff] %v17805_v37  ;;  %v7409_v37 = vld [vmem:[#allocation4 + $0xe0] sm:$0xff] }
 0x4a8   : > { %v17807_v34 = vpop.f32.mrb[46].mxu1 }
 0x4a9   : > { %19736 = vst [vmem:[#allocation115_spill] sm:$0xff] %v17807_v34  ;;  %v17809_v47 = vpop.f32.mrb[47].mxu1 }
 0x4aa   : > { %19737 = vst [vmem:[#allocation33_spill] sm:$0xff] %v17809_v47 }
 0x4ac   : > { %v17816_v31 = vpop.f32.mrb[48].mxu1 }
 0x4ad   : > { %19738 = vst [vmem:[#allocation34_spill] sm:$0xff] %v17816_v31  ;;  %v17819_v50 = vpop.f32.mrb[49].mxu1 }
 0x4ae   : > { %19739 = vst [vmem:[#allocation63_spill] sm:$0xff] %v17819_v50 }
 0x4b0   : > { %v17824_v36 = vpop.f32.mrb[50].mxu1 }
 0x4b1   : > { %19740 = vst [vmem:[#allocation64_spill] sm:$0xff] %v17824_v36  ;;  %v17827_v31 = vpop.f32.mrb[51].mxu1 }
 0x4b2   : > { %v13291_v44 = vpop.f32.mrb[0].mxu0  ;;  %19741 = vst [vmem:[#allocation65_spill] sm:$0xff] %v17827_v31 }
 0x4b3   : > { %v13889_v3 = vadd.f32 %v13291_v44, %v17431_v26  ;;  %v6269_v11 = vpop.f32.mrb[1].mxu0 }
 0x4b4   : > { %v13890_v30 = vadd.f32 %v6269_v11, %v17435_v54  ;;  %v17833_v36 = vpop.f32.mrb[52].mxu1 }
 0x4b5   : > { %v6468_v62 = vadd.f32 %v13889_v3, %v17814_v12  ;;  %19742 = vst [vmem:[#allocation66_spill] sm:$0xff] %v17833_v36  ;;  %v17837_v34 = vpop.f32.mrb[53].mxu1 }
 0x4b6   : > { %v6467_v49 = vadd.f32 %v13890_v30, %v17814_v12  ;;  %v13294_v52 = vpop.f32.mrb[2].mxu0  ;;  %19743 = vst [vmem:[#allocation67_spill] sm:$0xff] %v17837_v34  ;;  %v7405_v34 = vld [vmem:[#allocation4 + $0xc0] sm:$0xff] }
 0x4b7   : > { %vm6500_vm4 = vcmp.ge.f32.partialorder %v6468_v62, 0.0  ;;  %v6532_v17 = vmul.f32 0.2, %v6468_v62  ;;  %v13891_v5 = vadd.f32 %v13294_v52, %v17443_v21  ;;  %v6279_v47 = vpop.f32.mrb[3].mxu0 }
 0x4b8   : > { %vm6499_vm5 = vcmp.ge.f32.partialorder %v6467_v49, 0.0  ;;  %v6531_v26 = vmul.f32 0.2, %v6467_v49  ;;  %v13892_v44 = vadd.f32 %v6279_v47, %v17447_v15 }
 0x4b9   : > { %v6564_v50 = vsel %vm6500_vm4, %v6468_v62, %v6532_v17  ;;  %v6470_v54 = vadd.f32 %v13891_v5, %v17814_v12 }
 0x4ba   : > { %6597 = vst.msk [vmem:[#allocation4 + $0x30] sm:$0xff] %vm380_vm1, %v6564_v50  ;;  %v6563_v3 = vsel %vm6499_vm5, %v6467_v49, %v6531_v26  ;;  %v6469_v11 = vadd.f32 %v13892_v44, %v17814_v12  ;;  %v13297_v30 = vpop.f32.mrb[4].mxu0  ;;  %v17843_v26 = vpop.f32.mrb[54].mxu1 }
 0x4bb   : > { %6596 = vst.msk [vmem:[#allocation4 + $0x28] sm:$0xff] %vm380_vm1, %v6563_v3  ;;  %vm6502_vm6 = vcmp.ge.f32.partialorder %v6470_v54, 0.0  ;;  %v6534_v21 = vmul.f32 0.2, %v6470_v54  ;;  %v13893_v52 = vadd.f32 %v13297_v30, %v17455_v28  ;;  %v6289_v31 = vpop.f32.mrb[5].mxu0  ;;  %19744 = vst [vmem:[#allocation68_spill] sm:$0xff] %v17843_v26 }
 0x4bc   : > { %vm6501_vm7 = vcmp.ge.f32.partialorder %v6469_v11, 0.0  ;;  %v6533_v15 = vmul.f32 0.2, %v6469_v11  ;;  %v13894_v47 = vadd.f32 %v6289_v31, %v17459_v4  ;;  %v17847_v30 = vpop.f32.mrb[55].mxu1 }
 0x4bd   : > { %v6566_v50 = vsel %vm6502_vm6, %v6470_v54, %v6534_v21  ;;  %v6472_v62 = vadd.f32 %v13893_v52, %v17814_v12  ;;  %19745 = vst [vmem:[#allocation69_spill] sm:$0xff] %v17847_v30  ;;  %v7401_v30 = vld [vmem:[#allocation4 + $0xa0] sm:$0xff] }
 0x4be   : > { %6599 = vst.msk [vmem:[#allocation4 + $0x50] sm:$0xff] %vm380_vm1, %v6566_v50  ;;  %v6565_v49 = vsel %vm6501_vm7, %v6469_v11, %v6533_v15  ;;  %v6471_v17 = vadd.f32 %v13894_v47, %v17814_v12  ;;  %v13300_v5 = vpop.f32.mrb[6].mxu0  ;;  %v17855_v50 = vpop.f32.mrb[56].mxu1 }
 0x4bf   : > { %6598 = vst.msk [vmem:[#allocation4 + $0x48] sm:$0xff] %vm380_vm1, %v6565_v49  ;;  %vm6504_vm8 = vcmp.ge.f32.partialorder %v6472_v62, 0.0  ;;  %v6536_v28 = vmul.f32 0.2, %v6472_v62  ;;  %v13895_v44 = vadd.f32 %v13300_v5, %v17467_v25  ;;  %v6299_v3 = vpop.f32.mrb[7].mxu0  ;;  %19746 = vst [vmem:[#allocation70_spill] sm:$0xff] %v17855_v50 }
 0x4c0   : > { %vm6503_vm9 = vcmp.ge.f32.partialorder %v6471_v17, 0.0  ;;  %v6535_v4 = vmul.f32 0.2, %v6471_v17  ;;  %v13896_v31 = vadd.f32 %v6299_v3, %v17472_v0 }
 0x4c1   : > { %v6568_v54 = vsel %vm6504_vm8, %v6472_v62, %v6536_v28  ;;  %v6474_v11 = vadd.f32 %v13895_v44, %v17814_v12  ;;  %v17861_v62 = vld [vmem:[#allocation4 + $0x30] sm:$0xff] }
 0x4c2   : > { %6601 = vst.msk [vmem:[#allocation4 + $0x70] sm:$0xff] %vm380_vm1, %v6568_v54  ;;  %v6567_v21 = vsel %vm6503_vm9, %v6471_v17, %v6535_v4  ;;  %v6473_v52 = vadd.f32 %v13896_v31, %v17814_v12  ;;  %v13303_v15 = vpop.f32.mrb[8].mxu0  ;;  %v17853_v47 = vld [vmem:[#allocation4 + $0x28] sm:$0xff]  ;;  %v17863_v17 = vpop.f32.mrb[57].mxu1 }
 0x4c3   : > { %6600 = vst.msk [vmem:[#allocation4 + $0x68] sm:$0xff] %vm380_vm1, %v6567_v21  ;;  %vm6506_vm10 = vcmp.ge.f32.partialorder %v6474_v11, 0.0  ;;  %v6538_v25 = vmul.f32 0.2, %v6474_v11  ;;  %v13897_v49 = vadd.f32 %v13303_v15, %v17476_v38  ;;  %v6309_v0 = vpop.f32.mrb[9].mxu0  ;;  %13442 = vmatprep.mubr.msk.f32.mxu1 %vm380_vm1, %v17853_v47  ;;  %19747 = vst [vmem:[#allocation71_spill] sm:$0xff] %v17863_v17 }
 0x4c4   : > { %vm6505_vm11 = vcmp.ge.f32.partialorder %v6473_v52, 0.0  ;;  %v6537_v5 = vmul.f32 0.2, %v6473_v52  ;;  %v13898_v28 = vadd.f32 %v6309_v0, %v17478_v13  ;;  %13443 = vmatmul.mubr.msk.f32.gmra.mrb[66].mxu1 %vm380_vm1, %v17861_v62  ;;  %v17873_v21 = vpop.f32.mrb[58].mxu1 }
 0x4c5   : > { %v6570_v44 = vsel %vm6506_vm10, %v6474_v11, %v6538_v25  ;;  %v6476_v3 = vadd.f32 %v13897_v49, %v17814_v12  ;;  %19748 = vst [vmem:[#allocation72_spill] sm:$0xff] %v17873_v21  ;;  %v17879_v11 = vld [vmem:[#allocation4 + $0x50] sm:$0xff] }
 0x4c6   : > { %6603 = vst.msk [vmem:[#allocation4 + $0x90] sm:$0xff] %vm380_vm1, %v6570_v44  ;;  %v6569_v38 = vsel %vm6505_vm11, %v6473_v52, %v6537_v5  ;;  %v6475_v4 = vadd.f32 %v13898_v28, %v17814_v12  ;;  %v13306_v31 = vpop.f32.mrb[10].mxu0  ;;  %v17871_v54 = vld [vmem:[#allocation4 + $0x48] sm:$0xff]  ;;  %v17881_v52 = vpop.f32.mrb[59].mxu1 }
 0x4c7   : > { %6602 = vst.msk [vmem:[#allocation4 + $0x88] sm:$0xff] %vm380_vm1, %v6569_v38  ;;  %vm6508_vm12 = vcmp.ge.f32.partialorder %v6476_v3, 0.0  ;;  %v6540_v13 = vmul.f32 0.2, %v6476_v3  ;;  %v13899_v15 = vadd.f32 %v13306_v31, %v17484_v41  ;;  %v6319_v0 = vpop.f32.mrb[11].mxu0  ;;  %13445 = vmatprep.mubr.msk.f32.mxu1 %vm380_vm1, %v17871_v54  ;;  %19749 = vst [vmem:[#allocation73_spill] sm:$0xff] %v17881_v52 }
 0x4c8   : > { %vm6507_vm13 = vcmp.ge.f32.partialorder %v6475_v4, 0.0  ;;  %v6539_v25 = vmul.f32 0.2, %v6475_v4  ;;  %v13900_v49 = vadd.f32 %v6319_v0, %v17491_v33  ;;  %13446 = vmatmul.mubr.msk.f32.gmra.mrb[68].mxu1 %vm380_vm1, %v17879_v11  ;;  %v17891_v21 = vpop.f32.mrb[60].mxu1 }
 0x4c9   : > { %v6572_v5 = vsel %vm6508_vm12, %v6476_v3, %v6540_v13  ;;  %v6478_v28 = vadd.f32 %v13899_v15, %v17814_v12  ;;  %19750 = vst [vmem:[#allocation74_spill] sm:$0xff] %v17891_v21  ;;  %v17897_v3 = vld [vmem:[#allocation4 + $0x70] sm:$0xff] }
 0x4ca   : > { %6605 = vst.msk [vmem:[#allocation4 + $0xb0] sm:$0xff] %vm380_vm1, %v6572_v5  ;;  %v6571_v41 = vsel %vm6507_vm13, %v6475_v4, %v6539_v25  ;;  %v6477_v44 = vadd.f32 %v13900_v49, %v17814_v12  ;;  %v13309_v38 = vpop.f32.mrb[12].mxu0  ;;  %v17889_v31 = vld [vmem:[#allocation4 + $0x68] sm:$0xff]  ;;  %v17899_v4 = vpop.f32.mrb[61].mxu1 }
 0x4cb   : > { %6604 = vst.msk [vmem:[#allocation4 + $0xa8] sm:$0xff] %vm380_vm1, %v6571_v41  ;;  %vm6510_vm14 = vcmp.ge.f32.partialorder %v6478_v28, 0.0  ;;  %v6542_v33 = vmul.f32 0.2, %v6478_v28  ;;  %v13901_v0 = vadd.f32 %v13309_v38, %v17498_v43  ;;  %v6329_v52 = vpop.f32.mrb[13].mxu0  ;;  %13448 = vmatprep.mubr.msk.f32.mxu1 %vm380_vm1, %v17889_v31  ;;  %19751 = vst [vmem:[#allocation75_spill] sm:$0xff] %v17899_v4 }
 0x4cc   : > { %vm6509_vm15 = vcmp.ge.f32.partialorder %v6477_v44, 0.0  ;;  %v6541_v13 = vmul.f32 0.2, %v6477_v44  ;;  %v13902_v15 = vadd.f32 %v6329_v52, %v17501_v60  ;;  %13449 = vmatmul.mubr.msk.f32.gmra.mrb[70].mxu1 %vm380_vm1, %v17897_v3  ;;  %v17909_v21 = vpop.f32.mrb[62].mxu1 }
 0x4cd   : > { %v6574_v25 = vsel %vm6510_vm14, %v6478_v28, %v6542_v33  ;;  %v6480_v49 = vadd.f32 %v13901_v0, %v17814_v12  ;;  %19752 = vst [vmem:[#allocation76_spill] sm:$0xff] %v17909_v21  ;;  %v17915_v28 = vld [vmem:[#allocation4 + $0x90] sm:$0xff] }
 0x4ce   : > { %6607 = vst.msk [vmem:[#allocation4 + $0xd0] sm:$0xff] %vm380_vm1, %v6574_v25  ;;  %v6573_v43 = vsel %vm6509_vm15, %v6477_v44, %v6541_v13  ;;  %v6479_v5 = vadd.f32 %v13902_v15, %v17814_v12  ;;  %v13312_v41 = vpop.f32.mrb[14].mxu0  ;;  %v17907_v38 = vld [vmem:[#allocation4 + $0x88] sm:$0xff]  ;;  %v17917_v44 = vpop.f32.mrb[63].mxu1 }
 0x4cf   : > { %6606 = vst.msk [vmem:[#allocation4 + $0xc8] sm:$0xff] %vm380_vm1, %v6573_v43  ;;  %vm6512_vm4 = vcmp.ge.f32.partialorder %v6480_v49, 0.0  ;;  %v6544_v60 = vmul.f32 0.2, %v6480_v49  ;;  %v13903_v52 = vadd.f32 %v13312_v41, %v17507_v6  ;;  %v6339_v4 = vpop.f32.mrb[15].mxu0  ;;  %13451 = vmatprep.mubr.msk.f32.mxu1 %vm380_vm1, %v17907_v38  ;;  %19753 = vst [vmem:[#allocation77_spill] sm:$0xff] %v17917_v44 }
 0x4d0   : > { %vm6511_vm5 = vcmp.ge.f32.partialorder %v6479_v5, 0.0  ;;  %v6543_v33 = vmul.f32 0.2, %v6479_v5  ;;  %v13904_v0 = vadd.f32 %v6339_v4, %v17513_v2  ;;  %13452 = vmatmul.mubr.msk.f32.gmra.mrb[72].mxu1 %vm380_vm1, %v17915_v28 }
 0x4d1   : > { %v6576_v13 = vsel %vm6512_vm4, %v6480_v49, %v6544_v60  ;;  %v6482_v15 = vadd.f32 %v13903_v52, %v17814_v12  ;;  %v17931_v49 = vld [vmem:[#allocation4 + $0xb0] sm:$0xff] }
 0x4d2   : > { %6609 = vst.msk [vmem:[#allocation4 + $0xf0] sm:$0xff] %vm380_vm1, %v6576_v13  ;;  %v6575_v6 = vsel %vm6511_vm5, %v6479_v5, %v6543_v33  ;;  %v6481_v25 = vadd.f32 %v13904_v0, %v17814_v12  ;;  %v13315_v43 = vpop.f32.mrb[16].mxu0  ;;  %v17925_v41 = vld [vmem:[#allocation4 + $0xa8] sm:$0xff] }
 0x4d3   : > { %6608 = vst.msk [vmem:[#allocation4 + $0xe8] sm:$0xff] %vm380_vm1, %v6575_v6  ;;  %vm6514_vm6 = vcmp.ge.f32.partialorder %v6482_v15, 0.0  ;;  %v6546_v44 = vmul.f32 0.2, %v6482_v15  ;;  %v13905_v2 = vadd.f32 %v13315_v43, %v17543_v22  ;;  %v6349_v4 = vpop.f32.mrb[17].mxu0  ;;  %13454 = vmatprep.mubr.msk.f32.mxu1 %vm380_vm1, %v17925_v41 }
 0x4d4   : > { %vm6513_vm7 = vcmp.ge.f32.partialorder %v6481_v25, 0.0  ;;  %v6545_v60 = vmul.f32 0.2, %v6481_v25  ;;  %v13906_v5 = vadd.f32 %v6349_v4, %v17546_v58  ;;  %13455 = vmatmul.mubr.msk.f32.gmra.mrb[74].mxu1 %vm380_vm1, %v17931_v49 }
 0x4d5   : > { %v6578_v52 = vsel %vm6514_vm6, %v6482_v15, %v6546_v44  ;;  %v6484_v33 = vadd.f32 %v13905_v2, %v17814_v12  ;;  %v17945_v44 = vld [vmem:[#allocation4 + $0xd0] sm:$0xff] }
 0x4d6   : > { %6611 = vst.msk [vmem:[#allocation4 + $0x110] sm:$0xff] %vm380_vm1, %v6578_v52  ;;  %v6577_v0 = vsel %vm6513_vm7, %v6481_v25, %v6545_v60  ;;  %v6483_v22 = vadd.f32 %v13906_v5, %v17814_v12  ;;  %v13318_v13 = vpop.f32.mrb[18].mxu0  ;;  %v17939_v6 = vld [vmem:[#allocation4 + $0xc8] sm:$0xff] }
 0x4d7   : > { %6610 = vst.msk [vmem:[#allocation4 + $0x108] sm:$0xff] %vm380_vm1, %v6577_v0  ;;  %vm6516_vm8 = vcmp.ge.f32.partialorder %v6484_v33, 0.0  ;;  %v6548_v43 = vmul.f32 0.2, %v6484_v33  ;;  %v13907_v58 = vadd.f32 %v13318_v13, %v17555_v63  ;;  %v6359_v4 = vpop.f32.mrb[19].mxu0  ;;  %13457 = vmatprep.mubr.msk.f32.mxu1 %vm380_vm1, %v17939_v6 }
 0x4d8   : > { %vm6515_vm9 = vcmp.ge.f32.partialorder %v6483_v22, 0.0  ;;  %v6547_v15 = vmul.f32 0.2, %v6483_v22  ;;  %v13908_v25 = vadd.f32 %v6359_v4, %v17558_v48  ;;  %13458 = vmatmul.mubr.msk.f32.gmra.mrb[76].mxu1 %vm380_vm1, %v17945_v44 }
 0x4d9   : > { %v6580_v2 = vsel %vm6516_vm8, %v6484_v33, %v6548_v43  ;;  %v6486_v60 = vadd.f32 %v13907_v58, %v17814_v12  ;;  %v17959_v33 = vld [vmem:[#allocation4 + $0xf0] sm:$0xff] }
 0x4da   : > { %6613 = vst.msk [vmem:[#allocation4 + $0x130] sm:$0xff] %vm380_vm1, %v6580_v2  ;;  %v6579_v5 = vsel %vm6515_vm9, %v6483_v22, %v6547_v15  ;;  %v6485_v63 = vadd.f32 %v13908_v25, %v17814_v12  ;;  %v13321_v52 = vpop.f32.mrb[20].mxu0  ;;  %v17953_v0 = vld [vmem:[#allocation4 + $0xe8] sm:$0xff] }
 0x4db   : > { %6612 = vst.msk [vmem:[#allocation4 + $0x128] sm:$0xff] %vm380_vm1, %v6579_v5  ;;  %vm6518_vm10 = vcmp.ge.f32.partialorder %v6486_v60, 0.0  ;;  %v6550_v13 = vmul.f32 0.2, %v6486_v60  ;;  %v13909_v48 = vadd.f32 %v13321_v52, %v17567_v55  ;;  %v6369_v4 = vpop.f32.mrb[21].mxu0  ;;  %13460 = vmatprep.mubr.msk.f32.mxu1 %vm380_vm1, %v17953_v0 }
 0x4dc   : > { %vm6517_vm11 = vcmp.ge.f32.partialorder %v6485_v63, 0.0  ;;  %v6549_v43 = vmul.f32 0.2, %v6485_v63  ;;  %v13910_v22 = vadd.f32 %v6369_v4, %v17570_v19  ;;  %13461 = vmatmul.mubr.msk.f32.gmra.mrb[78].mxu1 %vm380_vm1, %v17959_v33 }
 0x4dd   : > { %v6582_v58 = vsel %vm6518_vm10, %v6486_v60, %v6550_v13  ;;  %v6488_v15 = vadd.f32 %v13909_v48, %v17814_v12  ;;  %v17973_v60 = vld [vmem:[#allocation4 + $0x110] sm:$0xff] }
 0x4de   : > { %6615 = vst.msk [vmem:[#allocation4 + $0x150] sm:$0xff] %vm380_vm1, %v6582_v58  ;;  %v6581_v25 = vsel %vm6517_vm11, %v6485_v63, %v6549_v43  ;;  %v6487_v55 = vadd.f32 %v13910_v22, %v17814_v12  ;;  %v13324_v2 = vpop.f32.mrb[22].mxu0  ;;  %v17967_v5 = vld [vmem:[#allocation4 + $0x108] sm:$0xff] }
 0x4df   : > { %6614 = vst.msk [vmem:[#allocation4 + $0x148] sm:$0xff] %vm380_vm1, %v6581_v25  ;;  %vm6520_vm12 = vcmp.ge.f32.partialorder %v6488_v15, 0.0  ;;  %v6552_v52 = vmul.f32 0.2, %v6488_v15  ;;  %v13911_v19 = vadd.f32 %v13324_v2, %v17579_v14  ;;  %v6379_v4 = vpop.f32.mrb[23].mxu0  ;;  %13463 = vmatprep.mubr.msk.f32.mxu1 %vm380_vm1, %v17967_v5 }
 0x4e0   : > { %vm6519_vm13 = vcmp.ge.f32.partialorder %v6487_v55, 0.0  ;;  %v6551_v13 = vmul.f32 0.2, %v6487_v55  ;;  %v13912_v63 = vadd.f32 %v6379_v4, %v17582_v46  ;;  %13464 = vmatmul.mubr.msk.f32.gmra.mrb[80].mxu1 %vm380_vm1, %v17973_v60 }
 0x4e1   : > { %v6584_v48 = vsel %vm6520_vm12, %v6488_v15, %v6552_v52  ;;  %v6490_v43 = vadd.f32 %v13911_v19, %v17814_v12  ;;  %v17987_v15 = vld [vmem:[#allocation4 + $0x130] sm:$0xff] }
 0x4e2   : > { %6617 = vst.msk [vmem:[#allocation4 + $0x170] sm:$0xff] %vm380_vm1, %v6584_v48  ;;  %v6583_v22 = vsel %vm6519_vm13, %v6487_v55, %v6551_v13  ;;  %v6489_v14 = vadd.f32 %v13912_v63, %v17814_v12  ;;  %v13327_v58 = vpop.f32.mrb[24].mxu0  ;;  %v17981_v25 = vld [vmem:[#allocation4 + $0x128] sm:$0xff] }
 0x4e3   : > { %6616 = vst.msk [vmem:[#allocation4 + $0x168] sm:$0xff] %vm380_vm1, %v6583_v22  ;;  %vm6522_vm14 = vcmp.ge.f32.partialorder %v6490_v43, 0.0  ;;  %v6554_v2 = vmul.f32 0.2, %v6490_v43  ;;  %v13913_v46 = vadd.f32 %v13327_v58, %v17591_v39  ;;  %v6389_v4 = vpop.f32.mrb[25].mxu0  ;;  %13466 = vmatprep.mubr.msk.f32.mxu1 %vm380_vm1, %v17981_v25 }
 0x4e4   : > { %vm6521_vm15 = vcmp.ge.f32.partialorder %v6489_v14, 0.0  ;;  %v6553_v52 = vmul.f32 0.2, %v6489_v14  ;;  %v13914_v55 = vadd.f32 %v6389_v4, %v17595_v20  ;;  %13467 = vmatmul.mubr.msk.f32.gmra.mrb[82].mxu1 %vm380_vm1, %v17987_v15 }
 0x4e5   : > { %v6586_v19 = vsel %vm6522_vm14, %v6490_v43, %v6554_v2  ;;  %v6492_v13 = vadd.f32 %v13913_v46, %v17814_v12  ;;  %v18001_v43 = vld [vmem:[#allocation4 + $0x150] sm:$0xff] }
 0x4e6   : > { %6619 = vst.msk [vmem:[#allocation4 + $0x190] sm:$0xff] %vm380_vm1, %v6586_v19  ;;  %v6585_v63 = vsel %vm6521_vm15, %v6489_v14, %v6553_v52  ;;  %v6491_v39 = vadd.f32 %v13914_v55, %v17814_v12  ;;  %v13330_v48 = vpop.f32.mrb[26].mxu0  ;;  %v17995_v22 = vld [vmem:[#allocation4 + $0x148] sm:$0xff] }
 0x4e7   : > { %6618 = vst.msk [vmem:[#allocation4 + $0x188] sm:$0xff] %vm380_vm1, %v6585_v63  ;;  %vm6524_vm4 = vcmp.ge.f32.partialorder %v6492_v13, 0.0  ;;  %v6556_v58 = vmul.f32 0.2, %v6492_v13  ;;  %v13915_v20 = vadd.f32 %v13330_v48, %v17604_v29  ;;  %v6399_v4 = vpop.f32.mrb[27].mxu0  ;;  %13469 = vmatprep.mubr.msk.f32.mxu1 %vm380_vm1, %v17995_v22 }
 0x4e8   : > { %vm6523_vm5 = vcmp.ge.f32.partialorder %v6491_v39, 0.0  ;;  %v6555_v2 = vmul.f32 0.2, %v6491_v39  ;;  %v13916_v14 = vadd.f32 %v6399_v4, %v17607_v9  ;;  %13470 = vmatmul.mubr.msk.f32.gmra.mrb[84].mxu1 %vm380_vm1, %v18001_v43 }
 0x4e9   : > { %v6588_v46 = vsel %vm6524_vm4, %v6492_v13, %v6556_v58  ;;  %v6494_v52 = vadd.f32 %v13915_v20, %v17814_v12  ;;  %v18015_v13 = vld [vmem:[#allocation4 + $0x170] sm:$0xff] }
 0x4ea   : > { %6621 = vst.msk [vmem:[#allocation4 + $0x1b0] sm:$0xff] %vm380_vm1, %v6588_v46  ;;  %v6587_v55 = vsel %vm6523_vm5, %v6491_v39, %v6555_v2  ;;  %v6493_v29 = vadd.f32 %v13916_v14, %v17814_v12  ;;  %v13333_v19 = vpop.f32.mrb[28].mxu0  ;;  %v18009_v63 = vld [vmem:[#allocation4 + $0x168] sm:$0xff] }
 0x4eb   : > { %6620 = vst.msk [vmem:[#allocation4 + $0x1a8] sm:$0xff] %vm380_vm1, %v6587_v55  ;;  %vm6526_vm6 = vcmp.ge.f32.partialorder %v6494_v52, 0.0  ;;  %v6558_v48 = vmul.f32 0.2, %v6494_v52  ;;  %v13917_v9 = vadd.f32 %v13333_v19, %v17616_v42  ;;  %v6409_v4 = vpop.f32.mrb[29].mxu0  ;;  %13472 = vmatprep.mubr.msk.f32.mxu1 %vm380_vm1, %v18009_v63 }
 0x4ec   : > { %vm6525_vm7 = vcmp.ge.f32.partialorder %v6493_v29, 0.0  ;;  %v6557_v58 = vmul.f32 0.2, %v6493_v29  ;;  %v13918_v39 = vadd.f32 %v6409_v4, %v17619_v32  ;;  %13473 = vmatmul.mubr.msk.f32.gmra.mrb[86].mxu1 %vm380_vm1, %v18015_v13 }
 0x4ed   : > { %v6590_v20 = vsel %vm6526_vm6, %v6494_v52, %v6558_v48  ;;  %v6496_v2 = vadd.f32 %v13917_v9, %v17814_v12  ;;  %v18029_v52 = vld [vmem:[#allocation4 + $0x190] sm:$0xff] }
 0x4ee   : > { %6623 = vst.msk [vmem:[#allocation4 + $0x1d0] sm:$0xff] %vm380_vm1, %v6590_v20  ;;  %v6589_v14 = vsel %vm6525_vm7, %v6493_v29, %v6557_v58  ;;  %v6495_v42 = vadd.f32 %v13918_v39, %v17814_v12  ;;  %v13336_v46 = vpop.f32.mrb[30].mxu0  ;;  %v18023_v55 = vld [vmem:[#allocation4 + $0x188] sm:$0xff] }
 0x4ef   : > { %6622 = vst.msk [vmem:[#allocation4 + $0x1c8] sm:$0xff] %vm380_vm1, %v6589_v14  ;;  %vm6528_vm8 = vcmp.ge.f32.partialorder %v6496_v2, 0.0  ;;  %v6560_v19 = vmul.f32 0.2, %v6496_v2  ;;  %v13919_v32 = vadd.f32 %v13336_v46, %v17628_v23  ;;  %v6419_v4 = vpop.f32.mrb[31].mxu0  ;;  %13475 = vmatprep.mubr.msk.f32.mxu1 %vm380_vm1, %v18023_v55  ;;  %v7381_v46 = vld [vmem:[#allocation4] sm:$0xff] }
 0x4f0   : > { %vm6527_vm9 = vcmp.ge.f32.partialorder %v6495_v42, 0.0  ;;  %v6559_v48 = vmul.f32 0.2, %v6495_v42  ;;  %v13920_v29 = vadd.f32 %v6419_v4, %v17631_v27  ;;  %13476 = vmatmul.mubr.msk.f32.gmra.mrb[88].mxu1 %vm380_vm1, %v18029_v52  ;;  %v7501_v4 = vrot.slane %v7381_v46, 7 }
 0x4f1   : > { %v6592_v9 = vsel %vm6528_vm8, %v6496_v2, %v6560_v19  ;;  %v6498_v58 = vadd.f32 %v13919_v32, %v17814_v12  ;;  %v18042_v27 = vld [vmem:[#allocation4 + $0x1b0] sm:$0xff] }
 0x4f2   : > { %6625 = vst.msk [vmem:[#allocation4 + $0x1f0] sm:$0xff] %vm380_vm1, %v6592_v9  ;;  %v6591_v39 = vsel %vm6527_vm9, %v6495_v42, %v6559_v48  ;;  %v6497_v23 = vadd.f32 %v13920_v29, %v17814_v12  ;;  %v18037_v20 = vld [vmem:[#allocation4 + $0x1a8] sm:$0xff]  ;;  %v7502_v12 = vrot.slane %v17759_v40, 7  ;;  %v7504_v29 = vrot.slane %v17763_v1, 7  ;;  %v7385_v9 = vld [vmem:[#allocation4 + $0x20] sm:$0xff] }
 0x4f3   : > { %6624 = vst.msk [vmem:[#allocation4 + $0x1e8] sm:$0xff] %vm380_vm1, %v6591_v39  ;;  %vm6530_vm10 = vcmp.ge.f32.partialorder %v6498_v58, 0.0  ;;  %v6562_v14 = vmul.f32 0.2, %v6498_v58  ;;  %13478 = vmatprep.mubr.msk.f32.mxu1 %vm380_vm1, %v18037_v20  ;;  %v7506_v46 = vrot.slane %v7385_v9, 7  ;;  %v7512_v9 = vrot.slane %v17871_v54, 7 }
 0x4f4   : > { %vm6529_vm11 = vcmp.ge.f32.partialorder %v6497_v23, 0.0  ;;  %v6561_v2 = vmul.f32 0.2, %v6497_v23  ;;  %13479 = vmatmul.mubr.msk.f32.gmra.mrb[90].mxu1 %vm380_vm1, %v18042_v27  ;;  %v7503_v39 = vsel %vm919_vm3, %v7501_v4, %v7502_v12  ;;  %v18074_v4 = vld [vmem:[%s19062_s5 + $0xc] sm:$0xf] }
 0x4f5   : > { %v6594_v42 = vsel %vm6530_vm10, %v6498_v58, %v6562_v14  ;;  %v18053_v48 = vld [vmem:[#allocation4 + $0x1d0] sm:$0xff]  ;;  %v7507_v14 = vrot.slane %v17853_v47, 7 }
 0x4f6   : > { %6627 = vst.msk [vmem:[#allocation4 + $0x210] sm:$0xff] %vm380_vm1, %v6594_v42  ;;  %v6593_v19 = vsel %vm6529_vm11, %v6497_v23, %v6561_v2  ;;  %v18048_v32 = vld [vmem:[#allocation4 + $0x1c8] sm:$0xff]  ;;  %v7505_v2 = vsel %vm919_vm3, %v7502_v12, %v7504_v29  ;;  %v7389_v42 = vld [vmem:[#allocation4 + $0x40] sm:$0xff] }
 0x4f7   : > { %6626 = vst.msk [vmem:[#allocation4 + $0x208] sm:$0xff] %vm380_vm1, %v6593_v19  ;;  %13481 = vmatprep.mubr.msk.f32.mxu1 %vm380_vm1, %v18048_v32  ;;  %v7509_v19 = vrot.slane %v17861_v62, 7  ;;  %v18078_v21 = vsel %vm919_vm3, %v7506_v46, %v7507_v14  ;;  %v7511_v17 = vrot.slane %v7389_v42, 7  ;;  %v7393_v12 = vld [vmem:[#allocation4 + $0x60] sm:$0xff] }
 0x4f8   : > { %13482 = vmatmul.mubr.msk.f32.gmra.mrb[92].mxu1 %vm380_vm1, %v18053_v48  ;;  %v7397_v42 = vld [vmem:[#allocation4 + $0x80] sm:$0xff] }
 0x4f9   : > { %v18063_v23 = vld [vmem:[#allocation4 + $0x1f0] sm:$0xff]  ;;  %v18088_v29 = vsel %vm919_vm3, %v7507_v14, %v7509_v19  ;;  %v18094_v46 = vsel %vm919_vm3, %v7511_v17, %v7512_v9  ;;  %v7519_v14 = vrot.slane %v17897_v3, 7  ;;  %v7521_v17 = vrot.slane %v7397_v42, 7 }
 0x4fa   : > { %v18058_v58 = vld [vmem:[#allocation4 + $0x1e8] sm:$0xff]  ;;  %v7527_v42 = vrot.slane %v17925_v41, 7 }
 0x4fb   : > { %13484 = vmatprep.mubr.msk.f32.mxu1 %vm380_vm1, %v18058_v58 }
 0x4fc   : > { %13485 = vmatmul.mubr.msk.f32.gmra.mrb[94].mxu1 %vm380_vm1, %v18063_v23 }
 0x4fd   : > { %13489 = vmatprep.mubr.msk.f32.mxu1 %vm380_vm1, %v7503_v39  ;;  %v7514_v39 = vrot.slane %v17879_v11, 7 }
 0x4ff   : > { %v18100_v50 = vsel %vm919_vm3, %v7512_v9, %v7514_v39  ;;  %v7524_v9 = vrot.slane %v17915_v28, 7 }
 0x500   : > { %13490 = vmatmul.mubr.msk.f32.vlgmr.msra.gmra.mrb[64].mxu1 %vm380_vm1, %v7505_v2  ;;  %v7516_v2 = vrot.slane %v7393_v12, 7  ;;  %v7522_v12 = vrot.slane %v17907_v38, 7 }
 0x501   : > { %13538 = vmatpush3.msk.msra.mxu1 %vm1194_vm0, %v17775_v56  ;;  %13492 = vmatprep.mubr.msk.f32.mxu1 %vm380_vm1, %v18078_v21  ;;  %v7517_v56 = vrot.slane %v17889_v31, 7 }
 0x502   : > { %13587 = vmatprep.subr.msk.mxu1 %vm1194_vm0, %v18074_v4  ;;  %v18118_v39 = vsel %vm919_vm3, %v7521_v17, %v7522_v12  ;;  %v18124_v36 = vsel %vm919_vm3, %v7522_v12, %v7524_v9  ;;  %v7531_v17 = vrot.slane %v7405_v34, 7  ;;  %v7534_v12 = vrot.slane %v17945_v44, 7 }
 0x503   : > { %v18106_v19 = vsel %vm919_vm3, %v7516_v2, %v7517_v56  ;;  %v18112_v26 = vsel %vm919_vm3, %v7517_v56, %v7519_v14  ;;  %v7526_v2 = vrot.slane %v7401_v30, 7  ;;  %v7529_v56 = vrot.slane %v17931_v49, 7 }
 0x504   : > { %13493 = vmatmul.mubr.msk.f32.gmra.mrb[66].mxu1 %vm380_vm1, %v18088_v29  ;;  %v7532_v30 = vrot.slane %v17939_v6, 7  ;;  %v7537_v34 = vrot.slane %v17953_v0, 7 }
 0x505   : > { %13495 = vmatprep.mubr.msk.f32.mxu1 %vm380_vm1, %v18094_v46  ;;  %v18130_v14 = vsel %vm919_vm3, %v7526_v2, %v7527_v42  ;;  %v18136_v24 = vsel %vm919_vm3, %v7527_v42, %v7529_v56  ;;  %v7536_v2 = vrot.slane %v7409_v37, 7  ;;  %v7539_v42 = vrot.slane %v17959_v33, 7 }
 0x506   : > { %v18142_v9 = vsel %vm919_vm3, %v7531_v17, %v7532_v30  ;;  %v18148_v16 = vsel %vm919_vm3, %v7532_v30, %v7534_v12  ;;  %v7541_v17 = vrot.slane %v7413_v59, 7  ;;  %v7542_v37 = vrot.slane %v17967_v5, 7 }
 0x507   : > { %v18154_v56 = vsel %vm919_vm3, %v7536_v2, %v7537_v34  ;;  %v18160_v7 = vsel %vm919_vm3, %v7537_v34, %v7539_v42  ;;  %v7544_v30 = vrot.slane %v17973_v60, 7  ;;  %v7546_v2 = vrot.slane %v7417_v8, 7 }
 0x508   : > { %13496 = vmatmul.mubr.msk.f32.gmra.mrb[68].mxu1 %vm380_vm1, %v18100_v50  ;;  %v18166_v12 = vsel %vm919_vm3, %v7541_v17, %v7542_v37  ;;  %v7547_v59 = vrot.slane %v17981_v25, 7  ;;  %v7549_v34 = vrot.slane %v17987_v15, 7  ;;  %v7551_v17 = vrot.slane %v7421_v45, 7 }
 0x509   : > { %13498 = vmatprep.mubr.msk.f32.mxu1 %vm380_vm1, %v18106_v19  ;;  %v18172_v51 = vsel %vm919_vm3, %v7542_v37, %v7544_v30  ;;  %v7552_v8 = vrot.slane %v17995_v22, 7  ;;  %v7554_v37 = vrot.slane %v18001_v43, 7  ;;  %v7557_v45 = vrot.slane %v18009_v63, 7 }
 0x50a   : > { %v18178_v42 = vsel %vm919_vm3, %v7546_v2, %v7547_v59  ;;  %v18184_v61 = vsel %vm919_vm3, %v7547_v59, %v7549_v34  ;;  %v7556_v2 = vrot.slane %v7425_v57, 7  ;;  %v7559_v59 = vrot.slane %v18015_v13, 7 }
 0x50b   : > { %v18190_v30 = vsel %vm919_vm3, %v7551_v17, %v7552_v8  ;;  %v18196_v35 = vsel %vm919_vm3, %v7552_v8, %v7554_v37  ;;  %v7561_v17 = vrot.slane %v7429_v18, 7  ;;  %v7562_v57 = vrot.slane %v18023_v55, 7 }
 0x50c   : > { %13499 = vmatmul.mubr.msk.f32.gmra.mrb[70].mxu1 %vm380_vm1, %v18112_v26  ;;  %19754 = vst [vmem:[#allocation78_spill] sm:$0xff] %v18190_v30  ;;  %19755 = vst [vmem:[#allocation79_spill] sm:$0xff] %v18196_v35  ;;  %v18202_v34 = vsel %vm919_vm3, %v7556_v2, %v7557_v45  ;;  %v18208_v53 = vsel %vm919_vm3, %v7557_v45, %v7559_v59  ;;  %v7564_v8 = vrot.slane %v18029_v52, 7  ;;  %v7566_v2 = vrot.slane %v7433_v10, 7 }
 0x50d   : > { %13501 = vmatprep.mubr.msk.f32.mxu1 %vm380_vm1, %v18118_v39  ;;  %19756 = vst [vmem:[#allocation80_spill] sm:$0xff] %v18202_v34  ;;  %19757 = vst [vmem:[#allocation81_spill] sm:$0xff] %v18208_v53  ;;  %v18214_v37 = vsel %vm919_vm3, %v7561_v17, %v7562_v57  ;;  %v7567_v18 = vrot.slane %v18037_v20, 7  ;;  %v7569_v45 = vrot.slane %v18042_v27, 7  ;;  %v7572_v10 = vrot.slane %v18048_v32, 7 }
 0x50e   : > { %19758 = vst [vmem:[#allocation82_spill] sm:$0xff] %v18214_v37 }
 0x50f   : > { %v18226_v59 = vsel %vm919_vm3, %v7566_v2, %v7567_v18 }
 0x510   : > { %13502 = vmatmul.mubr.msk.f32.gmra.mrb[72].mxu1 %vm380_vm1, %v18124_v36  ;;  %19760 = vst [vmem:[#allocation84_spill] sm:$0xff] %v18226_v59 }
 0x511   : > { %13504 = vmatprep.mubr.msk.f32.mxu1 %vm380_vm1, %v18130_v14 }
 0x514   : > { %13505 = vmatmul.mubr.msk.f32.gmra.mrb[74].mxu1 %vm380_vm1, %v18136_v24 }
 0x515   : > { %13507 = vmatprep.mubr.msk.f32.mxu1 %vm380_vm1, %v18142_v9 }
 0x518   : > { %13508 = vmatmul.mubr.msk.f32.gmra.mrb[76].mxu1 %vm380_vm1, %v18148_v16 }
 0x519   : > { %13510 = vmatprep.mubr.msk.f32.mxu1 %vm380_vm1, %v18154_v56 }
 0x51c   : > { %13511 = vmatmul.mubr.msk.f32.gmra.mrb[78].mxu1 %vm380_vm1, %v18160_v7 }
 0x51d   : > { %13513 = vmatprep.mubr.msk.f32.mxu1 %vm380_vm1, %v18166_v12 }
 0x520   : > { %13514 = vmatmul.mubr.msk.f32.gmra.mrb[80].mxu1 %vm380_vm1, %v18172_v51 }
 0x521   : > { %13516 = vmatprep.mubr.msk.f32.mxu1 %vm380_vm1, %v18178_v42 }
 0x524   : > { %13517 = vmatmul.mubr.msk.f32.gmra.mrb[82].mxu1 %vm380_vm1, %v18184_v61 }
 0x525   : > { %13519 = vmatprep.mubr.msk.f32.mxu1 %vm380_vm1, %v18190_v30  ;;  %v7579_v30 = vrot.slane %v18063_v23, 7 }
 0x528   : > { %13520 = vmatmul.mubr.msk.f32.gmra.mrb[84].mxu1 %vm380_vm1, %v18196_v35  ;;  %v7437_v35 = vld [vmem:[#allocation4 + $0x1c0] sm:$0xff] }
 0x529   : > { %13522 = vmatprep.mubr.msk.f32.mxu1 %vm380_vm1, %v18202_v34  ;;  %v18220_v34 = vsel %vm919_vm3, %v7562_v57, %v7564_v8  ;;  %v7571_v17 = vrot.slane %v7437_v35, 7  ;;  %v7574_v57 = vrot.slane %v18053_v48, 7  ;;  %v7577_v35 = vrot.slane %v18058_v58, 7 }
 0x52a   : > { %19759 = vst [vmem:[#allocation83_spill] sm:$0xff] %v18220_v34 }
 0x52b   : > { %v18238_v8 = vsel %vm919_vm3, %v7571_v17, %v7572_v10 }
 0x52c   : > { %13523 = vmatmul.mubr.msk.f32.gmra.mrb[86].mxu1 %vm380_vm1, %v18208_v53  ;;  %v7441_v53 = vld [vmem:[#allocation4 + $0x1e0] sm:$0xff]  ;;  %19761 = vst [vmem:[#allocation85_spill] sm:$0xff] %v18238_v8 }
 0x52d   : > { %13525 = vmatprep.mubr.msk.f32.mxu1 %vm380_vm1, %v18214_v37  ;;  %v18232_v37 = vsel %vm919_vm3, %v7567_v18, %v7569_v45  ;;  %v7576_v2 = vrot.slane %v7441_v53, 7  ;;  %v7384_v18 = vld [vmem:[#allocation4 + $0x18] sm:$0xff]  ;;  %v18246_v45 = vsel %vm919_vm3, %v7572_v10, %v7574_v57  ;;  %v8189_v10 = vrot.slane %v17853_v47, 1 }
 0x52e   : > { %19762 = vst [vmem:[#allocation86_spill] sm:$0xff] %v18246_v45  ;;  %v8187_v17 = vrot.slane %v7384_v18, 1  ;;  %v8190_v57 = vrot.slane %v17861_v62, 1  ;;  %v8194_v62 = vrot.slane %v17871_v54, 1 }
 0x52f   : > { %v18252_v53 = vsel %vm919_vm3, %v7576_v2, %v7577_v35 }
 0x530   : > { %13526 = vmatmul.mubr.msk.f32.gmra.mrb[88].mxu1 %vm380_vm1, %v18220_v34  ;;  %v8185_v34 = vrot.slane %v17763_v1, 1  ;;  %19763 = vst [vmem:[#allocation87_spill] sm:$0xff] %v18252_v53  ;;  %v18258_v1 = vsel %vm919_vm3, %v7577_v35, %v7579_v30  ;;  %v18273_v47 = vsel %vm2383_vm2, %v8189_v10, %v8190_v57  ;;  %v8195_v30 = vrot.slane %v17879_v11, 1  ;;  %v7392_v35 = vld [vmem:[#allocation4 + $0x58] sm:$0xff] }
 0x531   : > { %13528 = vmatprep.mubr.msk.f32.mxu1 %vm380_vm1, %v18226_v59  ;;  %v8184_v59 = vrot.slane %v17759_v40, 1  ;;  %19764 = vst [vmem:[#allocation88_spill] sm:$0xff] %v18258_v1  ;;  %v8197_v18 = vrot.slane %v7392_v35, 1  ;;  %v8199_v11 = vrot.slane %v17889_v31, 1  ;;  %v8204_v10 = vrot.slane %v17907_v38, 1 }
 0x532   : > { %v8188_v2 = vsel %vm2383_vm2, %v8185_v34, %v8187_v17  ;;  %v18289_v54 = vsel %vm2383_vm2, %v8194_v62, %v8195_v30  ;;  %v8205_v31 = vrot.slane %v17915_v28, 1  ;;  %v8209_v35 = vrot.slane %v17925_v41, 1 }
 0x533   : > { %v8186_v40 = vsel %vm2383_vm2, %v8184_v59, %v8185_v34  ;;  %v18269_v59 = vld [vmem:[%s19062_s5 + $0x10] sm:$0xf]  ;;  %v18296_v17 = vsel %vm2383_vm2, %v8195_v30, %v8197_v18  ;;  %v8210_v18 = vrot.slane %v17931_v49, 1 }
 0x534   : > { %13529 = vmatmul.mubr.msk.f32.gmra.mrb[90].mxu1 %vm380_vm1, %v18232_v37  ;;  %v18313_v30 = vsel %vm2383_vm2, %v8204_v10, %v8205_v31  ;;  %v8214_v10 = vrot.slane %v17939_v6, 1 }
 0x535   : > { %13531 = vmatprep.mubr.msk.f32.mxu1 %vm380_vm1, %v18238_v8  ;;  %19766 = vst [vmem:[#allocation90_spill] sm:$0xff] %v18313_v30 }
 0x538   : > { %13532 = vmatmul.mubr.msk.f32.gmra.mrb[92].mxu1 %vm380_vm1, %v18246_v45  ;;  %v7388_v45 = vld [vmem:[#allocation4 + $0x38] sm:$0xff] }
 0x539   : > { %13534 = vmatprep.mubr.msk.f32.mxu1 %vm380_vm1, %v18252_v53  ;;  %v8192_v8 = vrot.slane %v7388_v45, 1  ;;  %v7396_v45 = vld [vmem:[#allocation4 + $0x78] sm:$0xff] }
 0x53b   : > { %v18284_v34 = vsel %vm2383_vm2, %v8190_v57, %v8192_v8  ;;  %v8202_v8 = vrot.slane %v7396_v45, 1  ;;  %v7400_v57 = vld [vmem:[#allocation4 + $0x98] sm:$0xff] }
 0x53c   : > { %13535 = vmatmul.mubr.msk.f32.gmra.mrb[94].mxu1 %vm380_vm1, %v18258_v1  ;;  %v8207_v62 = vrot.slane %v7400_v57, 1  ;;  %v8215_v57 = vrot.slane %v17945_v44, 1 }
 0x53d   : > { %13539 = vmatprep.mubr.msk.f32.mxu1 %vm380_vm1, %v8186_v40 }
 0x53e   : > { %v18320_v45 = vsel %vm2383_vm2, %v8205_v31, %v8207_v62  ;;  %v18337_v62 = vsel %vm2383_vm2, %v8214_v10, %v8215_v57  ;;  %v8225_v10 = vrot.slane %v17973_v60, 1 }
 0x53f   : > { %19767 = vst [vmem:[#allocation62_spill] sm:$0xff] %v18320_v45  ;;  %19770 = vst [vmem:[#allocation130_spill] sm:$0xff] %v18337_v62 }
 0x540   : > { %13540 = vmatmul.mubr.msk.f32.vlgmr.msra.gmra.mrb[64].mxu1 %vm380_vm1, %v8188_v2 }
 0x541   : > { %13588 = vmatpush3.msk.msra.mxu1 %vm1194_vm0, %v18074_v4  ;;  %13542 = vmatprep.mubr.msk.f32.mxu1 %vm380_vm1, %v18273_v47  ;;  %v8200_v4 = vrot.slane %v17897_v3, 1 }
 0x542   : > { %13637 = vmatprep.subr.msk.mxu1 %vm1194_vm0, %v18269_v59 }
 0x543   : > { %v18301_v40 = vsel %vm2383_vm2, %v8199_v11, %v8200_v4  ;;  %v18308_v2 = vsel %vm2383_vm2, %v8200_v4, %v8202_v8  ;;  %v7404_v11 = vld [vmem:[#allocation4 + $0xb8] sm:$0xff]  ;;  %v18325_v8 = vsel %vm2383_vm2, %v8209_v35, %v8210_v18  ;;  %v8219_v35 = vrot.slane %v17953_v0, 1 }
 0x544   : > { %13543 = vmatmul.mubr.msk.f32.gmra.mrb[66].mxu1 %vm380_vm1, %v18284_v34  ;;  %19765 = vst [vmem:[#allocation89_spill] sm:$0xff] %v18308_v2  ;;  %v8212_v4 = vrot.slane %v7404_v11, 1  ;;  %19768 = vst [vmem:[#allocation91_spill] sm:$0xff] %v18325_v8  ;;  %v8220_v11 = vrot.slane %v17959_v33, 1 }
 0x545   : > { %13545 = vmatprep.mubr.msk.f32.mxu1 %vm380_vm1, %v18289_v54 }
 0x548   : > { %13546 = vmatmul.mubr.msk.f32.gmra.mrb[68].mxu1 %vm380_vm1, %v18296_v17 }
 0x549   : > { %13548 = vmatprep.mubr.msk.f32.mxu1 %vm380_vm1, %v18301_v40 }
 0x54c   : > { %13549 = vmatmul.mubr.msk.f32.gmra.mrb[70].mxu1 %vm380_vm1, %v18308_v2  ;;  %v7408_v2 = vld [vmem:[#allocation4 + $0xd8] sm:$0xff] }
 0x54d   : > { %13551 = vmatprep.mubr.msk.f32.mxu1 %vm380_vm1, %v18313_v30  ;;  %v18332_v30 = vsel %vm2383_vm2, %v8210_v18, %v8212_v4  ;;  %v8217_v31 = vrot.slane %v7408_v2, 1  ;;  %v18349_v2 = vsel %vm2383_vm2, %v8219_v35, %v8220_v11  ;;  %v8224_v4 = vrot.slane %v17967_v5, 1 }
 0x54e   : > { %19769 = vst [vmem:[#allocation92_spill] sm:$0xff] %v18332_v30  ;;  %19772 = vst [vmem:[#allocation132_spill] sm:$0xff] %v18349_v2  ;;  %v8230_v35 = vrot.slane %v17987_v15, 1 }
 0x550   : > { %13552 = vmatmul.mubr.msk.f32.gmra.mrb[72].mxu1 %vm380_vm1, %v18320_v45  ;;  %v7412_v45 = vld [vmem:[#allocation4 + $0xf8] sm:$0xff] }
 0x551   : > { %13554 = vmatprep.mubr.msk.f32.mxu1 %vm380_vm1, %v18325_v8  ;;  %v18344_v8 = vsel %vm2383_vm2, %v8215_v57, %v8217_v31  ;;  %v8222_v18 = vrot.slane %v7412_v45, 1  ;;  %v18361_v45 = vsel %vm2383_vm2, %v8224_v4, %v8225_v10  ;;  %v8229_v31 = vrot.slane %v17981_v25, 1 }
 0x552   : > { %19771 = vst [vmem:[#allocation131_spill] sm:$0xff] %v18344_v8  ;;  %19774 = vst [vmem:[#allocation134_spill] sm:$0xff] %v18361_v45  ;;  %v8235_v4 = vrot.slane %v18001_v43, 1 }
 0x554   : > { %13555 = vmatmul.mubr.msk.f32.gmra.mrb[74].mxu1 %vm380_vm1, %v18332_v30  ;;  %v7416_v30 = vld [vmem:[#allocation4 + $0x118] sm:$0xff] }
 0x555   : > { %13557 = vmatprep.mubr.msk.f32.mxu1 %vm380_vm1, %v18337_v62  ;;  %v18356_v62 = vsel %vm2383_vm2, %v8220_v11, %v8222_v18  ;;  %v8227_v57 = vrot.slane %v7416_v30, 1  ;;  %v18373_v30 = vsel %vm2383_vm2, %v8229_v31, %v8230_v35  ;;  %v8234_v18 = vrot.slane %v17995_v22, 1 }
 0x556   : > { %19773 = vst [vmem:[#allocation133_spill] sm:$0xff] %v18356_v62  ;;  %19776 = vst [vmem:[#allocation136_spill] sm:$0xff] %v18373_v30  ;;  %v8240_v31 = vrot.slane %v18015_v13, 1 }
 0x558   : > { %13558 = vmatmul.mubr.msk.f32.gmra.mrb[76].mxu1 %vm380_vm1, %v18344_v8  ;;  %v7420_v8 = vld [vmem:[#allocation4 + $0x138] sm:$0xff] }
 0x559   : > { %13560 = vmatprep.mubr.msk.f32.mxu1 %vm380_vm1, %v18349_v2  ;;  %v18368_v2 = vsel %vm2383_vm2, %v8225_v10, %v8227_v57  ;;  %v8232_v11 = vrot.slane %v7420_v8, 1  ;;  %v18385_v8 = vsel %vm2383_vm2, %v8234_v18, %v8235_v4  ;;  %v8239_v57 = vrot.slane %v18009_v63, 1 }
 0x55a   : > { %19775 = vst [vmem:[#allocation135_spill] sm:$0xff] %v18368_v2  ;;  %19778 = vst [vmem:[#allocation138_spill] sm:$0xff] %v18385_v8  ;;  %v8245_v18 = vrot.slane %v18029_v52, 1 }
 0x55c   : > { %13561 = vmatmul.mubr.msk.f32.gmra.mrb[78].mxu1 %vm380_vm1, %v18356_v62  ;;  %v7424_v62 = vld [vmem:[#allocation4 + $0x158] sm:$0xff] }
 0x55d   : > { %13563 = vmatprep.mubr.msk.f32.mxu1 %vm380_vm1, %v18361_v45  ;;  %v18380_v45 = vsel %vm2383_vm2, %v8230_v35, %v8232_v11  ;;  %v8237_v10 = vrot.slane %v7424_v62, 1  ;;  %v18397_v62 = vsel %vm2383_vm2, %v8239_v57, %v8240_v31  ;;  %v8244_v11 = vrot.slane %v18023_v55, 1 }
 0x55e   : > { %19777 = vst [vmem:[#allocation137_spill] sm:$0xff] %v18380_v45  ;;  %19780 = vst [vmem:[#allocation93_spill] sm:$0xff] %v18397_v62  ;;  %v8250_v57 = vrot.slane %v18042_v27, 1 }
 0x560   : > { %13564 = vmatmul.mubr.msk.f32.gmra.mrb[80].mxu1 %vm380_vm1, %v18368_v2  ;;  %v7428_v2 = vld [vmem:[#allocation4 + $0x178] sm:$0xff] }
 0x561   : > { %13566 = vmatprep.mubr.msk.f32.mxu1 %vm380_vm1, %v18373_v30  ;;  %v18392_v30 = vsel %vm2383_vm2, %v8235_v4, %v8237_v10  ;;  %v8242_v35 = vrot.slane %v7428_v2, 1  ;;  %v18409_v2 = vsel %vm2383_vm2, %v8244_v11, %v8245_v18  ;;  %v8249_v10 = vrot.slane %v18037_v20, 1 }
 0x562   : > { %19779 = vst [vmem:[#allocation139_spill] sm:$0xff] %v18392_v30  ;;  %19782 = vst [vmem:[#allocation116_spill] sm:$0xff] %v18409_v2  ;;  %v8255_v11 = vrot.slane %v18053_v48, 1 }
 0x564   : > { %13567 = vmatmul.mubr.msk.f32.gmra.mrb[82].mxu1 %vm380_vm1, %v18380_v45  ;;  %v7432_v45 = vld [vmem:[#allocation4 + $0x198] sm:$0xff] }
 0x565   : > { %13569 = vmatprep.mubr.msk.f32.mxu1 %vm380_vm1, %v18385_v8  ;;  %v18404_v8 = vsel %vm2383_vm2, %v8240_v31, %v8242_v35  ;;  %v8247_v4 = vrot.slane %v7432_v45, 1  ;;  %v18421_v45 = vsel %vm2383_vm2, %v8249_v10, %v8250_v57  ;;  %v8254_v35 = vrot.slane %v18048_v32, 1 }
 0x566   : > { %19781 = vst [vmem:[#allocation94_spill] sm:$0xff] %v18404_v8  ;;  %19784 = vst [vmem:[#allocation118_spill] sm:$0xff] %v18421_v45  ;;  %v8260_v10 = vrot.slane %v18063_v23, 1 }
 0x568   : > { %13570 = vmatmul.mubr.msk.f32.gmra.mrb[84].mxu1 %vm380_vm1, %v18392_v30  ;;  %v7436_v30 = vld [vmem:[#allocation4 + $0x1b8] sm:$0xff] }
 0x569   : > { %13572 = vmatprep.mubr.msk.f32.mxu1 %vm380_vm1, %v18397_v62  ;;  %v18416_v62 = vsel %vm2383_vm2, %v8245_v18, %v8247_v4  ;;  %v8252_v31 = vrot.slane %v7436_v30, 1  ;;  %v18433_v30 = vsel %vm2383_vm2, %v8254_v35, %v8255_v11  ;;  %v8259_v4 = vrot.slane %v18058_v58, 1  ;;  %v19790_v35 = vld [vmem:[#allocation81_spill] sm:$0xff] }
 0x56a   : > { %19783 = vst [vmem:[#allocation117_spill] sm:$0xff] %v18416_v62 }
 0x56c   : > { %13573 = vmatmul.mubr.msk.f32.gmra.mrb[86].mxu1 %vm380_vm1, %v18404_v8  ;;  %v7440_v8 = vld [vmem:[#allocation4 + $0x1d8] sm:$0xff] }
 0x56d   : > { %13575 = vmatprep.mubr.msk.f32.mxu1 %vm380_vm1, %v18409_v2  ;;  %v18428_v2 = vsel %vm2383_vm2, %v8250_v57, %v8252_v31  ;;  %v8257_v18 = vrot.slane %v7440_v8, 1  ;;  %v18445_v8 = vsel %vm2383_vm2, %v8259_v4, %v8260_v10  ;;  %v19793_v4 = vld [vmem:[#allocation84_spill] sm:$0xff] }
 0x56e   : > { %19785 = vst [vmem:[#allocation119_spill] sm:$0xff] %v18428_v2 }
 0x570   : > { %13576 = vmatmul.mubr.msk.f32.gmra.mrb[88].mxu1 %vm380_vm1, %v18416_v62  ;;  %v7444_v62 = vld [vmem:[#allocation4 + $0x1f8] sm:$0xff] }
 0x571   : > { %13578 = vmatprep.mubr.msk.f32.mxu1 %vm380_vm1, %v18421_v45  ;;  %v18440_v45 = vsel %vm2383_vm2, %v8255_v11, %v8257_v18  ;;  %v8262_v57 = vrot.slane %v7444_v62, 1  ;;  %v11338_v62 = vld [vmem:[%s19062_s5 + $0x14] sm:$0xf]  ;;  %v19791_v11 = vld [vmem:[#allocation82_spill] sm:$0xff] }
 0x572   : > { %19786 = vst [vmem:[#allocation120_spill] sm:$0xff] %v18440_v45  ;;  %v19792_v18 = vld [vmem:[#allocation83_spill] sm:$0xff] }
 0x573   : > { %v18450_v31 = vsel %vm2383_vm2, %v8260_v10, %v8262_v57  ;;  %v19794_v10 = vld [vmem:[#allocation85_spill] sm:$0xff] }
 0x574   : > { %13579 = vmatmul.mubr.msk.f32.gmra.mrb[90].mxu1 %vm380_vm1, %v18428_v2  ;;  %v7445_v57 = vld [vmem:[#allocation4 + $0x200] sm:$0xff] }
 0x575   : > { %13581 = vmatprep.mubr.msk.f32.mxu1 %vm380_vm1, %v18433_v30 }
 0x578   : > { %13582 = vmatmul.mubr.msk.f32.gmra.mrb[92].mxu1 %vm380_vm1, %v18440_v45 }
 0x579   : > { %13584 = vmatprep.mubr.msk.f32.mxu1 %vm380_vm1, %v18445_v8 }
 0x57c   : > { %13585 = vmatmul.mubr.msk.f32.gmra.mrb[94].mxu1 %vm380_vm1, %v18450_v31 }
 0x57d   : > { %13589 = vmatprep.mubr.msk.f32.mxu1 %vm380_vm1, %v18078_v21  ;;  %v19787_v21 = vld [vmem:[#allocation78_spill] sm:$0xff] }
 0x580   : > { %13590 = vmatmul.mubr.msk.f32.vlgmr.msra.gmra.mrb[64].mxu1 %vm380_vm1, %v18088_v29  ;;  %v19788_v29 = vld [vmem:[#allocation79_spill] sm:$0xff] }
 0x581   : > { %13638 = vmatpush3.msk.msra.mxu1 %vm1194_vm0, %v18269_v59  ;;  %13592 = vmatprep.mubr.msk.f32.mxu1 %vm380_vm1, %v18094_v46  ;;  %v19789_v59 = vld [vmem:[#allocation80_spill] sm:$0xff] }
 0x582   : > { %13687 = vmatprep.subr.msk.mxu1 %vm1194_vm0, %v11338_v62 }
 0x584   : > { %13593 = vmatmul.mubr.msk.f32.gmra.mrb[66].mxu1 %vm380_vm1, %v18100_v50 }
 0x585   : > { %13595 = vmatprep.mubr.msk.f32.mxu1 %vm380_vm1, %v18106_v19 }
 0x588   : > { %13596 = vmatmul.mubr.msk.f32.gmra.mrb[68].mxu1 %vm380_vm1, %v18112_v26 }
 0x589   : > { %13598 = vmatprep.mubr.msk.f32.mxu1 %vm380_vm1, %v18118_v39 }
 0x58c   : > { %13599 = vmatmul.mubr.msk.f32.gmra.mrb[70].mxu1 %vm380_vm1, %v18124_v36 }
 0x58d   : > { %13601 = vmatprep.mubr.msk.f32.mxu1 %vm380_vm1, %v18130_v14 }
 0x590   : > { %13602 = vmatmul.mubr.msk.f32.gmra.mrb[72].mxu1 %vm380_vm1, %v18136_v24 }
 0x591   : > { %13604 = vmatprep.mubr.msk.f32.mxu1 %vm380_vm1, %v18142_v9 }
 0x594   : > { %13605 = vmatmul.mubr.msk.f32.gmra.mrb[74].mxu1 %vm380_vm1, %v18148_v16 }
 0x595   : > { %13607 = vmatprep.mubr.msk.f32.mxu1 %vm380_vm1, %v18154_v56 }
 0x598   : > { %13608 = vmatmul.mubr.msk.f32.gmra.mrb[76].mxu1 %vm380_vm1, %v18160_v7 }
 0x599   : > { %13610 = vmatprep.mubr.msk.f32.mxu1 %vm380_vm1, %v18166_v12 }
 0x59c   : > { %13611 = vmatmul.mubr.msk.f32.gmra.mrb[78].mxu1 %vm380_vm1, %v18172_v51 }
 0x59d   : > { %13613 = vmatprep.mubr.msk.f32.mxu1 %vm380_vm1, %v18178_v42 }
 0x5a0   : > { %13614 = vmatmul.mubr.msk.f32.gmra.mrb[80].mxu1 %vm380_vm1, %v18184_v61 }
 0x5a1   : > { %13616 = vmatprep.mubr.msk.f32.mxu1 %vm380_vm1, %v19787_v21  ;;  %v18519_v21 = vld [vmem:[#allocation4 + $0x210] sm:$0xff] }
 0x5a4   : > { %13617 = vmatmul.mubr.msk.f32.gmra.mrb[82].mxu1 %vm380_vm1, %v19788_v29  ;;  %v19795_v29 = vld [vmem:[#allocation86_spill] sm:$0xff] }
 0x5a5   : > { %13619 = vmatprep.mubr.msk.f32.mxu1 %vm380_vm1, %v19789_v59  ;;  %v18514_v59 = vld [vmem:[#allocation4 + $0x208] sm:$0xff] }
 0x5a8   : > { %13620 = vmatmul.mubr.msk.f32.gmra.mrb[84].mxu1 %vm380_vm1, %v19790_v35  ;;  %v8593_v35 = vrot.slane %v7445_v57, 7 }
 0x5a9   : > { %13622 = vmatprep.mubr.msk.f32.mxu1 %vm380_vm1, %v19791_v11  ;;  %v8594_v11 = vrot.slane %v18514_v59, 7 }
 0x5ac   : > { %13623 = vmatmul.mubr.msk.f32.gmra.mrb[86].mxu1 %vm380_vm1, %v19792_v18 }
 0x5ad   : > { %13625 = vmatprep.mubr.msk.f32.mxu1 %vm380_vm1, %v19793_v4  ;;  %v8596_v4 = vrot.slane %v18519_v21, 7 }
 0x5af   : > { %v18532_v57 = vsel %vm919_vm3, %v8594_v11, %v8596_v4  ;;  %v19814_v4 = vld [vmem:[#allocation117_spill] sm:$0xff] }
 0x5b0   : > { %13626 = vmatmul.mubr.msk.f32.gmra.mrb[88].mxu1 %vm380_vm1, %v18232_v37 }
 0x5b1   : > { %13628 = vmatprep.mubr.msk.f32.mxu1 %vm380_vm1, %v19794_v10  ;;  %v18527_v10 = vsel %vm919_vm3, %v8593_v35, %v8594_v11  ;;  %v18542_v35 = vld [vmem:[#allocation4 + $0x48] sm:$0xff]  ;;  %v18547_v11 = vld [vmem:[#allocation4 + $0x50] sm:$0xff] }
 0x5b4   : > { %13629 = vmatmul.mubr.msk.f32.gmra.mrb[90].mxu1 %vm380_vm1, %v19795_v29  ;;  %v14805_v29 = vld [vmem:[#allocation4 + $0x28] sm:$0xff] }
 0x5b5   : > { %13631 = vmatprep.mubr.msk.f32.mxu1 %vm380_vm1, %v18252_v53  ;;  %v11372_v53 = vld [vmem:[%s19062_s5 + $0x18] sm:$0xf] }
 0x5b8   : > { %13632 = vmatmul.mubr.msk.f32.gmra.mrb[92].mxu1 %vm380_vm1, %v18258_v1  ;;  %v14806_v1 = vld [vmem:[#allocation4 + $0x30] sm:$0xff] }
 0x5b9   : > { %13634 = vmatprep.mubr.msk.f32.mxu1 %vm380_vm1, %v18527_v10 }
 0x5bc   : > { %13635 = vmatmul.mubr.msk.f32.gmra.mrb[94].mxu1 %vm380_vm1, %v18532_v57 }
 0x5bd   : > { %13639 = vmatprep.mubr.msk.f32.mxu1 %vm380_vm1, %v14805_v29  ;;  %v18551_v29 = vld [vmem:[#allocation4 + $0x68] sm:$0xff] }
 0x5c0   : > { %13640 = vmatmul.mubr.msk.f32.vlgmr.msra.gmra.mrb[64].mxu1 %vm380_vm1, %v14806_v1  ;;  %v19810_v1 = vld [vmem:[#allocation139_spill] sm:$0xff] }
 0x5c1   : > { %13688 = vmatpush3.msk.msra.mxu1 %vm1194_vm0, %v11338_v62  ;;  %13642 = vmatprep.mubr.msk.f32.mxu1 %vm380_vm1, %v18542_v35  ;;  %v19813_v62 = vld [vmem:[#allocation116_spill] sm:$0xff] }
 0x5c2   : > { %13737 = vmatprep.subr.msk.mxu1 %vm1194_vm0, %v11372_v53 }
 0x5c4   : > { %13643 = vmatmul.mubr.msk.f32.gmra.mrb[66].mxu1 %vm380_vm1, %v18547_v11 }
 0x5c5   : > { %13645 = vmatprep.mubr.msk.f32.mxu1 %vm380_vm1, %v18551_v29 }
 0x5c8   : > { %13646 = vmatmul.mubr.msk.f32.gmra.mrb[68].mxu1 %vm380_vm1, %v17897_v3  ;;  %v11406_v3 = vld [vmem:[%s19062_s5 + $0x1c] sm:$0xf] }
 0x5c9   : > { %13648 = vmatprep.mubr.msk.f32.mxu1 %vm380_vm1, %v17907_v38  ;;  %v19796_v38 = vld [vmem:[#allocation89_spill] sm:$0xff] }
 0x5cc   : > { %13649 = vmatmul.mubr.msk.f32.gmra.mrb[70].mxu1 %vm380_vm1, %v17915_v28  ;;  %v19797_v28 = vld [vmem:[#allocation90_spill] sm:$0xff] }
 0x5cd   : > { %13651 = vmatprep.mubr.msk.f32.mxu1 %vm380_vm1, %v17925_v41  ;;  %v19798_v41 = vld [vmem:[#allocation62_spill] sm:$0xff] }
 0x5d0   : > { %13652 = vmatmul.mubr.msk.f32.gmra.mrb[72].mxu1 %vm380_vm1, %v17931_v49  ;;  %v19799_v49 = vld [vmem:[#allocation91_spill] sm:$0xff] }
 0x5d1   : > { %13654 = vmatprep.mubr.msk.f32.mxu1 %vm380_vm1, %v17939_v6  ;;  %v19800_v6 = vld [vmem:[#allocation92_spill] sm:$0xff] }
 0x5d4   : > { %13655 = vmatmul.mubr.msk.f32.gmra.mrb[74].mxu1 %vm380_vm1, %v17945_v44  ;;  %v19801_v44 = vld [vmem:[#allocation130_spill] sm:$0xff] }
 0x5d5   : > { %13657 = vmatprep.mubr.msk.f32.mxu1 %vm380_vm1, %v17953_v0  ;;  %v19802_v0 = vld [vmem:[#allocation131_spill] sm:$0xff] }
 0x5d8   : > { %13658 = vmatmul.mubr.msk.f32.gmra.mrb[76].mxu1 %vm380_vm1, %v17959_v33  ;;  %v19803_v33 = vld [vmem:[#allocation132_spill] sm:$0xff] }
 0x5d9   : > { %13660 = vmatprep.mubr.msk.f32.mxu1 %vm380_vm1, %v17967_v5  ;;  %v19804_v5 = vld [vmem:[#allocation133_spill] sm:$0xff] }
 0x5dc   : > { %13661 = vmatmul.mubr.msk.f32.gmra.mrb[78].mxu1 %vm380_vm1, %v17973_v60  ;;  %v19805_v60 = vld [vmem:[#allocation134_spill] sm:$0xff] }
 0x5dd   : > { %13663 = vmatprep.mubr.msk.f32.mxu1 %vm380_vm1, %v17981_v25  ;;  %v19806_v25 = vld [vmem:[#allocation135_spill] sm:$0xff] }
 0x5e0   : > { %13664 = vmatmul.mubr.msk.f32.gmra.mrb[80].mxu1 %vm380_vm1, %v17987_v15  ;;  %v19807_v15 = vld [vmem:[#allocation136_spill] sm:$0xff] }
 0x5e1   : > { %13666 = vmatprep.mubr.msk.f32.mxu1 %vm380_vm1, %v17995_v22  ;;  %v19808_v22 = vld [vmem:[#allocation137_spill] sm:$0xff] }
 0x5e4   : > { %13667 = vmatmul.mubr.msk.f32.gmra.mrb[82].mxu1 %vm380_vm1, %v18001_v43 }
 0x5e5   : > { %13669 = vmatprep.mubr.msk.f32.mxu1 %vm380_vm1, %v18009_v63 }
 0x5e8   : > { %13670 = vmatmul.mubr.msk.f32.gmra.mrb[84].mxu1 %vm380_vm1, %v18015_v13 }
 0x5e9   : > { %13672 = vmatprep.mubr.msk.f32.mxu1 %vm380_vm1, %v18023_v55 }
 0x5ec   : > { %13673 = vmatmul.mubr.msk.f32.gmra.mrb[86].mxu1 %vm380_vm1, %v18029_v52 }
 0x5ed   : > { %13675 = vmatprep.mubr.msk.f32.mxu1 %vm380_vm1, %v18037_v20 }
 0x5f0   : > { %13676 = vmatmul.mubr.msk.f32.gmra.mrb[88].mxu1 %vm380_vm1, %v18042_v27 }
 0x5f1   : > { %13678 = vmatprep.mubr.msk.f32.mxu1 %vm380_vm1, %v18048_v32 }
 0x5f4   : > { %13679 = vmatmul.mubr.msk.f32.gmra.mrb[90].mxu1 %vm380_vm1, %v18053_v48 }
 0x5f5   : > { %13681 = vmatprep.mubr.msk.f32.mxu1 %vm380_vm1, %v18058_v58 }
 0x5f8   : > { %13682 = vmatmul.mubr.msk.f32.gmra.mrb[92].mxu1 %vm380_vm1, %v18063_v23 }
 0x5f9   : > { %13684 = vmatprep.mubr.msk.f32.mxu1 %vm380_vm1, %v18514_v59 }
 0x5fc   : > { %13685 = vmatmul.mubr.msk.f32.gmra.mrb[94].mxu1 %vm380_vm1, %v18519_v21 }
 0x5fd   : > { %13689 = vmatprep.mubr.msk.f32.mxu1 %vm380_vm1, %v18273_v47  ;;  %v19811_v47 = vld [vmem:[#allocation93_spill] sm:$0xff] }
 0x600   : > { %13690 = vmatmul.mubr.msk.f32.vlgmr.msra.gmra.mrb[64].mxu1 %vm380_vm1, %v18284_v34  ;;  %v19812_v34 = vld [vmem:[#allocation94_spill] sm:$0xff] }
 0x601   : > { %13738 = vmatpush3.msk.msra.mxu1 %vm1194_vm0, %v11372_v53  ;;  %13692 = vmatprep.mubr.msk.f32.mxu1 %vm380_vm1, %v18289_v54  ;;  %v19809_v53 = vld [vmem:[#allocation138_spill] sm:$0xff] }
 0x602   : > { %13787 = vmatprep.subr.msk.mxu1 %vm1194_vm0, %v11406_v3 }
 0x604   : > { %13693 = vmatmul.mubr.msk.f32.gmra.mrb[66].mxu1 %vm380_vm1, %v18296_v17 }
 0x605   : > { %13695 = vmatprep.mubr.msk.f32.mxu1 %vm380_vm1, %v18301_v40 }
 0x608   : > { %13696 = vmatmul.mubr.msk.f32.gmra.mrb[68].mxu1 %vm380_vm1, %v19796_v38 }
 0x609   : > { %13698 = vmatprep.mubr.msk.f32.mxu1 %vm380_vm1, %v19797_v28 }
 0x60c   : > { %13699 = vmatmul.mubr.msk.f32.gmra.mrb[70].mxu1 %vm380_vm1, %v19798_v41 }
 0x60d   : > { %13701 = vmatprep.mubr.msk.f32.mxu1 %vm380_vm1, %v19799_v49 }
 0x610   : > { %13702 = vmatmul.mubr.msk.f32.gmra.mrb[72].mxu1 %vm380_vm1, %v19800_v6 }
 0x611   : > { %13704 = vmatprep.mubr.msk.f32.mxu1 %vm380_vm1, %v19801_v44 }
 0x614   : > { %13705 = vmatmul.mubr.msk.f32.gmra.mrb[74].mxu1 %vm380_vm1, %v19802_v0 }
 0x615   : > { %13707 = vmatprep.mubr.msk.f32.mxu1 %vm380_vm1, %v19803_v33 }
 0x618   : > { %13708 = vmatmul.mubr.msk.f32.gmra.mrb[76].mxu1 %vm380_vm1, %v19804_v5 }
 0x619   : > { %13710 = vmatprep.mubr.msk.f32.mxu1 %vm380_vm1, %v19805_v60 }
 0x61c   : > { %13711 = vmatmul.mubr.msk.f32.gmra.mrb[78].mxu1 %vm380_vm1, %v19806_v25 }
 0x61d   : > { %13713 = vmatprep.mubr.msk.f32.mxu1 %vm380_vm1, %v19807_v15  ;;  %v19815_v15 = vld [vmem:[#allocation118_spill] sm:$0xff] }
 0x620   : > { %13714 = vmatmul.mubr.msk.f32.gmra.mrb[80].mxu1 %vm380_vm1, %v19808_v22 }
 0x621   : > { %13716 = vmatprep.mubr.msk.f32.mxu1 %vm380_vm1, %v19809_v53 }
 0x624   : > { %13717 = vmatmul.mubr.msk.f32.gmra.mrb[82].mxu1 %vm380_vm1, %v19810_v1 }
 0x625   : > { %13719 = vmatprep.mubr.msk.f32.mxu1 %vm380_vm1, %v19811_v47  ;;  %v9132_v47 = vrot.slane %v18519_v21, 1 }
 0x628   : > { %13720 = vmatmul.mubr.msk.f32.gmra.mrb[84].mxu1 %vm380_vm1, %v19812_v34  ;;  %v9131_v34 = vrot.slane %v18514_v59, 1 }
 0x629   : > { %13722 = vmatprep.mubr.msk.f32.mxu1 %vm380_vm1, %v19813_v62  ;;  %v7448_v62 = vld [vmem:[#allocation4 + $0x218] sm:$0xff] }
 0x62c   : > { %13723 = vmatmul.mubr.msk.f32.gmra.mrb[86].mxu1 %vm380_vm1, %v19814_v4  ;;  %v9134_v4 = vrot.slane %v7448_v62, 1  ;;  %v11440_v62 = vld [vmem:[%s19062_s5 + $0x20] sm:$0xf] }
 0x62d   : > { %13725 = vmatprep.mubr.msk.f32.mxu1 %vm380_vm1, %v19815_v15 }
 0x630   : > { %13726 = vmatmul.mubr.msk.f32.gmra.mrb[88].mxu1 %vm380_vm1, %v18428_v2  ;;  %v18677_v2 = vsel %vm2383_vm2, %v9131_v34, %v9132_v47  ;;  %v14816_v34 = vld [vmem:[#allocation4 + $0xd0] sm:$0xff] }
 0x631   : > { %13728 = vmatprep.mubr.msk.f32.mxu1 %vm380_vm1, %v18433_v30 }
 0x634   : > { %13729 = vmatmul.mubr.msk.f32.gmra.mrb[90].mxu1 %vm380_vm1, %v18440_v45  ;;  %v18682_v45 = vsel %vm2383_vm2, %v9132_v47, %v9134_v4  ;;  %v14813_v47 = vld [vmem:[#allocation4 + $0xa8] sm:$0xff]  ;;  %v14818_v4 = vld [vmem:[#allocation4 + $0xf0] sm:$0xff] }
 0x635   : > { %13731 = vmatprep.mubr.msk.f32.mxu1 %vm380_vm1, %v18445_v8 }
 0x638   : > { %13732 = vmatmul.mubr.msk.f32.gmra.mrb[92].mxu1 %vm380_vm1, %v18450_v31 }
 0x639   : > { %13734 = vmatprep.mubr.msk.f32.mxu1 %vm380_vm1, %v18677_v2 }
 0x63c   : > { %13735 = vmatmul.mubr.msk.f32.gmra.mrb[94].mxu1 %vm380_vm1, %v18682_v45 }
 0x63d   : > { %13739 = vmatprep.mubr.msk.f32.mxu1 %vm380_vm1, %v18094_v46  ;;  %v18741_v46 = vld [vmem:[#allocation4 + $0x228] sm:$0xff] }
 0x640   : > { %13740 = vmatmul.mubr.msk.f32.vlgmr.msra.gmra.mrb[64].mxu1 %vm380_vm1, %v18100_v50  ;;  %v7449_v50 = vld [vmem:[#allocation4 + $0x220] sm:$0xff] }
 0x641   : > { %13788 = vmatpush3.msk.msra.mxu1 %vm1194_vm0, %v11406_v3  ;;  %13742 = vmatprep.mubr.msk.f32.mxu1 %vm380_vm1, %v18106_v19  ;;  %v19823_v19 = vld [vmem:[#allocation86_spill] sm:$0xff]  ;;  %v14812_v3 = vld [vmem:[#allocation4 + $0x90] sm:$0xff] }
 0x642   : > { %13837 = vmatprep.subr.msk.mxu1 %vm1194_vm0, %v11440_v62 }
 0x644   : > { %13743 = vmatmul.mubr.msk.f32.gmra.mrb[66].mxu1 %vm380_vm1, %v18112_v26  ;;  %v19820_v26 = vld [vmem:[#allocation82_spill] sm:$0xff] }
 0x645   : > { %13745 = vmatprep.mubr.msk.f32.mxu1 %vm380_vm1, %v18118_v39  ;;  %v19824_v39 = vld [vmem:[#allocation87_spill] sm:$0xff] }
 0x648   : > { %13746 = vmatmul.mubr.msk.f32.gmra.mrb[68].mxu1 %vm380_vm1, %v18124_v36  ;;  %v19818_v36 = vld [vmem:[#allocation80_spill] sm:$0xff] }
 0x649   : > { %13748 = vmatprep.mubr.msk.f32.mxu1 %vm380_vm1, %v18130_v14  ;;  %v9405_v14 = vrot.slane %v7449_v50, 7 }
 0x64c   : > { %13749 = vmatmul.mubr.msk.f32.gmra.mrb[70].mxu1 %vm380_vm1, %v18136_v24  ;;  %v19816_v24 = vld [vmem:[#allocation78_spill] sm:$0xff] }
 0x64d   : > { %13751 = vmatprep.mubr.msk.f32.mxu1 %vm380_vm1, %v18142_v9  ;;  %v9406_v9 = vrot.slane %v18741_v46, 7 }
 0x650   : > { %13752 = vmatmul.mubr.msk.f32.gmra.mrb[72].mxu1 %vm380_vm1, %v18148_v16  ;;  %v19817_v16 = vld [vmem:[#allocation79_spill] sm:$0xff] }
 0x651   : > { %13754 = vmatprep.mubr.msk.f32.mxu1 %vm380_vm1, %v18154_v56  ;;  %v18748_v56 = vld [vmem:[#allocation4 + $0x230] sm:$0xff] }
 0x654   : > { %13755 = vmatmul.mubr.msk.f32.gmra.mrb[74].mxu1 %vm380_vm1, %v18160_v7  ;;  %v19819_v7 = vld [vmem:[#allocation81_spill] sm:$0xff] }
 0x655   : > { %13757 = vmatprep.mubr.msk.f32.mxu1 %vm380_vm1, %v18166_v12  ;;  %v19825_v12 = vld [vmem:[#allocation88_spill] sm:$0xff] }
 0x658   : > { %13758 = vmatmul.mubr.msk.f32.gmra.mrb[76].mxu1 %vm380_vm1, %v18172_v51  ;;  %v19821_v51 = vld [vmem:[#allocation84_spill] sm:$0xff] }
 0x659   : > { %13760 = vmatprep.mubr.msk.f32.mxu1 %vm380_vm1, %v18178_v42  ;;  %v9408_v42 = vrot.slane %v18748_v56, 7 }
 0x65c   : > { %13761 = vmatmul.mubr.msk.f32.gmra.mrb[78].mxu1 %vm380_vm1, %v18184_v61  ;;  %v19822_v61 = vld [vmem:[#allocation85_spill] sm:$0xff] }
 0x65d   : > { %13763 = vmatprep.mubr.msk.f32.mxu1 %vm380_vm1, %v19816_v24  ;;  %v14820_v24 = vld [vmem:[#allocation4 + $0x110] sm:$0xff] }
 0x660   : > { %13764 = vmatmul.mubr.msk.f32.gmra.mrb[80].mxu1 %vm380_vm1, %v19817_v16  ;;  %v14821_v16 = vld [vmem:[#allocation4 + $0x128] sm:$0xff] }
 0x661   : > { %13766 = vmatprep.mubr.msk.f32.mxu1 %vm380_vm1, %v19818_v36  ;;  %v14822_v36 = vld [vmem:[#allocation4 + $0x130] sm:$0xff] }
 0x664   : > { %13767 = vmatmul.mubr.msk.f32.gmra.mrb[82].mxu1 %vm380_vm1, %v19819_v7  ;;  %v14823_v7 = vld [vmem:[#allocation4 + $0x148] sm:$0xff] }
 0x665   : > { %13769 = vmatprep.mubr.msk.f32.mxu1 %vm380_vm1, %v19820_v26 }
 0x668   : > { %13770 = vmatmul.mubr.msk.f32.gmra.mrb[84].mxu1 %vm380_vm1, %v19792_v18  ;;  %v9409_v18 = vsel %vm919_vm3, %v9406_v9, %v9408_v42 }
 0x669   : > { %13772 = vmatprep.mubr.msk.f32.mxu1 %vm380_vm1, %v19821_v51 }
 0x66c   : > { %13773 = vmatmul.mubr.msk.f32.gmra.mrb[86].mxu1 %vm380_vm1, %v18232_v37  ;;  %v9407_v37 = vsel %vm919_vm3, %v9405_v14, %v9406_v9 }
 0x66d   : > { %13775 = vmatprep.mubr.msk.f32.mxu1 %vm380_vm1, %v19822_v61  ;;  %v19836_v61 = vld [vmem:[#allocation100_spill] sm:$0xff] }
 0x670   : > { %13776 = vmatmul.mubr.msk.f32.gmra.mrb[88].mxu1 %vm380_vm1, %v19823_v19 }
 0x671   : > { %13778 = vmatprep.mubr.msk.f32.mxu1 %vm380_vm1, %v19824_v39 }
 0x674   : > { %13779 = vmatmul.mubr.msk.f32.gmra.mrb[90].mxu1 %vm380_vm1, %v19825_v12 }
 0x675   : > { %13781 = vmatprep.mubr.msk.f32.mxu1 %vm380_vm1, %v18527_v10  ;;  %v14810_v10 = vld [vmem:[#allocation4 + $0x70] sm:$0xff] }
 0x678   : > { %13782 = vmatmul.mubr.msk.f32.gmra.mrb[92].mxu1 %vm380_vm1, %v18532_v57  ;;  %v14811_v57 = vld [vmem:[#allocation4 + $0x88] sm:$0xff] }
 0x679   : > { %13784 = vmatprep.mubr.msk.f32.mxu1 %vm380_vm1, %v9407_v37  ;;  %v19837_v37 = vld [vmem:[#allocation102_spill] sm:$0xff] }
 0x67c   : > { %13785 = vmatmul.mubr.msk.f32.gmra.mrb[94].mxu1 %vm380_vm1, %v9409_v18 }
 0x67d   : > { %13789 = vmatprep.mubr.msk.f32.mxu1 %vm380_vm1, %v18542_v35  ;;  %v14814_v35 = vld [vmem:[#allocation4 + $0xb0] sm:$0xff] }
 0x680   : > { %13790 = vmatmul.mubr.msk.f32.vlgmr.msra.gmra.mrb[64].mxu1 %vm380_vm1, %v18547_v11  ;;  %v14815_v11 = vld [vmem:[#allocation4 + $0xc8] sm:$0xff] }
 0x681   : > { %13838 = vmatpush3.msk.msra.mxu1 %vm1194_vm0, %v11440_v62  ;;  %13792 = vmatprep.mubr.msk.f32.mxu1 %vm380_vm1, %v18551_v29  ;;  %v14817_v29 = vld [vmem:[#allocation4 + $0xe8] sm:$0xff] }
 0x682   : > { %v14819_v62 = vld [vmem:[#allocation4 + $0x108] sm:$0xff] }
 0x684   : > { %13793 = vmatmul.mubr.msk.f32.gmra.mrb[66].mxu1 %vm380_vm1, %v14810_v10 }
 0x685   : > { %13795 = vmatprep.mubr.msk.f32.mxu1 %vm380_vm1, %v14811_v57 }
 0x688   : > { %13796 = vmatmul.mubr.msk.f32.gmra.mrb[68].mxu1 %vm380_vm1, %v14812_v3  ;;  %v19838_v3 = vld [vmem:[#allocation104_spill] sm:$0xff] }
 0x689   : > { %13798 = vmatprep.mubr.msk.f32.mxu1 %vm380_vm1, %v14813_v47 }
 0x68c   : > { %13799 = vmatmul.mubr.msk.f32.gmra.mrb[70].mxu1 %vm380_vm1, %v14814_v35 }
 0x68d   : > { %13801 = vmatprep.mubr.msk.f32.mxu1 %vm380_vm1, %v14815_v11 }
 0x690   : > { %13802 = vmatmul.mubr.msk.f32.gmra.mrb[72].mxu1 %vm380_vm1, %v14816_v34 }
 0x691   : > { %13804 = vmatprep.mubr.msk.f32.mxu1 %vm380_vm1, %v14817_v29 }
 0x694   : > { %13805 = vmatmul.mubr.msk.f32.gmra.mrb[74].mxu1 %vm380_vm1, %v14818_v4 }
 0x695   : > { %13807 = vmatprep.mubr.msk.f32.mxu1 %vm380_vm1, %v14819_v62 }
 0x698   : > { %13808 = vmatmul.mubr.msk.f32.gmra.mrb[76].mxu1 %vm380_vm1, %v14820_v24 }
 0x699   : > { %13810 = vmatprep.mubr.msk.f32.mxu1 %vm380_vm1, %v14821_v16 }
 0x69c   : > { %13811 = vmatmul.mubr.msk.f32.gmra.mrb[78].mxu1 %vm380_vm1, %v14822_v36  ;;  %v19839_v36 = vld [vmem:[#allocation106_spill] sm:$0xff] }
 0x69d   : > { %13813 = vmatprep.mubr.msk.f32.mxu1 %vm380_vm1, %v14823_v7 }
 0x6a0   : > { %13814 = vmatmul.mubr.msk.f32.gmra.mrb[80].mxu1 %vm380_vm1, %v18001_v43  ;;  %v19826_v43 = vld [vmem:[#allocation136_spill] sm:$0xff] }
 0x6a1   : > { %13816 = vmatprep.mubr.msk.f32.mxu1 %vm380_vm1, %v18009_v63  ;;  %v19827_v63 = vld [vmem:[#allocation93_spill] sm:$0xff] }
 0x6a4   : > { %13817 = vmatmul.mubr.msk.f32.gmra.mrb[82].mxu1 %vm380_vm1, %v18015_v13  ;;  %v19828_v13 = vld [vmem:[#allocation94_spill] sm:$0xff] }
 0x6a5   : > { %13819 = vmatprep.mubr.msk.f32.mxu1 %vm380_vm1, %v18023_v55  ;;  %v19829_v55 = vld [vmem:[#allocation116_spill] sm:$0xff] }
 0x6a8   : > { %13820 = vmatmul.mubr.msk.f32.gmra.mrb[84].mxu1 %vm380_vm1, %v18029_v52  ;;  %v19830_v52 = vld [vmem:[#allocation117_spill] sm:$0xff] }
 0x6a9   : > { %13822 = vmatprep.mubr.msk.f32.mxu1 %vm380_vm1, %v18037_v20  ;;  %v19831_v20 = vld [vmem:[#allocation119_spill] sm:$0xff] }
 0x6ac   : > { %13823 = vmatmul.mubr.msk.f32.gmra.mrb[86].mxu1 %vm380_vm1, %v18042_v27  ;;  %v19832_v27 = vld [vmem:[#allocation120_spill] sm:$0xff] }
 0x6ad   : > { %13825 = vmatprep.mubr.msk.f32.mxu1 %vm380_vm1, %v18048_v32  ;;  %v9943_v32 = vrot.slane %v18741_v46, 1 }
 0x6b0   : > { %13826 = vmatmul.mubr.msk.f32.gmra.mrb[88].mxu1 %vm380_vm1, %v18053_v48  ;;  %v9944_v48 = vrot.slane %v18748_v56, 1 }
 0x6b1   : > { %13828 = vmatprep.mubr.msk.f32.mxu1 %vm380_vm1, %v18058_v58  ;;  %v7452_v58 = vld [vmem:[#allocation4 + $0x238] sm:$0xff] }
 0x6b4   : > { %13829 = vmatmul.mubr.msk.f32.gmra.mrb[90].mxu1 %vm380_vm1, %v18063_v23  ;;  %v9946_v23 = vrot.slane %v7452_v58, 1 }
 0x6b5   : > { %13831 = vmatprep.mubr.msk.f32.mxu1 %vm380_vm1, %v18514_v59  ;;  %v19833_v59 = vld [vmem:[#allocation97_spill] sm:$0xff] }
 0x6b8   : > { %13832 = vmatmul.mubr.msk.f32.gmra.mrb[92].mxu1 %vm380_vm1, %v18519_v21 }
 0x6b9   : > { %13834 = vmatprep.mubr.msk.f32.mxu1 %vm380_vm1, %v18741_v46 }
 0x6bc   : > { %13835 = vmatmul.mubr.msk.f32.gmra.mrb[94].mxu1 %vm380_vm1, %v18748_v56 }
 0x6bd   : > { %13839 = vmatprep.mubr.msk.f32.mxu1 %vm380_vm1, %v18289_v54  ;;  %v9945_v54 = vsel %vm2383_vm2, %v9943_v32, %v9944_v48 }
 0x6c0   : > { %13840 = vmatmul.mubr.msk.f32.vlgmr.msra.gmra.mrb[64].mxu1 %vm380_vm1, %v18296_v17  ;;  %v9947_v17 = vsel %vm2383_vm2, %v9944_v48, %v9946_v23 }
 0x6c1   : > { %13842 = vmatprep.mubr.msk.f32.mxu1 %vm380_vm1, %v18301_v40  ;;  %v18881_v40 = vld [vmem:[%s19063_s6] ss:$0 sm:$0xff] }
 0x6c4   : > { %13843 = vmatmul.mubr.msk.f32.gmra.mrb[66].mxu1 %vm380_vm1, %v19796_v38 }
 0x6c5   : > { %13845 = vmatprep.mubr.msk.f32.mxu1 %vm380_vm1, %v19797_v28 }
 0x6c8   : > { %13846 = vmatmul.mubr.msk.f32.gmra.mrb[68].mxu1 %vm380_vm1, %v19798_v41 }
 0x6c9   : > { %13848 = vmatprep.mubr.msk.f32.mxu1 %vm380_vm1, %v19799_v49  ;;  %v19834_v49 = vld [vmem:[#allocation98_spill] sm:$0xff] }
 0x6cc   : > { %13849 = vmatmul.mubr.msk.f32.gmra.mrb[70].mxu1 %vm380_vm1, %v19800_v6 }
 0x6cd   : > { %13851 = vmatprep.mubr.msk.f32.mxu1 %vm380_vm1, %v19801_v44 }
 0x6d0   : > { %13852 = vmatmul.mubr.msk.f32.gmra.mrb[72].mxu1 %vm380_vm1, %v19802_v0 }
 0x6d1   : > { %13854 = vmatprep.mubr.msk.f32.mxu1 %vm380_vm1, %v19803_v33 }
 0x6d4   : > { %13855 = vmatmul.mubr.msk.f32.gmra.mrb[74].mxu1 %vm380_vm1, %v19804_v5 }
 0x6d5   : > { %13857 = vmatprep.mubr.msk.f32.mxu1 %vm380_vm1, %v19805_v60 }
 0x6d8   : > { %13858 = vmatmul.mubr.msk.f32.gmra.mrb[76].mxu1 %vm380_vm1, %v19806_v25 }
 0x6d9   : > { %13860 = vmatprep.mubr.msk.f32.mxu1 %vm380_vm1, %v19826_v43 }
 0x6dc   : > { %13861 = vmatmul.mubr.msk.f32.gmra.mrb[78].mxu1 %vm380_vm1, %v19808_v22 }
 0x6dd   : > { %13863 = vmatprep.mubr.msk.f32.mxu1 %vm380_vm1, %v19809_v53  ;;  %v19835_v53 = vld [vmem:[#allocation99_spill] sm:$0xff] }
 0x6e0   : > { %13864 = vmatmul.mubr.msk.f32.gmra.mrb[80].mxu1 %vm380_vm1, %v19810_v1 }
 0x6e1   : > { %13866 = vmatprep.mubr.msk.f32.mxu1 %vm380_vm1, %v19827_v63 }
 0x6e4   : > { %13867 = vmatmul.mubr.msk.f32.gmra.mrb[82].mxu1 %vm380_vm1, %v19828_v13  ;;  %v19840_v13 = vld [vmem:[#allocation108_spill] sm:$0xff] }
 0x6e5   : > { %13869 = vmatprep.mubr.msk.f32.mxu1 %vm380_vm1, %v19829_v55 }
 0x6e8   : > { %13870 = vmatmul.mubr.msk.f32.gmra.mrb[84].mxu1 %vm380_vm1, %v19830_v52 }
 0x6e9   : > { %13872 = vmatprep.mubr.msk.f32.mxu1 %vm380_vm1, %v19815_v15 }
 0x6ec   : > { %13873 = vmatmul.mubr.msk.f32.gmra.mrb[86].mxu1 %vm380_vm1, %v19831_v20 }
 0x6ed   : > { %13875 = vmatprep.mubr.msk.f32.mxu1 %vm380_vm1, %v18433_v30 }
 0x6f0   : > { %13876 = vmatmul.mubr.msk.f32.gmra.mrb[88].mxu1 %vm380_vm1, %v19832_v27 }
 0x6f1   : > { %13878 = vmatprep.mubr.msk.f32.mxu1 %vm380_vm1, %v18445_v8 }
 0x6f4   : > { %13879 = vmatmul.mubr.msk.f32.gmra.mrb[90].mxu1 %vm380_vm1, %v18450_v31 }
 0x6f5   : > { %13881 = vmatprep.mubr.msk.f32.mxu1 %vm380_vm1, %v18677_v2  ;;  %v18886_v2 = vld [vmem:[%s19066_s9] ss:$0 sm:$0xff] }
 0x6f6   : > { %v7350_v38 = vadd.f32 %v19833_v59, %v18886_v2  ;;  %v7349_v6 = vadd.f32 %v18886_v2, %v19834_v49  ;;  %v7352_v1 = vadd.f32 %v19835_v53, %v18886_v2  ;;  %v7351_v50 = vadd.f32 %v18886_v2, %v19836_v61 }
 0x6f7   : > { %v7354_v18 = vadd.f32 %v19837_v37, %v18886_v2  ;;  %v7353_v47 = vadd.f32 %v18886_v2, %v19838_v3  ;;  %v7356_v7 = vadd.f32 %v19839_v36, %v18886_v2  ;;  %v7355_v55 = vadd.f32 %v18886_v2, %v19840_v13 }
 0x6f8   : > { %13882 = vmatmul.mubr.msk.f32.gmra.mrb[92].mxu1 %vm380_vm1, %v18682_v45 }
 0x6f9   : > { %13884 = vmatprep.mubr.msk.f32.mxu1 %vm380_vm1, %v9945_v54 }
 0x6fc   : > { %13885 = vmatmul.mubr.msk.f32.gmra.mrb[94].mxu1 %vm380_vm1, %v9947_v17  ;;  %v19841_v17 = vld [vmem:[#allocation109_spill] sm:$0xff] }
 0x793   : > { %v13841_v30 = vpop.f32.mrb[64].mxu1 }
 0x794   : > { %v10222_v45 = vadd.f32 %v13841_v30, %v18881_v40  ;;  %v10023_v8 = vpop.f32.mrb[65].mxu1  ;;  %v7358_v30 = vadd.f32 %v19841_v17, %v18886_v2 }
 0x795   : > { %v10221_v31 = vadd.f32 %v18881_v40, %v10023_v8 }
 0x796   : > { %vm10254_vm0 = vcmp.ge.f32.partialorder %v10222_v45, 0.0  ;;  %v10286_v21 = vmul.f32 0.2, %v10222_v45 }
 0x797   : > { %vm10253_vm2 = vcmp.ge.f32.partialorder %v10221_v31, 0.0  ;;  %v10285_v28 = vmul.f32 0.2, %v10221_v31  ;;  %v13844_v41 = vpop.f32.mrb[66].mxu1 }
 0x798   : > { %v10318_v44 = vsel %vm10254_vm0, %v10222_v45, %v10286_v21  ;;  %v10224_v0 = vadd.f32 %v13844_v41, %v18881_v40  ;;  %v10033_v33 = vpop.f32.mrb[67].mxu1 }
 0x799   : > { %v10350_v5 = vadd.f32 %v10318_v44, %v7350_v38  ;;  %v10317_v60 = vsel %vm10253_vm2, %v10221_v31, %v10285_v28  ;;  %v10223_v25 = vadd.f32 %v18881_v40, %v10033_v33  ;;  %v19842_v31 = vld [vmem:[#allocation110_spill] sm:$0xff]  ;;  %v19843_v33 = vld [vmem:[#allocation111_spill] sm:$0xff] }
 0x79a   : > { %v10349_v15 = vadd.f32 %v10317_v60, %v7349_v6  ;;  %vm10256_vm3 = vcmp.ge.f32.partialorder %v10224_v0, 0.0  ;;  %v10288_v22 = vmul.f32 0.2, %v10224_v0  ;;  %v7357_v21 = vadd.f32 %v18886_v2, %v19842_v31 }
 0x79b   : > { %10382 = vst.msk [vmem:[%s18898_s21 + $0x8] sm:$0xff] %vm380_vm1, %v10350_v5  ;;  %vm10255_vm12 = vcmp.ge.f32.partialorder %v10223_v25, 0.0  ;;  %v10287_v26 = vmul.f32 0.2, %v10223_v25  ;;  %v13847_v51 = vpop.f32.mrb[68].mxu1  ;;  %v7360_v5 = vadd.f32 %v19843_v33, %v18886_v2 }
 0x79c   : > { %10381 = vst.msk [vmem:[%s18898_s21] sm:$0xff] %vm380_vm1, %v10349_v15  ;;  %v10320_v46 = vsel %vm10256_vm3, %v10224_v0, %v10288_v22  ;;  %v10226_v19 = vadd.f32 %v13847_v51, %v18881_v40  ;;  %v10043_v39 = vpop.f32.mrb[69].mxu1  ;;  %v19844_v15 = vld [vmem:[#allocation112_spill] sm:$0xff] }
 0x79d   : > { %v10352_v14 = vadd.f32 %v10320_v46, %v7352_v1  ;;  %v10319_v9 = vsel %vm10255_vm12, %v10223_v25, %v10287_v26  ;;  %v10225_v56 = vadd.f32 %v18881_v40, %v10043_v39  ;;  %v7359_v22 = vadd.f32 %v18886_v2, %v19844_v15  ;;  %v19845_v39 = vld [vmem:[#allocation113_spill] sm:$0xff] }
 0x79e   : > { %v10351_v12 = vadd.f32 %v10319_v9, %v7351_v50  ;;  %vm10258_vm13 = vcmp.ge.f32.partialorder %v10226_v19, 0.0  ;;  %v10290_v42 = vmul.f32 0.2, %v10226_v19 }
 0x79f   : > { %10384 = vst.msk [vmem:[%s18898_s21 + $0x18] sm:$0xff] %vm380_vm1, %v10352_v14  ;;  %vm10257_vm14 = vcmp.ge.f32.partialorder %v10225_v56, 0.0  ;;  %v10289_v10 = vmul.f32 0.2, %v10225_v56  ;;  %v13850_v57 = vpop.f32.mrb[70].mxu1  ;;  %v7362_v14 = vadd.f32 %v19845_v39, %v18886_v2 }
 0x7a0   : > { %10383 = vst.msk [vmem:[%s18898_s21 + $0x10] sm:$0xff] %vm380_vm1, %v10351_v12  ;;  %v10322_v35 = vsel %vm10258_vm13, %v10226_v19, %v10290_v42  ;;  %v10228_v11 = vadd.f32 %v13850_v57, %v18881_v40  ;;  %v10053_v34 = vpop.f32.mrb[71].mxu1  ;;  %v19846_v12 = vld [vmem:[#allocation114_spill] sm:$0xff] }
 0x7a1   : > { %v10354_v29 = vadd.f32 %v10322_v35, %v7354_v18  ;;  %v10321_v4 = vsel %vm10257_vm14, %v10225_v56, %v10289_v10  ;;  %v10227_v62 = vadd.f32 %v18881_v40, %v10053_v34  ;;  %v7361_v42 = vadd.f32 %v18886_v2, %v19846_v12  ;;  %v19847_v34 = vld [vmem:[#allocation115_spill] sm:$0xff] }
 0x7a2   : > { %v10353_v24 = vadd.f32 %v10321_v4, %v7353_v47  ;;  %vm10260_vm15 = vcmp.ge.f32.partialorder %v10228_v11, 0.0  ;;  %v10292_v16 = vmul.f32 0.2, %v10228_v11 }
 0x7a3   : > { %10386 = vst.msk [vmem:[%s18898_s21 + $0x28] sm:$0xff] %vm380_vm1, %v10354_v29  ;;  %vm10259_vm4 = vcmp.ge.f32.partialorder %v10227_v62, 0.0  ;;  %v10291_v43 = vmul.f32 0.2, %v10227_v62  ;;  %v13853_v63 = vpop.f32.mrb[72].mxu1  ;;  %v7364_v29 = vadd.f32 %v19847_v34, %v18886_v2 }
 0x7a4   : > { %10385 = vst.msk [vmem:[%s18898_s21 + $0x20] sm:$0xff] %vm380_vm1, %v10353_v24  ;;  %v10324_v52 = vsel %vm10260_vm15, %v10228_v11, %v10292_v16  ;;  %v10230_v20 = vadd.f32 %v13853_v63, %v18881_v40  ;;  %v10063_v27 = vpop.f32.mrb[73].mxu1  ;;  %v19848_v24 = vld [vmem:[#allocation33_spill] sm:$0xff] }
 0x7a5   : > { %v10356_v32 = vadd.f32 %v10324_v52, %v7356_v7  ;;  %v10323_v48 = vsel %vm10259_vm4, %v10227_v62, %v10291_v43  ;;  %v10229_v58 = vadd.f32 %v18881_v40, %v10063_v27  ;;  %v7363_v16 = vadd.f32 %v18886_v2, %v19848_v24  ;;  %v19849_v27 = vld [vmem:[#allocation34_spill] sm:$0xff] }
 0x7a6   : > { %v10355_v23 = vadd.f32 %v10323_v48, %v7355_v55  ;;  %vm10262_vm5 = vcmp.ge.f32.partialorder %v10230_v20, 0.0  ;;  %v10294_v54 = vmul.f32 0.2, %v10230_v20 }
 0x7a7   : > { %10388 = vst.msk [vmem:[%s18898_s21 + $0x38] sm:$0xff] %vm380_vm1, %v10356_v32  ;;  %vm10261_vm6 = vcmp.ge.f32.partialorder %v10229_v58, 0.0  ;;  %v10293_v45 = vmul.f32 0.2, %v10229_v58  ;;  %v13856_v8 = vpop.f32.mrb[74].mxu1  ;;  %v7366_v32 = vadd.f32 %v19849_v27, %v18886_v2 }
 0x7a8   : > { %10387 = vst.msk [vmem:[%s18898_s21 + $0x30] sm:$0xff] %vm380_vm1, %v10355_v23  ;;  %v10326_v59 = vsel %vm10262_vm5, %v10230_v20, %v10294_v54  ;;  %v10232_v38 = vadd.f32 %v13856_v8, %v18881_v40  ;;  %v10073_v28 = vpop.f32.mrb[75].mxu1  ;;  %v19850_v23 = vld [vmem:[#allocation63_spill] sm:$0xff] }
 0x7a9   : > { %v10358_v41 = vadd.f32 %v10326_v59, %v7358_v30  ;;  %v10325_v49 = vsel %vm10261_vm6, %v10229_v58, %v10293_v45  ;;  %v10231_v6 = vadd.f32 %v18881_v40, %v10073_v28  ;;  %v7365_v54 = vadd.f32 %v18886_v2, %v19850_v23  ;;  %v19851_v28 = vld [vmem:[#allocation64_spill] sm:$0xff] }
 0x7aa   : > { %v10357_v44 = vadd.f32 %v10325_v49, %v7357_v21  ;;  %vm10264_vm7 = vcmp.ge.f32.partialorder %v10232_v38, 0.0  ;;  %v10296_v0 = vmul.f32 0.2, %v10232_v38 }
 0x7ab   : > { %10390 = vst.msk [vmem:[%s18898_s21 + $0x48] sm:$0xff] %vm380_vm1, %v10358_v41  ;;  %vm10263_vm8 = vcmp.ge.f32.partialorder %v10231_v6, 0.0  ;;  %v10295_v60 = vmul.f32 0.2, %v10231_v6  ;;  %v13859_v25 = vpop.f32.mrb[76].mxu1  ;;  %v7368_v41 = vadd.f32 %v19851_v28, %v18886_v2 }
 0x7ac   : > { %10389 = vst.msk [vmem:[%s18898_s21 + $0x40] sm:$0xff] %vm380_vm1, %v10357_v44  ;;  %v10328_v53 = vsel %vm10264_vm7, %v10232_v38, %v10296_v0  ;;  %v10234_v1 = vadd.f32 %v13859_v25, %v18881_v40  ;;  %v10083_v26 = vpop.f32.mrb[77].mxu1  ;;  %v19852_v44 = vld [vmem:[#allocation65_spill] sm:$0xff] }
 0x7ad   : > { %v10360_v51 = vadd.f32 %v10328_v53, %v7360_v5  ;;  %v10327_v61 = vsel %vm10263_vm8, %v10231_v6, %v10295_v60  ;;  %v10233_v50 = vadd.f32 %v18881_v40, %v10083_v26  ;;  %v7367_v0 = vadd.f32 %v18886_v2, %v19852_v44  ;;  %v19853_v26 = vld [vmem:[#allocation66_spill] sm:$0xff] }
 0x7ae   : > { %v10359_v46 = vadd.f32 %v10327_v61, %v7359_v22  ;;  %vm10266_vm9 = vcmp.ge.f32.partialorder %v10234_v1, 0.0  ;;  %v10298_v19 = vmul.f32 0.2, %v10234_v1 }
 0x7af   : > { %10392 = vst.msk [vmem:[%s18898_s21 + $0x58] sm:$0xff] %vm380_vm1, %v10360_v51  ;;  %vm10265_vm10 = vcmp.ge.f32.partialorder %v10233_v50, 0.0  ;;  %v10297_v9 = vmul.f32 0.2, %v10233_v50  ;;  %v13862_v56 = vpop.f32.mrb[78].mxu1  ;;  %v7370_v51 = vadd.f32 %v19853_v26, %v18886_v2 }
 0x7b0   : > { %10391 = vst.msk [vmem:[%s18898_s21 + $0x50] sm:$0xff] %vm380_vm1, %v10359_v46  ;;  %v10330_v37 = vsel %vm10266_vm9, %v10234_v1, %v10298_v19  ;;  %v10236_v18 = vadd.f32 %v13862_v56, %v18881_v40  ;;  %v10093_v10 = vpop.f32.mrb[79].mxu1  ;;  %v19854_v46 = vld [vmem:[#allocation67_spill] sm:$0xff] }
 0x7b1   : > { %v10362_v57 = vadd.f32 %v10330_v37, %v7362_v14  ;;  %v10329_v3 = vsel %vm10265_vm10, %v10233_v50, %v10297_v9  ;;  %v10235_v47 = vadd.f32 %v18881_v40, %v10093_v10  ;;  %v7369_v19 = vadd.f32 %v18886_v2, %v19854_v46  ;;  %v19855_v10 = vld [vmem:[#allocation68_spill] sm:$0xff] }
 0x7b2   : > { %v10361_v35 = vadd.f32 %v10329_v3, %v7361_v42  ;;  %vm10268_vm11 = vcmp.ge.f32.partialorder %v10236_v18, 0.0  ;;  %v10300_v11 = vmul.f32 0.2, %v10236_v18 }
 0x7b3   : > { %10394 = vst.msk [vmem:[%s18898_s21 + $0x68] sm:$0xff] %vm380_vm1, %v10362_v57  ;;  %vm10267_vm0 = vcmp.ge.f32.partialorder %v10235_v47, 0.0  ;;  %v10299_v4 = vmul.f32 0.2, %v10235_v47  ;;  %v13865_v62 = vpop.f32.mrb[80].mxu1  ;;  %v7372_v57 = vadd.f32 %v19855_v10, %v18886_v2 }
 0x7b4   : > { %10393 = vst.msk [vmem:[%s18898_s21 + $0x60] sm:$0xff] %vm380_vm1, %v10361_v35  ;;  %v10332_v36 = vsel %vm10268_vm11, %v10236_v18, %v10300_v11  ;;  %v10238_v7 = vadd.f32 %v13865_v62, %v18881_v40  ;;  %v10103_v43 = vpop.f32.mrb[81].mxu1  ;;  %v19856_v35 = vld [vmem:[#allocation69_spill] sm:$0xff] }
 0x7b5   : > { %v10364_v63 = vadd.f32 %v10332_v36, %v7364_v29  ;;  %v10331_v13 = vsel %vm10267_vm0, %v10235_v47, %v10299_v4  ;;  %v10237_v55 = vadd.f32 %v18881_v40, %v10103_v43  ;;  %v7371_v11 = vadd.f32 %v18886_v2, %v19856_v35  ;;  %v19857_v43 = vld [vmem:[#allocation70_spill] sm:$0xff] }
 0x7b6   : > { %v10363_v52 = vadd.f32 %v10331_v13, %v7363_v16  ;;  %vm10270_vm2 = vcmp.ge.f32.partialorder %v10238_v7, 0.0  ;;  %v10302_v20 = vmul.f32 0.2, %v10238_v7 }
 0x7b7   : > { %10396 = vst.msk [vmem:[%s18898_s21 + $0x78] sm:$0xff] %vm380_vm1, %v10364_v63  ;;  %vm10269_vm3 = vcmp.ge.f32.partialorder %v10237_v55, 0.0  ;;  %v10301_v48 = vmul.f32 0.2, %v10237_v55  ;;  %v13868_v58 = vpop.f32.mrb[82].mxu1  ;;  %v7374_v63 = vadd.f32 %v19857_v43, %v18886_v2 }
 0x7b8   : > { %10395 = vst.msk [vmem:[%s18898_s21 + $0x70] sm:$0xff] %vm380_vm1, %v10363_v52  ;;  %v10334_v17 = vsel %vm10270_vm2, %v10238_v7, %v10302_v20  ;;  %v10240_v30 = vadd.f32 %v13868_v58, %v18881_v40  ;;  %v10113_v45 = vpop.f32.mrb[83].mxu1  ;;  %v19858_v52 = vld [vmem:[#allocation71_spill] sm:$0xff] }
 0x7b9   : > { %v10366_v8 = vadd.f32 %v10334_v17, %v7366_v32  ;;  %v10333_v31 = vsel %vm10269_vm3, %v10237_v55, %v10301_v48  ;;  %v10239_v21 = vadd.f32 %v18881_v40, %v10113_v45  ;;  %v7373_v20 = vadd.f32 %v18886_v2, %v19858_v52  ;;  %v19859_v45 = vld [vmem:[#allocation72_spill] sm:$0xff] }
 0x7ba   : > { %v10365_v59 = vadd.f32 %v10333_v31, %v7365_v54  ;;  %vm10272_vm12 = vcmp.ge.f32.partialorder %v10240_v30, 0.0  ;;  %v10304_v38 = vmul.f32 0.2, %v10240_v30 }
 0x7bb   : > { %10398 = vst.msk [vmem:[%s18898_s21 + $0x88] sm:$0xff] %vm380_vm1, %v10366_v8  ;;  %vm10271_vm13 = vcmp.ge.f32.partialorder %v10239_v21, 0.0  ;;  %v10303_v49 = vmul.f32 0.2, %v10239_v21  ;;  %v13871_v6 = vpop.f32.mrb[84].mxu1  ;;  %v7376_v8 = vadd.f32 %v19859_v45, %v18886_v2 }
 0x7bc   : > { %10397 = vst.msk [vmem:[%s18898_s21 + $0x80] sm:$0xff] %vm380_vm1, %v10365_v59  ;;  %v10336_v33 = vsel %vm10272_vm12, %v10240_v30, %v10304_v38  ;;  %v10242_v5 = vadd.f32 %v13871_v6, %v18881_v40  ;;  %v10123_v60 = vpop.f32.mrb[85].mxu1  ;;  %v19860_v59 = vld [vmem:[#allocation73_spill] sm:$0xff] }
 0x7bd   : > { %v10368_v25 = vadd.f32 %v10336_v33, %v7368_v41  ;;  %v10335_v15 = vsel %vm10271_vm13, %v10239_v21, %v10303_v49  ;;  %v10241_v22 = vadd.f32 %v18881_v40, %v10123_v60  ;;  %v7375_v38 = vadd.f32 %v18886_v2, %v19860_v59  ;;  %v19861_v60 = vld [vmem:[#allocation74_spill] sm:$0xff] }
 0x7be   : > { %v10367_v53 = vadd.f32 %v10335_v15, %v7367_v0  ;;  %vm10274_vm14 = vcmp.ge.f32.partialorder %v10242_v5, 0.0  ;;  %v10306_v1 = vmul.f32 0.2, %v10242_v5 }
 0x7bf   : > { %10400 = vst.msk [vmem:[%s18898_s21 + $0x98] sm:$0xff] %vm380_vm1, %v10368_v25  ;;  %vm10273_vm15 = vcmp.ge.f32.partialorder %v10241_v22, 0.0  ;;  %v10305_v61 = vmul.f32 0.2, %v10241_v22  ;;  %v13874_v50 = vpop.f32.mrb[86].mxu1  ;;  %v7378_v25 = vadd.f32 %v19861_v60, %v18886_v2 }
 0x7c0   : > { %10399 = vst.msk [vmem:[%s18898_s21 + $0x90] sm:$0xff] %vm380_vm1, %v10367_v53  ;;  %v10338_v39 = vsel %vm10274_vm14, %v10242_v5, %v10306_v1  ;;  %v10244_v14 = vadd.f32 %v13874_v50, %v18881_v40  ;;  %v10133_v9 = vpop.f32.mrb[87].mxu1  ;;  %v19862_v53 = vld [vmem:[#allocation75_spill] sm:$0xff] }
 0x7c1   : > { %v10370_v56 = vadd.f32 %v10338_v39, %v7370_v51  ;;  %v10337_v12 = vsel %vm10273_vm15, %v10241_v22, %v10305_v61  ;;  %v10243_v42 = vadd.f32 %v18881_v40, %v10133_v9  ;;  %v7377_v1 = vadd.f32 %v18886_v2, %v19862_v53  ;;  %v19863_v9 = vld [vmem:[#allocation76_spill] sm:$0xff] }
 0x7c2   : > { %v10369_v37 = vadd.f32 %v10337_v12, %v7369_v19  ;;  %vm10276_vm4 = vcmp.ge.f32.partialorder %v10244_v14, 0.0  ;;  %v10308_v18 = vmul.f32 0.2, %v10244_v14 }
 0x7c3   : > { %10402 = vst.msk [vmem:[%s18898_s21 + $0xa8] sm:$0xff] %vm380_vm1, %v10370_v56  ;;  %vm10275_vm5 = vcmp.ge.f32.partialorder %v10243_v42, 0.0  ;;  %v10307_v3 = vmul.f32 0.2, %v10243_v42  ;;  %v13877_v47 = vpop.f32.mrb[88].mxu1  ;;  %v7380_v56 = vadd.f32 %v19863_v9, %v18886_v2 }
 0x7c4   : > { %10401 = vst.msk [vmem:[%s18898_s21 + $0xa0] sm:$0xff] %vm380_vm1, %v10369_v37  ;;  %v10340_v34 = vsel %vm10276_vm4, %v10244_v14, %v10308_v18  ;;  %v10246_v29 = vadd.f32 %v13877_v47, %v18881_v40  ;;  %v10143_v4 = vpop.f32.mrb[89].mxu1 }
 0x7c5   : > { %v10372_v62 = vadd.f32 %v10340_v34, %v7372_v57  ;;  %v10339_v24 = vsel %vm10275_vm5, %v10243_v42, %v10307_v3  ;;  %v10245_v16 = vadd.f32 %v18881_v40, %v10143_v4  ;;  %v19864_v42 = vld [vmem:[#allocation77_spill] sm:$0xff] }
 0x7c6   : > { %v10371_v36 = vadd.f32 %v10339_v24, %v7371_v11  ;;  %vm10278_vm6 = vcmp.ge.f32.partialorder %v10246_v29, 0.0  ;;  %v10310_v7 = vmul.f32 0.2, %v10246_v29  ;;  %v7379_v37 = vadd.f32 %v18886_v2, %v19864_v42 }
 0x7c7   : > { %10404 = vst.msk [vmem:[%s18898_s21 + $0xb8] sm:$0xff] %vm380_vm1, %v10372_v62  ;;  %vm10277_vm7 = vcmp.ge.f32.partialorder %v10245_v16, 0.0  ;;  %v10309_v13 = vmul.f32 0.2, %v10245_v16  ;;  %v13880_v55 = vpop.f32.mrb[90].mxu1 }
 0x7c8   : > { %10403 = vst.msk [vmem:[%s18898_s21 + $0xb0] sm:$0xff] %vm380_vm1, %v10371_v36  ;;  %v10342_v27 = vsel %vm10278_vm6, %v10246_v29, %v10310_v7  ;;  %v10248_v32 = vadd.f32 %v13880_v55, %v18881_v40  ;;  %v10153_v48 = vpop.f32.mrb[91].mxu1 }
 0x7c9   : > { %v10374_v58 = vadd.f32 %v10342_v27, %v7374_v63  ;;  %v10341_v23 = vsel %vm10277_vm7, %v10245_v16, %v10309_v13  ;;  %v10247_v54 = vadd.f32 %v18881_v40, %v10153_v48 }
 0x7ca   : > { %v10373_v17 = vadd.f32 %v10341_v23, %v7373_v20  ;;  %vm10280_vm8 = vcmp.ge.f32.partialorder %v10248_v32, 0.0  ;;  %v10312_v30 = vmul.f32 0.2, %v10248_v32 }
 0x7cb   : > { %10406 = vst.msk [vmem:[%s18898_s21 + $0xc8] sm:$0xff] %vm380_vm1, %v10374_v58  ;;  %vm10279_vm9 = vcmp.ge.f32.partialorder %v10247_v54, 0.0  ;;  %v10311_v31 = vmul.f32 0.2, %v10247_v54  ;;  %v13883_v21 = vpop.f32.mrb[92].mxu1 }
 0x7cc   : > { %10405 = vst.msk [vmem:[%s18898_s21 + $0xc0] sm:$0xff] %vm380_vm1, %v10373_v17  ;;  %v10344_v28 = vsel %vm10280_vm8, %v10248_v32, %v10312_v30  ;;  %v10250_v41 = vadd.f32 %v13883_v21, %v18881_v40  ;;  %v10163_v49 = vpop.f32.mrb[93].mxu1 }
 0x7cd   : > { %v10376_v6 = vadd.f32 %v10344_v28, %v7376_v8  ;;  %v10343_v44 = vsel %vm10279_vm9, %v10247_v54, %v10311_v31  ;;  %v10249_v0 = vadd.f32 %v18881_v40, %v10163_v49 }
 0x7ce   : > { %v10375_v33 = vadd.f32 %v10343_v44, %v7375_v38  ;;  %vm10282_vm10 = vcmp.ge.f32.partialorder %v10250_v41, 0.0  ;;  %v10314_v5 = vmul.f32 0.2, %v10250_v41 }
 0x7cf   : > { %10408 = vst.msk [vmem:[%s18898_s21 + $0xd8] sm:$0xff] %vm380_vm1, %v10376_v6  ;;  %vm10281_vm11 = vcmp.ge.f32.partialorder %v10249_v0, 0.0  ;;  %v10313_v15 = vmul.f32 0.2, %v10249_v0  ;;  %v13886_v22 = vpop.f32.mrb[94].mxu1 }
 0x7d0   : > { %10407 = vst.msk [vmem:[%s18898_s21 + $0xd0] sm:$0xff] %vm380_vm1, %v10375_v33  ;;  %v10346_v26 = vsel %vm10282_vm10, %v10250_v41, %v10314_v5  ;;  %v10252_v51 = vadd.f32 %v13886_v22, %v18881_v40  ;;  %v10173_v61 = vpop.f32.mrb[95].mxu1 }
 0x7d1   : > { %v10378_v50 = vadd.f32 %v10346_v26, %v7378_v25  ;;  %v10345_v46 = vsel %vm10281_vm11, %v10249_v0, %v10313_v15  ;;  %v10251_v19 = vadd.f32 %v18881_v40, %v10173_v61 }
 0x7d2   : > { %v10377_v39 = vadd.f32 %v10345_v46, %v7377_v1  ;;  %vm10284_vm0 = vcmp.ge.f32.partialorder %v10252_v51, 0.0  ;;  %v10316_v14 = vmul.f32 0.2, %v10252_v51 }
 0x7d3   : > { %10410 = vst.msk [vmem:[%s18898_s21 + $0xe8] sm:$0xff] %vm380_vm1, %v10378_v50  ;;  %vm10283_vm2 = vcmp.ge.f32.partialorder %v10251_v19, 0.0  ;;  %v10315_v12 = vmul.f32 0.2, %v10251_v19 }
 0x7d4   : > { %10409 = vst.msk [vmem:[%s18898_s21 + $0xe0] sm:$0xff] %vm380_vm1, %v10377_v39  ;;  %v10348_v18 = vsel %vm10284_vm0, %v10252_v51, %v10316_v14 }
 0x7d5   : > { %v10380_v10 = vadd.f32 %v10348_v18, %v7380_v56  ;;  %v10347_v57 = vsel %vm10283_vm2, %v10251_v19, %v10315_v12 }
 0x7d6   : > { %v10379_v3 = vadd.f32 %v10347_v57, %v7379_v37 }
 0x7d7   : > { %10412 = vst.msk [vmem:[%s18898_s21 + $0xf8] sm:$0xff] %vm380_vm1, %v10380_v10 }
 0x7d8   : > { %10411 = vst.msk [vmem:[%s18898_s21 + $0xf0] sm:$0xff] %vm380_vm1, %v10379_v3 }
 0x7d9 PF: > { %s20_s13 = sadd.s32 1, %s14830_s13  }
 0x7da   : > { %p17_p4 = scmp.ge.s32.totalorder %s20_s13, 4  }
 0x7dc   :  { %19 = sbr.rel (!%p17_p4) target bundleno = 1 (0x1), region = 120 }

</bundles_post_ra>
